<compile_context>
chip_gen: v7x
topology: tpu7x:2x2x1
jax: 0.10.0
libtpu: 0.0.40
codegen_flags: <defaults>
</compile_context>

<pallas_src>
import functools
import math

import jax
import jax.numpy as jnp
from jax.experimental import pallas as pl
from jax.experimental.pallas import tpu as pltpu


# ---------------------------------------------------------------------------
# Pallas kernel: tiled matmul + bias, optional fused snake prologue / residual epilogue
# ---------------------------------------------------------------------------
def _make_conv_kernel(fuse_snake: bool, fuse_res: bool):
    def kernel(*refs):
        a_ref, w_ref, b_ref = refs[0], refs[1], refs[2]
        idx = 3
        if fuse_snake:
            alpha_ref, inv_a_ref = refs[idx], refs[idx + 1]
            idx += 2
        if fuse_res:
            r_ref = refs[idx]
            idx += 1
        o_ref, acc_ref = refs[idx], refs[idx + 1]

        k = pl.program_id(2)

        @pl.when(k == 0)
        def _init():
            acc_ref[...] = jnp.zeros_like(acc_ref)

        a = a_ref[...]
        if fuse_snake:
            # snake(x) = x + sin(alpha*x)^2 * inv_alpha, computed in f32, back to bf16 for MXU
            xf = a.astype(jnp.float32)
            s = jnp.sin(alpha_ref[...] * xf)
            a = (xf + (s * s) * inv_a_ref[...]).astype(jnp.bfloat16)

        acc_ref[...] += jnp.dot(a, w_ref[...], preferred_element_type=jnp.float32)

        @pl.when(k == pl.num_programs(2) - 1)
        def _finish():
            out = acc_ref[...] + b_ref[...]
            if fuse_res:
                out = out + r_ref[...].astype(jnp.float32)
            o_ref[...] = out.astype(o_ref.dtype)

    return kernel


def _round_up(x, m):
    return ((x + m - 1) // m) * m


def conv_mm_pallas(a, wmat, bias, *, alpha=None, residual=None, out_dtype=jnp.bfloat16):
    """out = [residual +] (snake?(a) @ wmat + bias).

    a: (M, Kd) activation (im2col'd), wmat: (Kd, N), bias: (N,),
    alpha: optional (1, Kd) per-column snake alpha, residual: optional (M, N).
    Returns (M, N) in out_dtype.
    """
    M, Kd = a.shape
    _, N = wmat.shape

    # --- tile selection (padded, lane-dense output) ---
    tm = 512 if M >= 512 else _round_up(M, 8)
    tk = 512 if Kd >= 512 else _round_up(Kd, 128)
    n_pad = _round_up(N, 128)
    if n_pad % 512 == 0:
        tn = 512
    elif n_pad % 256 == 0:
        tn = 256
    else:
        tn = 128
    m_pad = _round_up(M, tm)
    k_pad = _round_up(Kd, tk)

    a_p = jnp.pad(a.astype(jnp.bfloat16), ((0, m_pad - M), (0, k_pad - Kd)))
    w_p = jnp.pad(wmat.astype(jnp.bfloat16), ((0, k_pad - Kd), (0, n_pad - N)))
    b_p = jnp.pad(bias.reshape(1, N).astype(jnp.float32), ((0, 0), (0, n_pad - N)))

    inputs = [a_p, w_p, b_p]
    in_specs = [
        pl.BlockSpec((tm, tk), lambda i, j, k: (i, k)),
        pl.BlockSpec((tk, tn), lambda i, j, k: (k, j)),
        pl.BlockSpec((1, tn), lambda i, j, k: (0, j)),
    ]

    fuse_snake = alpha is not None
    fuse_res = residual is not None
    if fuse_snake:
        alpha_p = jnp.pad(
            alpha.astype(jnp.float32), ((0, 0), (0, k_pad - Kd)), constant_values=1.0
        )
        inv_alpha_p = 1.0 / (alpha_p + 1e-9)  # precomputed reciprocal (tiny, wrapper-side)
        inputs += [alpha_p, inv_alpha_p]
        in_specs += [
            pl.BlockSpec((1, tk), lambda i, j, k: (0, k)),
            pl.BlockSpec((1, tk), lambda i, j, k: (0, k)),
        ]
    if fuse_res:
        r_p = jnp.pad(residual.astype(jnp.bfloat16), ((0, m_pad - M), (0, n_pad - N)))
        inputs.append(r_p)
        in_specs.append(pl.BlockSpec((tm, tn), lambda i, j, k: (i, j)))

    grid = (m_pad // tm, n_pad // tn, k_pad // tk)

    out = pl.pallas_call(
        _make_conv_kernel(fuse_snake, fuse_res),
        out_shape=jax.ShapeDtypeStruct((m_pad, n_pad), out_dtype),
        grid=grid,
        in_specs=in_specs,
        out_specs=pl.BlockSpec((tm, tn), lambda i, j, k: (i, j)),
        scratch_shapes=[pltpu.VMEM((tm, tn), jnp.float32)],
        compiler_params=pltpu.CompilerParams(
            dimension_semantics=("parallel", "parallel", "arbitrary"),
            vmem_limit_bytes=32 * 1024 * 1024,
        ),
    )(*inputs)
    return out[:M, :N]


# ---------------------------------------------------------------------------
# Conv1d wrapper (JAX glue: padding + tap gather; matmul/snake/residual in Pallas)
# ---------------------------------------------------------------------------
def conv1d(x_nlc, conv_p, *, stride=1, dilation=1, padding=0, snake_alpha=None, residual=None):
    """Conv1d matching torch.nn.Conv1d semantics, with optional fused pre-snake and
    fused residual add on the output.

    x_nlc: (B, L, Cin) bf16; conv_p: {"w": (Cout, Cin, K), "b": (Cout,)};
    snake_alpha: optional (Cin,); residual: optional (B, L_out, Cout).
    Returns (B, L_out, Cout) bf16.
    """
    w, b = conv_p["w"], conv_p["b"]
    B, L, Cin = x_nlc.shape
    Cout, _, K = w.shape
    L_out = (L + 2 * padding - dilation * (K - 1) - 1) // stride + 1

    x_pad = jnp.pad(x_nlc, ((0, 0), (padding, padding), (0, 0)))
    if K == 1 and stride == 1:
        a = x_pad.reshape(B * L_out, Cin)
    else:
        taps = [
            x_pad[:, j * dilation : j * dilation + (L_out - 1) * stride + 1 : stride, :]
            for j in range(K)
        ]
        a = jnp.stack(taps, axis=2).reshape(B * L_out, K * Cin)

    wmat = jnp.transpose(w, (2, 1, 0)).reshape(K * Cin, Cout)

    alpha = None
    if snake_alpha is not None:
        # columns of `a` are (tap, channel) with channel fastest -> tile alpha K times
        alpha = jnp.tile(snake_alpha.reshape(1, Cin), (1, K))

    r2d = None
    if residual is not None:
        r2d = residual.reshape(B * L_out, Cout)

    out = conv_mm_pallas(a, wmat, b, alpha=alpha, residual=r2d, out_dtype=jnp.bfloat16)
    return out.reshape(B, L_out, Cout)


# ---------------------------------------------------------------------------
# Parameter init (deterministic, synthetic — shapes match the PyTorch module)
# ---------------------------------------------------------------------------
def _conv_params(key, c_in, c_out, k):
    kw, kb = jax.random.split(key)
    scale = 1.0 / math.sqrt(c_in * k)
    return {
        "w": jax.random.normal(kw, (c_out, c_in, k), jnp.float32) * scale,
        "b": jax.random.normal(kb, (c_out,), jnp.float32) * 0.01,
    }


def make_params(key, d_model, strides, d_latent):
    idx = [0]

    def nk():
        idx[0] += 1
        return jax.random.fold_in(key, idx[0])

    p = {}
    p["conv0"] = _conv_params(nk(), 1, d_model, 7)  # stem: Conv1d(1, d_model, 7, pad=3)
    d = d_model
    for bi, s in enumerate(strides):
        d_in = d
        d *= 2
        for ri, dil in enumerate((1, 3, 9)):
            pre = f"b{bi}_r{ri}_"
            p[pre + "alpha1"] = jnp.ones((d_in,), jnp.float32)  # Snake init = ones
            p[pre + "conv1"] = _conv_params(nk(), d_in, d_in, 7)
            p[pre + "alpha2"] = jnp.ones((d_in,), jnp.float32)
            p[pre + "conv2"] = _conv_params(nk(), d_in, d_in, 1)
        p[f"b{bi}_alpha"] = jnp.ones((d_in,), jnp.float32)
        p[f"b{bi}_conv"] = _conv_params(nk(), d_in, d, 2 * s)
    p["alpha_out"] = jnp.ones((d,), jnp.float32)
    p["conv_out"] = _conv_params(nk(), d, d_latent, 3)
    return p


# ---------------------------------------------------------------------------
# Forward pass (mirrors DACEncoder.forward; every Snake fused into the next conv)
# ---------------------------------------------------------------------------
def dac_encoder_forward(params, x_ncl, d_model, strides):
    x = jnp.transpose(x_ncl, (0, 2, 1)).astype(jnp.bfloat16)  # NCL -> NLC, bf16 activations
    x = conv1d(x, params["conv0"], padding=3)

    d = d_model
    for bi, s in enumerate(strides):
        d_in = d
        d *= 2
        # 3 ResidualUnits on d_in channels
        for ri, dil in enumerate((1, 3, 9)):
            pre = f"b{bi}_r{ri}_"
            res = x
            # Snake1d + dilated Conv1d(k=7), snake fused as kernel prologue
            y = conv1d(
                x,
                params[pre + "conv1"],
                dilation=dil,
                padding=(7 - 1) * dil // 2,
                snake_alpha=params[pre + "alpha1"],
            )
            # residual trim (no-op for these paddings, kept for fidelity)
            pad_t = (res.shape[1] - y.shape[1]) // 2
            if pad_t > 0:
                res = res[:, pad_t : res.shape[1] - pad_t, :]
            # Snake1d + pointwise Conv1d(k=1), snake prologue + residual add epilogue fused
            x = conv1d(
                y,
                params[pre + "conv2"],
                snake_alpha=params[pre + "alpha2"],
                residual=res,
            )
        # Snake1d + downsampling Conv1d(d_in, d, k=2s, stride=s, pad=ceil(s/2)), snake fused
        x = conv1d(
            x,
            params[f"b{bi}_conv"],
            stride=s,
            padding=math.ceil(s / 2),
            snake_alpha=params[f"b{bi}_alpha"],
        )

    # final Snake1d + Conv1d(d, d_latent, 3, pad=1), snake fused
    x = conv1d(x, params["conv_out"], padding=1, snake_alpha=params["alpha_out"])
    return jnp.transpose(x, (0, 2, 1)).astype(jnp.float32)  # NLC -> NCL (PyTorch layout)


# ---------------------------------------------------------------------------
if __name__ == "__main__":
    # Small config consistent with the module structure:
    #   DACEncoder(d_model=8, strides=[2, 2], d_latent=24), input (B=2, C=1, L=64)
    d_model, strides, d_latent = 8, (2, 2), 24
    B, L = 2, 64

    key = jax.random.PRNGKey(0)
    kp, kx = jax.random.split(key)
    params = make_params(kp, d_model, strides, d_latent)
    x = jax.random.normal(kx, (B, 1, L), jnp.float32)  # PyTorch NCL input

    fwd = jax.jit(functools.partial(dac_encoder_forward, d_model=d_model, strides=strides))
    out = jax.block_until_ready(fwd(params, x))

    expected_L = L
    for s in strides:
        expected_L = (expected_L + 2 * math.ceil(s / 2) - (2 * s - 1) - 1) // s + 1
    assert out.shape == (B, d_latent, expected_L), out.shape
    assert out.dtype == jnp.float32
    assert bool(jnp.all(jnp.isfinite(out)))
    print("KERNEL_OK")
</pallas_src>

<mosaic_0001>
module attributes {stable_mosaic.version = 11 : i64} {
  func.func @kernel(%arg0: i32, %arg1: i32, %arg2: i32, %arg3: memref<128x128xbf16, #tpu.memory_space<vmem>>, %arg4: memref<128x128xbf16, #tpu.memory_space<vmem>>, %arg5: memref<1x128xf32, #tpu.memory_space<vmem>>, %arg6: memref<128x128xbf16, #tpu.memory_space<vmem>>, %arg7: memref<128x128xf32, #tpu.memory_space<vmem>>) attributes {dimension_semantics = [#tpu.dimension_semantics<parallel>, #tpu.dimension_semantics<parallel>, #tpu.dimension_semantics<arbitrary>], iteration_bounds = array<i64: 1, 1, 1>, scalar_prefetch = 0 : i64, scratch_operands = 1 : i64, tpu.core_type = #tpu.core_type<tc>, window_params = [{transform_indices = @transform_0, window_bounds = array<i64: 128, 128>}, {transform_indices = @transform_1, window_bounds = array<i64: 128, 128>}, {transform_indices = @transform_2, window_bounds = array<i64: 1, 128>}, {transform_indices = @transform_3, window_bounds = array<i64: 128, 128>}]} {
    %c0_i32 = arith.constant 0 : i32
    %0 = arith.cmpi eq, %arg2, %c0_i32 : i32
    %1 = arith.extui %0 : i1 to i32
    %c0_i32_0 = arith.constant 0 : i32
    %2 = arith.cmpi ne, %1, %c0_i32_0 : i32
    scf.if %2 {
      %cst_10 = arith.constant 0.000000e+00 : f32
      %12 = vector.broadcast %cst_10 : f32 to vector<128x128xf32>
      %c0_11 = arith.constant 0 : index
      %c0_12 = arith.constant 0 : index
      %13 = vector.load %arg7[%c0_11, %c0_12] : memref<128x128xf32, #tpu.memory_space<vmem>>, vector<128x128xf32>
      tpu.vector_store %arg7[%c0_11, %c0_12], %12 {strides = array<i32>} : memref<128x128xf32, #tpu.memory_space<vmem>>, vector<128x128xf32>,
    } else {
    }
    %c0 = arith.constant 0 : index
    %c0_1 = arith.constant 0 : index
    %3 = vector.load %arg3[%c0, %c0_1] : memref<128x128xbf16, #tpu.memory_space<vmem>>, vector<128x128xbf16>
    %c0_2 = arith.constant 0 : index
    %c0_3 = arith.constant 0 : index
    %4 = vector.load %arg7[%c0_2, %c0_3] : memref<128x128xf32, #tpu.memory_space<vmem>>, vector<128x128xf32>
    %c0_4 = arith.constant 0 : index
    %c0_5 = arith.constant 0 : index
    %5 = vector.load %arg4[%c0_4, %c0_5] : memref<128x128xbf16, #tpu.memory_space<vmem>>, vector<128x128xbf16>
    %cst = arith.constant dense<0.000000e+00> : vector<128x128xf32>
    %6 = tpu.matmul %3, %5, %cst {dimension_numbers = #tpu.dot_dimension_numbers<[1], [0], [0], [1], [0, 0, 1, 1], [], []>} : vector<128x128xbf16>, vector<128x128xbf16>, vector<128x128xf32> -> vector<128x128xf32>
    %7 = arith.addf %4, %6 : vector<128x128xf32>
    %c0_6 = arith.constant 0 : index
    %c0_7 = arith.constant 0 : index
    %8 = vector.load %arg7[%c0_6, %c0_7] : memref<128x128xf32, #tpu.memory_space<vmem>>, vector<128x128xf32>
    tpu.vector_store %arg7[%c0_6, %c0_7], %7 {strides = array<i32>} : memref<128x128xf32, #tpu.memory_space<vmem>>, vector<128x128xf32>,
    %c0_i32_8 = arith.constant 0 : i32
    %9 = arith.cmpi eq, %arg2, %c0_i32_8 : i32
    %10 = arith.extui %9 : i1 to i32
    %c0_i32_9 = arith.constant 0 : i32
    %11 = arith.cmpi ne, %10, %c0_i32_9 : i32
    scf.if %11 {
      %c0_10 = arith.constant 0 : index
      %c0_11 = arith.constant 0 : index
      %12 = vector.load %arg7[%c0_10, %c0_11] : memref<128x128xf32, #tpu.memory_space<vmem>>, vector<128x128xf32>
      %c0_12 = arith.constant 0 : index
      %c0_13 = arith.constant 0 : index
      %13 = vector.load %arg5[%c0_12, %c0_13] : memref<1x128xf32, #tpu.memory_space<vmem>>, vector<1x128xf32>
      %14 = vector.broadcast %13 : vector<1x128xf32> to vector<128x128xf32>
      %15 = arith.addf %12, %14 : vector<128x128xf32>
      %16 = arith.truncf %15 : vector<128x128xf32> to vector<128x128xbf16>
      %c0_14 = arith.constant 0 : index
      %c0_15 = arith.constant 0 : index
      %17 = vector.load %arg6[%c0_14, %c0_15] : memref<128x128xbf16, #tpu.memory_space<vmem>>, vector<128x128xbf16>
      tpu.vector_store %arg6[%c0_14, %c0_15], %16 {strides = array<i32>} : memref<128x128xbf16, #tpu.memory_space<vmem>>, vector<128x128xbf16>,
    } else {
    }
    return
  }
  func.func @transform_0(%arg0: i32, %arg1: i32, %arg2: i32) -> (i32, i32) {
    %c0_i32 = arith.constant 0 : i32
    return %arg0, %arg2 : i32, i32
  }
  func.func @transform_1(%arg0: i32, %arg1: i32, %arg2: i32) -> (i32, i32) {
    %c0_i32 = arith.constant 0 : i32
    return %arg2, %arg1 : i32, i32
  }
  func.func @transform_2(%arg0: i32, %arg1: i32, %arg2: i32) -> (i32, i32) {
    %c0_i32 = arith.constant 0 : i32
    %c0_i32_0 = arith.constant 0 : i32
    return %c0_i32, %arg1 : i32, i32
  }
  func.func @transform_3(%arg0: i32, %arg1: i32, %arg2: i32) -> (i32, i32) {
    %c0_i32 = arith.constant 0 : i32
    return %arg0, %arg1 : i32, i32
  }
}

module attributes {stable_mosaic.version = 11 : i64} {
  func.func @kernel(%arg0: i32, %arg1: i32, %arg2: i32, %arg3: memref<128x128xbf16, #tpu.memory_space<vmem>>, %arg4: memref<128x128xbf16, #tpu.memory_space<vmem>>, %arg5: memref<1x128xf32, #tpu.memory_space<vmem>>, %arg6: memref<1x128xf32, #tpu.memory_space<vmem>>, %arg7: memref<1x128xf32, #tpu.memory_space<vmem>>, %arg8: memref<128x128xbf16, #tpu.memory_space<vmem>>, %arg9: memref<128x128xf32, #tpu.memory_space<vmem>>) attributes {dimension_semantics = [#tpu.dimension_semantics<parallel>, #tpu.dimension_semantics<parallel>, #tpu.dimension_semantics<arbitrary>], iteration_bounds = array<i64: 1, 1, 1>, scalar_prefetch = 0 : i64, scratch_operands = 1 : i64, tpu.core_type = #tpu.core_type<tc>, window_params = [{transform_indices = @transform_0, window_bounds = array<i64: 128, 128>}, {transform_indices = @transform_1, window_bounds = array<i64: 128, 128>}, {transform_indices = @transform_2, window_bounds = array<i64: 1, 128>}, {transform_indices = @transform_3, window_bounds = array<i64: 1, 128>}, {transform_indices = @transform_4, window_bounds = array<i64: 1, 128>}, {transform_indices = @transform_5, window_bounds = array<i64: 128, 128>}]} {
    %c0_i32 = arith.constant 0 : i32
    %0 = arith.cmpi eq, %arg2, %c0_i32 : i32
    %1 = arith.extui %0 : i1 to i32
    %c0_i32_0 = arith.constant 0 : i32
    %2 = arith.cmpi ne, %1, %c0_i32_0 : i32
    scf.if %2 {
      %cst_14 = arith.constant 0.000000e+00 : f32
      %23 = vector.broadcast %cst_14 : f32 to vector<128x128xf32>
      %c0_15 = arith.constant 0 : index
      %c0_16 = arith.constant 0 : index
      %24 = vector.load %arg9[%c0_15, %c0_16] : memref<128x128xf32, #tpu.memory_space<vmem>>, vector<128x128xf32>
      tpu.vector_store %arg9[%c0_15, %c0_16], %23 {strides = array<i32>} : memref<128x128xf32, #tpu.memory_space<vmem>>, vector<128x128xf32>,
    } else {
    }
    %c0 = arith.constant 0 : index
    %c0_1 = arith.constant 0 : index
    %3 = vector.load %arg3[%c0, %c0_1] : memref<128x128xbf16, #tpu.memory_space<vmem>>, vector<128x128xbf16>
    %4 = arith.extf %3 : vector<128x128xbf16> to vector<128x128xf32>
    %c0_2 = arith.constant 0 : index
    %c0_3 = arith.constant 0 : index
    %5 = vector.load %arg6[%c0_2, %c0_3] : memref<1x128xf32, #tpu.memory_space<vmem>>, vector<1x128xf32>
    %6 = vector.broadcast %5 : vector<1x128xf32> to vector<128x128xf32>
    %7 = arith.mulf %6, %4 : vector<128x128xf32>
    %8 = math.sin %7 : vector<128x128xf32>
    %9 = arith.mulf %8, %8 : vector<128x128xf32>
    %c0_4 = arith.constant 0 : index
    %c0_5 = arith.constant 0 : index
    %10 = vector.load %arg7[%c0_4, %c0_5] : memref<1x128xf32, #tpu.memory_space<vmem>>, vector<1x128xf32>
    %11 = vector.broadcast %10 : vector<1x128xf32> to vector<128x128xf32>
    %12 = arith.mulf %9, %11 : vector<128x128xf32>
    %13 = arith.addf %4, %12 : vector<128x128xf32>
    %14 = arith.truncf %13 : vector<128x128xf32> to vector<128x128xbf16>
    %c0_6 = arith.constant 0 : index
    %c0_7 = arith.constant 0 : index
    %15 = vector.load %arg9[%c0_6, %c0_7] : memref<128x128xf32, #tpu.memory_space<vmem>>, vector<128x128xf32>
    %c0_8 = arith.constant 0 : index
    %c0_9 = arith.constant 0 : index
    %16 = vector.load %arg4[%c0_8, %c0_9] : memref<128x128xbf16, #tpu.memory_space<vmem>>, vector<128x128xbf16>
    %cst = arith.constant dense<0.000000e+00> : vector<128x128xf32>
    %17 = tpu.matmul %14, %16, %cst {dimension_numbers = #tpu.dot_dimension_numbers<[1], [0], [0], [1], [0, 0, 1, 1], [], []>} : vector<128x128xbf16>, vector<128x128xbf16>, vector<128x128xf32> -> vector<128x128xf32>
    %18 = arith.addf %15, %17 : vector<128x128xf32>
    %c0_10 = arith.constant 0 : index
    %c0_11 = arith.constant 0 : index
    %19 = vector.load %arg9[%c0_10, %c0_11] : memref<128x128xf32, #tpu.memory_space<vmem>>, vector<128x128xf32>
    tpu.vector_store %arg9[%c0_10, %c0_11], %18 {strides = array<i32>} : memref<128x128xf32, #tpu.memory_space<vmem>>, vector<128x128xf32>,
    %c0_i32_12 = arith.constant 0 : i32
    %20 = arith.cmpi eq, %arg2, %c0_i32_12 : i32
    %21 = arith.extui %20 : i1 to i32
    %c0_i32_13 = arith.constant 0 : i32
    %22 = arith.cmpi ne, %21, %c0_i32_13 : i32
    scf.if %22 {
      %c0_14 = arith.constant 0 : index
      %c0_15 = arith.constant 0 : index
      %23 = vector.load %arg9[%c0_14, %c0_15] : memref<128x128xf32, #tpu.memory_space<vmem>>, vector<128x128xf32>
      %c0_16 = arith.constant 0 : index
      %c0_17 = arith.constant 0 : index
      %24 = vector.load %arg5[%c0_16, %c0_17] : memref<1x128xf32, #tpu.memory_space<vmem>>, vector<1x128xf32>
      %25 = vector.broadcast %24 : vector<1x128xf32> to vector<128x128xf32>
      %26 = arith.addf %23, %25 : vector<128x128xf32>
      %27 = arith.truncf %26 : vector<128x128xf32> to vector<128x128xbf16>
      %c0_18 = arith.constant 0 : index
      %c0_19 = arith.constant 0 : index
      %28 = vector.load %arg8[%c0_18, %c0_19] : memref<128x128xbf16, #tpu.memory_space<vmem>>, vector<128x128xbf16>
      tpu.vector_store %arg8[%c0_18, %c0_19], %27 {strides = array<i32>} : memref<128x128xbf16, #tpu.memory_space<vmem>>, vector<128x128xbf16>,
    } else {
    }
    return
  }
  func.func @transform_0(%arg0: i32, %arg1: i32, %arg2: i32) -> (i32, i32) {
    %c0_i32 = arith.constant 0 : i32
    return %arg0, %arg2 : i32, i32
  }
  func.func @transform_1(%arg0: i32, %arg1: i32, %arg2: i32) -> (i32, i32) {
    %c0_i32 = arith.constant 0 : i32
    return %arg2, %arg1 : i32, i32
  }
  func.func @transform_2(%arg0: i32, %arg1: i32, %arg2: i32) -> (i32, i32) {
    %c0_i32 = arith.constant 0 : i32
    %c0_i32_0 = arith.constant 0 : i32
    return %c0_i32, %arg1 : i32, i32
  }
  func.func @transform_3(%arg0: i32, %arg1: i32, %arg2: i32) -> (i32, i32) {
    %c0_i32 = arith.constant 0 : i32
    %c0_i32_0 = arith.constant 0 : i32
    return %c0_i32, %arg2 : i32, i32
  }
  func.func @transform_4(%arg0: i32, %arg1: i32, %arg2: i32) -> (i32, i32) {
    %c0_i32 = arith.constant 0 : i32
    %c0_i32_0 = arith.constant 0 : i32
    return %c0_i32, %arg2 : i32, i32
  }
  func.func @transform_5(%arg0: i32, %arg1: i32, %arg2: i32) -> (i32, i32) {
    %c0_i32 = arith.constant 0 : i32
    return %arg0, %arg1 : i32, i32
  }
}

module attributes {stable_mosaic.version = 11 : i64} {
  func.func @kernel(%arg0: i32, %arg1: i32, %arg2: i32, %arg3: memref<128x128xbf16, #tpu.memory_space<vmem>>, %arg4: memref<128x128xbf16, #tpu.memory_space<vmem>>, %arg5: memref<1x128xf32, #tpu.memory_space<vmem>>, %arg6: memref<1x128xf32, #tpu.memory_space<vmem>>, %arg7: memref<1x128xf32, #tpu.memory_space<vmem>>, %arg8: memref<128x128xbf16, #tpu.memory_space<vmem>>, %arg9: memref<128x128xbf16, #tpu.memory_space<vmem>>, %arg10: memref<128x128xf32, #tpu.memory_space<vmem>>) attributes {dimension_semantics = [#tpu.dimension_semantics<parallel>, #tpu.dimension_semantics<parallel>, #tpu.dimension_semantics<arbitrary>], iteration_bounds = array<i64: 1, 1, 1>, scalar_prefetch = 0 : i64, scratch_operands = 1 : i64, tpu.core_type = #tpu.core_type<tc>, window_params = [{transform_indices = @transform_0, window_bounds = array<i64: 128, 128>}, {transform_indices = @transform_1, window_bounds = array<i64: 128, 128>}, {transform_indices = @transform_2, window_bounds = array<i64: 1, 128>}, {transform_indices = @transform_3, window_bounds = array<i64: 1, 128>}, {transform_indices = @transform_4, window_bounds = array<i64: 1, 128>}, {transform_indices = @transform_5, window_bounds = array<i64: 128, 128>}, {transform_indices = @transform_6, window_bounds = array<i64: 128, 128>}]} {
    %c0_i32 = arith.constant 0 : i32
    %0 = arith.cmpi eq, %arg2, %c0_i32 : i32
    %1 = arith.extui %0 : i1 to i32
    %c0_i32_0 = arith.constant 0 : i32
    %2 = arith.cmpi ne, %1, %c0_i32_0 : i32
    scf.if %2 {
      %cst_14 = arith.constant 0.000000e+00 : f32
      %23 = vector.broadcast %cst_14 : f32 to vector<128x128xf32>
      %c0_15 = arith.constant 0 : index
      %c0_16 = arith.constant 0 : index
      %24 = vector.load %arg10[%c0_15, %c0_16] : memref<128x128xf32, #tpu.memory_space<vmem>>, vector<128x128xf32>
      tpu.vector_store %arg10[%c0_15, %c0_16], %23 {strides = array<i32>} : memref<128x128xf32, #tpu.memory_space<vmem>>, vector<128x128xf32>,
    } else {
    }
    %c0 = arith.constant 0 : index
    %c0_1 = arith.constant 0 : index
    %3 = vector.load %arg3[%c0, %c0_1] : memref<128x128xbf16, #tpu.memory_space<vmem>>, vector<128x128xbf16>
    %4 = arith.extf %3 : vector<128x128xbf16> to vector<128x128xf32>
    %c0_2 = arith.constant 0 : index
    %c0_3 = arith.constant 0 : index
    %5 = vector.load %arg6[%c0_2, %c0_3] : memref<1x128xf32, #tpu.memory_space<vmem>>, vector<1x128xf32>
    %6 = vector.broadcast %5 : vector<1x128xf32> to vector<128x128xf32>
    %7 = arith.mulf %6, %4 : vector<128x128xf32>
    %8 = math.sin %7 : vector<128x128xf32>
    %9 = arith.mulf %8, %8 : vector<128x128xf32>
    %c0_4 = arith.constant 0 : index
    %c0_5 = arith.constant 0 : index
    %10 = vector.load %arg7[%c0_4, %c0_5] : memref<1x128xf32, #tpu.memory_space<vmem>>, vector<1x128xf32>
    %11 = vector.broadcast %10 : vector<1x128xf32> to vector<128x128xf32>
    %12 = arith.mulf %9, %11 : vector<128x128xf32>
    %13 = arith.addf %4, %12 : vector<128x128xf32>
    %14 = arith.truncf %13 : vector<128x128xf32> to vector<128x128xbf16>
    %c0_6 = arith.constant 0 : index
    %c0_7 = arith.constant 0 : index
    %15 = vector.load %arg10[%c0_6, %c0_7] : memref<128x128xf32, #tpu.memory_space<vmem>>, vector<128x128xf32>
    %c0_8 = arith.constant 0 : index
    %c0_9 = arith.constant 0 : index
    %16 = vector.load %arg4[%c0_8, %c0_9] : memref<128x128xbf16, #tpu.memory_space<vmem>>, vector<128x128xbf16>
    %cst = arith.constant dense<0.000000e+00> : vector<128x128xf32>
    %17 = tpu.matmul %14, %16, %cst {dimension_numbers = #tpu.dot_dimension_numbers<[1], [0], [0], [1], [0, 0, 1, 1], [], []>} : vector<128x128xbf16>, vector<128x128xbf16>, vector<128x128xf32> -> vector<128x128xf32>
    %18 = arith.addf %15, %17 : vector<128x128xf32>
    %c0_10 = arith.constant 0 : index
    %c0_11 = arith.constant 0 : index
    %19 = vector.load %arg10[%c0_10, %c0_11] : memref<128x128xf32, #tpu.memory_space<vmem>>, vector<128x128xf32>
    tpu.vector_store %arg10[%c0_10, %c0_11], %18 {strides = array<i32>} : memref<128x128xf32, #tpu.memory_space<vmem>>, vector<128x128xf32>,
    %c0_i32_12 = arith.constant 0 : i32
    %20 = arith.cmpi eq, %arg2, %c0_i32_12 : i32
    %21 = arith.extui %20 : i1 to i32
    %c0_i32_13 = arith.constant 0 : i32
    %22 = arith.cmpi ne, %21, %c0_i32_13 : i32
    scf.if %22 {
      %c0_14 = arith.constant 0 : index
      %c0_15 = arith.constant 0 : index
      %23 = vector.load %arg10[%c0_14, %c0_15] : memref<128x128xf32, #tpu.memory_space<vmem>>, vector<128x128xf32>
      %c0_16 = arith.constant 0 : index
      %c0_17 = arith.constant 0 : index
      %24 = vector.load %arg5[%c0_16, %c0_17] : memref<1x128xf32, #tpu.memory_space<vmem>>, vector<1x128xf32>
      %25 = vector.broadcast %24 : vector<1x128xf32> to vector<128x128xf32>
      %26 = arith.addf %23, %25 : vector<128x128xf32>
      %c0_18 = arith.constant 0 : index
      %c0_19 = arith.constant 0 : index
      %27 = vector.load %arg8[%c0_18, %c0_19] : memref<128x128xbf16, #tpu.memory_space<vmem>>, vector<128x128xbf16>
      %28 = arith.extf %27 : vector<128x128xbf16> to vector<128x128xf32>
      %29 = arith.addf %26, %28 : vector<128x128xf32>
      %30 = arith.truncf %29 : vector<128x128xf32> to vector<128x128xbf16>
      %c0_20 = arith.constant 0 : index
      %c0_21 = arith.constant 0 : index
      %31 = vector.load %arg9[%c0_20, %c0_21] : memref<128x128xbf16, #tpu.memory_space<vmem>>, vector<128x128xbf16>
      tpu.vector_store %arg9[%c0_20, %c0_21], %30 {strides = array<i32>} : memref<128x128xbf16, #tpu.memory_space<vmem>>, vector<128x128xbf16>,
    } else {
    }
    return
  }
  func.func @transform_0(%arg0: i32, %arg1: i32, %arg2: i32) -> (i32, i32) {
    %c0_i32 = arith.constant 0 : i32
    return %arg0, %arg2 : i32, i32
  }
  func.func @transform_1(%arg0: i32, %arg1: i32, %arg2: i32) -> (i32, i32) {
    %c0_i32 = arith.constant 0 : i32
    return %arg2, %arg1 : i32, i32
  }
  func.func @transform_2(%arg0: i32, %arg1: i32, %arg2: i32) -> (i32, i32) {
    %c0_i32 = arith.constant 0 : i32
    %c0_i32_0 = arith.constant 0 : i32
    return %c0_i32, %arg1 : i32, i32
  }
  func.func @transform_3(%arg0: i32, %arg1: i32, %arg2: i32) -> (i32, i32) {
    %c0_i32 = arith.constant 0 : i32
    %c0_i32_0 = arith.constant 0 : i32
    return %c0_i32, %arg2 : i32, i32
  }
  func.func @transform_4(%arg0: i32, %arg1: i32, %arg2: i32) -> (i32, i32) {
    %c0_i32 = arith.constant 0 : i32
    %c0_i32_0 = arith.constant 0 : i32
    return %c0_i32, %arg2 : i32, i32
  }
  func.func @transform_5(%arg0: i32, %arg1: i32, %arg2: i32) -> (i32, i32) {
    %c0_i32 = arith.constant 0 : i32
    return %arg0, %arg1 : i32, i32
  }
  func.func @transform_6(%arg0: i32, %arg1: i32, %arg2: i32) -> (i32, i32) {
    %c0_i32 = arith.constant 0 : i32
    return %arg0, %arg1 : i32, i32
  }
}

module attributes {stable_mosaic.version = 11 : i64} {
  func.func @kernel(%arg0: i32, %arg1: i32, %arg2: i32, %arg3: memref<64x128xbf16, #tpu.memory_space<vmem>>, %arg4: memref<128x128xbf16, #tpu.memory_space<vmem>>, %arg5: memref<1x128xf32, #tpu.memory_space<vmem>>, %arg6: memref<1x128xf32, #tpu.memory_space<vmem>>, %arg7: memref<1x128xf32, #tpu.memory_space<vmem>>, %arg8: memref<64x128xbf16, #tpu.memory_space<vmem>>, %arg9: memref<64x128xf32, #tpu.memory_space<vmem>>) attributes {dimension_semantics = [#tpu.dimension_semantics<parallel>, #tpu.dimension_semantics<parallel>, #tpu.dimension_semantics<arbitrary>], iteration_bounds = array<i64: 1, 1, 1>, scalar_prefetch = 0 : i64, scratch_operands = 1 : i64, tpu.core_type = #tpu.core_type<tc>, window_params = [{transform_indices = @transform_0, window_bounds = array<i64: 64, 128>}, {transform_indices = @transform_1, window_bounds = array<i64: 128, 128>}, {transform_indices = @transform_2, window_bounds = array<i64: 1, 128>}, {transform_indices = @transform_3, window_bounds = array<i64: 1, 128>}, {transform_indices = @transform_4, window_bounds = array<i64: 1, 128>}, {transform_indices = @transform_5, window_bounds = array<i64: 64, 128>}]} {
    %c0_i32 = arith.constant 0 : i32
    %0 = arith.cmpi eq, %arg2, %c0_i32 : i32
    %1 = arith.extui %0 : i1 to i32
    %c0_i32_0 = arith.constant 0 : i32
    %2 = arith.cmpi ne, %1, %c0_i32_0 : i32
    scf.if %2 {
      %cst_14 = arith.constant 0.000000e+00 : f32
      %23 = vector.broadcast %cst_14 : f32 to vector<64x128xf32>
      %c0_15 = arith.constant 0 : index
      %c0_16 = arith.constant 0 : index
      %24 = vector.load %arg9[%c0_15, %c0_16] : memref<64x128xf32, #tpu.memory_space<vmem>>, vector<64x128xf32>
      tpu.vector_store %arg9[%c0_15, %c0_16], %23 {strides = array<i32>} : memref<64x128xf32, #tpu.memory_space<vmem>>, vector<64x128xf32>,
    } else {
    }
    %c0 = arith.constant 0 : index
    %c0_1 = arith.constant 0 : index
    %3 = vector.load %arg3[%c0, %c0_1] : memref<64x128xbf16, #tpu.memory_space<vmem>>, vector<64x128xbf16>
    %4 = arith.extf %3 : vector<64x128xbf16> to vector<64x128xf32>
    %c0_2 = arith.constant 0 : index
    %c0_3 = arith.constant 0 : index
    %5 = vector.load %arg6[%c0_2, %c0_3] : memref<1x128xf32, #tpu.memory_space<vmem>>, vector<1x128xf32>
    %6 = vector.broadcast %5 : vector<1x128xf32> to vector<64x128xf32>
    %7 = arith.mulf %6, %4 : vector<64x128xf32>
    %8 = math.sin %7 : vector<64x128xf32>
    %9 = arith.mulf %8, %8 : vector<64x128xf32>
    %c0_4 = arith.constant 0 : index
    %c0_5 = arith.constant 0 : index
    %10 = vector.load %arg7[%c0_4, %c0_5] : memref<1x128xf32, #tpu.memory_space<vmem>>, vector<1x128xf32>
    %11 = vector.broadcast %10 : vector<1x128xf32> to vector<64x128xf32>
    %12 = arith.mulf %9, %11 : vector<64x128xf32>
    %13 = arith.addf %4, %12 : vector<64x128xf32>
    %14 = arith.truncf %13 : vector<64x128xf32> to vector<64x128xbf16>
    %c0_6 = arith.constant 0 : index
    %c0_7 = arith.constant 0 : index
    %15 = vector.load %arg9[%c0_6, %c0_7] : memref<64x128xf32, #tpu.memory_space<vmem>>, vector<64x128xf32>
    %c0_8 = arith.constant 0 : index
    %c0_9 = arith.constant 0 : index
    %16 = vector.load %arg4[%c0_8, %c0_9] : memref<128x128xbf16, #tpu.memory_space<vmem>>, vector<128x128xbf16>
    %cst = arith.constant dense<0.000000e+00> : vector<64x128xf32>
    %17 = tpu.matmul %14, %16, %cst {dimension_numbers = #tpu.dot_dimension_numbers<[1], [0], [0], [1], [0, 0, 1, 1], [], []>} : vector<64x128xbf16>, vector<128x128xbf16>, vector<64x128xf32> -> vector<64x128xf32>
    %18 = arith.addf %15, %17 : vector<64x128xf32>
    %c0_10 = arith.constant 0 : index
    %c0_11 = arith.constant 0 : index
    %19 = vector.load %arg9[%c0_10, %c0_11] : memref<64x128xf32, #tpu.memory_space<vmem>>, vector<64x128xf32>
    tpu.vector_store %arg9[%c0_10, %c0_11], %18 {strides = array<i32>} : memref<64x128xf32, #tpu.memory_space<vmem>>, vector<64x128xf32>,
    %c0_i32_12 = arith.constant 0 : i32
    %20 = arith.cmpi eq, %arg2, %c0_i32_12 : i32
    %21 = arith.extui %20 : i1 to i32
    %c0_i32_13 = arith.constant 0 : i32
    %22 = arith.cmpi ne, %21, %c0_i32_13 : i32
    scf.if %22 {
      %c0_14 = arith.constant 0 : index
      %c0_15 = arith.constant 0 : index
      %23 = vector.load %arg9[%c0_14, %c0_15] : memref<64x128xf32, #tpu.memory_space<vmem>>, vector<64x128xf32>
      %c0_16 = arith.constant 0 : index
      %c0_17 = arith.constant 0 : index
      %24 = vector.load %arg5[%c0_16, %c0_17] : memref<1x128xf32, #tpu.memory_space<vmem>>, vector<1x128xf32>
      %25 = vector.broadcast %24 : vector<1x128xf32> to vector<64x128xf32>
      %26 = arith.addf %23, %25 : vector<64x128xf32>
      %27 = arith.truncf %26 : vector<64x128xf32> to vector<64x128xbf16>
      %c0_18 = arith.constant 0 : index
      %c0_19 = arith.constant 0 : index
      %28 = vector.load %arg8[%c0_18, %c0_19] : memref<64x128xbf16, #tpu.memory_space<vmem>>, vector<64x128xbf16>
      tpu.vector_store %arg8[%c0_18, %c0_19], %27 {strides = array<i32>} : memref<64x128xbf16, #tpu.memory_space<vmem>>, vector<64x128xbf16>,
    } else {
    }
    return
  }
  func.func @transform_0(%arg0: i32, %arg1: i32, %arg2: i32) -> (i32, i32) {
    %c0_i32 = arith.constant 0 : i32
    return %arg0, %arg2 : i32, i32
  }
  func.func @transform_1(%arg0: i32, %arg1: i32, %arg2: i32) -> (i32, i32) {
    %c0_i32 = arith.constant 0 : i32
    return %arg2, %arg1 : i32, i32
  }
  func.func @transform_2(%arg0: i32, %arg1: i32, %arg2: i32) -> (i32, i32) {
    %c0_i32 = arith.constant 0 : i32
    %c0_i32_0 = arith.constant 0 : i32
    return %c0_i32, %arg1 : i32, i32
  }
  func.func @transform_3(%arg0: i32, %arg1: i32, %arg2: i32) -> (i32, i32) {
    %c0_i32 = arith.constant 0 : i32
    %c0_i32_0 = arith.constant 0 : i32
    return %c0_i32, %arg2 : i32, i32
  }
  func.func @transform_4(%arg0: i32, %arg1: i32, %arg2: i32) -> (i32, i32) {
    %c0_i32 = arith.constant 0 : i32
    %c0_i32_0 = arith.constant 0 : i32
    return %c0_i32, %arg2 : i32, i32
  }
  func.func @transform_5(%arg0: i32, %arg1: i32, %arg2: i32) -> (i32, i32) {
    %c0_i32 = arith.constant 0 : i32
    return %arg0, %arg1 : i32, i32
  }
}

module attributes {stable_mosaic.version = 11 : i64} {
  func.func @kernel(%arg0: i32, %arg1: i32, %arg2: i32, %arg3: memref<64x128xbf16, #tpu.memory_space<vmem>>, %arg4: memref<128x128xbf16, #tpu.memory_space<vmem>>, %arg5: memref<1x128xf32, #tpu.memory_space<vmem>>, %arg6: memref<1x128xf32, #tpu.memory_space<vmem>>, %arg7: memref<1x128xf32, #tpu.memory_space<vmem>>, %arg8: memref<64x128xbf16, #tpu.memory_space<vmem>>, %arg9: memref<64x128xbf16, #tpu.memory_space<vmem>>, %arg10: memref<64x128xf32, #tpu.memory_space<vmem>>) attributes {dimension_semantics = [#tpu.dimension_semantics<parallel>, #tpu.dimension_semantics<parallel>, #tpu.dimension_semantics<arbitrary>], iteration_bounds = array<i64: 1, 1, 1>, scalar_prefetch = 0 : i64, scratch_operands = 1 : i64, tpu.core_type = #tpu.core_type<tc>, window_params = [{transform_indices = @transform_0, window_bounds = array<i64: 64, 128>}, {transform_indices = @transform_1, window_bounds = array<i64: 128, 128>}, {transform_indices = @transform_2, window_bounds = array<i64: 1, 128>}, {transform_indices = @transform_3, window_bounds = array<i64: 1, 128>}, {transform_indices = @transform_4, window_bounds = array<i64: 1, 128>}, {transform_indices = @transform_5, window_bounds = array<i64: 64, 128>}, {transform_indices = @transform_6, window_bounds = array<i64: 64, 128>}]} {
    %c0_i32 = arith.constant 0 : i32
    %0 = arith.cmpi eq, %arg2, %c0_i32 : i32
    %1 = arith.extui %0 : i1 to i32
    %c0_i32_0 = arith.constant 0 : i32
    %2 = arith.cmpi ne, %1, %c0_i32_0 : i32
    scf.if %2 {
      %cst_14 = arith.constant 0.000000e+00 : f32
      %23 = vector.broadcast %cst_14 : f32 to vector<64x128xf32>
      %c0_15 = arith.constant 0 : index
      %c0_16 = arith.constant 0 : index
      %24 = vector.load %arg10[%c0_15, %c0_16] : memref<64x128xf32, #tpu.memory_space<vmem>>, vector<64x128xf32>
      tpu.vector_store %arg10[%c0_15, %c0_16], %23 {strides = array<i32>} : memref<64x128xf32, #tpu.memory_space<vmem>>, vector<64x128xf32>,
    } else {
    }
    %c0 = arith.constant 0 : index
    %c0_1 = arith.constant 0 : index
    %3 = vector.load %arg3[%c0, %c0_1] : memref<64x128xbf16, #tpu.memory_space<vmem>>, vector<64x128xbf16>
    %4 = arith.extf %3 : vector<64x128xbf16> to vector<64x128xf32>
    %c0_2 = arith.constant 0 : index
    %c0_3 = arith.constant 0 : index
    %5 = vector.load %arg6[%c0_2, %c0_3] : memref<1x128xf32, #tpu.memory_space<vmem>>, vector<1x128xf32>
    %6 = vector.broadcast %5 : vector<1x128xf32> to vector<64x128xf32>
    %7 = arith.mulf %6, %4 : vector<64x128xf32>
    %8 = math.sin %7 : vector<64x128xf32>
    %9 = arith.mulf %8, %8 : vector<64x128xf32>
    %c0_4 = arith.constant 0 : index
    %c0_5 = arith.constant 0 : index
    %10 = vector.load %arg7[%c0_4, %c0_5] : memref<1x128xf32, #tpu.memory_space<vmem>>, vector<1x128xf32>
    %11 = vector.broadcast %10 : vector<1x128xf32> to vector<64x128xf32>
    %12 = arith.mulf %9, %11 : vector<64x128xf32>
    %13 = arith.addf %4, %12 : vector<64x128xf32>
    %14 = arith.truncf %13 : vector<64x128xf32> to vector<64x128xbf16>
    %c0_6 = arith.constant 0 : index
    %c0_7 = arith.constant 0 : index
    %15 = vector.load %arg10[%c0_6, %c0_7] : memref<64x128xf32, #tpu.memory_space<vmem>>, vector<64x128xf32>
    %c0_8 = arith.constant 0 : index
    %c0_9 = arith.constant 0 : index
    %16 = vector.load %arg4[%c0_8, %c0_9] : memref<128x128xbf16, #tpu.memory_space<vmem>>, vector<128x128xbf16>
    %cst = arith.constant dense<0.000000e+00> : vector<64x128xf32>
    %17 = tpu.matmul %14, %16, %cst {dimension_numbers = #tpu.dot_dimension_numbers<[1], [0], [0], [1], [0, 0, 1, 1], [], []>} : vector<64x128xbf16>, vector<128x128xbf16>, vector<64x128xf32> -> vector<64x128xf32>
    %18 = arith.addf %15, %17 : vector<64x128xf32>
    %c0_10 = arith.constant 0 : index
    %c0_11 = arith.constant 0 : index
    %19 = vector.load %arg10[%c0_10, %c0_11] : memref<64x128xf32, #tpu.memory_space<vmem>>, vector<64x128xf32>
    tpu.vector_store %arg10[%c0_10, %c0_11], %18 {strides = array<i32>} : memref<64x128xf32, #tpu.memory_space<vmem>>, vector<64x128xf32>,
    %c0_i32_12 = arith.constant 0 : i32
    %20 = arith.cmpi eq, %arg2, %c0_i32_12 : i32
    %21 = arith.extui %20 : i1 to i32
    %c0_i32_13 = arith.constant 0 : i32
    %22 = arith.cmpi ne, %21, %c0_i32_13 : i32
    scf.if %22 {
      %c0_14 = arith.constant 0 : index
      %c0_15 = arith.constant 0 : index
      %23 = vector.load %arg10[%c0_14, %c0_15] : memref<64x128xf32, #tpu.memory_space<vmem>>, vector<64x128xf32>
      %c0_16 = arith.constant 0 : index
      %c0_17 = arith.constant 0 : index
      %24 = vector.load %arg5[%c0_16, %c0_17] : memref<1x128xf32, #tpu.memory_space<vmem>>, vector<1x128xf32>
      %25 = vector.broadcast %24 : vector<1x128xf32> to vector<64x128xf32>
      %26 = arith.addf %23, %25 : vector<64x128xf32>
      %c0_18 = arith.constant 0 : index
      %c0_19 = arith.constant 0 : index
      %27 = vector.load %arg8[%c0_18, %c0_19] : memref<64x128xbf16, #tpu.memory_space<vmem>>, vector<64x128xbf16>
      %28 = arith.extf %27 : vector<64x128xbf16> to vector<64x128xf32>
      %29 = arith.addf %26, %28 : vector<64x128xf32>
      %30 = arith.truncf %29 : vector<64x128xf32> to vector<64x128xbf16>
      %c0_20 = arith.constant 0 : index
      %c0_21 = arith.constant 0 : index
      %31 = vector.load %arg9[%c0_20, %c0_21] : memref<64x128xbf16, #tpu.memory_space<vmem>>, vector<64x128xbf16>
      tpu.vector_store %arg9[%c0_20, %c0_21], %30 {strides = array<i32>} : memref<64x128xbf16, #tpu.memory_space<vmem>>, vector<64x128xbf16>,
    } else {
    }
    return
  }
  func.func @transform_0(%arg0: i32, %arg1: i32, %arg2: i32) -> (i32, i32) {
    %c0_i32 = arith.constant 0 : i32
    return %arg0, %arg2 : i32, i32
  }
  func.func @transform_1(%arg0: i32, %arg1: i32, %arg2: i32) -> (i32, i32) {
    %c0_i32 = arith.constant 0 : i32
    return %arg2, %arg1 : i32, i32
  }
  func.func @transform_2(%arg0: i32, %arg1: i32, %arg2: i32) -> (i32, i32) {
    %c0_i32 = arith.constant 0 : i32
    %c0_i32_0 = arith.constant 0 : i32
    return %c0_i32, %arg1 : i32, i32
  }
  func.func @transform_3(%arg0: i32, %arg1: i32, %arg2: i32) -> (i32, i32) {
    %c0_i32 = arith.constant 0 : i32
    %c0_i32_0 = arith.constant 0 : i32
    return %c0_i32, %arg2 : i32, i32
  }
  func.func @transform_4(%arg0: i32, %arg1: i32, %arg2: i32) -> (i32, i32) {
    %c0_i32 = arith.constant 0 : i32
    %c0_i32_0 = arith.constant 0 : i32
    return %c0_i32, %arg2 : i32, i32
  }
  func.func @transform_5(%arg0: i32, %arg1: i32, %arg2: i32) -> (i32, i32) {
    %c0_i32 = arith.constant 0 : i32
    return %arg0, %arg1 : i32, i32
  }
  func.func @transform_6(%arg0: i32, %arg1: i32, %arg2: i32) -> (i32, i32) {
    %c0_i32 = arith.constant 0 : i32
    return %arg0, %arg1 : i32, i32
  }
}

module attributes {stable_mosaic.version = 11 : i64} {
  func.func @kernel(%arg0: i32, %arg1: i32, %arg2: i32, %arg3: memref<32x128xbf16, #tpu.memory_space<vmem>>, %arg4: memref<128x128xbf16, #tpu.memory_space<vmem>>, %arg5: memref<1x128xf32, #tpu.memory_space<vmem>>, %arg6: memref<1x128xf32, #tpu.memory_space<vmem>>, %arg7: memref<1x128xf32, #tpu.memory_space<vmem>>, %arg8: memref<32x128xbf16, #tpu.memory_space<vmem>>, %arg9: memref<32x128xf32, #tpu.memory_space<vmem>>) attributes {dimension_semantics = [#tpu.dimension_semantics<parallel>, #tpu.dimension_semantics<parallel>, #tpu.dimension_semantics<arbitrary>], iteration_bounds = array<i64: 1, 1, 1>, scalar_prefetch = 0 : i64, scratch_operands = 1 : i64, tpu.core_type = #tpu.core_type<tc>, window_params = [{transform_indices = @transform_0, window_bounds = array<i64: 32, 128>}, {transform_indices = @transform_1, window_bounds = array<i64: 128, 128>}, {transform_indices = @transform_2, window_bounds = array<i64: 1, 128>}, {transform_indices = @transform_3, window_bounds = array<i64: 1, 128>}, {transform_indices = @transform_4, window_bounds = array<i64: 1, 128>}, {transform_indices = @transform_5, window_bounds = array<i64: 32, 128>}]} {
    %c0_i32 = arith.constant 0 : i32
    %0 = arith.cmpi eq, %arg2, %c0_i32 : i32
    %1 = arith.extui %0 : i1 to i32
    %c0_i32_0 = arith.constant 0 : i32
    %2 = arith.cmpi ne, %1, %c0_i32_0 : i32
    scf.if %2 {
      %cst_14 = arith.constant 0.000000e+00 : f32
      %23 = vector.broadcast %cst_14 : f32 to vector<32x128xf32>
      %c0_15 = arith.constant 0 : index
      %c0_16 = arith.constant 0 : index
      %24 = vector.load %arg9[%c0_15, %c0_16] : memref<32x128xf32, #tpu.memory_space<vmem>>, vector<32x128xf32>
      tpu.vector_store %arg9[%c0_15, %c0_16], %23 {strides = array<i32>} : memref<32x128xf32, #tpu.memory_space<vmem>>, vector<32x128xf32>,
    } else {
    }
    %c0 = arith.constant 0 : index
    %c0_1 = arith.constant 0 : index
    %3 = vector.load %arg3[%c0, %c0_1] : memref<32x128xbf16, #tpu.memory_space<vmem>>, vector<32x128xbf16>
    %4 = arith.extf %3 : vector<32x128xbf16> to vector<32x128xf32>
    %c0_2 = arith.constant 0 : index
    %c0_3 = arith.constant 0 : index
    %5 = vector.load %arg6[%c0_2, %c0_3] : memref<1x128xf32, #tpu.memory_space<vmem>>, vector<1x128xf32>
    %6 = vector.broadcast %5 : vector<1x128xf32> to vector<32x128xf32>
    %7 = arith.mulf %6, %4 : vector<32x128xf32>
    %8 = math.sin %7 : vector<32x128xf32>
    %9 = arith.mulf %8, %8 : vector<32x128xf32>
    %c0_4 = arith.constant 0 : index
    %c0_5 = arith.constant 0 : index
    %10 = vector.load %arg7[%c0_4, %c0_5] : memref<1x128xf32, #tpu.memory_space<vmem>>, vector<1x128xf32>
    %11 = vector.broadcast %10 : vector<1x128xf32> to vector<32x128xf32>
    %12 = arith.mulf %9, %11 : vector<32x128xf32>
    %13 = arith.addf %4, %12 : vector<32x128xf32>
    %14 = arith.truncf %13 : vector<32x128xf32> to vector<32x128xbf16>
    %c0_6 = arith.constant 0 : index
    %c0_7 = arith.constant 0 : index
    %15 = vector.load %arg9[%c0_6, %c0_7] : memref<32x128xf32, #tpu.memory_space<vmem>>, vector<32x128xf32>
    %c0_8 = arith.constant 0 : index
    %c0_9 = arith.constant 0 : index
    %16 = vector.load %arg4[%c0_8, %c0_9] : memref<128x128xbf16, #tpu.memory_space<vmem>>, vector<128x128xbf16>
    %cst = arith.constant dense<0.000000e+00> : vector<32x128xf32>
    %17 = tpu.matmul %14, %16, %cst {dimension_numbers = #tpu.dot_dimension_numbers<[1], [0], [0], [1], [0, 0, 1, 1], [], []>} : vector<32x128xbf16>, vector<128x128xbf16>, vector<32x128xf32> -> vector<32x128xf32>
    %18 = arith.addf %15, %17 : vector<32x128xf32>
    %c0_10 = arith.constant 0 : index
    %c0_11 = arith.constant 0 : index
    %19 = vector.load %arg9[%c0_10, %c0_11] : memref<32x128xf32, #tpu.memory_space<vmem>>, vector<32x128xf32>
    tpu.vector_store %arg9[%c0_10, %c0_11], %18 {strides = array<i32>} : memref<32x128xf32, #tpu.memory_space<vmem>>, vector<32x128xf32>,
    %c0_i32_12 = arith.constant 0 : i32
    %20 = arith.cmpi eq, %arg2, %c0_i32_12 : i32
    %21 = arith.extui %20 : i1 to i32
    %c0_i32_13 = arith.constant 0 : i32
    %22 = arith.cmpi ne, %21, %c0_i32_13 : i32
    scf.if %22 {
      %c0_14 = arith.constant 0 : index
      %c0_15 = arith.constant 0 : index
      %23 = vector.load %arg9[%c0_14, %c0_15] : memref<32x128xf32, #tpu.memory_space<vmem>>, vector<32x128xf32>
      %c0_16 = arith.constant 0 : index
      %c0_17 = arith.constant 0 : index
      %24 = vector.load %arg5[%c0_16, %c0_17] : memref<1x128xf32, #tpu.memory_space<vmem>>, vector<1x128xf32>
      %25 = vector.broadcast %24 : vector<1x128xf32> to vector<32x128xf32>
      %26 = arith.addf %23, %25 : vector<32x128xf32>
      %27 = arith.truncf %26 : vector<32x128xf32> to vector<32x128xbf16>
      %c0_18 = arith.constant 0 : index
      %c0_19 = arith.constant 0 : index
      %28 = vector.load %arg8[%c0_18, %c0_19] : memref<32x128xbf16, #tpu.memory_space<vmem>>, vector<32x128xbf16>
      tpu.vector_store %arg8[%c0_18, %c0_19], %27 {strides = array<i32>} : memref<32x128xbf16, #tpu.memory_space<vmem>>, vector<32x128xbf16>,
    } else {
    }
    return
  }
  func.func @transform_0(%arg0: i32, %arg1: i32, %arg2: i32) -> (i32, i32) {
    %c0_i32 = arith.constant 0 : i32
    return %arg0, %arg2 : i32, i32
  }
  func.func @transform_1(%arg0: i32, %arg1: i32, %arg2: i32) -> (i32, i32) {
    %c0_i32 = arith.constant 0 : i32
    return %arg2, %arg1 : i32, i32
  }
  func.func @transform_2(%arg0: i32, %arg1: i32, %arg2: i32) -> (i32, i32) {
    %c0_i32 = arith.constant 0 : i32
    %c0_i32_0 = arith.constant 0 : i32
    return %c0_i32, %arg1 : i32, i32
  }
  func.func @transform_3(%arg0: i32, %arg1: i32, %arg2: i32) -> (i32, i32) {
    %c0_i32 = arith.constant 0 : i32
    %c0_i32_0 = arith.constant 0 : i32
    return %c0_i32, %arg2 : i32, i32
  }
  func.func @transform_4(%arg0: i32, %arg1: i32, %arg2: i32) -> (i32, i32) {
    %c0_i32 = arith.constant 0 : i32
    %c0_i32_0 = arith.constant 0 : i32
    return %c0_i32, %arg2 : i32, i32
  }
  func.func @transform_5(%arg0: i32, %arg1: i32, %arg2: i32) -> (i32, i32) {
    %c0_i32 = arith.constant 0 : i32
    return %arg0, %arg1 : i32, i32
  }
}

</mosaic_0001>

<bundles_post_ra>
// kernel: dac_encoder_forward.17
= control target key start
LH: loop header
LB: loop body
LE: loop exit
PB: predicated region body
PF: predicated region fallthrough
CT: control target
= control target key end

     0   :  { %v2561_v45 = vmov 683565275   ;;  %v2562_v47 = vmov 2475754826   ;;  %v2563_v50 = vmov 2131351028   ;;  %s4131_s1 = inlined_call_operand.vmem [shape: bf16[128,128], index: 1, kind: input, shape index: {}]   ;;  %s4132_s0 = inlined_call_operand.vmem [shape: bf16[128,128], index: 0, kind: input, shape index: {}]   ;;  %s4133_s3 = inlined_call_operand.vmem [shape: f32[1,128], index: 3, kind: input, shape index: {}]   ;;  %s4134_s4 = inlined_call_operand.vmem [shape: f32[1,128], index: 4, kind: input, shape index: {}]   ;;  %s4135_s2 = inlined_call_operand.vmem [shape: f32[1,128], index: 2, kind: input, shape index: {}]   ;;  %s4136_s5 = inlined_call_operand.vmem [shape: bf16[128,128], index: 5, kind: output, shape index: {}]  }
   0x1   :  { %v2485_v0 = vld [vmem:[%s4131_s1] sm:$0xff]   ;;  %v2486_v1 = vld [vmem:[%s4131_s1 + $0x8] sm:$0xff]   ;;  %v2487_v2 = vld [vmem:[%s4131_s1 + $0x10] sm:$0xff]   ;;  %v2564_v52 = vmov 2102212464  }
   0x2   :  { %2367 = vmatprep.subr.bf16.mxu0 %v2485_v0  ;;  %2399 = vmatprep.subr.bf16.mxu1 %v2485_v0  ;;  %v2488_v3 = vld [vmem:[%s4131_s1 + $0x18] sm:$0xff]   ;;  %v2612_v4 = vld [vmem:[%s4132_s0] sm:$0xff]   ;;  %v2490_v18 = vld [vmem:[%s4131_s1 + $0x28] sm:$0xff]   ;;  %v2565_v54 = vmov 920167782  }
   0x3   :  { %2368 = vmatpush3.bf16.msra.mxu0 %v2485_v0  ;;  %2407 = vmatpush3.bf16.msra.mxu1 %v2485_v0  ;;  %v2617_v5 = vld [vmem:[%s4133_s3] ss:$0 sm:$0xff]  ;;  %v2267_v7 = vunpack.c.l.bf16 %v2612_v4  ;;  %v2268_v8 = vunpack.c.h.bf16 %v2612_v4  ;;  %v2491_v29 = vld [vmem:[%s4131_s1 + $0x30] sm:$0xff]   ;;  %v2492_v39 = vld [vmem:[%s4131_s1 + $0x38] sm:$0xff]   ;;  %v2566_v62 = vmov 1326507024  }
   0x4   :  { %2369 = vmatprep.subr.bf16.mxu0 %v2486_v1  ;;  %2400 = vmatprep.subr.bf16.mxu1 %v2486_v1  ;;  %v2622_v6 = vld [vmem:[%s4132_s0 + $0x20] sm:$0xff]  }
   0x5   :  { %v2283_v9 = vunpack.c.l.bf16 %v2622_v6  ;;  %v2630_v10 = vmul.f32 %v2267_v7, %v2617_v5  ;;  %v2635_v11 = vmul.f32 %v2268_v8, %v2617_v5  ;;  %v2489_v12 = vld [vmem:[%s4131_s1 + $0x20] sm:$0xff]   ;;  %v2284_v28 = vunpack.c.h.bf16 %v2622_v6 }
   0x7   :  { %2370 = vmatpush3.bf16.msra.mxu0 %v2486_v1  ;;  %2408 = vmatpush3.bf16.msra.mxu1 %v2486_v1  ;;  %v2643_v13 = vmul.f32 %v2283_v9, %v2617_v5  ;;  %v96_v14 = vand.u32 2147483647, %v2630_v10  ;;  %v99_v15 = vand.u32 2139095040, %v2630_v10  ;;  %v200_v16 = vand.u32 2147483647, %v2635_v11 }
   0x8   :  { %2371 = vmatprep.subr.bf16.mxu0 %v2487_v2  ;;  %2401 = vmatprep.subr.bf16.mxu1 %v2487_v2  ;;  %v203_v17 = vand.u32 2139095040, %v2635_v11  ;;  %v2666_v38 = vmul.f32 %v2284_v28, %v2617_v5  ;;  %vm98_vm14 = vcmp.lt.s32.totalorder %v2630_v10, 0 }
   0x9   :  { %v100_v19 = vshrl.u32 %v99_v15, 23  ;;  %v103_v20 = vand.u32 8388607, %v96_v14  ;;  %v207_v22 = vand.u32 8388607, %v200_v16  ;;  %v931_v23 = vand.u32 2139095040, %v2643_v13 }
   0xa   :  { %v204_v21 = vshrl.u32 %v203_v17, 23  ;;  %v928_v42 = vand.u32 2147483647, %v2643_v13 }
   0xb   :  { %2372 = vmatpush3.bf16.msra.mxu0 %v2487_v2  ;;  %2409 = vmatpush3.bf16.msra.mxu1 %v2487_v2  ;;  %v2159_v24 = vadd.s32 4294967169, %v100_v19  ;;  %v932_v26 = vshrl.u32 %v931_v23, 23  ;;  %v104_v30 = vor.u32 8388608, %v103_v20  ;;  %v208_v31 = vor.u32 8388608, %v207_v22 }
   0xc   :  { %2373 = vmatprep.subr.bf16.mxu0 %v2488_v3  ;;  %2402 = vmatprep.subr.bf16.mxu1 %v2488_v3  ;;  %v2163_v25 = vadd.s32 4294967169, %v204_v21 }
   0xd   :  { %v106_v27 = vadd.s32 1, %v2159_v24  ;;  %v2191_v33 = vadd.s32 4294967169, %v932_v26  ;;  %v2671_v40 = vshll.u32 %v104_v30, 8  ;;  %v2673_v41 = vshll.u32 %v208_v31, 8 }
   0xe   :  { %v210_v32 = vadd.s32 1, %v2163_v25 }
   0xf   :  { %2374 = vmatpush3.bf16.msra.mxu0 %v2488_v3  ;;  %2410 = vmatpush3.bf16.msra.mxu1 %v2488_v3  ;;  %vm107_vm0 = vcmp.gt.s32.totalorder %v106_v27, 0  ;;  %v2676_v43 = vadd.s32 1, %v2191_v33 }
  0x10   :  { %2375 = vmatprep.subr.bf16.mxu0 %v2489_v12  ;;  %2403 = vmatprep.subr.bf16.mxu1 %v2489_v12  ;;  %v108_v34 = vsel %vm107_vm0, %v106_v27, 0  ;;  %vm211_vm1 = vcmp.gt.s32.totalorder %v210_v32, 0 }
  0x11   :  { %v2661_v35 = vshrl.u32 %v108_v34, 5  ;;  %v110_v36 = vand.u32 31, %v108_v34  ;;  %v212_v37 = vsel %vm211_vm1, %v210_v32, 0  ;;  %vm939_vm6 = vcmp.gt.s32.totalorder %v2676_v43, 0 }
  0x12   :  { %v214_v49 = vand.u32 31, %v212_v37  ;;  %v2683_v56 = vshrl.u32 %v212_v37, 5 }
  0x13   :  { %2376 = vmatpush3.bf16.msra.mxu0 %v2489_v12  ;;  %2411 = vmatpush3.bf16.msra.mxu1 %v2489_v12  ;;  %v111_v44 = vsub.s32 32, %v110_v36  ;;  %v113_v46 = vshll.u32 %v2561_v45, %v110_v36  ;;  %v116_v48 = vshll.u32 %v2562_v47, %v110_v36  ;;  %v119_v51 = vshll.u32 %v2563_v50, %v110_v36 }
  0x14   :  { %2377 = vmatprep.subr.bf16.mxu0 %v2490_v18  ;;  %2404 = vmatprep.subr.bf16.mxu1 %v2490_v18  ;;  %v122_v53 = vshll.u32 %v2564_v52, %v110_v36  ;;  %v125_v55 = vshll.u32 %v2565_v54, %v110_v36  ;;  %vm128_vm2 = vcmp.lt.s32.totalorder %v2661_v35, 1  ;;  %vm130_vm3 = vcmp.lt.s32.totalorder %v2661_v35, 3 }
  0x15   :  { %v112_v57 = vshrl.u32 %v2561_v45, %v111_v44  ;;  %v114_v58 = vshrl.u32 %v2562_v47, %v111_v44  ;;  %v117_v59 = vshrl.u32 %v2563_v50, %v111_v44  ;;  %v120_v60 = vshrl.u32 %v2564_v52, %v111_v44 }
  0x16   :  { %v123_v61 = vshrl.u32 %v2565_v54, %v111_v44  ;;  %v126_v63 = vshrl.u32 %v2566_v62, %v111_v44  ;;  %vm131_vm4 = vcmp.lt.s32.totalorder %v2661_v35, 4  ;;  %v215_v2 = vsub.s32 32, %v214_v49 }
  0x17   :  { %2378 = vmatpush3.bf16.msra.mxu0 %v2490_v18  ;;  %2412 = vmatpush3.bf16.msra.mxu1 %v2490_v18  ;;  %v115_v0 = vor.u32 %v114_v58, %v113_v46  ;;  %v118_v1 = vor.u32 %v117_v59, %v116_v48  ;;  %v121_v3 = vor.u32 %v120_v60, %v119_v51  ;;  %vm129_vm5 = vcmp.lt.s32.totalorder %v2661_v35, 2 }
  0x18   :  { %2379 = vmatprep.subr.bf16.mxu0 %v2491_v29  ;;  %2405 = vmatprep.subr.bf16.mxu1 %v2491_v29  ;;  %v124_v12 = vor.u32 %v123_v61, %v122_v53  ;;  %v127_v15 = vor.u32 %v126_v63, %v125_v55  ;;  %v217_v17 = vshll.u32 %v2561_v45, %v214_v49  ;;  %vm232_vm7 = vcmp.lt.s32.totalorder %v2683_v56, 1 }
  0x19   :  { %v132_v18 = vsel %vm128_vm2, %v112_v57, %v115_v0  ;;  %v136_v19 = vsel %vm128_vm2, %v115_v0, %v118_v1  ;;  %v220_v20 = vshll.u32 %v2562_v47, %v214_v49  ;;  %v133_v21 = vsel %vm131_vm4, %v121_v3, 2102212464 }
  0x1a   :  { %v137_v22 = vsel %vm131_vm4, %v124_v12, 920167782  ;;  %v140_v23 = vsel %vm128_vm2, %v118_v1, %v121_v3  ;;  %v141_v24 = vsel %vm131_vm4, %v127_v15, 1326507024  ;;  %v134_v25 = vsel %vm130_vm3, %v118_v1, %v133_v21 }
  0x1b   :  { %2380 = vmatpush3.bf16.msra.mxu0 %v2491_v29  ;;  %2413 = vmatpush3.bf16.msra.mxu1 %v2491_v29  ;;  %v138_v26 = vsel %vm130_vm3, %v121_v3, %v137_v22  ;;  %v142_v27 = vsel %vm130_vm3, %v124_v12, %v141_v24  ;;  %v218_v29 = vshrl.u32 %v2562_v47, %v215_v2  ;;  %vm233_vm8 = vcmp.lt.s32.totalorder %v2683_v56, 2 }
  0x1c   :  { %2381 = vmatprep.subr.bf16.mxu0 %v2492_v39  ;;  %2406 = vmatprep.subr.bf16.mxu1 %v2492_v39  ;;  %v135_v30 = vsel %vm129_vm5, %v132_v18, %v134_v25  ;;  %v139_v31 = vsel %vm129_vm5, %v136_v19, %v138_v26  ;;  %v143_v32 = vsel %vm129_vm5, %v140_v23, %v142_v27  ;;  %vm235_vm10 = vcmp.lt.s32.totalorder %v2683_v56, 4 }
  0x1d   :  { %v221_v33 = vshrl.u32 %v2563_v50, %v215_v2  ;;  %v2713_v34 = vmul.u32.u64.low %v2671_v40, %v143_v32  ;;  %v2714_v36 = vmul.u32.u64.high %v2671_v40, %v143_v32, %v2713_v34  ;;  %v216_v44 = vshrl.u32 %v2561_v45, %v215_v2 }
  0x1e   :  { %v219_v35 = vor.u32 %v218_v29, %v217_v17  ;;  %v223_v48 = vshll.u32 %v2563_v50, %v214_v49  ;;  %v224_v51 = vshrl.u32 %v2564_v52, %v215_v2  ;;  %v226_v53 = vshll.u32 %v2564_v52, %v214_v49 }
  0x1f   :  { %2382 = vmatpush3.bf16.msra.mxu0 %v2492_v39  ;;  %2414 = vmatpush3.bf16.msra.mxu1 %v2492_v39  ;;  %v2717_v37 = vmul.u32.u64.low %v2671_v40, %v139_v31  ;;  %v2718_v39 = vmul.u32.u64.high %v2671_v40, %v139_v31, %v2717_v37  ;;  %v222_v46 = vor.u32 %v221_v33, %v220_v20  ;;  %v227_v55 = vshrl.u32 %v2565_v54, %v215_v2 }
  0x20   :  { %v229_v57 = vshll.u32 %v2565_v54, %v214_v49  ;;  %v151_v58 = vmul.u32 %v2671_v40, %v135_v30  ;;  %v230_v59 = vshrl.u32 %v2566_v62, %v215_v2  ;;  %v225_v61 = vor.u32 %v224_v51, %v223_v48 }
  0x21   :  { %vm153_vm9 = vc.u32 %v2714_v36, %v2717_v37  ;;  %v154_v60 = vadd.s32 1, %v2718_v39  ;;  %v228_v63 = vor.u32 %v227_v55, %v226_v53  ;;  %vm234_vm11 = vcmp.lt.s32.totalorder %v2683_v56, 3 }
  0x22   :  { %v231_v0 = vor.u32 %v230_v59, %v229_v57  ;;  %v236_v49 = vsel %vm232_vm7, %v216_v44, %v219_v35  ;;  %v237_v1 = vsel %vm235_vm10, %v225_v61, 2102212464  ;;  %v240_v2 = vsel %vm232_vm7, %v219_v35, %v222_v46 }
  0x23   :  { %v155_v40 = vsel %vm153_vm9, %v154_v60, %v2718_v39  ;;  %v244_v3 = vsel %vm232_vm7, %v222_v46, %v225_v61  ;;  %v238_v15 = vsel %vm234_vm11, %v222_v46, %v237_v1  ;;  %v241_v17 = vsel %vm235_vm10, %v228_v63, 920167782 }
  0x24   :  { %v156_v12 = vadd.s32 %v155_v40, %v151_v58  ;;  %v245_v18 = vsel %vm235_vm10, %v231_v0, 1326507024  ;;  %v242_v19 = vsel %vm234_vm11, %v225_v61, %v241_v17  ;;  %v935_v21 = vand.u32 8388607, %v928_v42 }
  0x25   :  { %v246_v20 = vsel %vm234_vm11, %v228_v63, %v245_v18  ;;  %v940_v22 = vsel %vm939_vm6, %v2676_v43, 0  ;;  %v239_v24 = vsel %vm233_vm8, %v236_v49, %v238_v15  ;;  %v243_v25 = vsel %vm233_vm8, %v240_v2, %v242_v19 }
  0x26   :  { %v157_v23 = vadd.s32 536870912, %v156_v12  ;;  %v247_v26 = vsel %vm233_vm8, %v244_v3, %v246_v20  ;;  %v2753_v30 = vmul.u32.u64.low %v2673_v41, %v243_v25  ;;  %v2754_v31 = vmul.u32.u64.high %v2673_v41, %v243_v25, %v2753_v30 }
  0x27   :  { %v2749_v27 = vmul.u32.u64.low %v2673_v41, %v247_v26  ;;  %v2750_v29 = vmul.u32.u64.high %v2673_v41, %v247_v26, %v2749_v27  ;;  %v942_v32 = vand.u32 31, %v940_v22  ;;  %v936_v33 = vor.u32 8388608, %v935_v21 }
  0x28   :  { %v2757_v43 = vshrl.u32 %v157_v23, 30  ;;  %v255_v39 = vmul.u32 %v2673_v41, %v239_v24  ;;  %v1035_v56 = vand.u32 2139095040, %v2666_v38  ;;  %v258_v35 = vadd.s32 1, %v2754_v31 }
  0x29   :  { %v943_v44 = vsub.s32 32, %v942_v32  ;;  %vm257_vm12 = vc.u32 %v2750_v29, %v2753_v30  ;;  %v2765_v46 = vshrl.u32 %v940_v22, 5  ;;  %v945_v51 = vshll.u32 %v2561_v45, %v942_v32 }
  0x2a   :  { %v159_v34 = vshll.u32 %v2757_v43, 30  ;;  %v259_v55 = vsel %vm257_vm12, %v258_v35, %v2754_v31  ;;  %v948_v41 = vshll.u32 %v2562_v47, %v942_v32  ;;  %v951_v58 = vshll.u32 %v2563_v50, %v942_v32 }
  0x2b   :  { %v946_v53 = vshrl.u32 %v2562_v47, %v943_v44  ;;  %v949_v57 = vshrl.u32 %v2563_v50, %v943_v44  ;;  %v260_v60 = vadd.s32 %v259_v55, %v255_v39  ;;  %v2776_v61 = vshll.u32 %v936_v33, 8 }
  0x2c   :  { %v2767_v48 = vsub.s32 %v156_v12, %v159_v34  ;;  %v1036_v63 = vshrl.u32 %v1035_v56, 23  ;;  %v952_v0 = vshrl.u32 %v2564_v52, %v943_v44  ;;  %v954_v49 = vshll.u32 %v2564_v52, %v942_v32 }
  0x2d   :  { %v955_v40 = vshrl.u32 %v2565_v54, %v943_v44  ;;  %vm963_vm13 = vcmp.lt.s32.totalorder %v2765_v46, 4  ;;  %v261_v2 = vadd.s32 536870912, %v260_v60  ;;  %v947_v3 = vor.u32 %v946_v53, %v945_v51 }
  0x2e   :  { %v162_v59 = vsub.s32 0, %v2767_v48  ;;  %v957_v12 = vshll.u32 %v2565_v54, %v942_v32  ;;  %v950_v15 = vor.u32 %v949_v57, %v948_v41  ;;  %v953_v17 = vor.u32 %v952_v0, %v951_v58 }
  0x2f   :  { %v956_v18 = vor.u32 %v955_v40, %v954_v49  ;;  %v958_v19 = vshrl.u32 %v2566_v62, %v943_v44  ;;  %v944_v21 = vshrl.u32 %v2561_v45, %v943_v44  ;;  %vm960_vm15 = vcmp.lt.s32.totalorder %v2765_v46, 1 }
  0x30   :  { %v2160_v1 = vmin.u32 %v162_v59, %v2767_v48  ;;  %vm962_vm0 = vcmp.lt.s32.totalorder %v2765_v46, 3  ;;  %v152_v22 = vadd.s32 %v2717_v37, %v2714_v36  ;;  %v2791_v23 = vshrl.u32 %v261_v2, 30 }
  0x31   :  { %v959_v24 = vor.u32 %v958_v19, %v957_v12  ;;  %vm961_vm1 = vcmp.lt.s32.totalorder %v2765_v46, 2  ;;  %vm2796_vm2 = vcmp.le.f32.partialorder %v96_v14, 0.7853982  ;;  %v965_v27 = vsel %vm963_vm13, %v953_v17, 2102212464 }
  0x32   :  { %v164_v20 = vclz %v2160_v1  ;;  %v969_v31 = vsel %vm963_vm13, %v956_v18, 920167782  ;;  %v2195_v32 = vadd.s32 4294967169, %v1036_v63  ;;  %v182_v36 = vsub.s32 4, %v2757_v43 }
  0x33   :  { %v263_v37 = vshll.u32 %v2791_v23, 30  ;;  %v968_v33 = vsel %vm960_vm15, %v947_v3, %v950_v15  ;;  %v970_v14 = vsel %vm962_vm0, %v953_v17, %v969_v31  ;;  %v964_v34 = vsel %vm960_vm15, %v944_v21, %v947_v3 }
  0x34   :  { %v2161_v26 = vadd.s32 4294967294, %v164_v20  ;;  %v972_v39 = vsel %vm960_vm15, %v950_v15, %v953_v17  ;;  %v973_v44 = vsel %vm963_vm13, %v959_v24, 1326507024  ;;  %v966_v51 = vsel %vm962_vm0, %v950_v15, %v965_v27 }
  0x35   :  { %v2816_v35 = vsub.s32 %v260_v60, %v263_v37  ;;  %v974_v53 = vsel %vm962_vm0, %v956_v18, %v973_v44  ;;  %v971_v58 = vsel %vm961_vm1, %v968_v33, %v970_v14  ;;  %v183_v59 = vsel %vm98_vm14, %v182_v36, %v2757_v43 }
  0x36   :  { %vm2162_vm3 = vcmp.lt.s32.totalorder %v2161_v26, 0  ;;  %v975_v63 = vsel %vm961_vm1, %v972_v39, %v974_v53  ;;  %v1042_v0 = vadd.s32 1, %v2195_v32  ;;  %v967_v43 = vsel %vm961_vm1, %v964_v34, %v966_v51 }
  0x37   :  { %v167_v56 = vsel %vm2162_vm3, 0, %v2161_v26  ;;  %v266_v60 = vsub.s32 0, %v2816_v35  ;;  %v2832_v1 = vmul.u32.u64.low %v2776_v61, %v975_v63  ;;  %v2833_v2 = vmul.u32.u64.high %v2776_v61, %v975_v63, %v2832_v1 }
  0x38   :  { %v168_v55 = vsub.s32 32, %v167_v56  ;;  %v169_v41 = vshll.u32 %v2767_v48, %v167_v56  ;;  %v172_v57 = vsub.s32 4294967266, %v167_v56  ;;  %v2838_v48 = vld [vmem:[%s4132_s0 + $0x8] sm:$0xff]   ;;  %v1032_v19 = vand.u32 2147483647, %v2666_v38 }
  0x39   :  { %v2164_v3 = vmin.u32 %v266_v60, %v2816_v35  ;;  %v2844_v12 = vmul.u32.u64.low %v2776_v61, %v971_v58  ;;  %v2845_v15 = vmul.u32.u64.high %v2776_v61, %v971_v58, %v2844_v12  ;;  %vm1043_vm4 = vcmp.gt.s32.totalorder %v1042_v0, 0 }
  0x3a   :  { %v170_v49 = vshrl.u32 %v152_v22, %v168_v55  ;;  %v173_v40 = vadd.s32 127, %v172_v57  ;;  %v185_v20 = vsel %vm2796_vm2, 0, %v183_v59  ;;  %v286_v22 = vsub.s32 4, %v2791_v23 }
  0x3b   :  { %v268_v21 = vclz %v2164_v3  ;;  %v2271_v24 = vunpack.c.l.bf16 %v2838_v48  ;;  %v983_v27 = vmul.u32 %v2776_v61, %v967_v43  ;;  %vm985_vm5 = vc.u32 %v2833_v2, %v2844_v12 }
  0x3c   :  { %v171_v17 = vor.u32 %v170_v49, %v169_v41  ;;  %v174_v18 = vshll.u32 %v173_v40, 23  ;;  %v986_v32 = vadd.s32 1, %v2845_v15  ;;  %v1044_v36 = vsel %vm1043_vm4, %v1042_v0, 0 }
  0x3d   :  { %v2165_v31 = vadd.s32 4294967294, %v268_v21  ;;  %v2272_v37 = vunpack.c.h.bf16 %v2838_v48  ;;  %vm202_vm6 = vcmp.lt.s32.totalorder %v2635_v11, 0  ;;  %v1039_v14 = vand.u32 8388607, %v1032_v19 }
  0x3e   :  { %v175_v46 = vor.u32 4788187, %v174_v18  ;;  %v178_v26 = vcvt.s32.f32 %v171_v17  ;;  %v1046_v34 = vand.u32 31, %v1044_v36  ;;  %v189_v39 = vadd.s32 3, %v185_v20 }
  0x3f   :  { %v256_v61 = vadd.s32 %v2753_v30, %v2750_v29  ;;  %vm2166_vm7 = vcmp.lt.s32.totalorder %v2165_v31, 0  ;;  %v987_v44 = vsel %vm985_vm5, %v986_v32, %v2845_v15  ;;  %v287_v53 = vsel %vm202_vm6, %v286_v22, %v2791_v23 }
  0x40   :  { %v176_v33 = vand.u32 2147483647, %v175_v46  ;;  %v271_v51 = vsel %vm2166_vm7, 0, %v2165_v31  ;;  %v988_v55 = vadd.s32 %v987_v44, %v983_v27  ;;  %v1047_v59 = vsub.s32 32, %v1046_v34 }
  0x41   :  { %v272_v41 = vsub.s32 32, %v271_v51  ;;  %v273_v57 = vshll.u32 %v2816_v35, %v271_v51  ;;  %v276_v58 = vsub.s32 4294967266, %v271_v51  ;;  %vm2870_vm8 = vcmp.le.f32.partialorder %v200_v16, 0.7853982 }
  0x42   :  { %v179_v56 = vmul.f32 %v178_v26, %v176_v33  ;;  %v989_v30 = vadd.s32 536870912, %v988_v55  ;;  %v1040_v63 = vor.u32 8388608, %v1039_v14  ;;  %v2874_v0 = vand.u32 3, %v189_v39 }
  0x43   :  { %v274_v49 = vshrl.u32 %v256_v61, %v272_v41  ;;  %v277_v40 = vadd.s32 127, %v276_v58  ;;  %v289_v23 = vsel %vm2870_vm8, 0, %v287_v53  ;;  %v2882_v3 = vshrl.u32 %v1044_v36, 5 }
  0x44   :  { %v180_v60 = vxor.u32 2147483648, %v179_v56  ;;  %v2880_v1 = vshrl.u32 %v989_v30, 30  ;;  %v1049_v16 = vshll.u32 %v2561_v45, %v1046_v34  ;;  %v1050_v18 = vshrl.u32 %v2562_v47, %v1047_v59 }
  0x45   :  { %v275_v15 = vor.u32 %v274_v49, %v273_v57  ;;  %v278_v17 = vshll.u32 %v277_v40, 23  ;;  %v1052_v21 = vshll.u32 %v2562_v47, %v1046_v34  ;;  %v1053_v22 = vshrl.u32 %v2563_v50, %v1047_v59 }
  0x46   :  { %v181_v35 = vsel %vm98_vm14, %v180_v60, %v179_v56  ;;  %v991_v20 = vshll.u32 %v2880_v1, 30  ;;  %v1058_v27 = vshll.u32 %v2564_v52, %v1046_v34  ;;  %vm195_vm9 = vcmp.eq.s32.totalorder %v2874_v0, 2 }
  0x47   :  { %v184_v43 = vsel %vm2796_vm2, %v2630_v10, %v181_v35  ;;  %v279_v46 = vor.u32 4788187, %v278_v17  ;;  %v282_v26 = vcvt.s32.f32 %v275_v15  ;;  %v1055_v31 = vshll.u32 %v2563_v50, %v1046_v34 }
  0x48   :  { %2493 = vcosq.f32 %v184_v43  ;;  %v2894_v25 = vsub.s32 %v988_v55, %v991_v20  ;;  %v1056_v32 = vshrl.u32 %v2564_v52, %v1047_v59  ;;  %v1059_v36 = vshrl.u32 %v2565_v54, %v1047_v59 }
  0x49   :  { %2495 = vsinq.f32 %v184_v43  ;;  %vm192_vm10 = vcmp.eq.s32.totalorder %v2874_v0, 0  ;;  %v280_v33 = vand.u32 2147483647, %v279_v46  ;;  %v293_v14 = vadd.s32 3, %v289_v23 }
  0x4a   :  { %v1061_v39 = vshll.u32 %v2565_v54, %v1046_v34  ;;  %v1062_v61 = vshrl.u32 %v2566_v62, %v1047_v59  ;;  %vm191_vm11 = vcmp.lt.s32.totalorder %v2874_v0, 2  ;;  %v984_v44 = vadd.s32 %v2844_v12, %v2833_v2 }
  0x4b   :  { %v994_v56 = vsub.s32 0, %v2894_v25  ;;  %v1060_v51 = vor.u32 %v1059_v36, %v1058_v27  ;;  %v2906_v53 = vshll.u32 %v1040_v63, 8  ;;  %v283_v55 = vmul.f32 %v282_v26, %v280_v33 }
  0x4c   :  { %v1048_v41 = vshrl.u32 %v2561_v45, %v1047_v59  ;;  %v1051_v57 = vor.u32 %v1050_v18, %v1049_v16  ;;  %v1054_v58 = vor.u32 %v1053_v22, %v1052_v21  ;;  %v1057_v34 = vor.u32 %v1056_v32, %v1055_v31 }
  0x4d   :  { %v2192_v60 = vmin.u32 %v994_v56, %v2894_v25  ;;  %vm1064_vm12 = vcmp.lt.s32.totalorder %v2882_v3, 1  ;;  %vm1067_vm13 = vcmp.lt.s32.totalorder %v2882_v3, 4  ;;  %vm188_vm14 = vweird.f32 %v2630_v10 }
  0x4e   :  { %v284_v2 = vxor.u32 2147483648, %v283_v55  ;;  %vm930_vm15 = vcmp.lt.s32.totalorder %v2643_v13, 0  ;;  %v1063_v12 = vor.u32 %v1062_v61, %v1061_v39  ;;  %vm1066_vm0 = vcmp.lt.s32.totalorder %v2882_v3, 3  ;;  %v2954_v39 = vld [vmem:[%s4132_s0 + $0x28] sm:$0xff]  }
  0x4f   :  { %v1073_v59 = vsel %vm1067_vm13, %v1060_v51, 920167782  ;;  %v996_v30 = vclz %v2192_v60  ;;  %v1014_v63 = vsub.s32 4, %v2880_v1  ;;  %v1069_v49 = vsel %vm1067_vm13, %v1057_v34, 2102212464 }
  0x50   :  { %v2923_v40 = vmul.f32 %v2271_v24, %v2617_v5  ;;  %v285_v23 = vsel %vm202_vm6, %v284_v2, %v283_v55  ;;  %vm1065_vm1 = vcmp.lt.s32.totalorder %v2882_v3, 2  ;;  %v1068_v35 = vsel %vm1064_vm12, %v1048_v41, %v1051_v57 }
  0x51   :  { %v1072_v16 = vsel %vm1064_vm12, %v1051_v57, %v1054_v58  ;;  %v288_v15 = vsel %vm2870_vm8, %v2635_v11, %v285_v23  ;;  %v2193_v17 = vadd.s32 4294967294, %v996_v30  ;;  %v1074_v18 = vsel %vm1066_vm0, %v1057_v34, %v1073_v59 }
  0x52   :  { %v2494_v43 = vpop.eup %2493  ;;  %v1076_v20 = vsel %vm1064_vm12, %v1054_v58, %v1057_v34  ;;  %2497 = vcosq.f32 %v288_v15  ;;  %v1070_v46 = vsel %vm1066_vm0, %v1054_v58, %v1069_v49  ;;  %v1077_v26 = vsel %vm1067_vm13, %v1063_v12, 1326507024 }
  0x53   :  { %v2496_v21 = vpop.eup %2495  ;;  %v196_v22 = vxor.u32 2147483648, %v2494_v43  ;;  %2499 = vsinq.f32 %v288_v15  ;;  %vm2194_vm2 = vcmp.lt.s32.totalorder %v2193_v17, 0  ;;  %v1078_v29 = vsel %vm1066_vm0, %v1060_v51, %v1077_v26  ;;  %v2994_v15 = vld [vmem:[%s4134_s4] ss:$0 sm:$0xff] }
  0x54   :  { %v193_v27 = vxor.u32 2147483648, %v2496_v21  ;;  %v999_v32 = vsel %vm2194_vm2, 0, %v2193_v17  ;;  %v1075_v36 = vsel %vm1065_vm1, %v1072_v16, %v1074_v18  ;;  %v1079_v33 = vsel %vm1065_vm1, %v1076_v20, %v1078_v29 }
  0x55   :  { %v197_v31 = vsel %vm195_vm9, %v196_v22, %v2496_v21  ;;  %v1000_v56 = vsub.s32 32, %v999_v32  ;;  %v1001_v51 = vshll.u32 %v2894_v25, %v999_v32  ;;  %v1004_v55 = vsub.s32 4294967266, %v999_v32 }
  0x56   :  { %v194_v61 = vsel %vm192_vm10, %v2494_v43, %v193_v27  ;;  %v294_v57 = vand.u32 3, %v293_v14  ;;  %v2962_v58 = vmul.u32.u64.low %v2906_v53, %v1079_v33  ;;  %v2963_v60 = vmul.u32.u64.high %v2906_v53, %v1079_v33, %v2962_v58 }
  0x57   :  { %v198_v41 = vsel %vm191_vm11, %v194_v61, %v197_v31  ;;  %v1002_v34 = vshrl.u32 %v984_v44, %v1000_v56  ;;  %v1005_v2 = vadd.s32 127, %v1004_v55  ;;  %v1015_v12 = vsel %vm930_vm15, %v1014_v63, %v2880_v1 }
  0x58   :  { %v2287_v59 = vunpack.c.l.bf16 %v2954_v39  ;;  %v1071_v25 = vsel %vm1065_vm1, %v1068_v35, %v1070_v46  ;;  %v2972_v30 = vmul.u32.u64.low %v2906_v53, %v1075_v36  ;;  %v2973_v0 = vmul.u32.u64.high %v2906_v53, %v1075_v36, %v2972_v30 }
  0x59   :  { %v307_v14 = vand.u32 2139095040, %v2923_v40  ;;  %v199_v44 = vsel %vm188_vm14, nan, %v198_v41  ;;  %vm2981_vm3 = vcmp.le.f32.partialorder %v928_v42, 0.7853982  ;;  %v1003_v1 = vor.u32 %v1002_v34, %v1001_v51 }
  0x5a   :  { %v1006_v63 = vshll.u32 %v1005_v2, 23  ;;  %vm292_vm4 = vweird.f32 %v2635_v11  ;;  %vm299_vm5 = vcmp.eq.s32.totalorder %v294_v57, 2  ;;  %v1017_v3 = vsel %vm2981_vm3, 0, %v1015_v12 }
  0x5b   :  { %v308_v23 = vshrl.u32 %v307_v14, 23  ;;  %v1010_v16 = vcvt.s32.f32 %v1003_v1  ;;  %v1087_v10 = vmul.u32 %v2906_v53, %v1071_v25  ;;  %vm1089_vm6 = vc.u32 %v2963_v60, %v2972_v30 }
  0x5c   :  { %v1007_v35 = vor.u32 4788187, %v1006_v63  ;;  %v2498_v42 = vpop.eup %2497  ;;  %v1760_v43 = vmul.f32 %v199_v44, %v199_v44  ;;  %v1090_v17 = vadd.s32 1, %v2973_v0  ;;  %v304_v18 = vand.u32 2147483647, %v2923_v40 }
  0x5d   :  { %v2167_v20 = vadd.s32 4294967169, %v308_v23  ;;  %v2500_v21 = vpop.eup %2499  ;;  %vm295_vm7 = vcmp.lt.s32.totalorder %v294_v57, 2  ;;  %vm296_vm8 = vcmp.eq.s32.totalorder %v294_v57, 0  ;;  %v300_v22 = vxor.u32 2147483648, %v2498_v42 }
  0x5e   :  { %v1008_v53 = vand.u32 2147483647, %v1007_v35  ;;  %v297_v46 = vxor.u32 2147483648, %v2500_v21  ;;  %v1091_v26 = vsel %vm1089_vm6, %v1090_v17, %v2973_v0  ;;  %v3002_v27 = vmul.f32 %v2272_v37, %v2617_v5 }
  0x5f   :  { %v314_v29 = vadd.s32 1, %v2167_v20  ;;  %v301_v31 = vsel %vm299_vm5, %v300_v22, %v2500_v21  ;;  %v1021_v36 = vadd.s32 3, %v1017_v3  ;;  %v1092_v33 = vadd.s32 %v1091_v26, %v1087_v10 }
  0x60   :  { %v1011_v32 = vmul.f32 %v1010_v16, %v1008_v53  ;;  %v298_v61 = vsel %vm296_vm8, %v2498_v42, %v297_v46  ;;  %v1783_v56 = vmul.f32 %v2994_v15, %v1760_v43  ;;  %v311_v51 = vand.u32 8388607, %v304_v18 }
  0x61   :  { %vm315_vm9 = vcmp.gt.s32.totalorder %v314_v29, 0  ;;  %v302_v55 = vsel %vm295_vm7, %v298_v61, %v301_v31  ;;  %v1093_v58 = vadd.s32 536870912, %v1092_v33  ;;  %v3016_v44 = vmul.f32 %v2287_v59, %v2617_v5 }
  0x62   :  { %v1012_v41 = vxor.u32 2147483648, %v1011_v32  ;;  %v316_v34 = vsel %vm315_vm9, %v314_v29, 0  ;;  %v303_v2 = vsel %vm292_vm4, nan, %v302_v55  ;;  %v3021_v1 = vand.u32 3, %v1021_v36 }
  0x63   :  { %v318_v12 = vand.u32 31, %v316_v34  ;;  %v1761_v25 = vmul.f32 %v303_v2, %v303_v2  ;;  %v1094_v14 = vshrl.u32 %v1093_v58, 30  ;;  %v411_v11 = vand.u32 2139095040, %v3002_v27 }
  0x64   :  { %v1013_v0 = vsel %vm930_vm15, %v1012_v41, %v1011_v32  ;;  %v1799_v23 = vadd.f32 %v2267_v7, %v1783_v56  ;;  %vm1034_vm10 = vcmp.lt.s32.totalorder %v2666_v38, 0  ;;  %v312_v16 = vor.u32 8388608, %v311_v51 }
  0x65   :  { %v1016_v57 = vsel %vm2981_vm3, %v2643_v13, %v1013_v0  ;;  %v319_v63 = vsub.s32 32, %v318_v12  ;;  %v1784_v3 = vmul.f32 %v2994_v15, %v1761_v25  ;;  %v1095_v35 = vshll.u32 %v1094_v14, 30 }
  0x66   :  { %2501 = vcosq.f32 %v1016_v57  ;;  %v321_v5 = vshll.u32 %v2561_v45, %v318_v12  ;;  %v324_v10 = vshll.u32 %v2562_v47, %v318_v12  ;;  %v327_v7 = vshll.u32 %v2563_v50, %v318_v12 }
  0x67   :  { %v322_v49 = vshrl.u32 %v2562_v47, %v319_v63  ;;  %v1800_v42 = vadd.f32 %v2268_v8, %v1784_v3  ;;  %v3033_v43 = vsub.s32 %v1092_v33, %v1095_v35  ;;  %v325_v17 = vshrl.u32 %v2563_v50, %v319_v63 }
  0x68   :  { %vm3039_vm11 = vcmp.le.f32.partialorder %v1032_v19, 0.7853982  ;;  %v317_v21 = vshrl.u32 %v316_v34, 5  ;;  %v328_v22 = vshrl.u32 %v2564_v52, %v319_v63  ;;  %v408_v53 = vand.u32 2147483647, %v3002_v27 }
  0x69   :  { %v412_v46 = vshrl.u32 %v411_v11, 23  ;;  %v1815_v4 = vpack.c.bf16 %v1800_v42, %v1799_v23  ;;  %2503 = vsinq.f32 %v1016_v57  ;;  %v1098_v8 = vsub.s32 0, %v3033_v43 }
  0x6a   :  { %v330_v26 = vshll.u32 %v2564_v52, %v318_v12  ;;  %v1118_v29 = vsub.s32 4, %v1094_v14  ;;  %v331_v31 = vshrl.u32 %v2565_v54, %v319_v63  ;;  %v333_v19 = vshll.u32 %v2565_v54, %v318_v12 }
  0x6b   :  { %v334_v32 = vshrl.u32 %v2566_v62, %v319_v63  ;;  %2383 = vmatprep.mubr.bf16.mxu0 %v1815_v4  ;;  %v2196_v36 = vmin.u32 %v1098_v8, %v3033_v43  ;;  %v323_v33 = vor.u32 %v322_v49, %v321_v5  ;;  %v326_v61 = vor.u32 %v325_v17, %v324_v10 }
  0x6c   :  { %v329_v56 = vor.u32 %v328_v22, %v327_v7  ;;  %v332_v51 = vor.u32 %v331_v31, %v330_v26  ;;  %vm336_vm12 = vcmp.lt.s32.totalorder %v317_v21, 1  ;;  %vm339_vm13 = vcmp.lt.s32.totalorder %v317_v21, 4 }
  0x6d   :  { %v335_v55 = vor.u32 %v334_v32, %v333_v19  ;;  %vm1027_vm14 = vcmp.eq.s32.totalorder %v3021_v1, 2  ;;  %v1088_v41 = vadd.s32 %v2972_v30, %v2963_v60  ;;  %v1100_v58 = vclz %v2196_v36 }
  0x6e   :  { %v320_v34 = vshrl.u32 %v2561_v45, %v319_v63  ;;  %vm338_vm15 = vcmp.lt.s32.totalorder %v317_v21, 3  ;;  %v1119_v2 = vsel %vm1034_vm10, %v1118_v29, %v1094_v14  ;;  %v345_v12 = vsel %vm339_vm13, %v332_v51, 920167782 }
  0x6f   :  { %v3058_v25 = vshll.u32 %v312_v16, 8  ;;  %v2171_v0 = vadd.s32 4294967169, %v412_v46  ;;  %vm1024_vm0 = vcmp.eq.s32.totalorder %v3021_v1, 0  ;;  %v2197_v57 = vadd.s32 4294967294, %v1100_v58 }
  0x70   :  { %vm337_vm1 = vcmp.lt.s32.totalorder %v317_v21, 2  ;;  %v341_v11 = vsel %vm339_vm13, %v329_v56, 2102212464  ;;  %v348_v60 = vsel %vm336_vm12, %v326_v61, %v329_v56  ;;  %v2502_v30 = vpop.eup %2501  ;;  %v344_v63 = vsel %vm336_vm12, %v323_v33, %v326_v61 }
  0x71   :  { %v346_v3 = vsel %vm338_vm15, %v329_v56, %v345_v12  ;;  %v349_v14 = vsel %vm339_vm13, %v335_v55, 1326507024  ;;  %v3068_v23 = vand.u32 8388607, %v408_v53  ;;  %vm2198_vm2 = vcmp.lt.s32.totalorder %v2197_v57, 0 }
  0x72   :  { %v1121_v35 = vsel %vm3039_vm11, 0, %v1119_v2  ;;  %v340_v16 = vsel %vm336_vm12, %v320_v34, %v323_v33  ;;  %v350_v5 = vsel %vm338_vm15, %v332_v51, %v349_v14  ;;  %v1103_v49 = vsel %vm2198_vm2, 0, %v2197_v57 }
  0x73   :  { %v342_v10 = vsel %vm338_vm15, %v326_v61, %v341_v11  ;;  %v351_v42 = vsel %vm337_vm1, %v348_v60, %v350_v5  ;;  %v418_v17 = vadd.s32 1, %v2171_v0  ;;  %v2504_v7 = vpop.eup %2503  ;;  %v1104_v22 = vsub.s32 32, %v1103_v49 }
  0x74   :  { %v1105_v46 = vshll.u32 %v3033_v43, %v1103_v49  ;;  %v1108_v4 = vsub.s32 4294967266, %v1103_v49  ;;  %v347_v8 = vsel %vm337_vm1, %v344_v63, %v346_v3  ;;  %v1028_v26 = vxor.u32 2147483648, %v2502_v30 }
  0x75   :  { %v3079_v29 = vmul.u32.u64.low %v3058_v25, %v351_v42  ;;  %v3080_v31 = vmul.u32.u64.high %v3058_v25, %v351_v42, %v3079_v29  ;;  %vm419_vm3 = vcmp.gt.s32.totalorder %v418_v17, 0  ;;  %v1106_v19 = vshrl.u32 %v1088_v41, %v1104_v22 }
  0x76   :  { %v1109_v32 = vadd.s32 127, %v1108_v4  ;;  %v343_v36 = vsel %vm337_vm1, %v340_v16, %v342_v10  ;;  %v420_v33 = vsel %vm419_vm3, %v418_v17, 0  ;;  %v1025_v61 = vxor.u32 2147483648, %v2504_v7 }
  0x77   :  { %v3084_v56 = vmul.u32.u64.low %v3058_v25, %v347_v8  ;;  %v3085_v51 = vmul.u32.u64.high %v3058_v25, %v347_v8, %v3084_v56  ;;  %v416_v43 = vor.u32 8388608, %v3068_v23  ;;  %vm1023_vm4 = vcmp.lt.s32.totalorder %v3021_v1, 2 }
  0x78   :  { %v1107_v55 = vor.u32 %v1106_v19, %v1105_v46  ;;  %v1110_v58 = vshll.u32 %v1109_v32, 23  ;;  %v3090_v34 = vshrl.u32 %v420_v33, 5  ;;  %v422_v2 = vand.u32 31, %v420_v33 }
  0x79   :  { %v1029_v21 = vsel %vm1027_vm14, %v1028_v26, %v2504_v7  ;;  %v1125_v41 = vadd.s32 3, %v1121_v35  ;;  %v359_v12 = vmul.u32 %v3058_v25, %v343_v36  ;;  %vm361_vm5 = vc.u32 %v3080_v31, %v3084_v56 }
  0x7a   :  { %v1111_v0 = vor.u32 4788187, %v1110_v58  ;;  %v1114_v57 = vcvt.s32.f32 %v1107_v55  ;;  %v423_v11 = vsub.s32 32, %v422_v2  ;;  %v425_v60 = vshll.u32 %v2561_v45, %v422_v2 }
  0x7b   :  { %v1026_v63 = vsel %vm1024_vm0, %v2502_v30, %v1025_v61  ;;  %v362_v3 = vadd.s32 1, %v3085_v51  ;;  %v428_v14 = vshll.u32 %v2562_v47, %v422_v2  ;;  %v431_v23 = vshll.u32 %v2563_v50, %v422_v2 }
  0x7c   :  { %vm1020_vm6 = vweird.f32 %v2643_v13  ;;  %v1112_v25 = vand.u32 2147483647, %v1111_v0  ;;  %v426_v35 = vshrl.u32 %v2562_v47, %v423_v11  ;;  %v429_v16 = vshrl.u32 %v2563_v50, %v423_v11 }
  0x7d   :  { %vm440_vm7 = vcmp.lt.s32.totalorder %v3090_v34, 1  ;;  %v363_v5 = vsel %vm361_vm5, %v362_v3, %v3085_v51  ;;  %v432_v49 = vshrl.u32 %v2564_v52, %v423_v11  ;;  %v434_v30 = vshll.u32 %v2564_v52, %v422_v2 }
  0x7e   :  { %v435_v10 = vshrl.u32 %v2565_v54, %v423_v11  ;;  %v1115_v42 = vmul.f32 %v1114_v57, %v1112_v25  ;;  %v364_v17 = vadd.s32 %v363_v5, %v359_v12  ;;  %v427_v7 = vor.u32 %v426_v35, %v425_v60 }
  0x7f   :  { %v430_v22 = vor.u32 %v429_v16, %v428_v14  ;;  %v433_v46 = vor.u32 %v432_v49, %v431_v23  ;;  %v437_v8 = vshll.u32 %v2565_v54, %v422_v2  ;;  %v438_v26 = vshrl.u32 %v2566_v62, %v423_v11 }
  0x80   :  { %v436_v4 = vor.u32 %v435_v10, %v434_v30  ;;  %v1116_v29 = vxor.u32 2147483648, %v1115_v42  ;;  %v365_v19 = vadd.s32 536870912, %v364_v17  ;;  %v424_v32 = vshrl.u32 %v2561_v45, %v423_v11 }
  0x81   :  { %vm442_vm8 = vcmp.lt.s32.totalorder %v3090_v34, 3  ;;  %v439_v36 = vor.u32 %v438_v26, %v437_v8  ;;  %vm441_vm9 = vcmp.lt.s32.totalorder %v3090_v34, 2  ;;  %vm443_vm12 = vcmp.lt.s32.totalorder %v3090_v34, 4 }
  0x82   :  { %v448_v33 = vsel %vm440_vm7, %v427_v7, %v430_v22  ;;  %v1117_v61 = vsel %vm1034_vm10, %v1116_v29, %v1115_v42  ;;  %v366_v51 = vshrl.u32 %v365_v19, 30  ;;  %v445_v55 = vsel %vm443_vm12, %v433_v46, 2102212464 }
  0x83   :  { %v449_v58 = vsel %vm443_vm12, %v436_v4, 920167782  ;;  %v1030_v2 = vsel %vm1023_vm4, %v1026_v63, %v1029_v21  ;;  %v1120_v12 = vsel %vm3039_vm11, %v2666_v38, %v1117_v61  ;;  %v456_v57 = vshll.u32 %v416_v43, 8 }
  0x84   :  { %v450_v0 = vsel %vm442_vm8, %v433_v46, %v449_v58  ;;  %2505 = vcosq.f32 %v1120_v12  ;;  %v367_v11 = vshll.u32 %v366_v51, 30  ;;  %v444_v60 = vsel %vm440_vm7, %v424_v32, %v427_v7 }
  0x85   :  { %v452_v3 = vsel %vm440_vm7, %v430_v22, %v433_v46  ;;  %2507 = vsinq.f32 %v1120_v12  ;;  %v446_v1 = vsel %vm442_vm8, %v430_v22, %v445_v55  ;;  %v451_v20 = vsel %vm441_vm9, %v448_v33, %v450_v0 }
  0x86   :  { %v453_v21 = vsel %vm443_vm12, %v439_v36, 1326507024  ;;  %v1126_v63 = vand.u32 3, %v1125_v41  ;;  %v3142_v43 = vsub.s32 %v364_v17, %v367_v11  ;;  %v1031_v23 = vsel %vm1020_vm6, nan, %v1030_v2 }
  0x87   :  { %v454_v14 = vsel %vm442_vm8, %v436_v4, %v453_v21  ;;  %v3150_v35 = vmul.u32.u64.low %v456_v57, %v451_v20  ;;  %v3151_v16 = vmul.u32.u64.high %v456_v57, %v451_v20, %v3150_v35  ;;  %v447_v41 = vsel %vm441_vm9, %v444_v60, %v446_v1 }
  0x88   :  { %v455_v25 = vsel %vm441_vm9, %v452_v3, %v454_v14  ;;  %v370_v5 = vsub.s32 0, %v3142_v43  ;;  %v390_v10 = vsub.s32 4, %v366_v51  ;;  %v2288_v42 = vunpack.c.h.bf16 %v2954_v39 }
  0x89   :  { %v3157_v49 = vmul.u32.u64.low %v456_v57, %v455_v25  ;;  %v3158_v30 = vmul.u32.u64.high %v456_v57, %v455_v25, %v3157_v49  ;;  %v1139_v13 = vand.u32 2139095040, %v3016_v44  ;;  %vm1124_vm10 = vweird.f32 %v2666_v38 }
  0x8a   :  { %v1768_v17 = vmul.f32 %v1031_v23, %v1031_v23  ;;  %vm3165_vm11 = vcmp.le.f32.partialorder %v304_v18, 0.7853982  ;;  %v2168_v34 = vmin.u32 %v370_v5, %v3142_v43  ;;  %vm306_vm13 = vcmp.lt.s32.totalorder %v2923_v40, 0 }
  0x8b   :  { %v463_v22 = vmul.u32 %v456_v57, %v447_v41  ;;  %v466_v46 = vadd.s32 1, %v3151_v16  ;;  %v1140_v4 = vshrl.u32 %v1139_v13, 23  ;;  %vm1127_vm14 = vcmp.lt.s32.totalorder %v1126_v63, 2 }
  0x8c   :  { %vm1128_vm15 = vcmp.eq.s32.totalorder %v1126_v63, 0  ;;  %v372_v8 = vclz %v2168_v34  ;;  %v1136_v26 = vand.u32 2147483647, %v3016_v44  ;;  %vm1131_vm0 = vcmp.eq.s32.totalorder %v1126_v63, 2 }
  0x8d   :  { %v391_v18 = vsel %vm306_vm13, %v390_v10, %v366_v51  ;;  %vm465_vm1 = vc.u32 %v3158_v30, %v3150_v35  ;;  %v2199_v29 = vadd.s32 4294967169, %v1140_v4  ;;  %v1791_v32 = vmul.f32 %v2994_v15, %v1768_v17  ;;  %v3184_v51 = vld [vmem:[%s4133_s3] ss:$0 sm:$0xff] }
  0x8e   :  { %v2506_v19 = vpop.eup %2505  ;;  %v360_v36 = vadd.s32 %v3084_v56, %v3080_v31  ;;  %v2169_v33 = vadd.s32 4294967294, %v372_v8  ;;  %v467_v61 = vsel %vm465_vm1, %v466_v46, %v3151_v16  ;;  %v3189_v12 = vmul.f32 %v3184_v51, %v2288_v42 }
  0x8f   :  { %v2508_v55 = vpop.eup %2507  ;;  %v1132_v58 = vxor.u32 2147483648, %v2506_v19  ;;  %v468_v2 = vadd.s32 %v467_v61, %v463_v22  ;;  %v1146_v0 = vadd.s32 1, %v2199_v29  ;;  %v393_v31 = vsel %vm3165_vm11, 0, %v391_v18 }
  0x90   :  { %v1129_v57 = vxor.u32 2147483648, %v2508_v55  ;;  %vm2170_vm2 = vcmp.lt.s32.totalorder %v2169_v33, 0  ;;  %v1143_v56 = vand.u32 8388607, %v1136_v26  ;;  %v1243_v5 = vand.u32 2139095040, %v3189_v12 }
  0x91   :  { %v1133_v11 = vsel %vm1131_vm0, %v1132_v58, %v2508_v55  ;;  %v375_v60 = vsel %vm2170_vm2, 0, %v2169_v33  ;;  %v469_v3 = vadd.s32 536870912, %v468_v2  ;;  %vm1147_vm3 = vcmp.gt.s32.totalorder %v1146_v0, 0 }
  0x92   :  { %v1130_v1 = vsel %vm1128_vm15, %v2506_v19, %v1129_v57  ;;  %v376_v20 = vsub.s32 32, %v375_v60  ;;  %v377_v21 = vshll.u32 %v3142_v43, %v375_v60  ;;  %v380_v14 = vsub.s32 4294967266, %v375_v60 }
  0x93   :  { %v1134_v23 = vsel %vm1127_vm14, %v1130_v1, %v1133_v11  ;;  %v3199_v25 = vshrl.u32 %v469_v3, 30  ;;  %v1148_v16 = vsel %vm1147_vm3, %v1146_v0, 0  ;;  %v1144_v34 = vor.u32 8388608, %v1143_v56 }
  0x94   :  { %v1135_v41 = vsel %vm1124_vm10, nan, %v1134_v23  ;;  %v378_v49 = vshrl.u32 %v360_v36, %v376_v20  ;;  %v381_v10 = vadd.s32 127, %v380_v14  ;;  %v1150_v22 = vand.u32 31, %v1148_v16 }
  0x95   :  { %v1769_v13 = vmul.f32 %v1135_v41, %v1135_v41  ;;  %v471_v17 = vshll.u32 %v3199_v25, 30  ;;  %v1807_v43 = vadd.f32 %v2283_v9, %v1791_v32  ;;  %v3207_v4 = vadd.s32 3, %v393_v31 }
  0x96   :  { %v379_v63 = vor.u32 %v378_v49, %v377_v21  ;;  %v382_v46 = vshll.u32 %v381_v10, 23  ;;  %v1151_v38 = vsub.s32 32, %v1150_v22  ;;  %v1244_v29 = vshrl.u32 %v1243_v5, 23 }
  0x97   :  { %v1792_v8 = vmul.f32 %v2994_v15, %v1769_v13  ;;  %v3210_v18 = vsub.s32 %v468_v2, %v471_v17  ;;  %v464_v33 = vadd.s32 %v3150_v35, %v3158_v30  ;;  %v3214_v61 = vshrl.u32 %v1148_v16, 5  ;;  %v3320_v17 = vld [vmem:[%s4132_s0 + $0x10] sm:$0xff]  }
  0x98   :  { %v383_v19 = vor.u32 4788187, %v382_v46  ;;  %v386_v36 = vcvt.s32.f32 %v379_v63  ;;  %v1153_v55 = vshll.u32 %v2561_v45, %v1150_v22  ;;  %v3220_v58 = vshll.u32 %v1144_v34, 8 }
  0x99   :  { %v1808_v9 = vadd.f32 %v2284_v28, %v1792_v8  ;;  %v474_v32 = vsub.s32 0, %v3210_v18  ;;  %v1154_v0 = vshrl.u32 %v2562_v47, %v1151_v38  ;;  %v1156_v57 = vshll.u32 %v2562_v47, %v1150_v22 }
  0x9a   :  { %v384_v2 = vand.u32 2147483647, %v383_v19  ;;  %v1157_v31 = vshrl.u32 %v2563_v50, %v1151_v38  ;;  %v1159_v30 = vshll.u32 %v2563_v50, %v1150_v22  ;;  %v2203_v6 = vadd.s32 4294967169, %v1244_v29 }
  0x9b   :  { %v1819_v56 = vpack.c.bf16 %v1808_v9, %v1807_v43  ;;  %v2172_v35 = vmin.u32 %v474_v32, %v3210_v18  ;;  %v494_v11 = vsub.s32 4, %v3199_v25  ;;  %v1160_v60 = vshrl.u32 %v2564_v52, %v1151_v38 }
  0x9c   :  { %v387_v28 = vmul.f32 %v386_v36, %v384_v2  ;;  %vm1168_vm4 = vcmp.lt.s32.totalorder %v3214_v61, 1  ;;  %vm410_vm5 = vcmp.lt.s32.totalorder %v3002_v27, 0  ;;  %v1152_v1 = vshrl.u32 %v2561_v45, %v1151_v38 }
  0x9d   :  { %2391 = vmatprep.mubr.bf16.mxu1 %v1819_v56  ;;  %v476_v3 = vclz %v2172_v35  ;;  %v1155_v20 = vor.u32 %v1154_v0, %v1153_v55  ;;  %vm1169_vm6 = vcmp.lt.s32.totalorder %v3214_v61, 2  ;;  %v1158_v14 = vor.u32 %v1157_v31, %v1156_v57 }
  0x9e   :  { %v388_v21 = vxor.u32 2147483648, %v387_v28  ;;  %v1162_v23 = vshll.u32 %v2564_v52, %v1150_v22  ;;  %v1163_v16 = vshrl.u32 %v2565_v54, %v1151_v38  ;;  %v1161_v41 = vor.u32 %v1160_v60, %v1159_v30 }
  0x9f   :  { %v2173_v5 = vadd.s32 4294967294, %v476_v3  ;;  %v1165_v49 = vshll.u32 %v2565_v54, %v1150_v22  ;;  %v1166_v10 = vshrl.u32 %v2566_v62, %v1151_v38  ;;  %vm3241_vm7 = vcmp.le.f32.partialorder %v408_v53, 0.7853982 }
  0xa0   :  { %v389_v13 = vsel %vm306_vm13, %v388_v21, %v387_v28  ;;  %v1164_v34 = vor.u32 %v1163_v16, %v1162_v23  ;;  %vm1170_vm8 = vcmp.lt.s32.totalorder %v3214_v61, 3  ;;  %vm1171_vm9 = vcmp.lt.s32.totalorder %v3214_v61, 4 }
  0xa1   :  { %v392_v22 = vsel %vm3165_vm11, %v2923_v40, %v389_v13  ;;  %vm2174_vm12 = vcmp.lt.s32.totalorder %v2173_v5, 0  ;;  %v1167_v43 = vor.u32 %v1166_v10, %v1165_v49  ;;  %v1173_v63 = vsel %vm1171_vm9, %v1161_v41, 2102212464 }
  0xa2   :  { %2509 = vcosq.f32 %v392_v22  ;;  %v479_v46 = vsel %vm2174_vm12, 0, %v2173_v5  ;;  %v1172_v53 = vsel %vm1168_vm4, %v1152_v1, %v1155_v20  ;;  %v1176_v8 = vsel %vm1168_vm4, %v1155_v20, %v1158_v14 }
  0xa3   :  { %2511 = vsinq.f32 %v392_v22  ;;  %v480_v38 = vsub.s32 32, %v479_v46  ;;  %v481_v29 = vshll.u32 %v3210_v18, %v479_v46  ;;  %v484_v19 = vsub.s32 4294967266, %v479_v46 }
  0xa4   :  { %v1174_v7 = vsel %vm1170_vm8, %v1158_v14, %v1173_v63  ;;  %v1177_v36 = vsel %vm1171_vm9, %v1164_v34, 920167782  ;;  %v1180_v9 = vsel %vm1168_vm4, %v1158_v14, %v1161_v41  ;;  %v1181_v32 = vsel %vm1171_vm9, %v1167_v43, 1326507024 }
  0xa5   :  { %v482_v55 = vshrl.u32 %v464_v33, %v480_v38  ;;  %v485_v2 = vadd.s32 127, %v484_v19  ;;  %v1178_v0 = vsel %vm1170_vm8, %v1161_v41, %v1177_v36  ;;  %v1182_v18 = vsel %vm1170_vm8, %v1164_v34, %v1181_v32 }
  0xa6   :  { %v495_v57 = vsel %vm410_vm5, %v494_v11, %v3199_v25  ;;  %v1179_v31 = vsel %vm1169_vm6, %v1176_v8, %v1178_v0  ;;  %v1183_v56 = vsel %vm1169_vm6, %v1180_v9, %v1182_v18  ;;  %v1240_v35 = vand.u32 2147483647, %v3189_v12 }
  0xa7   :  { %v483_v33 = vor.u32 %v482_v55, %v481_v29  ;;  %v486_v30 = vshll.u32 %v485_v2, 23  ;;  %v3278_v28 = vmul.u32.u64.low %v3220_v58, %v1183_v56  ;;  %v3279_v60 = vmul.u32.u64.high %v3220_v58, %v1183_v56, %v3278_v28 }
  0xa8   :  { %v1175_v3 = vsel %vm1169_vm6, %v1172_v53, %v1174_v7  ;;  %v3284_v1 = vmul.u32.u64.low %v3220_v58, %v1179_v31  ;;  %v3285_v25 = vmul.u32.u64.high %v3220_v58, %v1179_v31, %v3284_v1  ;;  %v1250_v11 = vadd.s32 1, %v2203_v6 }
  0xa9   :  { %v398_v20 = vand.u32 3, %v3207_v4  ;;  %v487_v21 = vor.u32 4788187, %v486_v30  ;;  %v490_v14 = vcvt.s32.f32 %v483_v33  ;;  %v497_v23 = vsel %vm3241_vm7, 0, %v495_v57 }
  0xaa   :  { %vm1251_vm10 = vcmp.gt.s32.totalorder %v1250_v11, 0  ;;  %v1191_v5 = vmul.u32 %v3220_v58, %v1175_v3  ;;  %vm1193_vm11 = vc.u32 %v3279_v60, %v3284_v1  ;;  %v501_v49 = vadd.s32 3, %v497_v23 }
  0xab   :  { %v488_v16 = vand.u32 2147483647, %v487_v21  ;;  %v1252_v61 = vsel %vm1251_vm10, %v1250_v11, 0  ;;  %v1194_v10 = vadd.s32 1, %v3285_v25  ;;  %v1247_v4 = vand.u32 8388607, %v1240_v35 }
  0xac   :  { %v2510_v41 = vpop.eup %2509  ;;  %v1254_v6 = vand.u32 31, %v1252_v61  ;;  %vm396_vm13 = vweird.f32 %v2923_v40  ;;  %vm399_vm14 = vcmp.lt.s32.totalorder %v398_v20, 2  ;;  %vm400_vm15 = vcmp.eq.s32.totalorder %v398_v20, 0 }
  0xad   :  { %v2512_v13 = vpop.eup %2511  ;;  %v491_v34 = vmul.f32 %v490_v14, %v488_v16  ;;  %v404_v43 = vxor.u32 2147483648, %v2510_v41  ;;  %v1195_v58 = vsel %vm1193_vm11, %v1194_v10, %v3285_v25  ;;  %vm403_vm0 = vcmp.eq.s32.totalorder %v398_v20, 2 }
  0xae   :  { %v401_v22 = vxor.u32 2147483648, %v2512_v13  ;;  %v1255_v63 = vsub.s32 32, %v1254_v6  ;;  %v1196_v53 = vadd.s32 %v1195_v58, %v1191_v5  ;;  %v3299_v8 = vand.u32 3, %v501_v49 }
  0xaf   :  { %v492_v46 = vxor.u32 2147483648, %v491_v34  ;;  %v1248_v38 = vor.u32 8388608, %v1247_v4  ;;  %v1257_v29 = vshll.u32 %v2561_v45, %v1254_v6  ;;  %v1260_v19 = vshll.u32 %v2562_v47, %v1254_v6 }
  0xb0   :  { %v1197_v36 = vadd.s32 536870912, %v1196_v53  ;;  %v1258_v9 = vshrl.u32 %v2562_v47, %v1255_v63  ;;  %v1261_v32 = vshrl.u32 %v2563_v50, %v1255_v63  ;;  %v402_v55 = vsel %vm400_vm15, %v2510_v41, %v401_v22 }
  0xb1   :  { %v493_v7 = vsel %vm410_vm5, %v492_v46, %v491_v34  ;;  %v405_v2 = vsel %vm403_vm0, %v404_v43, %v2512_v13  ;;  %v1253_v18 = vshrl.u32 %v1252_v61, 5  ;;  %v1263_v31 = vshll.u32 %v2563_v50, %v1254_v6 }
  0xb2   :  { %v496_v0 = vsel %vm3241_vm7, %v3002_v27, %v493_v7  ;;  %v3310_v57 = vshrl.u32 %v1197_v36, 30  ;;  %v1264_v56 = vshrl.u32 %v2564_v52, %v1255_v63  ;;  %v1266_v33 = vshll.u32 %v2564_v52, %v1254_v6 }
  0xb3   :  { %2513 = vcosq.f32 %v496_v0  ;;  %v1267_v30 = vshrl.u32 %v2565_v54, %v1255_v63  ;;  %v1269_v28 = vshll.u32 %v2565_v54, %v1254_v6  ;;  %v406_v3 = vsel %vm399_vm14, %v402_v55, %v405_v2 }
  0xb4   :  { %2515 = vsinq.f32 %v496_v0  ;;  %v1199_v25 = vshll.u32 %v3310_v57, 30  ;;  %v1259_v11 = vor.u32 %v1258_v9, %v1257_v29  ;;  %v1262_v21 = vor.u32 %v1261_v32, %v1260_v19 }
  0xb5   :  { %v1256_v14 = vshrl.u32 %v2561_v45, %v1255_v63  ;;  %v1268_v23 = vor.u32 %v1267_v30, %v1266_v33  ;;  %v1270_v16 = vshrl.u32 %v2566_v62, %v1255_v63  ;;  %vm1272_vm1 = vcmp.lt.s32.totalorder %v1253_v18, 1 }
  0xb6   :  { %vm503_vm2 = vcmp.lt.s32.totalorder %v3299_v8, 2  ;;  %v3327_v5 = vsub.s32 %v1196_v53, %v1199_v25  ;;  %v1265_v61 = vor.u32 %v1264_v56, %v1263_v31  ;;  %v3329_v41 = vshll.u32 %v1248_v38, 8 }
  0xb7   :  { %v2275_v20 = vunpack.c.l.bf16 %v3320_v17  ;;  %v407_v49 = vsel %vm396_vm13, nan, %v406_v3  ;;  %vm500_vm3 = vweird.f32 %v3002_v27  ;;  %vm1138_vm4 = vcmp.lt.s32.totalorder %v3016_v44, 0 }
  0xb8   :  { %v1271_v10 = vor.u32 %v1270_v16, %v1269_v28  ;;  %vm1274_vm5 = vcmp.lt.s32.totalorder %v1253_v18, 3  ;;  %vm1275_vm6 = vcmp.lt.s32.totalorder %v1253_v18, 4  ;;  %v1202_v4 = vsub.s32 0, %v3327_v5 }
  0xb9   :  { %vm1273_vm7 = vcmp.lt.s32.totalorder %v1253_v18, 2  ;;  %v1277_v6 = vsel %vm1275_vm6, %v1265_v61, 2102212464  ;;  %v1280_v13 = vsel %vm1272_vm1, %v1259_v11, %v1262_v21  ;;  %v1276_v34 = vsel %vm1272_vm1, %v1256_v14, %v1259_v11 }
  0xba   :  { %v1278_v22 = vsel %vm1274_vm5, %v1262_v21, %v1277_v6  ;;  %v1281_v43 = vsel %vm1275_vm6, %v1268_v23, 920167782  ;;  %v1285_v40 = vsel %vm1275_vm6, %v1271_v10, 1326507024  ;;  %vm504_vm8 = vcmp.eq.s32.totalorder %v3299_v8, 0 }
  0xbb   :  { %v2200_v58 = vmin.u32 %v1202_v4, %v3327_v5  ;;  %v1282_v63 = vsel %vm1274_vm5, %v1265_v61, %v1281_v43  ;;  %v1284_v46 = vsel %vm1272_vm1, %v1262_v21, %v1265_v61  ;;  %v1762_v53 = vmul.f32 %v407_v49, %v407_v49 }
  0xbc   :  { %v1283_v38 = vsel %vm1273_vm7, %v1280_v13, %v1282_v63  ;;  %v1286_v29 = vsel %vm1274_vm5, %v1268_v23, %v1285_v40  ;;  %v3349_v19 = vmul.f32 %v3184_v51, %v2275_v20  ;;  %vm507_vm9 = vcmp.eq.s32.totalorder %v3299_v8, 2 }
  0xbd   :  { %v2514_v7 = vpop.eup %2513  ;;  %v1204_v36 = vclz %v2200_v58  ;;  %v1222_v9 = vsub.s32 4, %v3310_v57  ;;  %v1279_v32 = vsel %vm1273_vm7, %v1276_v34, %v1278_v22  ;;  %vm3356_vm12 = vcmp.le.f32.partialorder %v1136_v26, 0.7853982 }
  0xbe   :  { %v2516_v55 = vpop.eup %2515  ;;  %v508_v2 = vxor.u32 2147483648, %v2514_v7  ;;  %v1287_v31 = vsel %vm1273_vm7, %v1284_v46, %v1286_v29  ;;  %v3362_v56 = vmul.u32.u64.low %v3329_v41, %v1283_v38  ;;  %v3363_v33 = vmul.u32.u64.high %v3329_v41, %v1283_v38, %v3362_v56 }
  0xbf   :  { %v505_v30 = vxor.u32 2147483648, %v2516_v55  ;;  %v2201_v28 = vadd.s32 4294967294, %v1204_v36  ;;  %v3366_v3 = vmul.u32.u64.low %v3329_v41, %v1287_v31  ;;  %v3367_v25 = vmul.u32.u64.high %v3329_v41, %v1287_v31, %v3366_v3 }
  0xc0   :  { %v509_v11 = vsel %vm507_vm9, %v508_v2, %v2516_v55  ;;  %v1785_v21 = vmul.f32 %v2994_v15, %v1762_v53  ;;  %v1192_v26 = vadd.s32 %v3284_v1, %v3279_v60  ;;  %v515_v14 = vand.u32 2139095040, %v3349_v19 }
  0xc1   :  { %v506_v18 = vsel %vm504_vm8, %v2514_v7, %v505_v30  ;;  %vm2202_vm10 = vcmp.lt.s32.totalorder %v2201_v28, 0  ;;  %v1223_v23 = vsel %vm1138_vm4, %v1222_v9, %v3310_v57  ;;  %v1295_v16 = vmul.u32 %v3329_v41, %v1279_v32 }
  0xc2   :  { %v510_v61 = vsel %vm503_vm2, %v506_v18, %v509_v11  ;;  %v1207_v49 = vsel %vm2202_vm10, 0, %v2201_v28  ;;  %v1298_v10 = vadd.s32 1, %v3363_v33  ;;  %v516_v4 = vshrl.u32 %v515_v14, 23 }
  0xc3   :  { %v511_v60 = vsel %vm500_vm3, nan, %v510_v61  ;;  %v1208_v1 = vsub.s32 32, %v1207_v49  ;;  %v1209_v6 = vshll.u32 %v3327_v5, %v1207_v49  ;;  %v1212_v13 = vsub.s32 4294967266, %v1207_v49 }
  0xc4   :  { %v1763_v34 = vmul.f32 %v511_v60, %v511_v60  ;;  %vm1297_vm11 = vc.u32 %v3367_v25, %v3362_v56  ;;  %v512_v57 = vand.u32 2147483647, %v3349_v19  ;;  %v2175_v41 = vadd.s32 4294967169, %v516_v4 }
  0xc5   :  { %v1210_v22 = vshrl.u32 %v1192_v26, %v1208_v1  ;;  %v1213_v8 = vadd.s32 127, %v1212_v13  ;;  %v1299_v43 = vsel %vm1297_vm11, %v1298_v10, %v3363_v33  ;;  %v2276_v40 = vunpack.c.h.bf16 %v3320_v17 }
  0xc6   :  { %v1786_v58 = vmul.f32 %v2994_v15, %v1763_v34  ;;  %v1801_v27 = vadd.f32 %v2271_v24, %v1785_v21  ;;  %v1300_v63 = vadd.s32 %v1299_v43, %v1295_v16  ;;  %v522_v5 = vadd.s32 1, %v2175_v41 }
  0xc7   :  { %v1211_v46 = vor.u32 %v1210_v22, %v1209_v6  ;;  %v1214_v53 = vshll.u32 %v1213_v8, 23  ;;  %v1225_v38 = vsel %vm3356_vm12, 0, %v1223_v23  ;;  %v519_v36 = vand.u32 8388607, %v512_v57 }
  0xc8   :  { %v1802_v29 = vadd.f32 %v2272_v37, %v1786_v58  ;;  %v1301_v7 = vadd.s32 536870912, %v1300_v63  ;;  %vm523_vm13 = vcmp.gt.s32.totalorder %v522_v5, 0  ;;  %v3401_v24 = vmul.f32 %v3184_v51, %v2276_v40 }
  0xc9   :  { %v1215_v9 = vor.u32 4788187, %v1214_v53  ;;  %v1218_v15 = vcvt.s32.f32 %v1211_v46  ;;  %v524_v32 = vsel %vm523_vm13, %v522_v5, 0  ;;  %v3403_v30 = vadd.s32 3, %v1225_v38 }
  0xca   :  { %v1816_v55 = vpack.c.bf16 %v1802_v29, %v1801_v27  ;;  %v1302_v2 = vshrl.u32 %v1301_v7, 30  ;;  %v526_v31 = vand.u32 31, %v524_v32  ;;  %vm1242_vm14 = vcmp.lt.s32.totalorder %v3189_v12, 0 }
  0xcb   :  { %v1216_v33 = vand.u32 2147483647, %v1215_v9  ;;  %v3407_v48 = vadd.s32 %v3362_v56, %v3367_v25  ;;  %v520_v28 = vor.u32 8388608, %v519_v36  ;;  %v616_v11 = vand.u32 2147483647, %v3401_v24 }
  0xcc   :  { %2384 = vmatmul.mubr.bf16.vlgmr.msra.gmra.mrb[0].mxu0 %v1816_v55  ;;  %v1303_v37 = vshll.u32 %v1302_v2, 30  ;;  %v527_v3 = vsub.s32 32, %v526_v31  ;;  %v525_v26 = vshrl.u32 %v524_v32, 5  ;;  %v529_v14 = vshll.u32 %v2561_v45, %v526_v31 }
  0xcd   :  { %v1219_v21 = vmul.f32 %v1218_v15, %v1216_v33  ;;  %v619_v18 = vand.u32 2139095040, %v3401_v24  ;;  %v532_v61 = vshll.u32 %v2562_v47, %v526_v31  ;;  %v535_v56 = vshll.u32 %v2563_v50, %v526_v31 }
  0xce   :  { %v3412_v23 = vsub.s32 %v1300_v63, %v1303_v37  ;;  %v530_v16 = vshrl.u32 %v2562_v47, %v527_v3  ;;  %vm3419_vm15 = vcmp.le.f32.partialorder %v1240_v35, 0.7853982  ;;  %v533_v10 = vshrl.u32 %v2563_v50, %v527_v3 }
  0xcf   :  { %v1220_v25 = vxor.u32 2147483648, %v1219_v21  ;;  %v536_v4 = vshrl.u32 %v2564_v52, %v527_v3  ;;  %v538_v60 = vshll.u32 %v2564_v52, %v526_v31  ;;  %v1326_v6 = vsub.s32 4, %v1302_v2 }
  0xd0   :  { %v1306_v1 = vsub.s32 0, %v3412_v23  ;;  %v539_v13 = vshrl.u32 %v2565_v54, %v527_v3  ;;  %v3428_v34 = vshll.u32 %v520_v28, 8  ;;  %v528_v35 = vshrl.u32 %v2561_v45, %v527_v3 }
  0xd1   :  { %v1221_v41 = vsel %vm1138_vm4, %v1220_v25, %v1219_v21  ;;  %v541_v22 = vshll.u32 %v2565_v54, %v526_v31  ;;  %v620_v8 = vshrl.u32 %v619_v18, 23  ;;  %v531_v27 = vor.u32 %v530_v16, %v529_v14  ;;  %v3449_v16 = vld [vmem:[%s4132_s0 + $0x30] sm:$0xff]  }
  0xd2   :  { %v1224_v43 = vsel %vm3356_vm12, %v3016_v44, %v1221_v41  ;;  %v2204_v58 = vmin.u32 %v1306_v1, %v3412_v23  ;;  %v534_v63 = vor.u32 %v533_v10, %v532_v61  ;;  %v537_v5 = vor.u32 %v536_v4, %v535_v56 }
  0xd3   :  { %v540_v46 = vor.u32 %v539_v13, %v538_v60  ;;  %v542_v53 = vshrl.u32 %v2566_v62, %v527_v3  ;;  %vm544_vm0 = vcmp.lt.s32.totalorder %v525_v26, 1  ;;  %2517 = vcosq.f32 %v1224_v43 }
  0xd4   :  { %v1308_v38 = vclz %v2204_v58  ;;  %v1327_v29 = vsel %vm1242_vm14, %v1326_v6, %v1302_v2  ;;  %vm545_vm1 = vcmp.lt.s32.totalorder %v525_v26, 2  ;;  %2519 = vsinq.f32 %v1224_v43 }
  0xd5   :  { %v543_v7 = vor.u32 %v542_v53, %v541_v22  ;;  %vm546_vm2 = vcmp.lt.s32.totalorder %v525_v26, 3  ;;  %vm547_vm3 = vcmp.lt.s32.totalorder %v525_v26, 4  ;;  %v548_v36 = vsel %vm544_vm0, %v528_v35, %v531_v27 }
  0xd6   :  { %v2205_v0 = vadd.s32 4294967294, %v1308_v38  ;;  %v549_v9 = vsel %vm547_vm3, %v537_v5, 2102212464  ;;  %v552_v15 = vsel %vm544_vm0, %v531_v27, %v534_v63  ;;  %v553_v55 = vsel %vm547_vm3, %v540_v46, 920167782 }
  0xd7   :  { %v550_v32 = vsel %vm546_vm2, %v534_v63, %v549_v9  ;;  %v556_v31 = vsel %vm544_vm0, %v534_v63, %v537_v5  ;;  %v557_v33 = vsel %vm547_vm3, %v543_v7, 1326507024  ;;  %v1329_v37 = vsel %vm3419_vm15, 0, %v1327_v29 }
  0xd8   :  { %vm2206_vm4 = vcmp.lt.s32.totalorder %v2205_v0, 0  ;;  %v554_v28 = vsel %vm546_vm2, %v537_v5, %v553_v55  ;;  %v558_v3 = vsel %vm546_vm2, %v540_v46, %v557_v33  ;;  %v551_v21 = vsel %vm545_vm1, %v548_v36, %v550_v32 }
  0xd9   :  { %v1311_v2 = vsel %vm2206_vm4, 0, %v2205_v0  ;;  %v555_v14 = vsel %vm545_vm1, %v552_v15, %v554_v28  ;;  %v559_v18 = vsel %vm545_vm1, %v556_v31, %v558_v3  ;;  %v2179_v10 = vadd.s32 4294967169, %v620_v8 }
  0xda   :  { %v1312_v61 = vsub.s32 32, %v1311_v2  ;;  %v1313_v56 = vshll.u32 %v3412_v23, %v1311_v2  ;;  %v1316_v25 = vsub.s32 4294967266, %v1311_v2  ;;  %v2291_v35 = vunpack.c.l.bf16 %v3449_v16 }
  0xdb   :  { %v3453_v4 = vmul.u32.u64.low %v3428_v34, %v559_v18  ;;  %v3454_v60 = vmul.u32.u64.high %v3428_v34, %v559_v18, %v3453_v4  ;;  %v3457_v1 = vmul.u32.u64.low %v3428_v34, %v555_v14  ;;  %v3458_v6 = vmul.u32.u64.high %v3428_v34, %v555_v14, %v3457_v1 }
  0xdc   :  { %v1314_v26 = vshrl.u32 %v3407_v48, %v1312_v61  ;;  %v1317_v13 = vadd.s32 127, %v1316_v25  ;;  %v626_v41 = vadd.s32 1, %v2179_v10  ;;  %v1230_v22 = vand.u32 3, %v3403_v30 }
  0xdd   :  { %v1333_v23 = vadd.s32 3, %v1329_v37  ;;  %v2518_v43 = vpop.eup %2517  ;;  %v567_v27 = vmul.u32 %v3428_v34, %v551_v21  ;;  %vm569_vm6 = vc.u32 %v3454_v60, %v3457_v1  ;;  %v570_v5 = vadd.s32 1, %v3458_v6 }
  0xde   :  { %v1315_v8 = vor.u32 %v1314_v26, %v1313_v56  ;;  %v1318_v58 = vshll.u32 %v1317_v13, 23  ;;  %vm627_vm5 = vcmp.gt.s32.totalorder %v626_v41, 0  ;;  %v2520_v63 = vpop.eup %2519  ;;  %v623_v48 = vand.u32 8388607, %v616_v11 }
  0xdf   :  { %v2292_v46 = vunpack.c.h.bf16 %v3449_v16  ;;  %v628_v38 = vsel %vm627_vm5, %v626_v41, 0  ;;  %v3474_v29 = vmul.f32 %v3184_v51, %v2291_v35  ;;  %vm1231_vm7 = vcmp.lt.s32.totalorder %v1230_v22, 2 }
  0xe0   :  { %v1319_v53 = vor.u32 4788187, %v1318_v58  ;;  %v1322_v30 = vcvt.s32.f32 %v1315_v8  ;;  %vm1232_vm8 = vcmp.eq.s32.totalorder %v1230_v22, 0  ;;  %v571_v34 = vsel %vm569_vm6, %v570_v5, %v3458_v6 }
  0xe1   :  { %v630_v7 = vand.u32 31, %v628_v38  ;;  %vm1235_vm9 = vcmp.eq.s32.totalorder %v1230_v22, 2  ;;  %v3477_v36 = vand.u32 3, %v1333_v23  ;;  %v572_v9 = vadd.s32 %v571_v34, %v567_v27 }
  0xe2   :  { %v1320_v0 = vand.u32 2147483647, %v1319_v53  ;;  %v1233_v15 = vxor.u32 2147483648, %v2520_v63  ;;  %v1236_v32 = vxor.u32 2147483648, %v2518_v43  ;;  %v624_v55 = vor.u32 8388608, %v623_v48 }
  0xe3   :  { %v631_v31 = vsub.s32 32, %v630_v7  ;;  %v573_v37 = vadd.s32 536870912, %v572_v9  ;;  %v633_v28 = vshll.u32 %v2561_v45, %v630_v7  ;;  %v636_v3 = vshll.u32 %v2562_v47, %v630_v7 }
  0xe4   :  { %v1323_v33 = vmul.f32 %v1322_v30, %v1320_v0  ;;  %vm1228_vm12 = vweird.f32 %v3016_v44  ;;  %v629_v2 = vshrl.u32 %v628_v38, 5  ;;  %v639_v18 = vshll.u32 %v2563_v50, %v630_v7 }
  0xe5   :  { %v634_v21 = vshrl.u32 %v2562_v47, %v631_v31  ;;  %v637_v14 = vshrl.u32 %v2563_v50, %v631_v31  ;;  %v574_v56 = vshrl.u32 %v573_v37, 30  ;;  %v640_v25 = vshrl.u32 %v2564_v52, %v631_v31 }
  0xe6   :  { %v1324_v61 = vxor.u32 2147483648, %v1323_v33  ;;  %v642_v10 = vshll.u32 %v2564_v52, %v630_v7  ;;  %v1234_v4 = vsel %vm1232_vm8, %v2518_v43, %v1233_v15  ;;  %v1237_v6 = vsel %vm1235_vm9, %v1236_v32, %v2520_v63 }
  0xe7   :  { %v632_v26 = vshrl.u32 %v2561_v45, %v631_v31  ;;  %v643_v13 = vshrl.u32 %v2565_v54, %v631_v31  ;;  %v575_v23 = vshll.u32 %v574_v56, 30  ;;  %v635_v8 = vor.u32 %v634_v21, %v633_v28 }
  0xe8   :  { %v1325_v41 = vsel %vm1242_vm14, %v1324_v61, %v1323_v33  ;;  %v638_v58 = vor.u32 %v637_v14, %v636_v3  ;;  %v645_v48 = vshll.u32 %v2565_v54, %v630_v7  ;;  %v646_v43 = vshrl.u32 %v2566_v62, %v631_v31 }
  0xe9   :  { %v1328_v27 = vsel %vm3419_vm15, %v3189_v12, %v1325_v41  ;;  %v644_v5 = vor.u32 %v643_v13, %v642_v10  ;;  %v3498_v63 = vsub.s32 %v572_v9, %v575_v23  ;;  %v641_v53 = vor.u32 %v640_v25, %v639_v18 }
  0xea   :  { %2521 = vcosq.f32 %v1328_v27  ;;  %vm648_vm10 = vcmp.lt.s32.totalorder %v629_v2, 1  ;;  %v1238_v30 = vsel %vm1231_vm7, %v1234_v4, %v1237_v6  ;;  %vm514_vm11 = vcmp.lt.s32.totalorder %v3349_v19, 0 }
  0xeb   :  { %2523 = vsinq.f32 %v1328_v27  ;;  %v647_v38 = vor.u32 %v646_v43, %v645_v48  ;;  %v578_v34 = vsub.s32 0, %v3498_v63  ;;  %vm649_vm13 = vcmp.lt.s32.totalorder %v629_v2, 2 }
  0xec   :  { %vm650_vm14 = vcmp.lt.s32.totalorder %v629_v2, 3  ;;  %vm651_vm15 = vcmp.lt.s32.totalorder %v629_v2, 4  ;;  %v656_v7 = vsel %vm648_vm10, %v635_v8, %v638_v58  ;;  %v664_v15 = vshll.u32 %v624_v55, 8 }
  0xed   :  { %v653_v49 = vsel %vm651_vm15, %v641_v53, 2102212464  ;;  %v657_v0 = vsel %vm651_vm15, %v644_v5, 920167782  ;;  %vm1335_vm0 = vcmp.lt.s32.totalorder %v3477_v36, 2  ;;  %v2176_v9 = vmin.u32 %v578_v34, %v3498_v63 }
  0xee   :  { %v652_v22 = vsel %vm648_vm10, %v632_v26, %v635_v8  ;;  %v658_v32 = vsel %vm650_vm14, %v641_v53, %v657_v0  ;;  %v1347_v31 = vand.u32 2139095040, %v3474_v29  ;;  %vm1332_vm1 = vweird.f32 %v3189_v12 }
  0xef   :  { %v654_v33 = vsel %vm650_vm14, %v638_v58, %v653_v49  ;;  %v659_v37 = vsel %vm649_vm13, %v656_v7, %v658_v32  ;;  %v660_v28 = vsel %vm648_vm10, %v638_v58, %v641_v53  ;;  %v661_v3 = vsel %vm651_vm15, %v647_v38, 1326507024 }
  0xf0   :  { %v1239_v55 = vsel %vm1228_vm12, nan, %v1238_v30  ;;  %vm1336_vm2 = vcmp.eq.s32.totalorder %v3477_v36, 0  ;;  %vm3518_vm3 = vcmp.le.f32.partialorder %v512_v57, 0.7853982  ;;  %v580_v14 = vclz %v2176_v9 }
  0xf1   :  { %v598_v18 = vsub.s32 4, %v574_v56  ;;  %vm1339_vm4 = vcmp.eq.s32.totalorder %v3477_v36, 2  ;;  %v662_v61 = vsel %vm650_vm14, %v644_v5, %v661_v3  ;;  %v655_v4 = vsel %vm649_vm13, %v652_v22, %v654_v33 }
  0xf2   :  { %v3524_v25 = vmul.u32.u64.low %v664_v15, %v659_v37  ;;  %v3525_v10 = vmul.u32.u64.high %v664_v15, %v659_v37, %v3524_v25  ;;  %v2177_v44 = vadd.s32 4294967294, %v580_v14  ;;  %v663_v6 = vsel %vm649_vm13, %v660_v28, %v662_v61 }
  0xf3   :  { %v1348_v26 = vshrl.u32 %v1347_v31, 23  ;;  %v1770_v57 = vmul.f32 %v1239_v55, %v1239_v55  ;;  %v3530_v13 = vmul.u32.u64.low %v664_v15, %v663_v6  ;;  %v3531_v41 = vmul.u32.u64.high %v664_v15, %v663_v6, %v3530_v13 }
  0xf4   :  { %v1344_v23 = vand.u32 2147483647, %v3474_v29  ;;  %v2522_v8 = vpop.eup %2521  ;;  %v568_v58 = vadd.s32 %v3457_v1, %v3454_v60  ;;  %vm2178_vm5 = vcmp.lt.s32.totalorder %v2177_v44, 0  ;;  %v599_v27 = vsel %vm514_vm11, %v598_v18, %v574_v56  ;;  %v3545_v60 = vld [vmem:[%s4134_s4] ss:$0 sm:$0xff] }
  0xf5   :  { %v2207_v5 = vadd.s32 4294967169, %v1348_v26  ;;  %v2524_v48 = vpop.eup %2523  ;;  %v1340_v43 = vxor.u32 2147483648, %v2522_v8  ;;  %v583_v2 = vsel %vm2178_vm5, 0, %v2177_v44  ;;  %v671_v53 = vmul.u32 %v664_v15, %v655_v4 }
  0xf6   :  { %v674_v30 = vadd.s32 1, %v3525_v10  ;;  %v1337_v38 = vxor.u32 2147483648, %v2524_v48  ;;  %v584_v34 = vsub.s32 32, %v583_v2  ;;  %v585_v49 = vshll.u32 %v3498_v63, %v583_v2 }
  0xf7   :  { %v588_v7 = vsub.s32 4294967266, %v583_v2  ;;  %v1341_v0 = vsel %vm1339_vm4, %v1340_v43, %v2524_v48  ;;  %v1793_v1 = vmul.f32 %v3545_v60, %v1770_v57  ;;  %vm673_vm6 = vc.u32 %v3531_v41, %v3524_v25 }
  0xf8   :  { %v1354_v56 = vadd.s32 1, %v2207_v5  ;;  %v1338_v15 = vsel %vm1336_vm2, %v2522_v8, %v1337_v38  ;;  %v586_v9 = vshrl.u32 %v568_v58, %v584_v34  ;;  %v675_v22 = vsel %vm673_vm6, %v674_v30, %v3525_v10 }
  0xf9   :  { %v589_v63 = vadd.s32 127, %v588_v7  ;;  %v1342_v32 = vsel %vm1335_vm0, %v1338_v15, %v1341_v0  ;;  %v601_v31 = vsel %vm3518_vm3, 0, %v599_v27  ;;  %v676_v33 = vadd.s32 %v675_v22, %v671_v53 }
  0xfa   :  { %vm1355_vm7 = vcmp.gt.s32.totalorder %v1354_v56, 0  ;;  %v1343_v37 = vsel %vm1332_vm1, nan, %v1342_v32  ;;  %v587_v28 = vor.u32 %v586_v9, %v585_v49  ;;  %v1809_v10 = vadd.f32 %v2287_v59, %v1793_v1 }
  0xfb   :  { %v590_v3 = vshll.u32 %v589_v63, 23  ;;  %v1356_v55 = vsel %vm1355_vm7, %v1354_v56, 0  ;;  %v1771_v14 = vmul.f32 %v1343_v37, %v1343_v37  ;;  %v677_v18 = vadd.s32 536870912, %v676_v33 }
  0xfc   :  { %v1358_v61 = vand.u32 31, %v1356_v55  ;;  %v594_v36 = vcvt.s32.f32 %v587_v28  ;;  %v3564_v4 = vmul.f32 %v3184_v51, %v2292_v46  ;;  %v3567_v12 = vadd.s32 3, %v601_v31 }
  0xfd   :  { %v591_v44 = vor.u32 4788187, %v590_v3  ;;  %v1794_v6 = vmul.f32 %v3545_v60, %v1771_v14  ;;  %v678_v26 = vshrl.u32 %v677_v18, 30  ;;  %v1351_v8 = vand.u32 8388607, %v1344_v23 }
  0xfe   :  { %v1359_v57 = vsub.s32 32, %v1358_v61  ;;  %v1357_v58 = vshrl.u32 %v1356_v55, 5  ;;  %v1361_v59 = vshll.u32 %v2561_v45, %v1358_v61  ;;  %v1364_v51 = vshll.u32 %v2562_v47, %v1358_v61 }
  0xff   :  { %v592_v13 = vand.u32 2147483647, %v591_v44  ;;  %v1810_v27 = vadd.f32 %v2288_v42, %v1794_v6  ;;  %v679_v5 = vshll.u32 %v678_v26, 30  ;;  %v1367_v48 = vshll.u32 %v2563_v50, %v1358_v61 }
 0x100   :  { %v1362_v2 = vshrl.u32 %v2562_v47, %v1359_v57  ;;  %v1365_v53 = vshrl.u32 %v2563_v50, %v1359_v57  ;;  %v1368_v30 = vshrl.u32 %v2564_v52, %v1359_v57  ;;  %vm618_vm8 = vcmp.lt.s32.totalorder %v3401_v24, 0 }
 0x101   :  { %v595_v43 = vmul.f32 %v594_v36, %v592_v13  ;;  %v1820_v38 = vpack.c.bf16 %v1810_v27, %v1809_v10  ;;  %v3580_v34 = vsub.s32 %v676_v33, %v679_v5  ;;  %v1370_v39 = vshll.u32 %v2564_v52, %v1358_v61 }
 0x102   :  { %v1371_v42 = vshrl.u32 %v2565_v54, %v1359_v57  ;;  %v672_v7 = vadd.s32 %v3524_v25, %v3531_v41  ;;  %v1352_v0 = vor.u32 8388608, %v1351_v8  ;;  %v1451_v1 = vand.u32 2139095040, %v3564_v4 }
 0x103   :  { %v596_v49 = vxor.u32 2147483648, %v595_v43  ;;  %2392 = vmatmul.mubr.bf16.vlgmr.msra.gmra.mrb[0].mxu1 %v1820_v38  ;;  %v682_v56 = vsub.s32 0, %v3580_v34  ;;  %v1360_v15 = vshrl.u32 %v2561_v45, %v1359_v57  ;;  %v1363_v9 = vor.u32 %v1362_v2, %v1361_v59 }
 0x104   :  { %v1366_v63 = vor.u32 %v1365_v53, %v1364_v51  ;;  %v1369_v32 = vor.u32 %v1368_v30, %v1367_v48  ;;  %v1373_v31 = vshll.u32 %v2565_v54, %v1358_v61  ;;  %v1374_v33 = vshrl.u32 %v2566_v62, %v1359_v57 }
 0x105   :  { %v597_v22 = vsel %vm514_vm11, %v596_v49, %v595_v43  ;;  %v2180_v41 = vmin.u32 %v682_v56, %v3580_v34  ;;  %v1372_v37 = vor.u32 %v1371_v42, %v1370_v39  ;;  %vm1376_vm9 = vcmp.lt.s32.totalorder %v1357_v58, 1 }
 0x106   :  { %v600_v25 = vsel %vm3518_vm3, %v3349_v19, %v597_v22  ;;  %v702_v28 = vsub.s32 4, %v678_v26  ;;  %v1375_v3 = vor.u32 %v1374_v33, %v1373_v31  ;;  %vm1379_vm12 = vcmp.lt.s32.totalorder %v1357_v58, 4 }
 0x107   :  { %2525 = vcosq.f32 %v600_v25  ;;  %v684_v55 = vclz %v2180_v41  ;;  %vm1378_vm10 = vcmp.lt.s32.totalorder %v1357_v58, 3  ;;  %v1392_v14 = vshll.u32 %v1352_v0, 8 }
 0x108   :  { %2527 = vsinq.f32 %v600_v25  ;;  %vm1377_vm11 = vcmp.lt.s32.totalorder %v1357_v58, 2  ;;  %v1380_v18 = vsel %vm1376_vm9, %v1360_v15, %v1363_v9  ;;  %v1381_v61 = vsel %vm1379_vm12, %v1369_v32, 2102212464 }
 0x109   :  { %v1384_v10 = vsel %vm1376_vm9, %v1363_v9, %v1366_v63  ;;  %v2181_v21 = vadd.s32 4294967294, %v684_v55  ;;  %v1382_v44 = vsel %vm1378_vm10, %v1366_v63, %v1381_v61  ;;  %v1385_v36 = vsel %vm1379_vm12, %v1372_v37, 920167782 }
 0x10a   :  { %v1388_v6 = vsel %vm1376_vm9, %v1366_v63, %v1369_v32  ;;  %v703_v57 = vsel %vm618_vm8, %v702_v28, %v678_v26  ;;  %v1386_v13 = vsel %vm1378_vm10, %v1369_v32, %v1385_v36  ;;  %v1389_v8 = vsel %vm1379_vm12, %v1375_v3, 1326507024 }
 0x10b   :  { %v1452_v59 = vshrl.u32 %v1451_v1, 23  ;;  %vm2182_vm13 = vcmp.lt.s32.totalorder %v2181_v21, 0  ;;  %v1383_v27 = vsel %vm1377_vm11, %v1380_v18, %v1382_v44  ;;  %v1387_v5 = vsel %vm1377_vm11, %v1384_v10, %v1386_v13  ;;  %v3633_v18 = vld [vmem:[%s4132_s0 + $0x18] sm:$0xff]  }
 0x10c   :  { %v1390_v51 = vsel %vm1378_vm10, %v1372_v37, %v1389_v8  ;;  %v687_v48 = vsel %vm2182_vm13, 0, %v2181_v21  ;;  %v3608_v2 = vmul.u32.u64.low %v1392_v14, %v1387_v5  ;;  %v3609_v53 = vmul.u32.u64.high %v1392_v14, %v1387_v5, %v3608_v2 }
 0x10d   :  { %v1391_v43 = vsel %vm1377_vm11, %v1388_v6, %v1390_v51  ;;  %v688_v30 = vsub.s32 32, %v687_v48  ;;  %v689_v26 = vshll.u32 %v3580_v34, %v687_v48  ;;  %v692_v38 = vsub.s32 4294967266, %v687_v48 }
 0x10e   :  { %v2211_v39 = vadd.s32 4294967169, %v1452_v59  ;;  %vm3615_vm14 = vcmp.le.f32.partialorder %v616_v11, 0.7853982  ;;  %v3619_v49 = vmul.u32.u64.low %v1392_v14, %v1391_v43  ;;  %v3620_v0 = vmul.u32.u64.high %v1392_v14, %v1391_v43, %v3619_v49 }
 0x10f   :  { %v690_v58 = vshrl.u32 %v672_v7, %v688_v30  ;;  %v693_v1 = vadd.s32 127, %v692_v38  ;;  %v705_v56 = vsel %vm3615_vm14, 0, %v703_v57  ;;  %v606_v34 = vand.u32 3, %v3567_v12 }
 0x110   :  { %v1458_v15 = vadd.s32 1, %v2211_v39  ;;  %v1399_v63 = vmul.u32 %v1392_v14, %v1383_v27  ;;  %v1402_v22 = vadd.s32 1, %v3609_v53  ;;  %v709_v33 = vadd.s32 3, %v705_v56 }
 0x111   :  { %v2526_v9 = vpop.eup %2525  ;;  %v691_v11 = vor.u32 %v690_v58, %v689_v26  ;;  %v694_v31 = vshll.u32 %v693_v1, 23  ;;  %vm1401_vm0 = vc.u32 %v3620_v0, %v3608_v2  ;;  %v1448_v7 = vand.u32 2147483647, %v3564_v4 }
 0x112   :  { %v2528_v32 = vpop.eup %2527  ;;  %vm1459_vm15 = vcmp.gt.s32.totalorder %v1458_v15, 0  ;;  %v612_v41 = vxor.u32 2147483648, %v2526_v9  ;;  %v1403_v3 = vsel %vm1401_vm0, %v1402_v22, %v3609_v53  ;;  %vm611_vm1 = vcmp.eq.s32.totalorder %v606_v34, 2 }
 0x113   :  { %v1460_v25 = vsel %vm1459_vm15, %v1458_v15, 0  ;;  %v695_v37 = vor.u32 4788187, %v694_v31  ;;  %v698_v28 = vcvt.s32.f32 %v691_v11  ;;  %v609_v12 = vxor.u32 2147483648, %v2528_v32 }
 0x114   :  { %v1404_v55 = vadd.s32 %v1403_v3, %v1399_v63  ;;  %v1462_v14 = vand.u32 31, %v1460_v25  ;;  %vm604_vm2 = vweird.f32 %v3349_v19  ;;  %vm608_vm3 = vcmp.eq.s32.totalorder %v606_v34, 0 }
 0x115   :  { %v696_v61 = vand.u32 2147483647, %v695_v37  ;;  %vm607_vm4 = vcmp.lt.s32.totalorder %v606_v34, 2  ;;  %v3636_v10 = vand.u32 3, %v709_v33  ;;  %v613_v36 = vsel %vm611_vm1, %v612_v41, %v2528_v32 }
 0x116   :  { %v1405_v21 = vadd.s32 536870912, %v1404_v55  ;;  %v1463_v44 = vsub.s32 32, %v1462_v14  ;;  %v1455_v57 = vand.u32 8388607, %v1448_v7  ;;  %v2279_v13 = vunpack.c.l.bf16 %v3633_v18 }
 0x117   :  { %v699_v6 = vmul.f32 %v698_v28, %v696_v61  ;;  %v610_v8 = vsel %vm608_vm3, %v2526_v9, %v609_v12  ;;  %v1465_v27 = vshll.u32 %v2561_v45, %v1462_v14  ;;  %v1468_v48 = vshll.u32 %v2562_v47, %v1462_v14 }
 0x118   :  { %v3641_v59 = vshrl.u32 %v1405_v21, 30  ;;  %v1466_v5 = vshrl.u32 %v2562_v47, %v1463_v44  ;;  %v1469_v43 = vshrl.u32 %v2563_v50, %v1463_v44  ;;  %v1474_v53 = vshll.u32 %v2564_v52, %v1462_v14  ;;  %v3679_v21 = vld [vmem:[%s4133_s3] ss:$0 sm:$0xff] }
 0x119   :  { %v700_v51 = vxor.u32 2147483648, %v699_v6  ;;  %v1461_v26 = vshrl.u32 %v1460_v25, 5  ;;  %v1471_v38 = vshll.u32 %v2563_v50, %v1462_v14  ;;  %v1472_v39 = vshrl.u32 %v2564_v52, %v1463_v44 }
 0x11a   :  { %v1407_v30 = vshll.u32 %v3641_v59, 30  ;;  %v614_v49 = vsel %vm607_vm4, %v610_v8, %v613_v36  ;;  %v1456_v1 = vor.u32 8388608, %v1455_v57  ;;  %v1475_v56 = vshrl.u32 %v2565_v54, %v1463_v44 }
 0x11b   :  { %v701_v58 = vsel %vm618_vm8, %v700_v51, %v699_v6  ;;  %v1467_v63 = vor.u32 %v1466_v5, %v1465_v27  ;;  %v1477_v22 = vshll.u32 %v2565_v54, %v1462_v14  ;;  %v1470_v32 = vor.u32 %v1469_v43, %v1468_v48 }
 0x11c   :  { %v704_v15 = vsel %vm3615_vm14, %v3401_v24, %v701_v58  ;;  %v3658_v9 = vsub.s32 %v1404_v55, %v1407_v30  ;;  %v1476_v11 = vor.u32 %v1475_v56, %v1474_v53  ;;  %v1478_v34 = vshrl.u32 %v2566_v62, %v1463_v44 }
 0x11d   :  { %2529 = vcosq.f32 %v704_v15  ;;  %v1473_v33 = vor.u32 %v1472_v39, %v1471_v38  ;;  %vm1480_vm5 = vcmp.lt.s32.totalorder %v1461_v26, 1  ;;  %v615_v25 = vsel %vm604_vm2, nan, %v614_v49 }
 0x11e   :  { %2531 = vsinq.f32 %v704_v15  ;;  %v1410_v31 = vsub.s32 0, %v3658_v9  ;;  %v1464_v42 = vshrl.u32 %v2561_v45, %v1463_v44  ;;  %v1479_v41 = vor.u32 %v1478_v34, %v1477_v22 }
 0x11f   :  { %vm1483_vm6 = vcmp.lt.s32.totalorder %v1461_v26, 4  ;;  %vm712_vm7 = vcmp.eq.s32.totalorder %v3636_v10, 0  ;;  %vm715_vm8 = vcmp.eq.s32.totalorder %v3636_v10, 2  ;;  %vm1482_vm9 = vcmp.lt.s32.totalorder %v1461_v26, 3 }
 0x120   :  { %v2208_v37 = vmin.u32 %v1410_v31, %v3658_v9  ;;  %v1485_v28 = vsel %vm1483_vm6, %v1473_v33, 2102212464  ;;  %vm711_vm12 = vcmp.lt.s32.totalorder %v3636_v10, 2  ;;  %vm1346_vm10 = vcmp.lt.s32.totalorder %v3474_v29, 0 }
 0x121   :  { %vm1481_vm11 = vcmp.lt.s32.totalorder %v1461_v26, 2  ;;  %v1488_v19 = vsel %vm1480_vm5, %v1467_v63, %v1470_v32  ;;  %v1489_v3 = vsel %vm1483_vm6, %v1476_v11, 920167782  ;;  %v1496_v12 = vshll.u32 %v1456_v1, 8 }
 0x122   :  { %vm708_vm13 = vweird.f32 %v3401_v24  ;;  %v1764_v55 = vmul.f32 %v615_v25, %v615_v25  ;;  %v1412_v14 = vclz %v2208_v37  ;;  %v1492_v61 = vsel %vm1480_vm5, %v1470_v32, %v1473_v33 }
 0x123   :  { %v3684_v44 = vmul.f32 %v3679_v21, %v2279_v13  ;;  %v1484_v36 = vsel %vm1480_vm5, %v1464_v42, %v1467_v63  ;;  %v1486_v6 = vsel %vm1482_vm9, %v1470_v32, %v1485_v28  ;;  %v1490_v57 = vsel %vm1482_vm9, %v1473_v33, %v1489_v3 }
 0x124   :  { %v1493_v8 = vsel %vm1483_vm6, %v1479_v41, 1326507024  ;;  %v1400_v27 = vadd.s32 %v3608_v2, %v3620_v0  ;;  %v2209_v5 = vadd.s32 4294967294, %v1412_v14  ;;  %v1491_v51 = vsel %vm1481_vm11, %v1488_v19, %v1490_v57 }
 0x125   :  { %v1494_v48 = vsel %vm1482_vm9, %v1476_v11, %v1493_v8  ;;  %v1430_v43 = vsub.s32 4, %v3641_v59  ;;  %v3696_v30 = vmul.u32.u64.low %v1496_v12, %v1491_v51  ;;  %v3697_v38 = vmul.u32.u64.high %v1496_v12, %v1491_v51, %v3696_v30 }
 0x126   :  { %v1495_v53 = vsel %vm1481_vm11, %v1492_v61, %v1494_v48  ;;  %vm2210_vm14 = vcmp.lt.s32.totalorder %v2209_v5, 0  ;;  %v1487_v39 = vsel %vm1481_vm11, %v1484_v36, %v1486_v6  ;;  %v1787_v2 = vmul.f32 %v3545_v60, %v1764_v55 }
 0x127   :  { %v3700_v49 = vmul.u32.u64.low %v1496_v12, %v1495_v53  ;;  %v3701_v58 = vmul.u32.u64.high %v1496_v12, %v1495_v53, %v3700_v49  ;;  %v2530_v1 = vpop.eup %2529  ;;  %v1415_v0 = vsel %vm2210_vm14, 0, %v2209_v5  ;;  %v2280_v56 = vunpack.c.h.bf16 %v3633_v18 }
 0x128   :  { %v723_v15 = vand.u32 2139095040, %v3684_v44  ;;  %v2532_v63 = vpop.eup %2531  ;;  %v716_v22 = vxor.u32 2147483648, %v2530_v1  ;;  %v1416_v32 = vsub.s32 32, %v1415_v0  ;;  %v1417_v11 = vshll.u32 %v3658_v9, %v1415_v0 }
 0x129   :  { %v1420_v34 = vsub.s32 4294967266, %v1415_v0  ;;  %v713_v31 = vxor.u32 2147483648, %v2532_v63  ;;  %v1503_v26 = vmul.u32 %v1496_v12, %v1487_v39  ;;  %v1506_v33 = vadd.s32 1, %v3697_v38 }
 0x12a   :  { %v724_v25 = vshrl.u32 %v723_v15, 23  ;;  %v717_v42 = vsel %vm715_vm8, %v716_v22, %v2532_v63  ;;  %v1418_v41 = vshrl.u32 %v1400_v27, %v1416_v32  ;;  %v1431_v28 = vsel %vm1346_vm10, %v1430_v43, %v3641_v59 }
 0x12b   :  { %v1421_v37 = vadd.s32 127, %v1420_v34  ;;  %v714_v19 = vsel %vm712_vm7, %v2530_v1, %v713_v31  ;;  %vm1505_vm15 = vc.u32 %v3701_v58, %v3696_v30  ;;  %v720_v9 = vand.u32 2147483647, %v3684_v44 }
 0x12c   :  { %v2183_v3 = vadd.s32 4294967169, %v724_v25  ;;  %v718_v12 = vsel %vm711_vm12, %v714_v19, %v717_v42  ;;  %v1419_v55 = vor.u32 %v1418_v41, %v1417_v11  ;;  %v1507_v61 = vsel %vm1505_vm15, %v1506_v33, %v3697_v38 }
 0x12d   :  { %v1422_v14 = vshll.u32 %v1421_v37, 23  ;;  %v719_v36 = vsel %vm708_vm13, nan, %v718_v12  ;;  %vm3724_vm0 = vcmp.le.f32.partialorder %v1344_v23, 0.7853982  ;;  %v1508_v6 = vadd.s32 %v1507_v61, %v1503_v26 }
 0x12e   :  { %v730_v57 = vadd.s32 1, %v2183_v3  ;;  %v1765_v8 = vmul.f32 %v719_v36, %v719_v36  ;;  %v1803_v10 = vadd.f32 %v2275_v20, %v1787_v2  ;;  %v1426_v5 = vcvt.s32.f32 %v1419_v55 }
 0x12f   :  { %v1423_v27 = vor.u32 4788187, %v1422_v14  ;;  %v1433_v51 = vsel %vm3724_vm0, 0, %v1431_v28  ;;  %v1509_v48 = vadd.s32 536870912, %v1508_v6  ;;  %v727_v24 = vand.u32 8388607, %v720_v9 }
 0x130   :  { %vm731_vm1 = vcmp.gt.s32.totalorder %v730_v57, 0  ;;  %v1788_v23 = vmul.f32 %v3545_v60, %v1765_v8  ;;  %v3738_v53 = vmul.f32 %v3679_v21, %v2280_v56  ;;  %v3742_v2 = vadd.s32 3, %v1433_v51 }
 0x131   :  { %v1424_v43 = vand.u32 2147483647, %v1423_v27  ;;  %v732_v38 = vsel %vm731_vm1, %v730_v57, 0  ;;  %v1510_v20 = vshrl.u32 %v1509_v48, 30  ;;  %v3745_v0 = vadd.s32 %v3696_v30, %v3701_v58 }
 0x132   :  { %v734_v39 = vand.u32 31, %v732_v38  ;;  %v1804_v49 = vadd.f32 %v2276_v40, %v1788_v23  ;;  %v728_v63 = vor.u32 8388608, %v727_v24  ;;  %v827_v31 = vand.u32 2139095040, %v3738_v53 }
 0x133   :  { %v1427_v1 = vmul.f32 %v1426_v5, %v1424_v43  ;;  %v1511_v15 = vshll.u32 %v1510_v20, 30  ;;  %v733_v33 = vshrl.u32 %v732_v38, 5  ;;  %vm1450_vm2 = vcmp.lt.s32.totalorder %v3564_v4, 0 }
 0x134   :  { %v735_v22 = vsub.s32 32, %v734_v39  ;;  %v1817_v32 = vpack.c.bf16 %v1804_v49, %v1803_v10  ;;  %v737_v34 = vshll.u32 %v2561_v45, %v734_v39  ;;  %v740_v40 = vshll.u32 %v2562_v47, %v734_v39 }
 0x135   :  { %v1428_v11 = vxor.u32 2147483648, %v1427_v1  ;;  %v3749_v26 = vsub.s32 %v1508_v6, %v1511_v15  ;;  %v743_v25 = vshll.u32 %v2563_v50, %v734_v39  ;;  %v3763_v28 = vshll.u32 %v728_v63, 8 }
 0x136   :  { %v738_v17 = vshrl.u32 %v2562_v47, %v735_v22  ;;  %2387 = vmatprep.mubr.bf16.mxu0 %v1817_v32  ;;  %v741_v58 = vshrl.u32 %v2563_v50, %v735_v22  ;;  %v744_v42 = vshrl.u32 %v2564_v52, %v735_v22  ;;  %v824_v19 = vand.u32 2147483647, %v3738_v53 }
 0x137   :  { %v1429_v30 = vsel %vm1346_vm10, %v1428_v11, %v1427_v1  ;;  %v1514_v37 = vsub.s32 0, %v3749_v26  ;;  %v736_v3 = vshrl.u32 %v2561_v45, %v735_v22  ;;  %v746_v55 = vshll.u32 %v2564_v52, %v734_v39 }
 0x138   :  { %v1432_v41 = vsel %vm3724_vm0, %v3474_v29, %v1429_v30  ;;  %v739_v12 = vor.u32 %v738_v17, %v737_v34  ;;  %v828_v14 = vshrl.u32 %v827_v31, 23  ;;  %v742_v36 = vor.u32 %v741_v58, %v740_v40 }
 0x139   :  { %2533 = vcosq.f32 %v1432_v41  ;;  %v2212_v61 = vmin.u32 %v1514_v37, %v3749_v26  ;;  %v747_v6 = vshrl.u32 %v2565_v54, %v735_v22  ;;  %vm3772_vm3 = vcmp.le.f32.partialorder %v1448_v7, 0.7853982 }
 0x13a   :  { %v745_v57 = vor.u32 %v744_v42, %v743_v25  ;;  %v749_v8 = vshll.u32 %v2565_v54, %v734_v39  ;;  %v750_v10 = vshrl.u32 %v2566_v62, %v735_v22  ;;  %vm752_vm4 = vcmp.lt.s32.totalorder %v733_v33, 1 }
 0x13b   :  { %2535 = vsinq.f32 %v1432_v41  ;;  %v1516_v27 = vclz %v2212_v61  ;;  %v1534_v5 = vsub.s32 4, %v1510_v20  ;;  %vm753_vm5 = vcmp.lt.s32.totalorder %v733_v33, 2 }
 0x13c   :  { %v748_v51 = vor.u32 %v747_v6, %v746_v55  ;;  %v751_v48 = vor.u32 %v750_v10, %v749_v8  ;;  %vm754_vm6 = vcmp.lt.s32.totalorder %v733_v33, 3  ;;  %vm755_vm7 = vcmp.lt.s32.totalorder %v733_v33, 4 }
 0x13d   :  { %v2213_v24 = vadd.s32 4294967294, %v1516_v27  ;;  %v756_v23 = vsel %vm752_vm4, %v736_v3, %v739_v12  ;;  %v757_v7 = vsel %vm755_vm7, %v745_v57, 2102212464  ;;  %v760_v43 = vsel %vm752_vm4, %v739_v12, %v742_v36 }
 0x13e   :  { %v758_v38 = vsel %vm754_vm6, %v742_v36, %v757_v7  ;;  %v761_v49 = vsel %vm755_vm7, %v748_v51, 920167782  ;;  %v764_v1 = vsel %vm752_vm4, %v742_v36, %v745_v57  ;;  %v765_v15 = vsel %vm755_vm7, %v751_v48, 1326507024 }
 0x13f   :  { %vm2214_vm8 = vcmp.lt.s32.totalorder %v2213_v24, 0  ;;  %v1535_v39 = vsel %vm1450_vm2, %v1534_v5, %v1510_v20  ;;  %v762_v63 = vsel %vm754_vm6, %v745_v57, %v761_v49  ;;  %v766_v22 = vsel %vm754_vm6, %v748_v51, %v765_v15 }
 0x140   :  { %v1519_v32 = vsel %vm2214_vm8, 0, %v2213_v24  ;;  %v759_v11 = vsel %vm753_vm5, %v756_v23, %v758_v38  ;;  %v763_v34 = vsel %vm753_vm5, %v760_v43, %v762_v63  ;;  %v767_v31 = vsel %vm753_vm5, %v764_v1, %v766_v22 }
 0x141   :  { %v1520_v17 = vsub.s32 32, %v1519_v32  ;;  %v1521_v40 = vshll.u32 %v3749_v26, %v1519_v32  ;;  %v1524_v30 = vsub.s32 4294967266, %v1519_v32  ;;  %v2187_v58 = vadd.s32 4294967169, %v828_v14  ;;  %v3799_v26 = vld [vmem:[%s4132_s0 + $0x38] sm:$0xff]  }
 0x142   :  { %v3785_v25 = vmul.u32.u64.low %v3763_v28, %v767_v31  ;;  %v3786_v42 = vmul.u32.u64.high %v3763_v28, %v767_v31, %v3785_v25  ;;  %v3789_v20 = vmul.u32.u64.low %v3763_v28, %v763_v34  ;;  %v3790_v41 = vmul.u32.u64.high %v3763_v28, %v763_v34, %v3789_v20 }
 0x143   :  { %v2534_v37 = vpop.eup %2533  ;;  %v1522_v3 = vshrl.u32 %v3745_v0, %v1520_v17  ;;  %v1525_v12 = vadd.s32 127, %v1524_v30  ;;  %v1537_v33 = vsel %vm3772_vm3, 0, %v1535_v39  ;;  %v3802_v55 = vand.u32 3, %v3742_v2 }
 0x144   :  { %v831_v14 = vand.u32 8388607, %v824_v19  ;;  %v834_v61 = vadd.s32 1, %v2187_v58  ;;  %v775_v0 = vmul.u32 %v3763_v28, %v759_v11  ;;  %v1541_v8 = vadd.s32 3, %v1537_v33 }
 0x145   :  { %v2536_v36 = vpop.eup %2535  ;;  %v1523_v6 = vor.u32 %v1522_v3, %v1521_v40  ;;  %v1526_v57 = vshll.u32 %v1525_v12, 23  ;;  %vm777_vm9 = vc.u32 %v3786_v42, %v3789_v20  ;;  %v778_v10 = vadd.s32 1, %v3790_v41 }
 0x146   :  { %v2295_v27 = vunpack.c.l.bf16 %v3799_v26  ;;  %v1444_v5 = vxor.u32 2147483648, %v2534_v37  ;;  %vm835_vm12 = vcmp.gt.s32.totalorder %v834_v61, 0  ;;  %vm1443_vm10 = vcmp.eq.s32.totalorder %v3802_v55, 2 }
 0x147   :  { %v1527_v2 = vor.u32 4788187, %v1526_v57  ;;  %v1530_v51 = vcvt.s32.f32 %v1523_v6  ;;  %v779_v48 = vsel %vm777_vm9, %v778_v10, %v3790_v41  ;;  %v832_v24 = vor.u32 8388608, %v831_v14 }
 0x148   :  { %v836_v23 = vsel %vm835_vm12, %v834_v61, 0  ;;  %vm1439_vm11 = vcmp.lt.s32.totalorder %v3802_v55, 2  ;;  %v780_v7 = vadd.s32 %v779_v48, %v775_v0  ;;  %vm1440_vm13 = vcmp.eq.s32.totalorder %v3802_v55, 0 }
 0x149   :  { %v1528_v28 = vand.u32 2147483647, %v1527_v2  ;;  %v1441_v43 = vxor.u32 2147483648, %v2536_v36  ;;  %v3815_v38 = vand.u32 3, %v1541_v8  ;;  %v838_v49 = vand.u32 31, %v836_v23 }
 0x14a   :  { %v1445_v1 = vsel %vm1443_vm10, %v1444_v5, %v2536_v36  ;;  %v781_v39 = vadd.s32 536870912, %v780_v7  ;;  %v3820_v63 = vmul.f32 %v3679_v21, %v2295_v27  ;;  %v837_v22 = vshrl.u32 %v836_v23, 5 }
 0x14b   :  { %v1531_v15 = vmul.f32 %v1530_v51, %v1528_v28  ;;  %v839_v32 = vsub.s32 32, %v838_v49  ;;  %v841_v11 = vshll.u32 %v2561_v45, %v838_v49  ;;  %v3823_v34 = vshll.u32 %v832_v24, 8 }
 0x14c   :  { %vm1436_vm14 = vweird.f32 %v3474_v29  ;;  %v3826_v17 = vshrl.u32 %v781_v39, 30  ;;  %v844_v40 = vshll.u32 %v2562_v47, %v838_v49  ;;  %v850_v30 = vshll.u32 %v2564_v52, %v838_v49 }
 0x14d   :  { %v1532_v31 = vxor.u32 2147483648, %v1531_v15  ;;  %v842_v58 = vshrl.u32 %v2562_v47, %v839_v32  ;;  %v845_v25 = vshrl.u32 %v2563_v50, %v839_v32  ;;  %v847_v41 = vshll.u32 %v2563_v50, %v838_v49 }
 0x14e   :  { %v848_v3 = vshrl.u32 %v2564_v52, %v839_v32  ;;  %v1442_v12 = vsel %vm1440_vm13, %v2534_v37, %v1441_v43  ;;  %v783_v14 = vshll.u32 %v3826_v17, 30  ;;  %v851_v61 = vshrl.u32 %v2565_v54, %v839_v32 }
 0x14f   :  { %v1533_v33 = vsel %vm1450_vm2, %v1532_v31, %v1531_v15  ;;  %v840_v6 = vshrl.u32 %v2561_v45, %v839_v32  ;;  %v843_v57 = vor.u32 %v842_v58, %v841_v11  ;;  %vm856_vm15 = vcmp.lt.s32.totalorder %v837_v22, 1 }
 0x150   :  { %v1536_v36 = vsel %vm3772_vm3, %v3564_v4, %v1533_v33  ;;  %v3844_v0 = vsub.s32 %v780_v7, %v783_v14  ;;  %v846_v8 = vor.u32 %v845_v25, %v844_v40  ;;  %v852_v37 = vor.u32 %v851_v61, %v850_v30 }
 0x151   :  { %2537 = vcosq.f32 %v1536_v36  ;;  %v849_v10 = vor.u32 %v848_v3, %v847_v41  ;;  %v853_v5 = vshll.u32 %v2565_v54, %v838_v49  ;;  %v854_v2 = vshrl.u32 %v2566_v62, %v839_v32 }
 0x152   :  { %2539 = vsinq.f32 %v1536_v36  ;;  %v1446_v51 = vsel %vm1439_vm11, %v1442_v12, %v1445_v1  ;;  %v786_v59 = vsub.s32 0, %v3844_v0  ;;  %vm858_vm0 = vcmp.lt.s32.totalorder %v837_v22, 3 }
 0x153   :  { %v1555_v48 = vand.u32 2139095040, %v3820_v63  ;;  %v855_v24 = vor.u32 %v854_v2, %v853_v5  ;;  %vm857_vm1 = vcmp.lt.s32.totalorder %v837_v22, 2  ;;  %vm859_vm2 = vcmp.lt.s32.totalorder %v837_v22, 4 }
 0x154   :  { %v860_v23 = vsel %vm856_vm15, %v840_v6, %v843_v57  ;;  %v2184_v28 = vmin.u32 %v786_v59, %v3844_v0  ;;  %v861_v7 = vsel %vm859_vm2, %v849_v10, 2102212464  ;;  %v864_v43 = vsel %vm856_vm15, %v843_v57, %v846_v8 }
 0x155   :  { %v865_v49 = vsel %vm859_vm2, %v852_v37, 920167782  ;;  %vm1540_vm3 = vweird.f32 %v3564_v4  ;;  %v862_v55 = vsel %vm858_vm0, %v846_v8, %v861_v7  ;;  %v868_v15 = vsel %vm856_vm15, %v846_v8, %v849_v10 }
 0x156   :  { %v866_v1 = vsel %vm858_vm0, %v849_v10, %v865_v49  ;;  %v869_v39 = vsel %vm859_vm2, %v855_v24, 1326507024  ;;  %vm1543_vm4 = vcmp.lt.s32.totalorder %v3815_v38, 2  ;;  %vm1544_vm5 = vcmp.eq.s32.totalorder %v3815_v38, 0 }
 0x157   :  { %vm722_vm6 = vcmp.lt.s32.totalorder %v3684_v44, 0  ;;  %v788_v32 = vclz %v2184_v28  ;;  %v1447_v11 = vsel %vm1436_vm14, nan, %v1446_v51  ;;  %v863_v31 = vsel %vm857_vm1, %v860_v23, %v862_v55 }
 0x158   :  { %v867_v40 = vsel %vm857_vm1, %v864_v43, %v866_v1  ;;  %v870_v30 = vsel %vm858_vm0, %v852_v37, %v869_v39  ;;  %vm3869_vm7 = vcmp.le.f32.partialorder %v720_v9, 0.7853982  ;;  %vm1547_vm8 = vcmp.eq.s32.totalorder %v3815_v38, 2 }
 0x159   :  { %v2185_v25 = vadd.s32 4294967294, %v788_v32  ;;  %v871_v41 = vsel %vm857_vm1, %v868_v15, %v870_v30  ;;  %v3875_v3 = vmul.u32.u64.low %v3823_v34, %v867_v40  ;;  %v3876_v12 = vmul.u32.u64.high %v3823_v34, %v867_v40, %v3875_v3 }
 0x15a   :  { %v3881_v29 = vmul.u32.u64.low %v3823_v34, %v871_v41  ;;  %v3882_v33 = vmul.u32.u64.high %v3823_v34, %v871_v41, %v3881_v29  ;;  %v1556_v14 = vshrl.u32 %v1555_v48, 23  ;;  %v1772_v9 = vmul.f32 %v1447_v11, %v1447_v11 }
 0x15b   :  { %v2538_v61 = vpop.eup %2537  ;;  %v776_v36 = vadd.s32 %v3789_v20, %v3786_v42  ;;  %vm2186_vm9 = vcmp.lt.s32.totalorder %v2185_v25, 0  ;;  %v806_v22 = vsub.s32 4, %v3826_v17  ;;  %v879_v37 = vmul.u32 %v3823_v34, %v863_v31 }
 0x15c   :  { %v2540_v6 = vpop.eup %2539  ;;  %v1548_v57 = vxor.u32 2147483648, %v2538_v61  ;;  %v791_v8 = vsel %vm2186_vm9, 0, %v2185_v25  ;;  %v2215_v10 = vadd.s32 4294967169, %v1556_v14  ;;  %vm881_vm12 = vc.u32 %v3882_v33, %v3875_v3 }
 0x15d   :  { %v1545_v5 = vxor.u32 2147483648, %v2540_v6  ;;  %v792_v2 = vsub.s32 32, %v791_v8  ;;  %v793_v51 = vshll.u32 %v3844_v0, %v791_v8  ;;  %v796_v59 = vsub.s32 4294967266, %v791_v8 }
 0x15e   :  { %v1549_v48 = vsel %vm1547_vm8, %v1548_v57, %v2540_v6  ;;  %v882_v42 = vadd.s32 1, %v3876_v12  ;;  %v2296_v20 = vunpack.c.h.bf16 %v3799_v26  ;;  %v807_v0 = vsel %vm722_vm6, %v806_v22, %v3826_v17 }
 0x15f   :  { %v1546_v24 = vsel %vm1544_vm5, %v2538_v61, %v1545_v5  ;;  %v794_v34 = vshrl.u32 %v776_v36, %v792_v2  ;;  %v797_v23 = vadd.s32 127, %v796_v59  ;;  %v1795_v7 = vmul.f32 %v3545_v60, %v1772_v9 }
 0x160   :  { %v1550_v28 = vsel %vm1543_vm4, %v1546_v24, %v1549_v48  ;;  %v883_v43 = vsel %vm881_vm12, %v882_v42, %v3876_v12  ;;  %v1562_v49 = vadd.s32 1, %v2215_v10  ;;  %v809_v11 = vsel %vm3869_vm7, 0, %v807_v0 }
 0x161   :  { %v1551_v55 = vsel %vm1540_vm3, nan, %v1550_v28  ;;  %v795_v1 = vor.u32 %v794_v34, %v793_v51  ;;  %v798_v15 = vshll.u32 %v797_v23, 23  ;;  %v884_v39 = vadd.s32 %v883_v43, %v879_v37 }
 0x162   :  { %v1773_v32 = vmul.f32 %v1551_v55, %v1551_v55  ;;  %v1552_v17 = vand.u32 2147483647, %v3820_v63  ;;  %vm1563_vm10 = vcmp.gt.s32.totalorder %v1562_v49, 0  ;;  %v1811_v4 = vadd.f32 %v2291_v35, %v1795_v7 }
 0x163   :  { %v799_v38 = vor.u32 4788187, %v798_v15  ;;  %v802_v31 = vcvt.s32.f32 %v795_v1  ;;  %v885_v40 = vadd.s32 536870912, %v884_v39  ;;  %v1564_v30 = vsel %vm1563_vm10, %v1562_v49, 0 }
 0x164   :  { %v1796_v25 = vmul.f32 %v3545_v60, %v1773_v32  ;;  %v3915_v41 = vmul.f32 %v3679_v21, %v2296_v20  ;;  %v1566_v12 = vand.u32 31, %v1564_v30  ;;  %v3917_v14 = vadd.s32 3, %v809_v11 }
 0x165   :  { %v800_v29 = vand.u32 2147483647, %v799_v38  ;;  %v3919_v61 = vshrl.u32 %v885_v40, 30  ;;  %v1559_v60 = vand.u32 8388607, %v1552_v17  ;;  %v1565_v37 = vshrl.u32 %v1564_v30, 5 }
 0x166   :  { %v1812_v9 = vadd.f32 %v2292_v46, %v1796_v25  ;;  %v1567_v36 = vsub.s32 32, %v1566_v12  ;;  %v1656_v35 = vand.u32 2147483647, %v3915_v41  ;;  %v1569_v21 = vshll.u32 %v2561_v45, %v1566_v12 }
 0x167   :  { %v803_v22 = vmul.f32 %v802_v31, %v800_v29  ;;  %v887_v6 = vshll.u32 %v3919_v61, 30  ;;  %v1572_v57 = vshll.u32 %v2562_v47, %v1566_v12  ;;  %v1575_v2 = vshll.u32 %v2563_v50, %v1566_v12 }
 0x168   :  { %v1821_v8 = vpack.c.bf16 %v1812_v9, %v1811_v4  ;;  %v1570_v10 = vshrl.u32 %v2562_v47, %v1567_v36  ;;  %v1573_v16 = vshrl.u32 %v2563_v50, %v1567_v36  ;;  %v1576_v51 = vshrl.u32 %v2564_v52, %v1567_v36 }
 0x169   :  { %v804_v46 = vxor.u32 2147483648, %v803_v22  ;;  %v3931_v5 = vsub.s32 %v884_v39, %v887_v6  ;;  %v1560_v59 = vor.u32 8388608, %v1559_v60  ;;  %v1568_v48 = vshrl.u32 %v2561_v45, %v1567_v36 }
 0x16a   :  { %2395 = vmatprep.mubr.bf16.mxu1 %v1821_v8  ;;  %v1578_v42 = vshll.u32 %v2564_v52, %v1566_v12  ;;  %v1659_v24 = vand.u32 2139095040, %v3915_v41  ;;  %v1571_v0 = vor.u32 %v1570_v10, %v1569_v21  ;;  %v1574_v28 = vor.u32 %v1573_v16, %v1572_v57 }
 0x16b   :  { %v805_v34 = vsel %vm722_vm6, %v804_v46, %v803_v22  ;;  %v890_v23 = vsub.s32 0, %v3931_v5  ;;  %v1579_v43 = vshrl.u32 %v2565_v54, %v1567_v36  ;;  %v1581_v49 = vshll.u32 %v2565_v54, %v1566_v12 }
 0x16c   :  { %v808_v7 = vsel %vm3869_vm7, %v3684_v44, %v805_v34  ;;  %v1582_v55 = vshrl.u32 %v2566_v62, %v1567_v36  ;;  %v880_v1 = vadd.s32 %v3875_v3, %v3882_v33  ;;  %v1577_v39 = vor.u32 %v1576_v51, %v1575_v2 }
 0x16d   :  { %v2188_v15 = vmin.u32 %v890_v23, %v3931_v5  ;;  %vm1584_vm11 = vcmp.lt.s32.totalorder %v1565_v37, 1  ;;  %2541 = vcosq.f32 %v808_v7  ;;  %v1580_v32 = vor.u32 %v1579_v43, %v1578_v42 }
 0x16e   :  { %v1583_v11 = vor.u32 %v1582_v55, %v1581_v49  ;;  %v1660_v38 = vshrl.u32 %v1659_v24, 23  ;;  %2543 = vsinq.f32 %v808_v7  ;;  %vm1585_vm13 = vcmp.lt.s32.totalorder %v1565_v37, 2 }
 0x16f   :  { %v892_v58 = vclz %v2188_v15  ;;  %v1600_v31 = vshll.u32 %v1560_v59, 8  ;;  %vm1586_vm14 = vcmp.lt.s32.totalorder %v1565_v37, 3  ;;  %vm1587_vm15 = vcmp.lt.s32.totalorder %v1565_v37, 4 }
 0x170   :  { %v1588_v40 = vsel %vm1584_vm11, %v1568_v48, %v1571_v0  ;;  %v1592_v30 = vsel %vm1584_vm11, %v1571_v0, %v1574_v28  ;;  %v1589_v3 = vsel %vm1587_vm15, %v1577_v39, 2102212464  ;;  %v1593_v33 = vsel %vm1587_vm15, %v1580_v32, 920167782 }
 0x171   :  { %v2189_v25 = vadd.s32 4294967294, %v892_v58  ;;  %v1596_v4 = vsel %vm1584_vm11, %v1574_v28, %v1577_v39  ;;  %v1590_v12 = vsel %vm1586_vm14, %v1574_v28, %v1589_v3  ;;  %v1594_v29 = vsel %vm1586_vm14, %v1577_v39, %v1593_v33 }
 0x172   :  { %v1597_v9 = vsel %vm1587_vm15, %v1583_v11, 1326507024  ;;  %v2219_v60 = vadd.s32 4294967169, %v1660_v38  ;;  %v910_v36 = vsub.s32 4, %v3919_v61  ;;  %v1595_v22 = vsel %vm1585_vm13, %v1592_v30, %v1594_v29 }
 0x173   :  { %vm2190_vm0 = vcmp.lt.s32.totalorder %v2189_v25, 0  ;;  %v1598_v6 = vsel %vm1586_vm14, %v1580_v32, %v1597_v9  ;;  %v3956_v8 = vmul.u32.u64.low %v1600_v31, %v1595_v22  ;;  %v3957_v10 = vmul.u32.u64.high %v1600_v31, %v1595_v22, %v3956_v8 }
 0x174   :  { %v895_v21 = vsel %vm2190_vm0, 0, %v2189_v25  ;;  %v1599_v57 = vsel %vm1585_vm13, %v1596_v4, %v1598_v6  ;;  %v1591_v51 = vsel %vm1585_vm13, %v1588_v40, %v1590_v12  ;;  %vm826_vm1 = vcmp.lt.s32.totalorder %v3738_v53, 0 }
 0x175   :  { %v896_v16 = vsub.s32 32, %v895_v21  ;;  %v897_v46 = vshll.u32 %v3931_v5, %v895_v21  ;;  %v900_v2 = vsub.s32 4294967266, %v895_v21  ;;  %v1666_v42 = vadd.s32 1, %v2219_v60 }
 0x176   :  { %v3963_v59 = vmul.u32.u64.low %v1600_v31, %v1599_v57  ;;  %v3964_v48 = vmul.u32.u64.high %v1600_v31, %v1599_v57, %v3963_v59  ;;  %vm3968_vm2 = vcmp.le.f32.partialorder %v824_v19, 0.7853982  ;;  %v911_v5 = vsel %vm826_vm1, %v910_v36, %v3919_v61 }
 0x177   :  { %v898_v34 = vshrl.u32 %v880_v1, %v896_v16  ;;  %v901_v23 = vadd.s32 127, %v900_v2  ;;  %v2542_v37 = vpop.eup %2541  ;;  %v3976_v0 = vand.u32 3, %v3917_v14  ;;  %v1607_v28 = vmul.u32 %v1600_v31, %v1591_v51 }
 0x178   :  { %v1610_v7 = vadd.s32 1, %v3957_v10  ;;  %vm1667_vm3 = vcmp.gt.s32.totalorder %v1666_v42, 0  ;;  %v2544_v43 = vpop.eup %2543  ;;  %v1663_v55 = vand.u32 8388607, %v1656_v35  ;;  %v913_v15 = vsel %vm3968_vm2, 0, %v911_v5 }
 0x179   :  { %v899_v49 = vor.u32 %v898_v34, %v897_v46  ;;  %v902_v19 = vshll.u32 %v901_v23, 23  ;;  %v1668_v1 = vsel %vm1667_vm3, %v1666_v42, 0  ;;  %vm1609_vm4 = vc.u32 %v3964_v48, %v3956_v8 }
 0x17a   :  { %v1611_v39 = vsel %vm1609_vm4, %v1610_v7, %v3957_v10  ;;  %vm816_vm5 = vcmp.eq.s32.totalorder %v3976_v0, 0  ;;  %v820_v32 = vxor.u32 2147483648, %v2542_v37  ;;  %v1670_v38 = vand.u32 31, %v1668_v1 }
 0x17b   :  { %v903_v61 = vor.u32 4788187, %v902_v19  ;;  %v906_v14 = vcvt.s32.f32 %v899_v49  ;;  %v1612_v11 = vadd.s32 %v1611_v39, %v1607_v28  ;;  %vm815_vm6 = vcmp.lt.s32.totalorder %v3976_v0, 2 }
 0x17c   :  { %vm819_vm7 = vcmp.eq.s32.totalorder %v3976_v0, 2  ;;  %v917_v31 = vadd.s32 3, %v913_v15  ;;  %v1664_v40 = vor.u32 8388608, %v1663_v55  ;;  %v817_v30 = vxor.u32 2147483648, %v2544_v43 }
 0x17d   :  { %v904_v58 = vand.u32 2147483647, %v903_v61  ;;  %v1613_v25 = vadd.s32 536870912, %v1612_v11  ;;  %v1669_v3 = vshrl.u32 %v1668_v1, 5  ;;  %v1671_v33 = vsub.s32 32, %v1670_v38 }
 0x17e   :  { %v1673_v12 = vshll.u32 %v2561_v45, %v1670_v38  ;;  %v1676_v29 = vshll.u32 %v2562_v47, %v1670_v38  ;;  %v1682_v9 = vshll.u32 %v2564_v52, %v1670_v38  ;;  %v821_v60 = vsel %vm819_vm7, %v820_v32, %v2544_v43 }
 0x17f   :  { %v907_v4 = vmul.f32 %v906_v14, %v904_v58  ;;  %v3992_v36 = vshrl.u32 %v1613_v25, 30  ;;  %v1674_v22 = vshrl.u32 %v2562_v47, %v1671_v33  ;;  %v1679_v6 = vshll.u32 %v2563_v50, %v1670_v38 }
 0x180   :  { %vm812_vm8 = vweird.f32 %v3684_v44  ;;  %v1677_v57 = vshrl.u32 %v2563_v50, %v1671_v33  ;;  %v1680_v10 = vshrl.u32 %v2564_v52, %v1671_v33  ;;  %v1683_v16 = vshrl.u32 %v2565_v54, %v1671_v33 }
 0x181   :  { %v908_v21 = vxor.u32 2147483648, %v907_v4  ;;  %v818_v46 = vsel %vm816_vm5, %v2542_v37, %v817_v30  ;;  %v1615_v2 = vshll.u32 %v3992_v36, 30  ;;  %v1672_v51 = vshrl.u32 %v2561_v45, %v1671_v33 }
 0x182   :  { %vm1688_vm9 = vcmp.lt.s32.totalorder %v1669_v3, 1  ;;  %v1675_v59 = vor.u32 %v1674_v22, %v1673_v12  ;;  %v1678_v42 = vor.u32 %v1677_v57, %v1676_v29  ;;  %v1684_v34 = vor.u32 %v1683_v16, %v1682_v9 }
 0x183   :  { %v909_v47 = vsel %vm826_vm1, %v908_v21, %v907_v4  ;;  %v1616_v52 = vsub.s32 %v1612_v11, %v1615_v2  ;;  %v1681_v23 = vor.u32 %v1680_v10, %v1679_v6  ;;  %v1685_v5 = vshll.u32 %v2565_v54, %v1670_v38 }
 0x184   :  { %v912_v50 = vsel %vm3968_vm2, %v3738_v53, %v909_v47  ;;  %v1686_v37 = vshrl.u32 %v2566_v62, %v1671_v33  ;;  %vm1690_vm12 = vcmp.lt.s32.totalorder %v1669_v3, 3  ;;  %vm1691_vm10 = vcmp.lt.s32.totalorder %v1669_v3, 4 }
 0x185   :  { %2545 = vcosq.f32 %v912_v50  ;;  %v1618_v45 = vsub.s32 0, %v1616_v52  ;;  %vm1689_vm11 = vcmp.lt.s32.totalorder %v1669_v3, 2  ;;  %v1704_v28 = vshll.u32 %v1664_v40, 8 }
 0x186   :  { %2547 = vsinq.f32 %v912_v50  ;;  %v1687_v7 = vor.u32 %v1686_v37, %v1685_v5  ;;  %v1693_v43 = vsel %vm1691_vm10, %v1681_v23, 2102212464  ;;  %v1696_v49 = vsel %vm1688_vm9, %v1675_v59, %v1678_v42 }
 0x187   :  { %v1697_v24 = vsel %vm1691_vm10, %v1684_v34, 920167782  ;;  %v822_v19 = vsel %vm815_vm6, %v818_v46, %v821_v60  ;;  %v2216_v54 = vmin.u32 %v1618_v45, %v1616_v52  ;;  %v1692_v55 = vsel %vm1688_vm9, %v1672_v51, %v1675_v59  ;;  %v4046_v59 = vld [vmem:[%s4134_s4] ss:$0 sm:$0xff] }
 0x188   :  { %v1698_v62 = vsel %vm1690_vm12, %v1681_v23, %v1697_v24  ;;  %v1694_v1 = vsel %vm1690_vm12, %v1678_v42, %v1693_v43  ;;  %v1700_v61 = vsel %vm1688_vm9, %v1678_v42, %v1681_v23  ;;  %v1701_v14 = vsel %vm1691_vm10, %v1687_v7, 1326507024 }
 0x189   :  { %v1699_v15 = vsel %vm1689_vm11, %v1696_v49, %v1698_v62  ;;  %v918_v39 = vand.u32 3, %v917_v31  ;;  %v1620_v32 = vclz %v2216_v54  ;;  %v1702_v11 = vsel %vm1690_vm12, %v1684_v34, %v1701_v14  ;;  %v4058_v14 = vld [vmem:[%s4135_s2] ss:$0 sm:$0xff] }
 0x18a   :  { %v4023_v38 = vmul.u32.u64.low %v1704_v28, %v1699_v15  ;;  %v4024_v0 = vmul.u32.u64.high %v1704_v28, %v1699_v15, %v4023_v38  ;;  %v823_v58 = vsel %vm812_vm8, nan, %v822_v19  ;;  %v1695_v30 = vsel %vm1689_vm11, %v1692_v55, %v1694_v1 }
 0x18b   :  { %v2217_v40 = vadd.s32 4294967294, %v1620_v32  ;;  %v1703_v25 = vsel %vm1689_vm11, %v1700_v61, %v1702_v11  ;;  %vm920_vm13 = vcmp.eq.s32.totalorder %v918_v39, 0  ;;  %vm923_vm14 = vcmp.eq.s32.totalorder %v918_v39, 2 }
 0x18c   :  { %v4031_v33 = vmul.u32.u64.low %v1704_v28, %v1703_v25  ;;  %v4032_v4 = vmul.u32.u64.high %v1704_v28, %v1703_v25, %v4031_v33  ;;  %v1608_v31 = vadd.s32 %v3956_v8, %v3964_v48  ;;  %v1766_v29 = vmul.f32 %v823_v58, %v823_v58 }
 0x18d   :  { %vm2218_vm15 = vcmp.lt.s32.totalorder %v2217_v40, 0  ;;  %v1711_v60 = vmul.u32 %v1704_v28, %v1695_v30  ;;  %v1714_v44 = vadd.s32 1, %v4024_v0  ;;  %vm916_vm0 = vweird.f32 %v3738_v53 }
 0x18e   :  { %v1623_v9 = vsel %vm2218_vm15, 0, %v2217_v40  ;;  %vm919_vm1 = vcmp.lt.s32.totalorder %v918_v39, 2  ;;  %vm1713_vm2 = vc.u32 %v4032_v4, %v4023_v38  ;;  %v1789_v53 = vmul.f32 %v4046_v59, %v1766_v29 }
 0x18f   :  { %v2546_v12 = vpop.eup %2545  ;;  %v1624_v21 = vsub.s32 32, %v1623_v9  ;;  %v1625_v3 = vshll.u32 %v1616_v52, %v1623_v9  ;;  %v1628_v57 = vsub.s32 4294967266, %v1623_v9  ;;  %v1715_v46 = vsel %vm1713_vm2, %v1714_v44, %v4024_v0 }
 0x190   :  { %v2548_v22 = vpop.eup %2547  ;;  %v924_v6 = vxor.u32 2147483648, %v2546_v12  ;;  %v1716_v51 = vadd.s32 %v1715_v46, %v1711_v60  ;;  %v1805_v7 = vadd.f32 %v2279_v13, %v1789_v53  ;;  %vm1554_vm3 = vcmp.lt.s32.totalorder %v3820_v63, 0 }
 0x191   :  { %v921_v10 = vxor.u32 2147483648, %v2548_v22  ;;  %v1626_v48 = vshrl.u32 %v1608_v31, %v1624_v21  ;;  %v1629_v16 = vadd.s32 127, %v1628_v57  ;;  %vm4062_vm4 = vcmp.le.f32.partialorder %v1552_v17, 0.7853982 }
 0x192   :  { %v925_v8 = vsel %vm923_vm14, %v924_v6, %v2548_v22  ;;  %v1717_v52 = vadd.s32 536870912, %v1716_v51  ;;  %v1638_v17 = vsub.s32 4, %v3992_v36  ;;  %vm1658_vm6 = vcmp.lt.s32.totalorder %v3915_v41, 0 }
 0x193   :  { %v922_v2 = vsel %vm920_vm13, %v2546_v12, %v921_v10  ;;  %v1627_v42 = vor.u32 %v1626_v48, %v1625_v3  ;;  %v1630_v34 = vshll.u32 %v1629_v16, 23  ;;  %v1712_v12 = vadd.s32 %v4023_v38, %v4032_v4 }
 0x194   :  { %v926_v47 = vsel %vm919_vm1, %v922_v2, %v925_v8  ;;  %v1718_v45 = vshrl.u32 %v1717_v52, 30  ;;  %v1639_v6 = vsel %vm1554_vm3, %v1638_v17, %v3992_v36  ;;  %vm1657_vm7 = vcmp.le.f32.partialorder %v1656_v35, 0.7853982 }
 0x195   :  { %v927_v50 = vsel %vm916_vm0, nan, %v926_v47  ;;  %v1631_v5 = vor.u32 4788187, %v1630_v34  ;;  %v1634_v37 = vcvt.s32.f32 %v1627_v42  ;;  %v1641_v21 = vsel %vm4062_vm4, 0, %v1639_v6 }
 0x196   :  { %v1767_v23 = vmul.f32 %v927_v50, %v927_v50  ;;  %v1719_v49 = vshll.u32 %v1718_v45, 30  ;;  %v1645_v48 = vadd.s32 3, %v1641_v21  ;;  %v1742_v46 = vsub.s32 4, %v1718_v45 }
 0x197   :  { %v1632_v43 = vand.u32 2147483647, %v1631_v5  ;;  %vm1644_vm10 = vweird.f32 %v3820_v63  ;;  %vm1748_vm15 = vweird.f32 %v3915_v41 }
 0x198   :  { %v1790_v28 = vmul.f32 %v4046_v59, %v1767_v23  ;;  %v1720_v54 = vsub.s32 %v1716_v51, %v1719_v49  ;;  %v1646_v53 = vand.u32 3, %v1645_v48  ;;  %v1743_v42 = vsel %vm1658_vm6, %v1742_v46, %v1718_v45 }
 0x199   :  { %v1635_v19 = vmul.f32 %v1634_v37, %v1632_v43  ;;  %v1745_v5 = vsel %vm1657_vm7, 0, %v1743_v42 }
 0x19a   :  { %v1806_v24 = vadd.f32 %v2280_v56, %v1790_v28  ;;  %v1722_v1 = vsub.s32 0, %v1720_v54  ;;  %vm1648_vm8 = vcmp.eq.s32.totalorder %v1646_v53, 0  ;;  %vm1651_vm9 = vcmp.eq.s32.totalorder %v1646_v53, 2 }
 0x19b   :  { %v1636_v62 = vxor.u32 2147483648, %v1635_v19  ;;  %vm1647_vm12 = vcmp.lt.s32.totalorder %v1646_v53, 2 }
 0x19c   :  { %v1818_v55 = vpack.c.bf16 %v1806_v24, %v1805_v7  ;;  %v2220_v15 = vmin.u32 %v1722_v1, %v1720_v54  ;;  %v1749_v7 = vadd.s32 3, %v1745_v5 }
 0x19d   :  { %v1637_v56 = vsel %vm1554_vm3, %v1636_v62, %v1635_v19 }
 0x19e   :  { %2388 = vmatmul.mubr.bf16.gmra.mrb[4].mxu0 %v1818_v55  ;;  %v1724_v39 = vclz %v2220_v15  ;;  %v1640_v33 = vsel %vm4062_vm4, %v3820_v63, %v1637_v56  ;;  %v1750_v35 = vand.u32 3, %v1749_v7 }
 0x19f   :  { %v2385_v61 = vpop.f32.mrb[0].mxu0  ;;  %2549 = vcosq.f32 %v1640_v33 }
 0x1a0   :  { %v1937_v13 = vpop.f32.mrb[1].mxu0  ;;  %v2060_v11 = vadd.f32 %v2385_v61, %v4058_v14  ;;  %v2221_v40 = vadd.s32 4294967294, %v1724_v39  ;;  %2551 = vsinq.f32 %v1640_v33  ;;  %vm1755_vm11 = vcmp.eq.s32.totalorder %v1750_v35, 2 }
 0x1a1   :  { %v2386_v32 = vpop.f32.mrb[2].mxu0  ;;  %v2058_v30 = vadd.f32 %v4058_v14, %v1937_v13  ;;  %vm1752_vm13 = vcmp.eq.s32.totalorder %v1750_v35, 0  ;;  %vm1751_vm14 = vcmp.lt.s32.totalorder %v1750_v35, 2 }
 0x1a2   :  { %v2061_v0 = vadd.f32 %v2386_v32, %v4058_v14  ;;  %v1940_v58 = vpop.f32.mrb[3].mxu0  ;;  %vm2222_vm5 = vcmp.lt.s32.totalorder %v2221_v40, 0 }
 0x1a3   :  { %v2059_v25 = vadd.f32 %v4058_v14, %v1940_v58  ;;  %v1727_v9 = vsel %vm2222_vm5, 0, %v2221_v40 }
 0x1a4   :  { %v2305_v31 = vpack.c.bf16 %v2061_v0, %v2060_v11  ;;  %v1728_v60 = vsub.s32 32, %v1727_v9  ;;  %v1729_v44 = vshll.u32 %v1720_v54, %v1727_v9  ;;  %v1732_v22 = vsub.s32 4294967266, %v1727_v9 }
 0x1a5   :  { %v2300_v29 = vpack.c.bf16 %v2059_v25, %v2058_v30 }
 0x1a6   :  { %2344 = vst [vmem:[%s4136_s5 + $0x8] sm:$0xff] %v2305_v31   ;;  %v1730_v38 = vshrl.u32 %v1712_v12, %v1728_v60  ;;  %v1733_v4 = vadd.s32 127, %v1732_v22 }
 0x1a7   :  { %2301 = vst [vmem:[%s4136_s5] sm:$0xff] %v2300_v29  }
 0x1a8   :  { %v1731_v3 = vor.u32 %v1730_v38, %v1729_v44  ;;  %v1734_v57 = vshll.u32 %v1733_v4, 23 }
 0x1a9   :  { %v2550_v2 = vpop.eup %2549 }
 0x1aa   :  { %v1735_v10 = vor.u32 4788187, %v1734_v57  ;;  %v1738_v8 = vcvt.s32.f32 %v1731_v3  ;;  %v2552_v47 = vpop.eup %2551  ;;  %v1652_v50 = vxor.u32 2147483648, %v2550_v2 }
 0x1ab   :  { %v1649_v34 = vxor.u32 2147483648, %v2552_v47 }
 0x1ac   :  { %v1736_v16 = vand.u32 2147483647, %v1735_v10  ;;  %v1653_v28 = vsel %vm1651_vm9, %v1652_v50, %v2552_v47 }
 0x1ad   :  { %v1650_v37 = vsel %vm1648_vm8, %v2550_v2, %v1649_v34 }
 0x1ae   :  { %v1739_v51 = vmul.f32 %v1738_v8, %v1736_v16  ;;  %v1654_v43 = vsel %vm1647_vm12, %v1650_v37, %v1653_v28 }
 0x1af   :  { %v1655_v49 = vsel %vm1644_vm10, nan, %v1654_v43 }
 0x1b0   :  { %v1740_v36 = vxor.u32 2147483648, %v1739_v51  ;;  %v1774_v54 = vmul.f32 %v1655_v49, %v1655_v49 }
 0x1b2   :  { %v1741_v52 = vsel %vm1658_vm6, %v1740_v36, %v1739_v51  ;;  %v1797_v61 = vmul.f32 %v4046_v59, %v1774_v54 }
 0x1b3   :  { %v1744_v23 = vsel %vm1657_vm7, %v3915_v41, %v1741_v52 }
 0x1b4   :  { %2553 = vcosq.f32 %v1744_v23  ;;  %v1813_v56 = vadd.f32 %v2295_v27, %v1797_v61 }
 0x1b5   :  { %2555 = vsinq.f32 %v1744_v23 }
 0x1be   :  { %v2554_v45 = vpop.eup %2553 }
 0x1bf   :  { %v2556_v24 = vpop.eup %2555  ;;  %v1756_v19 = vxor.u32 2147483648, %v2554_v45 }
 0x1c0   :  { %v1753_v55 = vxor.u32 2147483648, %v2556_v24 }
 0x1c1   :  { %v1757_v62 = vsel %vm1755_vm11, %v1756_v19, %v2556_v24 }
 0x1c2   :  { %v1754_v1 = vsel %vm1752_vm13, %v2554_v45, %v1753_v55 }
 0x1c3   :  { %v1758_v15 = vsel %vm1751_vm14, %v1754_v1, %v1757_v62 }
 0x1c4   :  { %v1759_v13 = vsel %vm1748_vm15, nan, %v1758_v15 }
 0x1c5   :  { %v1775_v63 = vmul.f32 %v1759_v13, %v1759_v13 }
 0x1c7   :  { %v1798_v18 = vmul.f32 %v4046_v59, %v1775_v63 }
 0x1c9   :  { %v1814_v39 = vadd.f32 %v2296_v20, %v1798_v18 }
 0x1cb   :  { %v1822_v32 = vpack.c.bf16 %v1814_v39, %v1813_v56 }
 0x1cd   :  { %2396 = vmatmul.mubr.bf16.gmra.mrb[4].mxu1 %v1822_v32 }
 0x1d6   :  { %v2393_v11 = vpop.f32.mrb[0].mxu1 }
 0x1d7   :  { %v1969_v0 = vpop.f32.mrb[1].mxu1  ;;  %v2068_v58 = vadd.f32 %v2393_v11, %v4058_v14 }
 0x1d8   :  { %v2394_v41 = vpop.f32.mrb[2].mxu1  ;;  %v2066_v25 = vadd.f32 %v4058_v14, %v1969_v0 }
 0x1d9   :  { %v2069_v40 = vadd.f32 %v2394_v41, %v4058_v14  ;;  %v1972_v30 = vpop.f32.mrb[3].mxu1 }
 0x1da   :  { %v2067_v59 = vadd.f32 %v4058_v14, %v1972_v30 }
 0x1db   :  { %v2325_v17 = vpack.c.bf16 %v2069_v40, %v2068_v58 }
 0x1dc   :  { %v2320_v33 = vpack.c.bf16 %v2067_v59, %v2066_v25 }
 0x1dd   :  { %2348 = vst [vmem:[%s4136_s5 + $0x28] sm:$0xff] %v2325_v17  }
 0x1de   :  { %2347 = vst [vmem:[%s4136_s5 + $0x20] sm:$0xff] %v2320_v33  }
 0x271   :  { %v2389_v26 = vpop.f32.mrb[4].mxu0 }
 0x272   :  { %v1953_v27 = vpop.f32.mrb[5].mxu0  ;;  %v2064_v31 = vadd.f32 %v2389_v26, %v4058_v14 }
 0x273   :  { %v2390_v20 = vpop.f32.mrb[6].mxu0  ;;  %v2062_v9 = vadd.f32 %v4058_v14, %v1953_v27 }
 0x274   :  { %v2065_v12 = vadd.f32 %v2390_v20, %v4058_v14  ;;  %v1956_v29 = vpop.f32.mrb[7].mxu0 }
 0x275   :  { %v2063_v60 = vadd.f32 %v4058_v14, %v1956_v29 }
 0x276   :  { %v2315_v44 = vpack.c.bf16 %v2065_v12, %v2064_v31 }
 0x277   :  { %v2310_v22 = vpack.c.bf16 %v2063_v60, %v2062_v9 }
 0x278   :  { %2346 = vst [vmem:[%s4136_s5 + $0x18] sm:$0xff] %v2315_v44  }
 0x279   :  { %2345 = vst [vmem:[%s4136_s5 + $0x10] sm:$0xff] %v2310_v22  }
 0x2a0   :  { %v2397_v6 = vpop.f32.mrb[4].mxu1 }
 0x2a1   :  { %v1985_v38 = vpop.f32.mrb[5].mxu1  ;;  %v2072_v21 = vadd.f32 %v2397_v6, %v4058_v14 }
 0x2a2   :  { %v2398_v4 = vpop.f32.mrb[6].mxu1  ;;  %v2070_v10 = vadd.f32 %v4058_v14, %v1985_v38 }
 0x2a3   :  { %v2073_v3 = vadd.f32 %v2398_v4, %v4058_v14  ;;  %v1988_v57 = vpop.f32.mrb[7].mxu1 }
 0x2a4   :  { %v2071_v8 = vadd.f32 %v4058_v14, %v1988_v57 }
 0x2a5   :  { %v2335_v48 = vpack.c.bf16 %v2073_v3, %v2072_v21 }
 0x2a6   :  { %v2330_v16 = vpack.c.bf16 %v2071_v8, %v2070_v10 }
 0x2a7   :  { %2350 = vst [vmem:[%s4136_s5 + $0x38] sm:$0xff] %v2335_v48  }
 0x2a8   :  { %2349 = vst [vmem:[%s4136_s5 + $0x30] sm:$0xff] %v2330_v16  }

// kernel: dac_encoder_forward.16
= control target key start
LH: loop header
LB: loop body
LE: loop exit
PB: predicated region body
PF: predicated region fallthrough
CT: control target
= control target key end

     0   :  { %s705_s1 = inlined_call_operand.vmem [shape: bf16[128,128], index: 1, kind: input, shape index: {}]   ;;  %s706_s0 = inlined_call_operand.vmem [shape: bf16[128,128], index: 0, kind: input, shape index: {}]   ;;  %s707_s2 = inlined_call_operand.vmem [shape: f32[1,128], index: 2, kind: input, shape index: {}]   ;;  %s708_s3 = inlined_call_operand.vmem [shape: bf16[128,128], index: 3, kind: output, shape index: {}]  }
   0x1   :  { %v594_v0 = vld [vmem:[%s705_s1] sm:$0xff]   ;;  %v595_v1 = vld [vmem:[%s705_s1 + $0x8] sm:$0xff]   ;;  %v596_v2 = vld [vmem:[%s705_s1 + $0x10] sm:$0xff]  }
   0x2   :  { %546 = vmatprep.subr.bf16.mxu0 %v594_v0  ;;  %578 = vmatprep.subr.bf16.mxu1 %v594_v0  ;;  %v597_v3 = vld [vmem:[%s705_s1 + $0x18] sm:$0xff]   ;;  %v602_v4 = vld [vmem:[%s706_s0] sm:$0xff]   ;;  %v599_v7 = vld [vmem:[%s705_s1 + $0x28] sm:$0xff]  }
   0x3   :  { %547 = vmatpush3.bf16.msra.mxu0 %v594_v0  ;;  %586 = vmatpush3.bf16.msra.mxu1 %v594_v0  ;;  %v603_v5 = vld [vmem:[%s706_s0 + $0x20] sm:$0xff]   ;;  %v600_v8 = vld [vmem:[%s705_s1 + $0x30] sm:$0xff]   ;;  %v601_v9 = vld [vmem:[%s705_s1 + $0x38] sm:$0xff]  }
   0x4   :  { %548 = vmatprep.subr.bf16.mxu0 %v595_v1  ;;  %579 = vmatprep.subr.bf16.mxu1 %v595_v1  ;;  %v598_v6 = vld [vmem:[%s705_s1 + $0x20] sm:$0xff]   ;;  %v604_v10 = vld [vmem:[%s706_s0 + $0x8] sm:$0xff]   ;;  %v606_v12 = vld [vmem:[%s706_s0 + $0x10] sm:$0xff]  }
   0x5   :  { %562 = vmatprep.mubr.bf16.mxu0 %v602_v4  ;;  %570 = vmatprep.mubr.bf16.mxu1 %v603_v5  ;;  %v605_v11 = vld [vmem:[%s706_s0 + $0x28] sm:$0xff]   ;;  %v607_v13 = vld [vmem:[%s706_s0 + $0x30] sm:$0xff]   ;;  %v608_v14 = vld [vmem:[%s706_s0 + $0x18] sm:$0xff]  }
   0x6   :  { %v609_v15 = vld [vmem:[%s706_s0 + $0x38] sm:$0xff]   ;;  %v450_v17 = vld [vmem:[%s707_s2] ss:$0 sm:$0xff] }
   0x7   :  { %549 = vmatpush3.bf16.msra.mxu0 %v595_v1  ;;  %587 = vmatpush3.bf16.msra.mxu1 %v595_v1 }
   0x8   :  { %550 = vmatprep.subr.bf16.mxu0 %v596_v2  ;;  %580 = vmatprep.subr.bf16.mxu1 %v596_v2 }
   0xb   :  { %551 = vmatpush3.bf16.msra.mxu0 %v596_v2  ;;  %588 = vmatpush3.bf16.msra.mxu1 %v596_v2 }
   0xc   :  { %552 = vmatprep.subr.bf16.mxu0 %v597_v3  ;;  %581 = vmatprep.subr.bf16.mxu1 %v597_v3 }
   0xf   :  { %553 = vmatpush3.bf16.msra.mxu0 %v597_v3  ;;  %589 = vmatpush3.bf16.msra.mxu1 %v597_v3 }
  0x10   :  { %554 = vmatprep.subr.bf16.mxu0 %v598_v6  ;;  %582 = vmatprep.subr.bf16.mxu1 %v598_v6 }
  0x13   :  { %555 = vmatpush3.bf16.msra.mxu0 %v598_v6  ;;  %590 = vmatpush3.bf16.msra.mxu1 %v598_v6 }
  0x14   :  { %556 = vmatprep.subr.bf16.mxu0 %v599_v7  ;;  %583 = vmatprep.subr.bf16.mxu1 %v599_v7 }
  0x17   :  { %557 = vmatpush3.bf16.msra.mxu0 %v599_v7  ;;  %591 = vmatpush3.bf16.msra.mxu1 %v599_v7 }
  0x18   :  { %558 = vmatprep.subr.bf16.mxu0 %v600_v8  ;;  %584 = vmatprep.subr.bf16.mxu1 %v600_v8 }
  0x1b   :  { %559 = vmatpush3.bf16.msra.mxu0 %v600_v8  ;;  %592 = vmatpush3.bf16.msra.mxu1 %v600_v8 }
  0x1c   :  { %560 = vmatprep.subr.bf16.mxu0 %v601_v9  ;;  %585 = vmatprep.subr.bf16.mxu1 %v601_v9 }
  0x1f   :  { %561 = vmatpush3.bf16.msra.mxu0 %v601_v9  ;;  %593 = vmatpush3.bf16.msra.mxu1 %v601_v9 }
  0x22   :  { %563 = vmatmul.mubr.bf16.vlgmr.msra.gmra.mrb[0].mxu0 %v604_v10  ;;  %571 = vmatmul.mubr.bf16.vlgmr.msra.gmra.mrb[0].mxu1 %v605_v11 }
  0x23   :  { %566 = vmatprep.mubr.bf16.mxu0 %v606_v12  ;;  %574 = vmatprep.mubr.bf16.mxu1 %v607_v13 }
  0x2a   :  { %567 = vmatmul.mubr.bf16.gmra.mrb[4].mxu0 %v608_v14  ;;  %575 = vmatmul.mubr.bf16.gmra.mrb[4].mxu1 %v609_v15 }
  0xf5   :  { %v564_v16 = vpop.f32.mrb[0].mxu0  ;;  %v572_v18 = vpop.f32.mrb[0].mxu1 }
  0xf6   :  { %v213_v19 = vpop.f32.mrb[1].mxu0  ;;  %v245_v20 = vpop.f32.mrb[1].mxu1  ;;  %v336_v23 = vadd.f32 %v564_v16, %v450_v17  ;;  %v344_v24 = vadd.f32 %v572_v18, %v450_v17 }
  0xf7   :  { %v565_v21 = vpop.f32.mrb[2].mxu0  ;;  %v573_v22 = vpop.f32.mrb[2].mxu1  ;;  %v334_v29 = vadd.f32 %v450_v17, %v213_v19  ;;  %v342_v30 = vadd.f32 %v450_v17, %v245_v20 }
  0xf8   :  { %v337_v25 = vadd.f32 %v565_v21, %v450_v17  ;;  %v345_v26 = vadd.f32 %v573_v22, %v450_v17  ;;  %v216_v27 = vpop.f32.mrb[3].mxu0  ;;  %v248_v28 = vpop.f32.mrb[3].mxu1 }
  0xf9   :  { %v335_v31 = vadd.f32 %v450_v17, %v216_v27  ;;  %v343_v32 = vadd.f32 %v450_v17, %v248_v28 }
  0xfa   :  { %v491_v33 = vpack.c.bf16 %v337_v25, %v336_v23  ;;  %v511_v34 = vpack.c.bf16 %v345_v26, %v344_v24 }
  0xfb   :  { %v486_v35 = vpack.c.bf16 %v335_v31, %v334_v29  ;;  %v506_v36 = vpack.c.bf16 %v343_v32, %v342_v30 }
  0xfc   :  { %523 = vst [vmem:[%s708_s3 + $0x8] sm:$0xff] %v491_v33   ;;  %527 = vst [vmem:[%s708_s3 + $0x28] sm:$0xff] %v511_v34  }
  0xfd   :  { %487 = vst [vmem:[%s708_s3] sm:$0xff] %v486_v35   ;;  %526 = vst [vmem:[%s708_s3 + $0x20] sm:$0xff] %v506_v36   ;;  %v568_v37 = vpop.f32.mrb[4].mxu0  ;;  %v576_v38 = vpop.f32.mrb[4].mxu1 }
  0xfe   :  { %v229_v39 = vpop.f32.mrb[5].mxu0  ;;  %v261_v40 = vpop.f32.mrb[5].mxu1  ;;  %v340_v43 = vadd.f32 %v568_v37, %v450_v17  ;;  %v348_v44 = vadd.f32 %v576_v38, %v450_v17 }
  0xff   :  { %v569_v41 = vpop.f32.mrb[6].mxu0  ;;  %v577_v42 = vpop.f32.mrb[6].mxu1  ;;  %v338_v49 = vadd.f32 %v450_v17, %v229_v39  ;;  %v346_v50 = vadd.f32 %v450_v17, %v261_v40 }
 0x100   :  { %v341_v45 = vadd.f32 %v569_v41, %v450_v17  ;;  %v349_v46 = vadd.f32 %v577_v42, %v450_v17  ;;  %v232_v47 = vpop.f32.mrb[7].mxu0  ;;  %v264_v48 = vpop.f32.mrb[7].mxu1 }
 0x101   :  { %v339_v51 = vadd.f32 %v450_v17, %v232_v47  ;;  %v347_v52 = vadd.f32 %v450_v17, %v264_v48 }
 0x102   :  { %v501_v53 = vpack.c.bf16 %v341_v45, %v340_v43  ;;  %v521_v54 = vpack.c.bf16 %v349_v46, %v348_v44 }
 0x103   :  { %v496_v55 = vpack.c.bf16 %v339_v51, %v338_v49  ;;  %v516_v56 = vpack.c.bf16 %v347_v52, %v346_v50 }
 0x104   :  { %525 = vst [vmem:[%s708_s3 + $0x18] sm:$0xff] %v501_v53   ;;  %529 = vst [vmem:[%s708_s3 + $0x38] sm:$0xff] %v521_v54  }
 0x105   :  { %524 = vst [vmem:[%s708_s3 + $0x10] sm:$0xff] %v496_v55   ;;  %528 = vst [vmem:[%s708_s3 + $0x30] sm:$0xff] %v516_v56  }

// kernel: dac_encoder_forward.18
= control target key start
LH: loop header
LB: loop body
LE: loop exit
PB: predicated region body
PF: predicated region fallthrough
CT: control target
= control target key end

     0   :  { %v2651_v45 = vmov 683565275   ;;  %v2652_v47 = vmov 2475754826   ;;  %v2653_v50 = vmov 2131351028   ;;  %s4255_s1 = inlined_call_operand.vmem [shape: bf16[128,128], index: 1, kind: input, shape index: {}]   ;;  %s4256_s0 = inlined_call_operand.vmem [shape: bf16[128,128], index: 0, kind: input, shape index: {}]   ;;  %s4257_s3 = inlined_call_operand.vmem [shape: f32[1,128], index: 3, kind: input, shape index: {}]   ;;  %s4258_s4 = inlined_call_operand.vmem [shape: f32[1,128], index: 4, kind: input, shape index: {}]   ;;  %s4259_s2 = inlined_call_operand.vmem [shape: f32[1,128], index: 2, kind: input, shape index: {}]   ;;  %s4260_s5 = inlined_call_operand.vmem [shape: bf16[128,128], index: 5, kind: input, shape index: {}]   ;;  %s4261_s6 = inlined_call_operand.vmem [shape: bf16[128,128], index: 6, kind: output, shape index: {}]  }
   0x1   :  { %v2575_v0 = vld [vmem:[%s4255_s1] sm:$0xff]   ;;  %v2576_v1 = vld [vmem:[%s4255_s1 + $0x8] sm:$0xff]   ;;  %v2577_v2 = vld [vmem:[%s4255_s1 + $0x10] sm:$0xff]   ;;  %v2654_v52 = vmov 2102212464  }
   0x2   :  { %2457 = vmatprep.subr.bf16.mxu0 %v2575_v0  ;;  %2489 = vmatprep.subr.bf16.mxu1 %v2575_v0  ;;  %v2578_v3 = vld [vmem:[%s4255_s1 + $0x18] sm:$0xff]   ;;  %v2707_v4 = vld [vmem:[%s4256_s0] sm:$0xff]   ;;  %v2580_v18 = vld [vmem:[%s4255_s1 + $0x28] sm:$0xff]   ;;  %v2655_v54 = vmov 920167782  }
   0x3   :  { %2458 = vmatpush3.bf16.msra.mxu0 %v2575_v0  ;;  %2497 = vmatpush3.bf16.msra.mxu1 %v2575_v0  ;;  %v2712_v5 = vld [vmem:[%s4257_s3] ss:$0 sm:$0xff]  ;;  %v2318_v7 = vunpack.c.l.bf16 %v2707_v4  ;;  %v2319_v8 = vunpack.c.h.bf16 %v2707_v4  ;;  %v2581_v29 = vld [vmem:[%s4255_s1 + $0x30] sm:$0xff]   ;;  %v2582_v39 = vld [vmem:[%s4255_s1 + $0x38] sm:$0xff]   ;;  %v2656_v62 = vmov 1326507024  }
   0x4   :  { %2459 = vmatprep.subr.bf16.mxu0 %v2576_v1  ;;  %2490 = vmatprep.subr.bf16.mxu1 %v2576_v1  ;;  %v2717_v6 = vld [vmem:[%s4256_s0 + $0x20] sm:$0xff]  }
   0x5   :  { %v2334_v9 = vunpack.c.l.bf16 %v2717_v6  ;;  %v2725_v10 = vmul.f32 %v2318_v7, %v2712_v5  ;;  %v2730_v11 = vmul.f32 %v2319_v8, %v2712_v5  ;;  %v2579_v12 = vld [vmem:[%s4255_s1 + $0x20] sm:$0xff]   ;;  %v2335_v28 = vunpack.c.h.bf16 %v2717_v6 }
   0x7   :  { %2460 = vmatpush3.bf16.msra.mxu0 %v2576_v1  ;;  %2498 = vmatpush3.bf16.msra.mxu1 %v2576_v1  ;;  %v2738_v13 = vmul.f32 %v2334_v9, %v2712_v5  ;;  %v99_v14 = vand.u32 2147483647, %v2725_v10  ;;  %v102_v15 = vand.u32 2139095040, %v2725_v10  ;;  %v203_v16 = vand.u32 2147483647, %v2730_v11 }
   0x8   :  { %2461 = vmatprep.subr.bf16.mxu0 %v2577_v2  ;;  %2491 = vmatprep.subr.bf16.mxu1 %v2577_v2  ;;  %v206_v17 = vand.u32 2139095040, %v2730_v11  ;;  %v2761_v38 = vmul.f32 %v2335_v28, %v2712_v5  ;;  %vm101_vm14 = vcmp.lt.s32.totalorder %v2725_v10, 0 }
   0x9   :  { %v103_v19 = vshrl.u32 %v102_v15, 23  ;;  %v106_v20 = vand.u32 8388607, %v99_v14  ;;  %v210_v22 = vand.u32 8388607, %v203_v16  ;;  %v934_v23 = vand.u32 2139095040, %v2738_v13 }
   0xa   :  { %v207_v21 = vshrl.u32 %v206_v17, 23  ;;  %v931_v42 = vand.u32 2147483647, %v2738_v13 }
   0xb   :  { %2462 = vmatpush3.bf16.msra.mxu0 %v2577_v2  ;;  %2499 = vmatpush3.bf16.msra.mxu1 %v2577_v2  ;;  %v2210_v24 = vadd.s32 4294967169, %v103_v19  ;;  %v935_v26 = vshrl.u32 %v934_v23, 23  ;;  %v107_v30 = vor.u32 8388608, %v106_v20  ;;  %v211_v31 = vor.u32 8388608, %v210_v22 }
   0xc   :  { %2463 = vmatprep.subr.bf16.mxu0 %v2578_v3  ;;  %2492 = vmatprep.subr.bf16.mxu1 %v2578_v3  ;;  %v2214_v25 = vadd.s32 4294967169, %v207_v21 }
   0xd   :  { %v109_v27 = vadd.s32 1, %v2210_v24  ;;  %v2242_v33 = vadd.s32 4294967169, %v935_v26  ;;  %v2766_v40 = vshll.u32 %v107_v30, 8  ;;  %v2768_v41 = vshll.u32 %v211_v31, 8 }
   0xe   :  { %v213_v32 = vadd.s32 1, %v2214_v25 }
   0xf   :  { %2464 = vmatpush3.bf16.msra.mxu0 %v2578_v3  ;;  %2500 = vmatpush3.bf16.msra.mxu1 %v2578_v3  ;;  %vm110_vm0 = vcmp.gt.s32.totalorder %v109_v27, 0  ;;  %v2771_v43 = vadd.s32 1, %v2242_v33 }
  0x10   :  { %2465 = vmatprep.subr.bf16.mxu0 %v2579_v12  ;;  %2493 = vmatprep.subr.bf16.mxu1 %v2579_v12  ;;  %v111_v34 = vsel %vm110_vm0, %v109_v27, 0  ;;  %vm214_vm1 = vcmp.gt.s32.totalorder %v213_v32, 0 }
  0x11   :  { %v2756_v35 = vshrl.u32 %v111_v34, 5  ;;  %v113_v36 = vand.u32 31, %v111_v34  ;;  %v215_v37 = vsel %vm214_vm1, %v213_v32, 0  ;;  %vm942_vm6 = vcmp.gt.s32.totalorder %v2771_v43, 0 }
  0x12   :  { %v217_v49 = vand.u32 31, %v215_v37  ;;  %v2778_v56 = vshrl.u32 %v215_v37, 5 }
  0x13   :  { %2466 = vmatpush3.bf16.msra.mxu0 %v2579_v12  ;;  %2501 = vmatpush3.bf16.msra.mxu1 %v2579_v12  ;;  %v114_v44 = vsub.s32 32, %v113_v36  ;;  %v116_v46 = vshll.u32 %v2651_v45, %v113_v36  ;;  %v119_v48 = vshll.u32 %v2652_v47, %v113_v36  ;;  %v122_v51 = vshll.u32 %v2653_v50, %v113_v36 }
  0x14   :  { %2467 = vmatprep.subr.bf16.mxu0 %v2580_v18  ;;  %2494 = vmatprep.subr.bf16.mxu1 %v2580_v18  ;;  %v125_v53 = vshll.u32 %v2654_v52, %v113_v36  ;;  %v128_v55 = vshll.u32 %v2655_v54, %v113_v36  ;;  %vm131_vm2 = vcmp.lt.s32.totalorder %v2756_v35, 1  ;;  %vm133_vm3 = vcmp.lt.s32.totalorder %v2756_v35, 3 }
  0x15   :  { %v115_v57 = vshrl.u32 %v2651_v45, %v114_v44  ;;  %v117_v58 = vshrl.u32 %v2652_v47, %v114_v44  ;;  %v120_v59 = vshrl.u32 %v2653_v50, %v114_v44  ;;  %v123_v60 = vshrl.u32 %v2654_v52, %v114_v44 }
  0x16   :  { %v126_v61 = vshrl.u32 %v2655_v54, %v114_v44  ;;  %v129_v63 = vshrl.u32 %v2656_v62, %v114_v44  ;;  %vm134_vm4 = vcmp.lt.s32.totalorder %v2756_v35, 4  ;;  %v218_v2 = vsub.s32 32, %v217_v49 }
  0x17   :  { %2468 = vmatpush3.bf16.msra.mxu0 %v2580_v18  ;;  %2502 = vmatpush3.bf16.msra.mxu1 %v2580_v18  ;;  %v118_v0 = vor.u32 %v117_v58, %v116_v46  ;;  %v121_v1 = vor.u32 %v120_v59, %v119_v48  ;;  %v124_v3 = vor.u32 %v123_v60, %v122_v51  ;;  %vm132_vm5 = vcmp.lt.s32.totalorder %v2756_v35, 2 }
  0x18   :  { %2469 = vmatprep.subr.bf16.mxu0 %v2581_v29  ;;  %2495 = vmatprep.subr.bf16.mxu1 %v2581_v29  ;;  %v127_v12 = vor.u32 %v126_v61, %v125_v53  ;;  %v130_v15 = vor.u32 %v129_v63, %v128_v55  ;;  %v220_v17 = vshll.u32 %v2651_v45, %v217_v49  ;;  %vm235_vm7 = vcmp.lt.s32.totalorder %v2778_v56, 1 }
  0x19   :  { %v135_v18 = vsel %vm131_vm2, %v115_v57, %v118_v0  ;;  %v139_v19 = vsel %vm131_vm2, %v118_v0, %v121_v1  ;;  %v223_v20 = vshll.u32 %v2652_v47, %v217_v49  ;;  %v136_v21 = vsel %vm134_vm4, %v124_v3, 2102212464 }
  0x1a   :  { %v140_v22 = vsel %vm134_vm4, %v127_v12, 920167782  ;;  %v143_v23 = vsel %vm131_vm2, %v121_v1, %v124_v3  ;;  %v144_v24 = vsel %vm134_vm4, %v130_v15, 1326507024  ;;  %v137_v25 = vsel %vm133_vm3, %v121_v1, %v136_v21 }
  0x1b   :  { %2470 = vmatpush3.bf16.msra.mxu0 %v2581_v29  ;;  %2503 = vmatpush3.bf16.msra.mxu1 %v2581_v29  ;;  %v141_v26 = vsel %vm133_vm3, %v124_v3, %v140_v22  ;;  %v145_v27 = vsel %vm133_vm3, %v127_v12, %v144_v24  ;;  %v221_v29 = vshrl.u32 %v2652_v47, %v218_v2  ;;  %vm236_vm8 = vcmp.lt.s32.totalorder %v2778_v56, 2 }
  0x1c   :  { %2471 = vmatprep.subr.bf16.mxu0 %v2582_v39  ;;  %2496 = vmatprep.subr.bf16.mxu1 %v2582_v39  ;;  %v138_v30 = vsel %vm132_vm5, %v135_v18, %v137_v25  ;;  %v142_v31 = vsel %vm132_vm5, %v139_v19, %v141_v26  ;;  %v146_v32 = vsel %vm132_vm5, %v143_v23, %v145_v27  ;;  %vm238_vm10 = vcmp.lt.s32.totalorder %v2778_v56, 4 }
  0x1d   :  { %v224_v33 = vshrl.u32 %v2653_v50, %v218_v2  ;;  %v2808_v34 = vmul.u32.u64.low %v2766_v40, %v146_v32  ;;  %v2809_v36 = vmul.u32.u64.high %v2766_v40, %v146_v32, %v2808_v34  ;;  %v219_v44 = vshrl.u32 %v2651_v45, %v218_v2 }
  0x1e   :  { %v222_v35 = vor.u32 %v221_v29, %v220_v17  ;;  %v226_v48 = vshll.u32 %v2653_v50, %v217_v49  ;;  %v227_v51 = vshrl.u32 %v2654_v52, %v218_v2  ;;  %v229_v53 = vshll.u32 %v2654_v52, %v217_v49 }
  0x1f   :  { %2472 = vmatpush3.bf16.msra.mxu0 %v2582_v39  ;;  %2504 = vmatpush3.bf16.msra.mxu1 %v2582_v39  ;;  %v2812_v37 = vmul.u32.u64.low %v2766_v40, %v142_v31  ;;  %v2813_v39 = vmul.u32.u64.high %v2766_v40, %v142_v31, %v2812_v37  ;;  %v225_v46 = vor.u32 %v224_v33, %v223_v20  ;;  %v230_v55 = vshrl.u32 %v2655_v54, %v218_v2 }
  0x20   :  { %v232_v57 = vshll.u32 %v2655_v54, %v217_v49  ;;  %v154_v58 = vmul.u32 %v2766_v40, %v138_v30  ;;  %v233_v59 = vshrl.u32 %v2656_v62, %v218_v2  ;;  %v228_v61 = vor.u32 %v227_v51, %v226_v48 }
  0x21   :  { %vm156_vm9 = vc.u32 %v2809_v36, %v2812_v37  ;;  %v157_v60 = vadd.s32 1, %v2813_v39  ;;  %v231_v63 = vor.u32 %v230_v55, %v229_v53  ;;  %vm237_vm11 = vcmp.lt.s32.totalorder %v2778_v56, 3 }
  0x22   :  { %v234_v0 = vor.u32 %v233_v59, %v232_v57  ;;  %v239_v49 = vsel %vm235_vm7, %v219_v44, %v222_v35  ;;  %v240_v1 = vsel %vm238_vm10, %v228_v61, 2102212464  ;;  %v243_v2 = vsel %vm235_vm7, %v222_v35, %v225_v46 }
  0x23   :  { %v158_v40 = vsel %vm156_vm9, %v157_v60, %v2813_v39  ;;  %v247_v3 = vsel %vm235_vm7, %v225_v46, %v228_v61  ;;  %v241_v15 = vsel %vm237_vm11, %v225_v46, %v240_v1  ;;  %v244_v17 = vsel %vm238_vm10, %v231_v63, 920167782 }
  0x24   :  { %v159_v12 = vadd.s32 %v158_v40, %v154_v58  ;;  %v248_v18 = vsel %vm238_vm10, %v234_v0, 1326507024  ;;  %v245_v19 = vsel %vm237_vm11, %v228_v61, %v244_v17  ;;  %v938_v21 = vand.u32 8388607, %v931_v42 }
  0x25   :  { %v249_v20 = vsel %vm237_vm11, %v231_v63, %v248_v18  ;;  %v943_v22 = vsel %vm942_vm6, %v2771_v43, 0  ;;  %v242_v24 = vsel %vm236_vm8, %v239_v49, %v241_v15  ;;  %v246_v25 = vsel %vm236_vm8, %v243_v2, %v245_v19 }
  0x26   :  { %v160_v23 = vadd.s32 536870912, %v159_v12  ;;  %v250_v26 = vsel %vm236_vm8, %v247_v3, %v249_v20  ;;  %v2848_v30 = vmul.u32.u64.low %v2768_v41, %v246_v25  ;;  %v2849_v31 = vmul.u32.u64.high %v2768_v41, %v246_v25, %v2848_v30 }
  0x27   :  { %v2844_v27 = vmul.u32.u64.low %v2768_v41, %v250_v26  ;;  %v2845_v29 = vmul.u32.u64.high %v2768_v41, %v250_v26, %v2844_v27  ;;  %v945_v32 = vand.u32 31, %v943_v22  ;;  %v939_v33 = vor.u32 8388608, %v938_v21 }
  0x28   :  { %v2852_v43 = vshrl.u32 %v160_v23, 30  ;;  %v258_v39 = vmul.u32 %v2768_v41, %v242_v24  ;;  %v1038_v56 = vand.u32 2139095040, %v2761_v38  ;;  %v261_v35 = vadd.s32 1, %v2849_v31 }
  0x29   :  { %v946_v44 = vsub.s32 32, %v945_v32  ;;  %vm260_vm12 = vc.u32 %v2845_v29, %v2848_v30  ;;  %v2860_v46 = vshrl.u32 %v943_v22, 5  ;;  %v948_v51 = vshll.u32 %v2651_v45, %v945_v32 }
  0x2a   :  { %v162_v34 = vshll.u32 %v2852_v43, 30  ;;  %v262_v55 = vsel %vm260_vm12, %v261_v35, %v2849_v31  ;;  %v951_v41 = vshll.u32 %v2652_v47, %v945_v32  ;;  %v954_v58 = vshll.u32 %v2653_v50, %v945_v32 }
  0x2b   :  { %v949_v53 = vshrl.u32 %v2652_v47, %v946_v44  ;;  %v952_v57 = vshrl.u32 %v2653_v50, %v946_v44  ;;  %v263_v60 = vadd.s32 %v262_v55, %v258_v39  ;;  %v2871_v61 = vshll.u32 %v939_v33, 8 }
  0x2c   :  { %v2862_v48 = vsub.s32 %v159_v12, %v162_v34  ;;  %v1039_v63 = vshrl.u32 %v1038_v56, 23  ;;  %v955_v0 = vshrl.u32 %v2654_v52, %v946_v44  ;;  %v957_v49 = vshll.u32 %v2654_v52, %v945_v32 }
  0x2d   :  { %v958_v40 = vshrl.u32 %v2655_v54, %v946_v44  ;;  %vm966_vm13 = vcmp.lt.s32.totalorder %v2860_v46, 4  ;;  %v264_v2 = vadd.s32 536870912, %v263_v60  ;;  %v950_v3 = vor.u32 %v949_v53, %v948_v51 }
  0x2e   :  { %v165_v59 = vsub.s32 0, %v2862_v48  ;;  %v960_v12 = vshll.u32 %v2655_v54, %v945_v32  ;;  %v953_v15 = vor.u32 %v952_v57, %v951_v41  ;;  %v956_v17 = vor.u32 %v955_v0, %v954_v58 }
  0x2f   :  { %v959_v18 = vor.u32 %v958_v40, %v957_v49  ;;  %v961_v19 = vshrl.u32 %v2656_v62, %v946_v44  ;;  %v947_v21 = vshrl.u32 %v2651_v45, %v946_v44  ;;  %vm963_vm15 = vcmp.lt.s32.totalorder %v2860_v46, 1 }
  0x30   :  { %v2211_v1 = vmin.u32 %v165_v59, %v2862_v48  ;;  %vm965_vm0 = vcmp.lt.s32.totalorder %v2860_v46, 3  ;;  %v155_v22 = vadd.s32 %v2812_v37, %v2809_v36  ;;  %v2886_v23 = vshrl.u32 %v264_v2, 30 }
  0x31   :  { %v962_v24 = vor.u32 %v961_v19, %v960_v12  ;;  %vm964_vm1 = vcmp.lt.s32.totalorder %v2860_v46, 2  ;;  %vm2891_vm2 = vcmp.le.f32.partialorder %v99_v14, 0.7853982  ;;  %v968_v27 = vsel %vm966_vm13, %v956_v17, 2102212464 }
  0x32   :  { %v167_v20 = vclz %v2211_v1  ;;  %v972_v31 = vsel %vm966_vm13, %v959_v18, 920167782  ;;  %v2246_v32 = vadd.s32 4294967169, %v1039_v63  ;;  %v185_v36 = vsub.s32 4, %v2852_v43 }
  0x33   :  { %v266_v37 = vshll.u32 %v2886_v23, 30  ;;  %v971_v33 = vsel %vm963_vm15, %v950_v3, %v953_v15  ;;  %v973_v14 = vsel %vm965_vm0, %v956_v17, %v972_v31  ;;  %v967_v34 = vsel %vm963_vm15, %v947_v21, %v950_v3 }
  0x34   :  { %v2212_v26 = vadd.s32 4294967294, %v167_v20  ;;  %v975_v39 = vsel %vm963_vm15, %v953_v15, %v956_v17  ;;  %v976_v44 = vsel %vm966_vm13, %v962_v24, 1326507024  ;;  %v969_v51 = vsel %vm965_vm0, %v953_v15, %v968_v27 }
  0x35   :  { %v2911_v35 = vsub.s32 %v263_v60, %v266_v37  ;;  %v977_v53 = vsel %vm965_vm0, %v959_v18, %v976_v44  ;;  %v974_v58 = vsel %vm964_vm1, %v971_v33, %v973_v14  ;;  %v186_v59 = vsel %vm101_vm14, %v185_v36, %v2852_v43 }
  0x36   :  { %vm2213_vm3 = vcmp.lt.s32.totalorder %v2212_v26, 0  ;;  %v978_v63 = vsel %vm964_vm1, %v975_v39, %v977_v53  ;;  %v1045_v0 = vadd.s32 1, %v2246_v32  ;;  %v970_v43 = vsel %vm964_vm1, %v967_v34, %v969_v51 }
  0x37   :  { %v170_v56 = vsel %vm2213_vm3, 0, %v2212_v26  ;;  %v269_v60 = vsub.s32 0, %v2911_v35  ;;  %v2927_v1 = vmul.u32.u64.low %v2871_v61, %v978_v63  ;;  %v2928_v2 = vmul.u32.u64.high %v2871_v61, %v978_v63, %v2927_v1 }
  0x38   :  { %v171_v55 = vsub.s32 32, %v170_v56  ;;  %v172_v41 = vshll.u32 %v2862_v48, %v170_v56  ;;  %v175_v57 = vsub.s32 4294967266, %v170_v56  ;;  %v2933_v48 = vld [vmem:[%s4256_s0 + $0x8] sm:$0xff]   ;;  %v1035_v19 = vand.u32 2147483647, %v2761_v38 }
  0x39   :  { %v2215_v3 = vmin.u32 %v269_v60, %v2911_v35  ;;  %v2939_v12 = vmul.u32.u64.low %v2871_v61, %v974_v58  ;;  %v2940_v15 = vmul.u32.u64.high %v2871_v61, %v974_v58, %v2939_v12  ;;  %vm1046_vm4 = vcmp.gt.s32.totalorder %v1045_v0, 0 }
  0x3a   :  { %v173_v49 = vshrl.u32 %v155_v22, %v171_v55  ;;  %v176_v40 = vadd.s32 127, %v175_v57  ;;  %v188_v20 = vsel %vm2891_vm2, 0, %v186_v59  ;;  %v289_v22 = vsub.s32 4, %v2886_v23 }
  0x3b   :  { %v271_v21 = vclz %v2215_v3  ;;  %v2322_v24 = vunpack.c.l.bf16 %v2933_v48  ;;  %v986_v27 = vmul.u32 %v2871_v61, %v970_v43  ;;  %vm988_vm5 = vc.u32 %v2928_v2, %v2939_v12 }
  0x3c   :  { %v174_v17 = vor.u32 %v173_v49, %v172_v41  ;;  %v177_v18 = vshll.u32 %v176_v40, 23  ;;  %v989_v32 = vadd.s32 1, %v2940_v15  ;;  %v1047_v36 = vsel %vm1046_vm4, %v1045_v0, 0 }
  0x3d   :  { %v2216_v31 = vadd.s32 4294967294, %v271_v21  ;;  %v2323_v37 = vunpack.c.h.bf16 %v2933_v48  ;;  %vm205_vm6 = vcmp.lt.s32.totalorder %v2730_v11, 0  ;;  %v1042_v14 = vand.u32 8388607, %v1035_v19 }
  0x3e   :  { %v178_v46 = vor.u32 4788187, %v177_v18  ;;  %v181_v26 = vcvt.s32.f32 %v174_v17  ;;  %v1049_v34 = vand.u32 31, %v1047_v36  ;;  %v192_v39 = vadd.s32 3, %v188_v20 }
  0x3f   :  { %v259_v61 = vadd.s32 %v2848_v30, %v2845_v29  ;;  %vm2217_vm7 = vcmp.lt.s32.totalorder %v2216_v31, 0  ;;  %v990_v44 = vsel %vm988_vm5, %v989_v32, %v2940_v15  ;;  %v290_v53 = vsel %vm205_vm6, %v289_v22, %v2886_v23 }
  0x40   :  { %v179_v33 = vand.u32 2147483647, %v178_v46  ;;  %v274_v51 = vsel %vm2217_vm7, 0, %v2216_v31  ;;  %v991_v55 = vadd.s32 %v990_v44, %v986_v27  ;;  %v1050_v59 = vsub.s32 32, %v1049_v34 }
  0x41   :  { %v275_v41 = vsub.s32 32, %v274_v51  ;;  %v276_v57 = vshll.u32 %v2911_v35, %v274_v51  ;;  %v279_v58 = vsub.s32 4294967266, %v274_v51  ;;  %vm2965_vm8 = vcmp.le.f32.partialorder %v203_v16, 0.7853982 }
  0x42   :  { %v182_v56 = vmul.f32 %v181_v26, %v179_v33  ;;  %v992_v30 = vadd.s32 536870912, %v991_v55  ;;  %v1043_v63 = vor.u32 8388608, %v1042_v14  ;;  %v2969_v0 = vand.u32 3, %v192_v39 }
  0x43   :  { %v277_v49 = vshrl.u32 %v259_v61, %v275_v41  ;;  %v280_v40 = vadd.s32 127, %v279_v58  ;;  %v292_v23 = vsel %vm2965_vm8, 0, %v290_v53  ;;  %v2977_v3 = vshrl.u32 %v1047_v36, 5 }
  0x44   :  { %v183_v60 = vxor.u32 2147483648, %v182_v56  ;;  %v2975_v1 = vshrl.u32 %v992_v30, 30  ;;  %v1052_v16 = vshll.u32 %v2651_v45, %v1049_v34  ;;  %v1053_v18 = vshrl.u32 %v2652_v47, %v1050_v59 }
  0x45   :  { %v278_v15 = vor.u32 %v277_v49, %v276_v57  ;;  %v281_v17 = vshll.u32 %v280_v40, 23  ;;  %v1055_v21 = vshll.u32 %v2652_v47, %v1049_v34  ;;  %v1056_v22 = vshrl.u32 %v2653_v50, %v1050_v59 }
  0x46   :  { %v184_v35 = vsel %vm101_vm14, %v183_v60, %v182_v56  ;;  %v994_v20 = vshll.u32 %v2975_v1, 30  ;;  %v1061_v27 = vshll.u32 %v2654_v52, %v1049_v34  ;;  %vm198_vm9 = vcmp.eq.s32.totalorder %v2969_v0, 2 }
  0x47   :  { %v187_v43 = vsel %vm2891_vm2, %v2725_v10, %v184_v35  ;;  %v282_v46 = vor.u32 4788187, %v281_v17  ;;  %v285_v26 = vcvt.s32.f32 %v278_v15  ;;  %v1058_v31 = vshll.u32 %v2653_v50, %v1049_v34 }
  0x48   :  { %2583 = vcosq.f32 %v187_v43  ;;  %v2989_v25 = vsub.s32 %v991_v55, %v994_v20  ;;  %v1059_v32 = vshrl.u32 %v2654_v52, %v1050_v59  ;;  %v1062_v36 = vshrl.u32 %v2655_v54, %v1050_v59 }
  0x49   :  { %2585 = vsinq.f32 %v187_v43  ;;  %vm195_vm10 = vcmp.eq.s32.totalorder %v2969_v0, 0  ;;  %v283_v33 = vand.u32 2147483647, %v282_v46  ;;  %v296_v14 = vadd.s32 3, %v292_v23 }
  0x4a   :  { %v1064_v39 = vshll.u32 %v2655_v54, %v1049_v34  ;;  %v1065_v61 = vshrl.u32 %v2656_v62, %v1050_v59  ;;  %vm194_vm11 = vcmp.lt.s32.totalorder %v2969_v0, 2  ;;  %v987_v44 = vadd.s32 %v2939_v12, %v2928_v2 }
  0x4b   :  { %v997_v56 = vsub.s32 0, %v2989_v25  ;;  %v1063_v51 = vor.u32 %v1062_v36, %v1061_v27  ;;  %v3001_v53 = vshll.u32 %v1043_v63, 8  ;;  %v286_v55 = vmul.f32 %v285_v26, %v283_v33 }
  0x4c   :  { %v1051_v41 = vshrl.u32 %v2651_v45, %v1050_v59  ;;  %v1054_v57 = vor.u32 %v1053_v18, %v1052_v16  ;;  %v1057_v58 = vor.u32 %v1056_v22, %v1055_v21  ;;  %v1060_v34 = vor.u32 %v1059_v32, %v1058_v31 }
  0x4d   :  { %v2243_v60 = vmin.u32 %v997_v56, %v2989_v25  ;;  %vm1067_vm12 = vcmp.lt.s32.totalorder %v2977_v3, 1  ;;  %vm1070_vm13 = vcmp.lt.s32.totalorder %v2977_v3, 4  ;;  %vm191_vm14 = vweird.f32 %v2725_v10 }
  0x4e   :  { %v287_v2 = vxor.u32 2147483648, %v286_v55  ;;  %vm933_vm15 = vcmp.lt.s32.totalorder %v2738_v13, 0  ;;  %v1066_v12 = vor.u32 %v1065_v61, %v1064_v39  ;;  %vm1069_vm0 = vcmp.lt.s32.totalorder %v2977_v3, 3  ;;  %v3049_v39 = vld [vmem:[%s4256_s0 + $0x28] sm:$0xff]  }
  0x4f   :  { %v1076_v59 = vsel %vm1070_vm13, %v1063_v51, 920167782  ;;  %v999_v30 = vclz %v2243_v60  ;;  %v1017_v63 = vsub.s32 4, %v2975_v1  ;;  %v1072_v49 = vsel %vm1070_vm13, %v1060_v34, 2102212464 }
  0x50   :  { %v3018_v40 = vmul.f32 %v2322_v24, %v2712_v5  ;;  %v288_v23 = vsel %vm205_vm6, %v287_v2, %v286_v55  ;;  %vm1068_vm1 = vcmp.lt.s32.totalorder %v2977_v3, 2  ;;  %v1071_v35 = vsel %vm1067_vm12, %v1051_v41, %v1054_v57 }
  0x51   :  { %v1075_v16 = vsel %vm1067_vm12, %v1054_v57, %v1057_v58  ;;  %v291_v15 = vsel %vm2965_vm8, %v2730_v11, %v288_v23  ;;  %v2244_v17 = vadd.s32 4294967294, %v999_v30  ;;  %v1077_v18 = vsel %vm1069_vm0, %v1060_v34, %v1076_v59 }
  0x52   :  { %v2584_v43 = vpop.eup %2583  ;;  %v1079_v20 = vsel %vm1067_vm12, %v1057_v58, %v1060_v34  ;;  %2587 = vcosq.f32 %v291_v15  ;;  %v1073_v46 = vsel %vm1069_vm0, %v1057_v58, %v1072_v49  ;;  %v1080_v26 = vsel %vm1070_vm13, %v1066_v12, 1326507024 }
  0x53   :  { %v2586_v21 = vpop.eup %2585  ;;  %v199_v22 = vxor.u32 2147483648, %v2584_v43  ;;  %2589 = vsinq.f32 %v291_v15  ;;  %vm2245_vm2 = vcmp.lt.s32.totalorder %v2244_v17, 0  ;;  %v1081_v29 = vsel %vm1069_vm0, %v1063_v51, %v1080_v26  ;;  %v3089_v15 = vld [vmem:[%s4258_s4] ss:$0 sm:$0xff] }
  0x54   :  { %v196_v27 = vxor.u32 2147483648, %v2586_v21  ;;  %v1002_v32 = vsel %vm2245_vm2, 0, %v2244_v17  ;;  %v1078_v36 = vsel %vm1068_vm1, %v1075_v16, %v1077_v18  ;;  %v1082_v33 = vsel %vm1068_vm1, %v1079_v20, %v1081_v29 }
  0x55   :  { %v200_v31 = vsel %vm198_vm9, %v199_v22, %v2586_v21  ;;  %v1003_v56 = vsub.s32 32, %v1002_v32  ;;  %v1004_v51 = vshll.u32 %v2989_v25, %v1002_v32  ;;  %v1007_v55 = vsub.s32 4294967266, %v1002_v32 }
  0x56   :  { %v197_v61 = vsel %vm195_vm10, %v2584_v43, %v196_v27  ;;  %v297_v57 = vand.u32 3, %v296_v14  ;;  %v3057_v58 = vmul.u32.u64.low %v3001_v53, %v1082_v33  ;;  %v3058_v60 = vmul.u32.u64.high %v3001_v53, %v1082_v33, %v3057_v58 }
  0x57   :  { %v201_v41 = vsel %vm194_vm11, %v197_v61, %v200_v31  ;;  %v1005_v34 = vshrl.u32 %v987_v44, %v1003_v56  ;;  %v1008_v2 = vadd.s32 127, %v1007_v55  ;;  %v1018_v12 = vsel %vm933_vm15, %v1017_v63, %v2975_v1 }
  0x58   :  { %v2338_v59 = vunpack.c.l.bf16 %v3049_v39  ;;  %v1074_v25 = vsel %vm1068_vm1, %v1071_v35, %v1073_v46  ;;  %v3067_v30 = vmul.u32.u64.low %v3001_v53, %v1078_v36  ;;  %v3068_v0 = vmul.u32.u64.high %v3001_v53, %v1078_v36, %v3067_v30 }
  0x59   :  { %v310_v14 = vand.u32 2139095040, %v3018_v40  ;;  %v202_v44 = vsel %vm191_vm14, nan, %v201_v41  ;;  %vm3076_vm3 = vcmp.le.f32.partialorder %v931_v42, 0.7853982  ;;  %v1006_v1 = vor.u32 %v1005_v34, %v1004_v51 }
  0x5a   :  { %v1009_v63 = vshll.u32 %v1008_v2, 23  ;;  %vm295_vm4 = vweird.f32 %v2730_v11  ;;  %vm302_vm5 = vcmp.eq.s32.totalorder %v297_v57, 2  ;;  %v1020_v3 = vsel %vm3076_vm3, 0, %v1018_v12 }
  0x5b   :  { %v311_v23 = vshrl.u32 %v310_v14, 23  ;;  %v1013_v16 = vcvt.s32.f32 %v1006_v1  ;;  %v1090_v10 = vmul.u32 %v3001_v53, %v1074_v25  ;;  %vm1092_vm6 = vc.u32 %v3058_v60, %v3067_v30 }
  0x5c   :  { %v1010_v35 = vor.u32 4788187, %v1009_v63  ;;  %v2588_v42 = vpop.eup %2587  ;;  %v1763_v43 = vmul.f32 %v202_v44, %v202_v44  ;;  %v1093_v17 = vadd.s32 1, %v3068_v0  ;;  %v307_v18 = vand.u32 2147483647, %v3018_v40 }
  0x5d   :  { %v2218_v20 = vadd.s32 4294967169, %v311_v23  ;;  %v2590_v21 = vpop.eup %2589  ;;  %vm298_vm7 = vcmp.lt.s32.totalorder %v297_v57, 2  ;;  %vm299_vm8 = vcmp.eq.s32.totalorder %v297_v57, 0  ;;  %v303_v22 = vxor.u32 2147483648, %v2588_v42 }
  0x5e   :  { %v1011_v53 = vand.u32 2147483647, %v1010_v35  ;;  %v300_v46 = vxor.u32 2147483648, %v2590_v21  ;;  %v1094_v26 = vsel %vm1092_vm6, %v1093_v17, %v3068_v0  ;;  %v3097_v27 = vmul.f32 %v2323_v37, %v2712_v5 }
  0x5f   :  { %v317_v29 = vadd.s32 1, %v2218_v20  ;;  %v304_v31 = vsel %vm302_vm5, %v303_v22, %v2590_v21  ;;  %v1024_v36 = vadd.s32 3, %v1020_v3  ;;  %v1095_v33 = vadd.s32 %v1094_v26, %v1090_v10 }
  0x60   :  { %v1014_v32 = vmul.f32 %v1013_v16, %v1011_v53  ;;  %v301_v61 = vsel %vm299_vm8, %v2588_v42, %v300_v46  ;;  %v1786_v56 = vmul.f32 %v3089_v15, %v1763_v43  ;;  %v314_v51 = vand.u32 8388607, %v307_v18 }
  0x61   :  { %vm318_vm9 = vcmp.gt.s32.totalorder %v317_v29, 0  ;;  %v305_v55 = vsel %vm298_vm7, %v301_v61, %v304_v31  ;;  %v1096_v58 = vadd.s32 536870912, %v1095_v33  ;;  %v3111_v44 = vmul.f32 %v2338_v59, %v2712_v5 }
  0x62   :  { %v1015_v41 = vxor.u32 2147483648, %v1014_v32  ;;  %v319_v34 = vsel %vm318_vm9, %v317_v29, 0  ;;  %v306_v2 = vsel %vm295_vm4, nan, %v305_v55  ;;  %v3116_v1 = vand.u32 3, %v1024_v36 }
  0x63   :  { %v321_v12 = vand.u32 31, %v319_v34  ;;  %v1764_v25 = vmul.f32 %v306_v2, %v306_v2  ;;  %v1097_v14 = vshrl.u32 %v1096_v58, 30  ;;  %v414_v11 = vand.u32 2139095040, %v3097_v27 }
  0x64   :  { %v1016_v0 = vsel %vm933_vm15, %v1015_v41, %v1014_v32  ;;  %v1802_v23 = vadd.f32 %v2318_v7, %v1786_v56  ;;  %vm1037_vm10 = vcmp.lt.s32.totalorder %v2761_v38, 0  ;;  %v315_v16 = vor.u32 8388608, %v314_v51 }
  0x65   :  { %v1019_v57 = vsel %vm3076_vm3, %v2738_v13, %v1016_v0  ;;  %v322_v63 = vsub.s32 32, %v321_v12  ;;  %v1787_v3 = vmul.f32 %v3089_v15, %v1764_v25  ;;  %v1098_v35 = vshll.u32 %v1097_v14, 30 }
  0x66   :  { %2591 = vcosq.f32 %v1019_v57  ;;  %v324_v5 = vshll.u32 %v2651_v45, %v321_v12  ;;  %v327_v10 = vshll.u32 %v2652_v47, %v321_v12  ;;  %v330_v7 = vshll.u32 %v2653_v50, %v321_v12 }
  0x67   :  { %v325_v49 = vshrl.u32 %v2652_v47, %v322_v63  ;;  %v1803_v42 = vadd.f32 %v2319_v8, %v1787_v3  ;;  %v3128_v43 = vsub.s32 %v1095_v33, %v1098_v35  ;;  %v328_v17 = vshrl.u32 %v2653_v50, %v322_v63 }
  0x68   :  { %vm3134_vm11 = vcmp.le.f32.partialorder %v1035_v19, 0.7853982  ;;  %v320_v21 = vshrl.u32 %v319_v34, 5  ;;  %v331_v22 = vshrl.u32 %v2654_v52, %v322_v63  ;;  %v411_v53 = vand.u32 2147483647, %v3097_v27 }
  0x69   :  { %v415_v46 = vshrl.u32 %v414_v11, 23  ;;  %v1818_v4 = vpack.c.bf16 %v1803_v42, %v1802_v23  ;;  %2593 = vsinq.f32 %v1019_v57  ;;  %v1101_v8 = vsub.s32 0, %v3128_v43 }
  0x6a   :  { %v333_v26 = vshll.u32 %v2654_v52, %v321_v12  ;;  %v1121_v29 = vsub.s32 4, %v1097_v14  ;;  %v334_v31 = vshrl.u32 %v2655_v54, %v322_v63  ;;  %v336_v19 = vshll.u32 %v2655_v54, %v321_v12 }
  0x6b   :  { %v337_v32 = vshrl.u32 %v2656_v62, %v322_v63  ;;  %2473 = vmatprep.mubr.bf16.mxu0 %v1818_v4  ;;  %v2247_v36 = vmin.u32 %v1101_v8, %v3128_v43  ;;  %v326_v33 = vor.u32 %v325_v49, %v324_v5  ;;  %v329_v61 = vor.u32 %v328_v17, %v327_v10 }
  0x6c   :  { %v332_v56 = vor.u32 %v331_v22, %v330_v7  ;;  %v335_v51 = vor.u32 %v334_v31, %v333_v26  ;;  %vm339_vm12 = vcmp.lt.s32.totalorder %v320_v21, 1  ;;  %vm342_vm13 = vcmp.lt.s32.totalorder %v320_v21, 4 }
  0x6d   :  { %v338_v55 = vor.u32 %v337_v32, %v336_v19  ;;  %vm1030_vm14 = vcmp.eq.s32.totalorder %v3116_v1, 2  ;;  %v1091_v41 = vadd.s32 %v3067_v30, %v3058_v60  ;;  %v1103_v58 = vclz %v2247_v36 }
  0x6e   :  { %v323_v34 = vshrl.u32 %v2651_v45, %v322_v63  ;;  %vm341_vm15 = vcmp.lt.s32.totalorder %v320_v21, 3  ;;  %v1122_v2 = vsel %vm1037_vm10, %v1121_v29, %v1097_v14  ;;  %v348_v12 = vsel %vm342_vm13, %v335_v51, 920167782 }
  0x6f   :  { %v3153_v25 = vshll.u32 %v315_v16, 8  ;;  %v2222_v0 = vadd.s32 4294967169, %v415_v46  ;;  %vm1027_vm0 = vcmp.eq.s32.totalorder %v3116_v1, 0  ;;  %v2248_v57 = vadd.s32 4294967294, %v1103_v58 }
  0x70   :  { %vm340_vm1 = vcmp.lt.s32.totalorder %v320_v21, 2  ;;  %v344_v11 = vsel %vm342_vm13, %v332_v56, 2102212464  ;;  %v351_v60 = vsel %vm339_vm12, %v329_v61, %v332_v56  ;;  %v2592_v30 = vpop.eup %2591  ;;  %v347_v63 = vsel %vm339_vm12, %v326_v33, %v329_v61 }
  0x71   :  { %v349_v3 = vsel %vm341_vm15, %v332_v56, %v348_v12  ;;  %v352_v14 = vsel %vm342_vm13, %v338_v55, 1326507024  ;;  %v3163_v23 = vand.u32 8388607, %v411_v53  ;;  %vm2249_vm2 = vcmp.lt.s32.totalorder %v2248_v57, 0 }
  0x72   :  { %v1124_v35 = vsel %vm3134_vm11, 0, %v1122_v2  ;;  %v343_v16 = vsel %vm339_vm12, %v323_v34, %v326_v33  ;;  %v353_v5 = vsel %vm341_vm15, %v335_v51, %v352_v14  ;;  %v1106_v49 = vsel %vm2249_vm2, 0, %v2248_v57 }
  0x73   :  { %v345_v10 = vsel %vm341_vm15, %v329_v61, %v344_v11  ;;  %v354_v42 = vsel %vm340_vm1, %v351_v60, %v353_v5  ;;  %v421_v17 = vadd.s32 1, %v2222_v0  ;;  %v2594_v7 = vpop.eup %2593  ;;  %v1107_v22 = vsub.s32 32, %v1106_v49 }
  0x74   :  { %v1108_v46 = vshll.u32 %v3128_v43, %v1106_v49  ;;  %v1111_v4 = vsub.s32 4294967266, %v1106_v49  ;;  %v350_v8 = vsel %vm340_vm1, %v347_v63, %v349_v3  ;;  %v1031_v26 = vxor.u32 2147483648, %v2592_v30 }
  0x75   :  { %v3174_v29 = vmul.u32.u64.low %v3153_v25, %v354_v42  ;;  %v3175_v31 = vmul.u32.u64.high %v3153_v25, %v354_v42, %v3174_v29  ;;  %vm422_vm3 = vcmp.gt.s32.totalorder %v421_v17, 0  ;;  %v1109_v19 = vshrl.u32 %v1091_v41, %v1107_v22 }
  0x76   :  { %v1112_v32 = vadd.s32 127, %v1111_v4  ;;  %v346_v36 = vsel %vm340_vm1, %v343_v16, %v345_v10  ;;  %v423_v33 = vsel %vm422_vm3, %v421_v17, 0  ;;  %v1028_v61 = vxor.u32 2147483648, %v2594_v7 }
  0x77   :  { %v3179_v56 = vmul.u32.u64.low %v3153_v25, %v350_v8  ;;  %v3180_v51 = vmul.u32.u64.high %v3153_v25, %v350_v8, %v3179_v56  ;;  %v419_v43 = vor.u32 8388608, %v3163_v23  ;;  %vm1026_vm4 = vcmp.lt.s32.totalorder %v3116_v1, 2 }
  0x78   :  { %v1110_v55 = vor.u32 %v1109_v19, %v1108_v46  ;;  %v1113_v58 = vshll.u32 %v1112_v32, 23  ;;  %v3185_v34 = vshrl.u32 %v423_v33, 5  ;;  %v425_v2 = vand.u32 31, %v423_v33 }
  0x79   :  { %v1032_v21 = vsel %vm1030_vm14, %v1031_v26, %v2594_v7  ;;  %v1128_v41 = vadd.s32 3, %v1124_v35  ;;  %v362_v12 = vmul.u32 %v3153_v25, %v346_v36  ;;  %vm364_vm5 = vc.u32 %v3175_v31, %v3179_v56 }
  0x7a   :  { %v1114_v0 = vor.u32 4788187, %v1113_v58  ;;  %v1117_v57 = vcvt.s32.f32 %v1110_v55  ;;  %v426_v11 = vsub.s32 32, %v425_v2  ;;  %v428_v60 = vshll.u32 %v2651_v45, %v425_v2 }
  0x7b   :  { %v1029_v63 = vsel %vm1027_vm0, %v2592_v30, %v1028_v61  ;;  %v365_v3 = vadd.s32 1, %v3180_v51  ;;  %v431_v14 = vshll.u32 %v2652_v47, %v425_v2  ;;  %v434_v23 = vshll.u32 %v2653_v50, %v425_v2 }
  0x7c   :  { %vm1023_vm6 = vweird.f32 %v2738_v13  ;;  %v1115_v25 = vand.u32 2147483647, %v1114_v0  ;;  %v429_v35 = vshrl.u32 %v2652_v47, %v426_v11  ;;  %v432_v16 = vshrl.u32 %v2653_v50, %v426_v11 }
  0x7d   :  { %vm443_vm7 = vcmp.lt.s32.totalorder %v3185_v34, 1  ;;  %v366_v5 = vsel %vm364_vm5, %v365_v3, %v3180_v51  ;;  %v435_v49 = vshrl.u32 %v2654_v52, %v426_v11  ;;  %v437_v30 = vshll.u32 %v2654_v52, %v425_v2 }
  0x7e   :  { %v438_v10 = vshrl.u32 %v2655_v54, %v426_v11  ;;  %v1118_v42 = vmul.f32 %v1117_v57, %v1115_v25  ;;  %v367_v17 = vadd.s32 %v366_v5, %v362_v12  ;;  %v430_v7 = vor.u32 %v429_v35, %v428_v60 }
  0x7f   :  { %v433_v22 = vor.u32 %v432_v16, %v431_v14  ;;  %v436_v46 = vor.u32 %v435_v49, %v434_v23  ;;  %v440_v8 = vshll.u32 %v2655_v54, %v425_v2  ;;  %v441_v26 = vshrl.u32 %v2656_v62, %v426_v11 }
  0x80   :  { %v439_v4 = vor.u32 %v438_v10, %v437_v30  ;;  %v1119_v29 = vxor.u32 2147483648, %v1118_v42  ;;  %v368_v19 = vadd.s32 536870912, %v367_v17  ;;  %v427_v32 = vshrl.u32 %v2651_v45, %v426_v11 }
  0x81   :  { %vm445_vm8 = vcmp.lt.s32.totalorder %v3185_v34, 3  ;;  %v442_v36 = vor.u32 %v441_v26, %v440_v8  ;;  %vm444_vm9 = vcmp.lt.s32.totalorder %v3185_v34, 2  ;;  %vm446_vm12 = vcmp.lt.s32.totalorder %v3185_v34, 4 }
  0x82   :  { %v451_v33 = vsel %vm443_vm7, %v430_v7, %v433_v22  ;;  %v1120_v61 = vsel %vm1037_vm10, %v1119_v29, %v1118_v42  ;;  %v369_v51 = vshrl.u32 %v368_v19, 30  ;;  %v448_v55 = vsel %vm446_vm12, %v436_v46, 2102212464 }
  0x83   :  { %v452_v58 = vsel %vm446_vm12, %v439_v4, 920167782  ;;  %v1033_v2 = vsel %vm1026_vm4, %v1029_v63, %v1032_v21  ;;  %v1123_v12 = vsel %vm3134_vm11, %v2761_v38, %v1120_v61  ;;  %v459_v57 = vshll.u32 %v419_v43, 8 }
  0x84   :  { %v453_v0 = vsel %vm445_vm8, %v436_v46, %v452_v58  ;;  %2595 = vcosq.f32 %v1123_v12  ;;  %v370_v11 = vshll.u32 %v369_v51, 30  ;;  %v447_v60 = vsel %vm443_vm7, %v427_v32, %v430_v7 }
  0x85   :  { %v455_v3 = vsel %vm443_vm7, %v433_v22, %v436_v46  ;;  %2597 = vsinq.f32 %v1123_v12  ;;  %v449_v1 = vsel %vm445_vm8, %v433_v22, %v448_v55  ;;  %v454_v20 = vsel %vm444_vm9, %v451_v33, %v453_v0 }
  0x86   :  { %v456_v21 = vsel %vm446_vm12, %v442_v36, 1326507024  ;;  %v1129_v63 = vand.u32 3, %v1128_v41  ;;  %v3237_v43 = vsub.s32 %v367_v17, %v370_v11  ;;  %v1034_v23 = vsel %vm1023_vm6, nan, %v1033_v2 }
  0x87   :  { %v457_v14 = vsel %vm445_vm8, %v439_v4, %v456_v21  ;;  %v3245_v35 = vmul.u32.u64.low %v459_v57, %v454_v20  ;;  %v3246_v16 = vmul.u32.u64.high %v459_v57, %v454_v20, %v3245_v35  ;;  %v450_v41 = vsel %vm444_vm9, %v447_v60, %v449_v1 }
  0x88   :  { %v458_v25 = vsel %vm444_vm9, %v455_v3, %v457_v14  ;;  %v373_v5 = vsub.s32 0, %v3237_v43  ;;  %v393_v10 = vsub.s32 4, %v369_v51  ;;  %v2339_v42 = vunpack.c.h.bf16 %v3049_v39 }
  0x89   :  { %v3252_v49 = vmul.u32.u64.low %v459_v57, %v458_v25  ;;  %v3253_v30 = vmul.u32.u64.high %v459_v57, %v458_v25, %v3252_v49  ;;  %v1142_v13 = vand.u32 2139095040, %v3111_v44  ;;  %vm1127_vm10 = vweird.f32 %v2761_v38 }
  0x8a   :  { %v1771_v17 = vmul.f32 %v1034_v23, %v1034_v23  ;;  %vm3260_vm11 = vcmp.le.f32.partialorder %v307_v18, 0.7853982  ;;  %v2219_v34 = vmin.u32 %v373_v5, %v3237_v43  ;;  %vm309_vm13 = vcmp.lt.s32.totalorder %v3018_v40, 0 }
  0x8b   :  { %v466_v22 = vmul.u32 %v459_v57, %v450_v41  ;;  %v469_v46 = vadd.s32 1, %v3246_v16  ;;  %v1143_v4 = vshrl.u32 %v1142_v13, 23  ;;  %vm1130_vm14 = vcmp.lt.s32.totalorder %v1129_v63, 2 }
  0x8c   :  { %vm1131_vm15 = vcmp.eq.s32.totalorder %v1129_v63, 0  ;;  %v375_v8 = vclz %v2219_v34  ;;  %v1139_v26 = vand.u32 2147483647, %v3111_v44  ;;  %vm1134_vm0 = vcmp.eq.s32.totalorder %v1129_v63, 2 }
  0x8d   :  { %v394_v18 = vsel %vm309_vm13, %v393_v10, %v369_v51  ;;  %vm468_vm1 = vc.u32 %v3253_v30, %v3245_v35  ;;  %v2250_v29 = vadd.s32 4294967169, %v1143_v4  ;;  %v1794_v32 = vmul.f32 %v3089_v15, %v1771_v17  ;;  %v3279_v51 = vld [vmem:[%s4257_s3] ss:$0 sm:$0xff] }
  0x8e   :  { %v2596_v19 = vpop.eup %2595  ;;  %v363_v36 = vadd.s32 %v3179_v56, %v3175_v31  ;;  %v2220_v33 = vadd.s32 4294967294, %v375_v8  ;;  %v470_v61 = vsel %vm468_vm1, %v469_v46, %v3246_v16  ;;  %v3284_v12 = vmul.f32 %v3279_v51, %v2339_v42 }
  0x8f   :  { %v2598_v55 = vpop.eup %2597  ;;  %v1135_v58 = vxor.u32 2147483648, %v2596_v19  ;;  %v471_v2 = vadd.s32 %v470_v61, %v466_v22  ;;  %v1149_v0 = vadd.s32 1, %v2250_v29  ;;  %v396_v31 = vsel %vm3260_vm11, 0, %v394_v18 }
  0x90   :  { %v1132_v57 = vxor.u32 2147483648, %v2598_v55  ;;  %vm2221_vm2 = vcmp.lt.s32.totalorder %v2220_v33, 0  ;;  %v1146_v56 = vand.u32 8388607, %v1139_v26  ;;  %v1246_v5 = vand.u32 2139095040, %v3284_v12 }
  0x91   :  { %v1136_v11 = vsel %vm1134_vm0, %v1135_v58, %v2598_v55  ;;  %v378_v60 = vsel %vm2221_vm2, 0, %v2220_v33  ;;  %v472_v3 = vadd.s32 536870912, %v471_v2  ;;  %vm1150_vm3 = vcmp.gt.s32.totalorder %v1149_v0, 0 }
  0x92   :  { %v1133_v1 = vsel %vm1131_vm15, %v2596_v19, %v1132_v57  ;;  %v379_v20 = vsub.s32 32, %v378_v60  ;;  %v380_v21 = vshll.u32 %v3237_v43, %v378_v60  ;;  %v383_v14 = vsub.s32 4294967266, %v378_v60 }
  0x93   :  { %v1137_v23 = vsel %vm1130_vm14, %v1133_v1, %v1136_v11  ;;  %v3294_v25 = vshrl.u32 %v472_v3, 30  ;;  %v1151_v16 = vsel %vm1150_vm3, %v1149_v0, 0  ;;  %v1147_v34 = vor.u32 8388608, %v1146_v56 }
  0x94   :  { %v1138_v41 = vsel %vm1127_vm10, nan, %v1137_v23  ;;  %v381_v49 = vshrl.u32 %v363_v36, %v379_v20  ;;  %v384_v10 = vadd.s32 127, %v383_v14  ;;  %v1153_v22 = vand.u32 31, %v1151_v16 }
  0x95   :  { %v1772_v13 = vmul.f32 %v1138_v41, %v1138_v41  ;;  %v474_v17 = vshll.u32 %v3294_v25, 30  ;;  %v1810_v43 = vadd.f32 %v2334_v9, %v1794_v32  ;;  %v3302_v4 = vadd.s32 3, %v396_v31 }
  0x96   :  { %v382_v63 = vor.u32 %v381_v49, %v380_v21  ;;  %v385_v46 = vshll.u32 %v384_v10, 23  ;;  %v1154_v38 = vsub.s32 32, %v1153_v22  ;;  %v1247_v29 = vshrl.u32 %v1246_v5, 23 }
  0x97   :  { %v1795_v8 = vmul.f32 %v3089_v15, %v1772_v13  ;;  %v3305_v18 = vsub.s32 %v471_v2, %v474_v17  ;;  %v467_v33 = vadd.s32 %v3245_v35, %v3253_v30  ;;  %v3309_v61 = vshrl.u32 %v1151_v16, 5  ;;  %v3415_v17 = vld [vmem:[%s4256_s0 + $0x10] sm:$0xff]  }
  0x98   :  { %v386_v19 = vor.u32 4788187, %v385_v46  ;;  %v389_v36 = vcvt.s32.f32 %v382_v63  ;;  %v1156_v55 = vshll.u32 %v2651_v45, %v1153_v22  ;;  %v3315_v58 = vshll.u32 %v1147_v34, 8 }
  0x99   :  { %v1811_v9 = vadd.f32 %v2335_v28, %v1795_v8  ;;  %v477_v32 = vsub.s32 0, %v3305_v18  ;;  %v1157_v0 = vshrl.u32 %v2652_v47, %v1154_v38  ;;  %v1159_v57 = vshll.u32 %v2652_v47, %v1153_v22 }
  0x9a   :  { %v387_v2 = vand.u32 2147483647, %v386_v19  ;;  %v1160_v31 = vshrl.u32 %v2653_v50, %v1154_v38  ;;  %v1162_v30 = vshll.u32 %v2653_v50, %v1153_v22  ;;  %v2254_v6 = vadd.s32 4294967169, %v1247_v29 }
  0x9b   :  { %v1822_v56 = vpack.c.bf16 %v1811_v9, %v1810_v43  ;;  %v2223_v35 = vmin.u32 %v477_v32, %v3305_v18  ;;  %v497_v11 = vsub.s32 4, %v3294_v25  ;;  %v1163_v60 = vshrl.u32 %v2654_v52, %v1154_v38 }
  0x9c   :  { %v390_v28 = vmul.f32 %v389_v36, %v387_v2  ;;  %vm1171_vm4 = vcmp.lt.s32.totalorder %v3309_v61, 1  ;;  %vm413_vm5 = vcmp.lt.s32.totalorder %v3097_v27, 0  ;;  %v1155_v1 = vshrl.u32 %v2651_v45, %v1154_v38 }
  0x9d   :  { %2481 = vmatprep.mubr.bf16.mxu1 %v1822_v56  ;;  %v479_v3 = vclz %v2223_v35  ;;  %v1158_v20 = vor.u32 %v1157_v0, %v1156_v55  ;;  %vm1172_vm6 = vcmp.lt.s32.totalorder %v3309_v61, 2  ;;  %v1161_v14 = vor.u32 %v1160_v31, %v1159_v57 }
  0x9e   :  { %v391_v21 = vxor.u32 2147483648, %v390_v28  ;;  %v1165_v23 = vshll.u32 %v2654_v52, %v1153_v22  ;;  %v1166_v16 = vshrl.u32 %v2655_v54, %v1154_v38  ;;  %v1164_v41 = vor.u32 %v1163_v60, %v1162_v30 }
  0x9f   :  { %v2224_v5 = vadd.s32 4294967294, %v479_v3  ;;  %v1168_v49 = vshll.u32 %v2655_v54, %v1153_v22  ;;  %v1169_v10 = vshrl.u32 %v2656_v62, %v1154_v38  ;;  %vm3336_vm7 = vcmp.le.f32.partialorder %v411_v53, 0.7853982 }
  0xa0   :  { %v392_v13 = vsel %vm309_vm13, %v391_v21, %v390_v28  ;;  %v1167_v34 = vor.u32 %v1166_v16, %v1165_v23  ;;  %vm1173_vm8 = vcmp.lt.s32.totalorder %v3309_v61, 3  ;;  %vm1174_vm9 = vcmp.lt.s32.totalorder %v3309_v61, 4 }
  0xa1   :  { %v395_v22 = vsel %vm3260_vm11, %v3018_v40, %v392_v13  ;;  %vm2225_vm12 = vcmp.lt.s32.totalorder %v2224_v5, 0  ;;  %v1170_v43 = vor.u32 %v1169_v10, %v1168_v49  ;;  %v1176_v63 = vsel %vm1174_vm9, %v1164_v41, 2102212464 }
  0xa2   :  { %2599 = vcosq.f32 %v395_v22  ;;  %v482_v46 = vsel %vm2225_vm12, 0, %v2224_v5  ;;  %v1175_v53 = vsel %vm1171_vm4, %v1155_v1, %v1158_v20  ;;  %v1179_v8 = vsel %vm1171_vm4, %v1158_v20, %v1161_v14 }
  0xa3   :  { %2601 = vsinq.f32 %v395_v22  ;;  %v483_v38 = vsub.s32 32, %v482_v46  ;;  %v484_v29 = vshll.u32 %v3305_v18, %v482_v46  ;;  %v487_v19 = vsub.s32 4294967266, %v482_v46 }
  0xa4   :  { %v1177_v7 = vsel %vm1173_vm8, %v1161_v14, %v1176_v63  ;;  %v1180_v36 = vsel %vm1174_vm9, %v1167_v34, 920167782  ;;  %v1183_v9 = vsel %vm1171_vm4, %v1161_v14, %v1164_v41  ;;  %v1184_v32 = vsel %vm1174_vm9, %v1170_v43, 1326507024 }
  0xa5   :  { %v485_v55 = vshrl.u32 %v467_v33, %v483_v38  ;;  %v488_v2 = vadd.s32 127, %v487_v19  ;;  %v1181_v0 = vsel %vm1173_vm8, %v1164_v41, %v1180_v36  ;;  %v1185_v18 = vsel %vm1173_vm8, %v1167_v34, %v1184_v32 }
  0xa6   :  { %v498_v57 = vsel %vm413_vm5, %v497_v11, %v3294_v25  ;;  %v1182_v31 = vsel %vm1172_vm6, %v1179_v8, %v1181_v0  ;;  %v1186_v56 = vsel %vm1172_vm6, %v1183_v9, %v1185_v18  ;;  %v1243_v35 = vand.u32 2147483647, %v3284_v12 }
  0xa7   :  { %v486_v33 = vor.u32 %v485_v55, %v484_v29  ;;  %v489_v30 = vshll.u32 %v488_v2, 23  ;;  %v3373_v28 = vmul.u32.u64.low %v3315_v58, %v1186_v56  ;;  %v3374_v60 = vmul.u32.u64.high %v3315_v58, %v1186_v56, %v3373_v28 }
  0xa8   :  { %v1178_v3 = vsel %vm1172_vm6, %v1175_v53, %v1177_v7  ;;  %v3379_v1 = vmul.u32.u64.low %v3315_v58, %v1182_v31  ;;  %v3380_v25 = vmul.u32.u64.high %v3315_v58, %v1182_v31, %v3379_v1  ;;  %v1253_v11 = vadd.s32 1, %v2254_v6 }
  0xa9   :  { %v401_v20 = vand.u32 3, %v3302_v4  ;;  %v490_v21 = vor.u32 4788187, %v489_v30  ;;  %v493_v14 = vcvt.s32.f32 %v486_v33  ;;  %v500_v23 = vsel %vm3336_vm7, 0, %v498_v57 }
  0xaa   :  { %vm1254_vm10 = vcmp.gt.s32.totalorder %v1253_v11, 0  ;;  %v1194_v5 = vmul.u32 %v3315_v58, %v1178_v3  ;;  %vm1196_vm11 = vc.u32 %v3374_v60, %v3379_v1  ;;  %v504_v49 = vadd.s32 3, %v500_v23 }
  0xab   :  { %v491_v16 = vand.u32 2147483647, %v490_v21  ;;  %v1255_v61 = vsel %vm1254_vm10, %v1253_v11, 0  ;;  %v1197_v10 = vadd.s32 1, %v3380_v25  ;;  %v1250_v4 = vand.u32 8388607, %v1243_v35 }
  0xac   :  { %v2600_v41 = vpop.eup %2599  ;;  %v1257_v6 = vand.u32 31, %v1255_v61  ;;  %vm399_vm13 = vweird.f32 %v3018_v40  ;;  %vm402_vm14 = vcmp.lt.s32.totalorder %v401_v20, 2  ;;  %vm403_vm15 = vcmp.eq.s32.totalorder %v401_v20, 0 }
  0xad   :  { %v2602_v13 = vpop.eup %2601  ;;  %v494_v34 = vmul.f32 %v493_v14, %v491_v16  ;;  %v407_v43 = vxor.u32 2147483648, %v2600_v41  ;;  %v1198_v58 = vsel %vm1196_vm11, %v1197_v10, %v3380_v25  ;;  %vm406_vm0 = vcmp.eq.s32.totalorder %v401_v20, 2 }
  0xae   :  { %v404_v22 = vxor.u32 2147483648, %v2602_v13  ;;  %v1258_v63 = vsub.s32 32, %v1257_v6  ;;  %v1199_v53 = vadd.s32 %v1198_v58, %v1194_v5  ;;  %v3394_v8 = vand.u32 3, %v504_v49 }
  0xaf   :  { %v495_v46 = vxor.u32 2147483648, %v494_v34  ;;  %v1251_v38 = vor.u32 8388608, %v1250_v4  ;;  %v1260_v29 = vshll.u32 %v2651_v45, %v1257_v6  ;;  %v1263_v19 = vshll.u32 %v2652_v47, %v1257_v6 }
  0xb0   :  { %v1200_v36 = vadd.s32 536870912, %v1199_v53  ;;  %v1261_v9 = vshrl.u32 %v2652_v47, %v1258_v63  ;;  %v1264_v32 = vshrl.u32 %v2653_v50, %v1258_v63  ;;  %v405_v55 = vsel %vm403_vm15, %v2600_v41, %v404_v22 }
  0xb1   :  { %v496_v7 = vsel %vm413_vm5, %v495_v46, %v494_v34  ;;  %v408_v2 = vsel %vm406_vm0, %v407_v43, %v2602_v13  ;;  %v1256_v18 = vshrl.u32 %v1255_v61, 5  ;;  %v1266_v31 = vshll.u32 %v2653_v50, %v1257_v6 }
  0xb2   :  { %v499_v0 = vsel %vm3336_vm7, %v3097_v27, %v496_v7  ;;  %v3405_v57 = vshrl.u32 %v1200_v36, 30  ;;  %v1267_v56 = vshrl.u32 %v2654_v52, %v1258_v63  ;;  %v1269_v33 = vshll.u32 %v2654_v52, %v1257_v6 }
  0xb3   :  { %2603 = vcosq.f32 %v499_v0  ;;  %v1270_v30 = vshrl.u32 %v2655_v54, %v1258_v63  ;;  %v1272_v28 = vshll.u32 %v2655_v54, %v1257_v6  ;;  %v409_v3 = vsel %vm402_vm14, %v405_v55, %v408_v2 }
  0xb4   :  { %2605 = vsinq.f32 %v499_v0  ;;  %v1202_v25 = vshll.u32 %v3405_v57, 30  ;;  %v1262_v11 = vor.u32 %v1261_v9, %v1260_v29  ;;  %v1265_v21 = vor.u32 %v1264_v32, %v1263_v19 }
  0xb5   :  { %v1259_v14 = vshrl.u32 %v2651_v45, %v1258_v63  ;;  %v1271_v23 = vor.u32 %v1270_v30, %v1269_v33  ;;  %v1273_v16 = vshrl.u32 %v2656_v62, %v1258_v63  ;;  %vm1275_vm1 = vcmp.lt.s32.totalorder %v1256_v18, 1 }
  0xb6   :  { %vm506_vm2 = vcmp.lt.s32.totalorder %v3394_v8, 2  ;;  %v3422_v5 = vsub.s32 %v1199_v53, %v1202_v25  ;;  %v1268_v61 = vor.u32 %v1267_v56, %v1266_v31  ;;  %v3424_v41 = vshll.u32 %v1251_v38, 8 }
  0xb7   :  { %v2326_v20 = vunpack.c.l.bf16 %v3415_v17  ;;  %v410_v49 = vsel %vm399_vm13, nan, %v409_v3  ;;  %vm503_vm3 = vweird.f32 %v3097_v27  ;;  %vm1141_vm4 = vcmp.lt.s32.totalorder %v3111_v44, 0 }
  0xb8   :  { %v1274_v10 = vor.u32 %v1273_v16, %v1272_v28  ;;  %vm1277_vm5 = vcmp.lt.s32.totalorder %v1256_v18, 3  ;;  %vm1278_vm6 = vcmp.lt.s32.totalorder %v1256_v18, 4  ;;  %v1205_v4 = vsub.s32 0, %v3422_v5 }
  0xb9   :  { %vm1276_vm7 = vcmp.lt.s32.totalorder %v1256_v18, 2  ;;  %v1280_v6 = vsel %vm1278_vm6, %v1268_v61, 2102212464  ;;  %v1283_v13 = vsel %vm1275_vm1, %v1262_v11, %v1265_v21  ;;  %v1279_v34 = vsel %vm1275_vm1, %v1259_v14, %v1262_v11 }
  0xba   :  { %v1281_v22 = vsel %vm1277_vm5, %v1265_v21, %v1280_v6  ;;  %v1284_v43 = vsel %vm1278_vm6, %v1271_v23, 920167782  ;;  %v1288_v40 = vsel %vm1278_vm6, %v1274_v10, 1326507024  ;;  %vm507_vm8 = vcmp.eq.s32.totalorder %v3394_v8, 0 }
  0xbb   :  { %v2251_v58 = vmin.u32 %v1205_v4, %v3422_v5  ;;  %v1285_v63 = vsel %vm1277_vm5, %v1268_v61, %v1284_v43  ;;  %v1287_v46 = vsel %vm1275_vm1, %v1265_v21, %v1268_v61  ;;  %v1765_v53 = vmul.f32 %v410_v49, %v410_v49 }
  0xbc   :  { %v1286_v38 = vsel %vm1276_vm7, %v1283_v13, %v1285_v63  ;;  %v1289_v29 = vsel %vm1277_vm5, %v1271_v23, %v1288_v40  ;;  %v3444_v19 = vmul.f32 %v3279_v51, %v2326_v20  ;;  %vm510_vm9 = vcmp.eq.s32.totalorder %v3394_v8, 2 }
  0xbd   :  { %v2604_v7 = vpop.eup %2603  ;;  %v1207_v36 = vclz %v2251_v58  ;;  %v1225_v9 = vsub.s32 4, %v3405_v57  ;;  %v1282_v32 = vsel %vm1276_vm7, %v1279_v34, %v1281_v22  ;;  %vm3451_vm12 = vcmp.le.f32.partialorder %v1139_v26, 0.7853982 }
  0xbe   :  { %v2606_v55 = vpop.eup %2605  ;;  %v511_v2 = vxor.u32 2147483648, %v2604_v7  ;;  %v1290_v31 = vsel %vm1276_vm7, %v1287_v46, %v1289_v29  ;;  %v3457_v56 = vmul.u32.u64.low %v3424_v41, %v1286_v38  ;;  %v3458_v33 = vmul.u32.u64.high %v3424_v41, %v1286_v38, %v3457_v56 }
  0xbf   :  { %v508_v30 = vxor.u32 2147483648, %v2606_v55  ;;  %v2252_v28 = vadd.s32 4294967294, %v1207_v36  ;;  %v3461_v3 = vmul.u32.u64.low %v3424_v41, %v1290_v31  ;;  %v3462_v25 = vmul.u32.u64.high %v3424_v41, %v1290_v31, %v3461_v3 }
  0xc0   :  { %v512_v11 = vsel %vm510_vm9, %v511_v2, %v2606_v55  ;;  %v1788_v21 = vmul.f32 %v3089_v15, %v1765_v53  ;;  %v1195_v26 = vadd.s32 %v3379_v1, %v3374_v60  ;;  %v518_v14 = vand.u32 2139095040, %v3444_v19 }
  0xc1   :  { %v509_v18 = vsel %vm507_vm8, %v2604_v7, %v508_v30  ;;  %vm2253_vm10 = vcmp.lt.s32.totalorder %v2252_v28, 0  ;;  %v1226_v23 = vsel %vm1141_vm4, %v1225_v9, %v3405_v57  ;;  %v1298_v16 = vmul.u32 %v3424_v41, %v1282_v32 }
  0xc2   :  { %v513_v61 = vsel %vm506_vm2, %v509_v18, %v512_v11  ;;  %v1210_v49 = vsel %vm2253_vm10, 0, %v2252_v28  ;;  %v1301_v10 = vadd.s32 1, %v3458_v33  ;;  %v519_v4 = vshrl.u32 %v518_v14, 23 }
  0xc3   :  { %v514_v60 = vsel %vm503_vm3, nan, %v513_v61  ;;  %v1211_v1 = vsub.s32 32, %v1210_v49  ;;  %v1212_v6 = vshll.u32 %v3422_v5, %v1210_v49  ;;  %v1215_v13 = vsub.s32 4294967266, %v1210_v49 }
  0xc4   :  { %v1766_v34 = vmul.f32 %v514_v60, %v514_v60  ;;  %vm1300_vm11 = vc.u32 %v3462_v25, %v3457_v56  ;;  %v515_v57 = vand.u32 2147483647, %v3444_v19  ;;  %v2226_v41 = vadd.s32 4294967169, %v519_v4 }
  0xc5   :  { %v1213_v22 = vshrl.u32 %v1195_v26, %v1211_v1  ;;  %v1216_v8 = vadd.s32 127, %v1215_v13  ;;  %v1302_v43 = vsel %vm1300_vm11, %v1301_v10, %v3458_v33  ;;  %v2327_v40 = vunpack.c.h.bf16 %v3415_v17 }
  0xc6   :  { %v1789_v58 = vmul.f32 %v3089_v15, %v1766_v34  ;;  %v1804_v27 = vadd.f32 %v2322_v24, %v1788_v21  ;;  %v1303_v63 = vadd.s32 %v1302_v43, %v1298_v16  ;;  %v525_v5 = vadd.s32 1, %v2226_v41 }
  0xc7   :  { %v1214_v46 = vor.u32 %v1213_v22, %v1212_v6  ;;  %v1217_v53 = vshll.u32 %v1216_v8, 23  ;;  %v1228_v38 = vsel %vm3451_vm12, 0, %v1226_v23  ;;  %v522_v36 = vand.u32 8388607, %v515_v57 }
  0xc8   :  { %v1805_v29 = vadd.f32 %v2323_v37, %v1789_v58  ;;  %v1304_v7 = vadd.s32 536870912, %v1303_v63  ;;  %vm526_vm13 = vcmp.gt.s32.totalorder %v525_v5, 0  ;;  %v3496_v24 = vmul.f32 %v3279_v51, %v2327_v40 }
  0xc9   :  { %v1218_v9 = vor.u32 4788187, %v1217_v53  ;;  %v1221_v15 = vcvt.s32.f32 %v1214_v46  ;;  %v527_v32 = vsel %vm526_vm13, %v525_v5, 0  ;;  %v3498_v30 = vadd.s32 3, %v1228_v38 }
  0xca   :  { %v1819_v55 = vpack.c.bf16 %v1805_v29, %v1804_v27  ;;  %v1305_v2 = vshrl.u32 %v1304_v7, 30  ;;  %v529_v31 = vand.u32 31, %v527_v32  ;;  %vm1245_vm14 = vcmp.lt.s32.totalorder %v3284_v12, 0 }
  0xcb   :  { %v1219_v33 = vand.u32 2147483647, %v1218_v9  ;;  %v3502_v48 = vadd.s32 %v3457_v56, %v3462_v25  ;;  %v523_v28 = vor.u32 8388608, %v522_v36  ;;  %v619_v11 = vand.u32 2147483647, %v3496_v24 }
  0xcc   :  { %2474 = vmatmul.mubr.bf16.vlgmr.msra.gmra.mrb[0].mxu0 %v1819_v55  ;;  %v1306_v37 = vshll.u32 %v1305_v2, 30  ;;  %v530_v3 = vsub.s32 32, %v529_v31  ;;  %v528_v26 = vshrl.u32 %v527_v32, 5  ;;  %v532_v14 = vshll.u32 %v2651_v45, %v529_v31 }
  0xcd   :  { %v1222_v21 = vmul.f32 %v1221_v15, %v1219_v33  ;;  %v622_v18 = vand.u32 2139095040, %v3496_v24  ;;  %v535_v61 = vshll.u32 %v2652_v47, %v529_v31  ;;  %v538_v56 = vshll.u32 %v2653_v50, %v529_v31 }
  0xce   :  { %v3507_v23 = vsub.s32 %v1303_v63, %v1306_v37  ;;  %v533_v16 = vshrl.u32 %v2652_v47, %v530_v3  ;;  %vm3514_vm15 = vcmp.le.f32.partialorder %v1243_v35, 0.7853982  ;;  %v536_v10 = vshrl.u32 %v2653_v50, %v530_v3 }
  0xcf   :  { %v1223_v25 = vxor.u32 2147483648, %v1222_v21  ;;  %v539_v4 = vshrl.u32 %v2654_v52, %v530_v3  ;;  %v541_v60 = vshll.u32 %v2654_v52, %v529_v31  ;;  %v1329_v6 = vsub.s32 4, %v1305_v2 }
  0xd0   :  { %v1309_v1 = vsub.s32 0, %v3507_v23  ;;  %v542_v13 = vshrl.u32 %v2655_v54, %v530_v3  ;;  %v3523_v34 = vshll.u32 %v523_v28, 8  ;;  %v531_v35 = vshrl.u32 %v2651_v45, %v530_v3 }
  0xd1   :  { %v1224_v41 = vsel %vm1141_vm4, %v1223_v25, %v1222_v21  ;;  %v544_v22 = vshll.u32 %v2655_v54, %v529_v31  ;;  %v623_v8 = vshrl.u32 %v622_v18, 23  ;;  %v534_v27 = vor.u32 %v533_v16, %v532_v14  ;;  %v3544_v16 = vld [vmem:[%s4256_s0 + $0x30] sm:$0xff]  }
  0xd2   :  { %v1227_v43 = vsel %vm3451_vm12, %v3111_v44, %v1224_v41  ;;  %v2255_v58 = vmin.u32 %v1309_v1, %v3507_v23  ;;  %v537_v63 = vor.u32 %v536_v10, %v535_v61  ;;  %v540_v5 = vor.u32 %v539_v4, %v538_v56 }
  0xd3   :  { %v543_v46 = vor.u32 %v542_v13, %v541_v60  ;;  %v545_v53 = vshrl.u32 %v2656_v62, %v530_v3  ;;  %vm547_vm0 = vcmp.lt.s32.totalorder %v528_v26, 1  ;;  %2607 = vcosq.f32 %v1227_v43 }
  0xd4   :  { %v1311_v38 = vclz %v2255_v58  ;;  %v1330_v29 = vsel %vm1245_vm14, %v1329_v6, %v1305_v2  ;;  %vm548_vm1 = vcmp.lt.s32.totalorder %v528_v26, 2  ;;  %2609 = vsinq.f32 %v1227_v43 }
  0xd5   :  { %v546_v7 = vor.u32 %v545_v53, %v544_v22  ;;  %vm549_vm2 = vcmp.lt.s32.totalorder %v528_v26, 3  ;;  %vm550_vm3 = vcmp.lt.s32.totalorder %v528_v26, 4  ;;  %v551_v36 = vsel %vm547_vm0, %v531_v35, %v534_v27 }
  0xd6   :  { %v2256_v0 = vadd.s32 4294967294, %v1311_v38  ;;  %v552_v9 = vsel %vm550_vm3, %v540_v5, 2102212464  ;;  %v555_v15 = vsel %vm547_vm0, %v534_v27, %v537_v63  ;;  %v556_v55 = vsel %vm550_vm3, %v543_v46, 920167782 }
  0xd7   :  { %v553_v32 = vsel %vm549_vm2, %v537_v63, %v552_v9  ;;  %v559_v31 = vsel %vm547_vm0, %v537_v63, %v540_v5  ;;  %v560_v33 = vsel %vm550_vm3, %v546_v7, 1326507024  ;;  %v1332_v37 = vsel %vm3514_vm15, 0, %v1330_v29 }
  0xd8   :  { %vm2257_vm4 = vcmp.lt.s32.totalorder %v2256_v0, 0  ;;  %v557_v28 = vsel %vm549_vm2, %v540_v5, %v556_v55  ;;  %v561_v3 = vsel %vm549_vm2, %v543_v46, %v560_v33  ;;  %v554_v21 = vsel %vm548_vm1, %v551_v36, %v553_v32 }
  0xd9   :  { %v1314_v2 = vsel %vm2257_vm4, 0, %v2256_v0  ;;  %v558_v14 = vsel %vm548_vm1, %v555_v15, %v557_v28  ;;  %v562_v18 = vsel %vm548_vm1, %v559_v31, %v561_v3  ;;  %v2230_v10 = vadd.s32 4294967169, %v623_v8 }
  0xda   :  { %v1315_v61 = vsub.s32 32, %v1314_v2  ;;  %v1316_v56 = vshll.u32 %v3507_v23, %v1314_v2  ;;  %v1319_v25 = vsub.s32 4294967266, %v1314_v2  ;;  %v2342_v35 = vunpack.c.l.bf16 %v3544_v16 }
  0xdb   :  { %v3548_v4 = vmul.u32.u64.low %v3523_v34, %v562_v18  ;;  %v3549_v60 = vmul.u32.u64.high %v3523_v34, %v562_v18, %v3548_v4  ;;  %v3552_v1 = vmul.u32.u64.low %v3523_v34, %v558_v14  ;;  %v3553_v6 = vmul.u32.u64.high %v3523_v34, %v558_v14, %v3552_v1 }
  0xdc   :  { %v1317_v26 = vshrl.u32 %v3502_v48, %v1315_v61  ;;  %v1320_v13 = vadd.s32 127, %v1319_v25  ;;  %v629_v41 = vadd.s32 1, %v2230_v10  ;;  %v1233_v22 = vand.u32 3, %v3498_v30 }
  0xdd   :  { %v1336_v23 = vadd.s32 3, %v1332_v37  ;;  %v2608_v43 = vpop.eup %2607  ;;  %v570_v27 = vmul.u32 %v3523_v34, %v554_v21  ;;  %vm572_vm6 = vc.u32 %v3549_v60, %v3552_v1  ;;  %v573_v5 = vadd.s32 1, %v3553_v6 }
  0xde   :  { %v1318_v8 = vor.u32 %v1317_v26, %v1316_v56  ;;  %v1321_v58 = vshll.u32 %v1320_v13, 23  ;;  %vm630_vm5 = vcmp.gt.s32.totalorder %v629_v41, 0  ;;  %v2610_v63 = vpop.eup %2609  ;;  %v626_v48 = vand.u32 8388607, %v619_v11 }
  0xdf   :  { %v2343_v46 = vunpack.c.h.bf16 %v3544_v16  ;;  %v631_v38 = vsel %vm630_vm5, %v629_v41, 0  ;;  %v3569_v29 = vmul.f32 %v3279_v51, %v2342_v35  ;;  %vm1234_vm7 = vcmp.lt.s32.totalorder %v1233_v22, 2 }
  0xe0   :  { %v1322_v53 = vor.u32 4788187, %v1321_v58  ;;  %v1325_v30 = vcvt.s32.f32 %v1318_v8  ;;  %vm1235_vm8 = vcmp.eq.s32.totalorder %v1233_v22, 0  ;;  %v574_v34 = vsel %vm572_vm6, %v573_v5, %v3553_v6 }
  0xe1   :  { %v633_v7 = vand.u32 31, %v631_v38  ;;  %vm1238_vm9 = vcmp.eq.s32.totalorder %v1233_v22, 2  ;;  %v3572_v36 = vand.u32 3, %v1336_v23  ;;  %v575_v9 = vadd.s32 %v574_v34, %v570_v27 }
  0xe2   :  { %v1323_v0 = vand.u32 2147483647, %v1322_v53  ;;  %v1236_v15 = vxor.u32 2147483648, %v2610_v63  ;;  %v1239_v32 = vxor.u32 2147483648, %v2608_v43  ;;  %v627_v55 = vor.u32 8388608, %v626_v48 }
  0xe3   :  { %v634_v31 = vsub.s32 32, %v633_v7  ;;  %v576_v37 = vadd.s32 536870912, %v575_v9  ;;  %v636_v28 = vshll.u32 %v2651_v45, %v633_v7  ;;  %v639_v3 = vshll.u32 %v2652_v47, %v633_v7 }
  0xe4   :  { %v1326_v33 = vmul.f32 %v1325_v30, %v1323_v0  ;;  %vm1231_vm12 = vweird.f32 %v3111_v44  ;;  %v632_v2 = vshrl.u32 %v631_v38, 5  ;;  %v642_v18 = vshll.u32 %v2653_v50, %v633_v7 }
  0xe5   :  { %v637_v21 = vshrl.u32 %v2652_v47, %v634_v31  ;;  %v640_v14 = vshrl.u32 %v2653_v50, %v634_v31  ;;  %v577_v56 = vshrl.u32 %v576_v37, 30  ;;  %v643_v25 = vshrl.u32 %v2654_v52, %v634_v31 }
  0xe6   :  { %v1327_v61 = vxor.u32 2147483648, %v1326_v33  ;;  %v645_v10 = vshll.u32 %v2654_v52, %v633_v7  ;;  %v1237_v4 = vsel %vm1235_vm8, %v2608_v43, %v1236_v15  ;;  %v1240_v6 = vsel %vm1238_vm9, %v1239_v32, %v2610_v63 }
  0xe7   :  { %v635_v26 = vshrl.u32 %v2651_v45, %v634_v31  ;;  %v646_v13 = vshrl.u32 %v2655_v54, %v634_v31  ;;  %v578_v23 = vshll.u32 %v577_v56, 30  ;;  %v638_v8 = vor.u32 %v637_v21, %v636_v28 }
  0xe8   :  { %v1328_v41 = vsel %vm1245_vm14, %v1327_v61, %v1326_v33  ;;  %v641_v58 = vor.u32 %v640_v14, %v639_v3  ;;  %v648_v48 = vshll.u32 %v2655_v54, %v633_v7  ;;  %v649_v43 = vshrl.u32 %v2656_v62, %v634_v31 }
  0xe9   :  { %v1331_v27 = vsel %vm3514_vm15, %v3284_v12, %v1328_v41  ;;  %v647_v5 = vor.u32 %v646_v13, %v645_v10  ;;  %v3593_v63 = vsub.s32 %v575_v9, %v578_v23  ;;  %v644_v53 = vor.u32 %v643_v25, %v642_v18 }
  0xea   :  { %2611 = vcosq.f32 %v1331_v27  ;;  %vm651_vm10 = vcmp.lt.s32.totalorder %v632_v2, 1  ;;  %v1241_v30 = vsel %vm1234_vm7, %v1237_v4, %v1240_v6  ;;  %vm517_vm11 = vcmp.lt.s32.totalorder %v3444_v19, 0 }
  0xeb   :  { %2613 = vsinq.f32 %v1331_v27  ;;  %v650_v38 = vor.u32 %v649_v43, %v648_v48  ;;  %v581_v34 = vsub.s32 0, %v3593_v63  ;;  %vm652_vm13 = vcmp.lt.s32.totalorder %v632_v2, 2 }
  0xec   :  { %vm653_vm14 = vcmp.lt.s32.totalorder %v632_v2, 3  ;;  %vm654_vm15 = vcmp.lt.s32.totalorder %v632_v2, 4  ;;  %v659_v7 = vsel %vm651_vm10, %v638_v8, %v641_v58  ;;  %v667_v15 = vshll.u32 %v627_v55, 8 }
  0xed   :  { %v656_v49 = vsel %vm654_vm15, %v644_v53, 2102212464  ;;  %v660_v0 = vsel %vm654_vm15, %v647_v5, 920167782  ;;  %vm1338_vm0 = vcmp.lt.s32.totalorder %v3572_v36, 2  ;;  %v2227_v9 = vmin.u32 %v581_v34, %v3593_v63 }
  0xee   :  { %v655_v22 = vsel %vm651_vm10, %v635_v26, %v638_v8  ;;  %v661_v32 = vsel %vm653_vm14, %v644_v53, %v660_v0  ;;  %v1350_v31 = vand.u32 2139095040, %v3569_v29  ;;  %vm1335_vm1 = vweird.f32 %v3284_v12 }
  0xef   :  { %v657_v33 = vsel %vm653_vm14, %v641_v58, %v656_v49  ;;  %v662_v37 = vsel %vm652_vm13, %v659_v7, %v661_v32  ;;  %v663_v28 = vsel %vm651_vm10, %v641_v58, %v644_v53  ;;  %v664_v3 = vsel %vm654_vm15, %v650_v38, 1326507024 }
  0xf0   :  { %v1242_v55 = vsel %vm1231_vm12, nan, %v1241_v30  ;;  %vm1339_vm2 = vcmp.eq.s32.totalorder %v3572_v36, 0  ;;  %vm3613_vm3 = vcmp.le.f32.partialorder %v515_v57, 0.7853982  ;;  %v583_v14 = vclz %v2227_v9 }
  0xf1   :  { %v601_v18 = vsub.s32 4, %v577_v56  ;;  %vm1342_vm4 = vcmp.eq.s32.totalorder %v3572_v36, 2  ;;  %v665_v61 = vsel %vm653_vm14, %v647_v5, %v664_v3  ;;  %v658_v4 = vsel %vm652_vm13, %v655_v22, %v657_v33 }
  0xf2   :  { %v3619_v25 = vmul.u32.u64.low %v667_v15, %v662_v37  ;;  %v3620_v10 = vmul.u32.u64.high %v667_v15, %v662_v37, %v3619_v25  ;;  %v2228_v44 = vadd.s32 4294967294, %v583_v14  ;;  %v666_v6 = vsel %vm652_vm13, %v663_v28, %v665_v61 }
  0xf3   :  { %v1351_v26 = vshrl.u32 %v1350_v31, 23  ;;  %v1773_v57 = vmul.f32 %v1242_v55, %v1242_v55  ;;  %v3625_v13 = vmul.u32.u64.low %v667_v15, %v666_v6  ;;  %v3626_v41 = vmul.u32.u64.high %v667_v15, %v666_v6, %v3625_v13 }
  0xf4   :  { %v1347_v23 = vand.u32 2147483647, %v3569_v29  ;;  %v2612_v8 = vpop.eup %2611  ;;  %v571_v58 = vadd.s32 %v3552_v1, %v3549_v60  ;;  %vm2229_vm5 = vcmp.lt.s32.totalorder %v2228_v44, 0  ;;  %v602_v27 = vsel %vm517_vm11, %v601_v18, %v577_v56  ;;  %v3640_v60 = vld [vmem:[%s4258_s4] ss:$0 sm:$0xff] }
  0xf5   :  { %v2258_v5 = vadd.s32 4294967169, %v1351_v26  ;;  %v2614_v48 = vpop.eup %2613  ;;  %v1343_v43 = vxor.u32 2147483648, %v2612_v8  ;;  %v586_v2 = vsel %vm2229_vm5, 0, %v2228_v44  ;;  %v674_v53 = vmul.u32 %v667_v15, %v658_v4 }
  0xf6   :  { %v677_v30 = vadd.s32 1, %v3620_v10  ;;  %v1340_v38 = vxor.u32 2147483648, %v2614_v48  ;;  %v587_v34 = vsub.s32 32, %v586_v2  ;;  %v588_v49 = vshll.u32 %v3593_v63, %v586_v2 }
  0xf7   :  { %v591_v7 = vsub.s32 4294967266, %v586_v2  ;;  %v1344_v0 = vsel %vm1342_vm4, %v1343_v43, %v2614_v48  ;;  %v1796_v1 = vmul.f32 %v3640_v60, %v1773_v57  ;;  %vm676_vm6 = vc.u32 %v3626_v41, %v3619_v25 }
  0xf8   :  { %v1357_v56 = vadd.s32 1, %v2258_v5  ;;  %v1341_v15 = vsel %vm1339_vm2, %v2612_v8, %v1340_v38  ;;  %v589_v9 = vshrl.u32 %v571_v58, %v587_v34  ;;  %v678_v22 = vsel %vm676_vm6, %v677_v30, %v3620_v10 }
  0xf9   :  { %v592_v63 = vadd.s32 127, %v591_v7  ;;  %v1345_v32 = vsel %vm1338_vm0, %v1341_v15, %v1344_v0  ;;  %v604_v31 = vsel %vm3613_vm3, 0, %v602_v27  ;;  %v679_v33 = vadd.s32 %v678_v22, %v674_v53 }
  0xfa   :  { %vm1358_vm7 = vcmp.gt.s32.totalorder %v1357_v56, 0  ;;  %v1346_v37 = vsel %vm1335_vm1, nan, %v1345_v32  ;;  %v590_v28 = vor.u32 %v589_v9, %v588_v49  ;;  %v1812_v10 = vadd.f32 %v2338_v59, %v1796_v1 }
  0xfb   :  { %v593_v3 = vshll.u32 %v592_v63, 23  ;;  %v1359_v55 = vsel %vm1358_vm7, %v1357_v56, 0  ;;  %v1774_v14 = vmul.f32 %v1346_v37, %v1346_v37  ;;  %v680_v18 = vadd.s32 536870912, %v679_v33 }
  0xfc   :  { %v1361_v61 = vand.u32 31, %v1359_v55  ;;  %v597_v36 = vcvt.s32.f32 %v590_v28  ;;  %v3659_v4 = vmul.f32 %v3279_v51, %v2343_v46  ;;  %v3662_v12 = vadd.s32 3, %v604_v31 }
  0xfd   :  { %v594_v44 = vor.u32 4788187, %v593_v3  ;;  %v1797_v6 = vmul.f32 %v3640_v60, %v1774_v14  ;;  %v681_v26 = vshrl.u32 %v680_v18, 30  ;;  %v1354_v8 = vand.u32 8388607, %v1347_v23 }
  0xfe   :  { %v1362_v57 = vsub.s32 32, %v1361_v61  ;;  %v1360_v58 = vshrl.u32 %v1359_v55, 5  ;;  %v1364_v59 = vshll.u32 %v2651_v45, %v1361_v61  ;;  %v1367_v51 = vshll.u32 %v2652_v47, %v1361_v61 }
  0xff   :  { %v595_v13 = vand.u32 2147483647, %v594_v44  ;;  %v1813_v27 = vadd.f32 %v2339_v42, %v1797_v6  ;;  %v682_v5 = vshll.u32 %v681_v26, 30  ;;  %v1370_v48 = vshll.u32 %v2653_v50, %v1361_v61 }
 0x100   :  { %v1365_v2 = vshrl.u32 %v2652_v47, %v1362_v57  ;;  %v1368_v53 = vshrl.u32 %v2653_v50, %v1362_v57  ;;  %v1371_v30 = vshrl.u32 %v2654_v52, %v1362_v57  ;;  %vm621_vm8 = vcmp.lt.s32.totalorder %v3496_v24, 0 }
 0x101   :  { %v598_v43 = vmul.f32 %v597_v36, %v595_v13  ;;  %v1823_v38 = vpack.c.bf16 %v1813_v27, %v1812_v10  ;;  %v3675_v34 = vsub.s32 %v679_v33, %v682_v5  ;;  %v1373_v39 = vshll.u32 %v2654_v52, %v1361_v61 }
 0x102   :  { %v1374_v42 = vshrl.u32 %v2655_v54, %v1362_v57  ;;  %v675_v7 = vadd.s32 %v3619_v25, %v3626_v41  ;;  %v1355_v0 = vor.u32 8388608, %v1354_v8  ;;  %v1454_v1 = vand.u32 2139095040, %v3659_v4 }
 0x103   :  { %v599_v49 = vxor.u32 2147483648, %v598_v43  ;;  %2482 = vmatmul.mubr.bf16.vlgmr.msra.gmra.mrb[0].mxu1 %v1823_v38  ;;  %v685_v56 = vsub.s32 0, %v3675_v34  ;;  %v1363_v15 = vshrl.u32 %v2651_v45, %v1362_v57  ;;  %v1366_v9 = vor.u32 %v1365_v2, %v1364_v59 }
 0x104   :  { %v1369_v63 = vor.u32 %v1368_v53, %v1367_v51  ;;  %v1372_v32 = vor.u32 %v1371_v30, %v1370_v48  ;;  %v1376_v31 = vshll.u32 %v2655_v54, %v1361_v61  ;;  %v1377_v33 = vshrl.u32 %v2656_v62, %v1362_v57 }
 0x105   :  { %v600_v22 = vsel %vm517_vm11, %v599_v49, %v598_v43  ;;  %v2231_v41 = vmin.u32 %v685_v56, %v3675_v34  ;;  %v1375_v37 = vor.u32 %v1374_v42, %v1373_v39  ;;  %vm1379_vm9 = vcmp.lt.s32.totalorder %v1360_v58, 1 }
 0x106   :  { %v603_v25 = vsel %vm3613_vm3, %v3444_v19, %v600_v22  ;;  %v705_v28 = vsub.s32 4, %v681_v26  ;;  %v1378_v3 = vor.u32 %v1377_v33, %v1376_v31  ;;  %vm1382_vm12 = vcmp.lt.s32.totalorder %v1360_v58, 4 }
 0x107   :  { %2615 = vcosq.f32 %v603_v25  ;;  %v687_v55 = vclz %v2231_v41  ;;  %vm1381_vm10 = vcmp.lt.s32.totalorder %v1360_v58, 3  ;;  %v1395_v14 = vshll.u32 %v1355_v0, 8 }
 0x108   :  { %2617 = vsinq.f32 %v603_v25  ;;  %vm1380_vm11 = vcmp.lt.s32.totalorder %v1360_v58, 2  ;;  %v1383_v18 = vsel %vm1379_vm9, %v1363_v15, %v1366_v9  ;;  %v1384_v61 = vsel %vm1382_vm12, %v1372_v32, 2102212464 }
 0x109   :  { %v1387_v10 = vsel %vm1379_vm9, %v1366_v9, %v1369_v63  ;;  %v2232_v21 = vadd.s32 4294967294, %v687_v55  ;;  %v1385_v44 = vsel %vm1381_vm10, %v1369_v63, %v1384_v61  ;;  %v1388_v36 = vsel %vm1382_vm12, %v1375_v37, 920167782 }
 0x10a   :  { %v1391_v6 = vsel %vm1379_vm9, %v1369_v63, %v1372_v32  ;;  %v706_v57 = vsel %vm621_vm8, %v705_v28, %v681_v26  ;;  %v1389_v13 = vsel %vm1381_vm10, %v1372_v32, %v1388_v36  ;;  %v1392_v8 = vsel %vm1382_vm12, %v1378_v3, 1326507024 }
 0x10b   :  { %v1455_v59 = vshrl.u32 %v1454_v1, 23  ;;  %vm2233_vm13 = vcmp.lt.s32.totalorder %v2232_v21, 0  ;;  %v1386_v27 = vsel %vm1380_vm11, %v1383_v18, %v1385_v44  ;;  %v1390_v5 = vsel %vm1380_vm11, %v1387_v10, %v1389_v13  ;;  %v3728_v18 = vld [vmem:[%s4256_s0 + $0x18] sm:$0xff]  }
 0x10c   :  { %v1393_v51 = vsel %vm1381_vm10, %v1375_v37, %v1392_v8  ;;  %v690_v48 = vsel %vm2233_vm13, 0, %v2232_v21  ;;  %v3703_v2 = vmul.u32.u64.low %v1395_v14, %v1390_v5  ;;  %v3704_v53 = vmul.u32.u64.high %v1395_v14, %v1390_v5, %v3703_v2 }
 0x10d   :  { %v1394_v43 = vsel %vm1380_vm11, %v1391_v6, %v1393_v51  ;;  %v691_v30 = vsub.s32 32, %v690_v48  ;;  %v692_v26 = vshll.u32 %v3675_v34, %v690_v48  ;;  %v695_v38 = vsub.s32 4294967266, %v690_v48 }
 0x10e   :  { %v2262_v39 = vadd.s32 4294967169, %v1455_v59  ;;  %vm3710_vm14 = vcmp.le.f32.partialorder %v619_v11, 0.7853982  ;;  %v3714_v49 = vmul.u32.u64.low %v1395_v14, %v1394_v43  ;;  %v3715_v0 = vmul.u32.u64.high %v1395_v14, %v1394_v43, %v3714_v49 }
 0x10f   :  { %v693_v58 = vshrl.u32 %v675_v7, %v691_v30  ;;  %v696_v1 = vadd.s32 127, %v695_v38  ;;  %v708_v56 = vsel %vm3710_vm14, 0, %v706_v57  ;;  %v609_v34 = vand.u32 3, %v3662_v12 }
 0x110   :  { %v1461_v15 = vadd.s32 1, %v2262_v39  ;;  %v1402_v63 = vmul.u32 %v1395_v14, %v1386_v27  ;;  %v1405_v22 = vadd.s32 1, %v3704_v53  ;;  %v712_v33 = vadd.s32 3, %v708_v56 }
 0x111   :  { %v2616_v9 = vpop.eup %2615  ;;  %v694_v11 = vor.u32 %v693_v58, %v692_v26  ;;  %v697_v31 = vshll.u32 %v696_v1, 23  ;;  %vm1404_vm0 = vc.u32 %v3715_v0, %v3703_v2  ;;  %v1451_v7 = vand.u32 2147483647, %v3659_v4 }
 0x112   :  { %v2618_v32 = vpop.eup %2617  ;;  %vm1462_vm15 = vcmp.gt.s32.totalorder %v1461_v15, 0  ;;  %v615_v41 = vxor.u32 2147483648, %v2616_v9  ;;  %v1406_v3 = vsel %vm1404_vm0, %v1405_v22, %v3704_v53  ;;  %vm614_vm1 = vcmp.eq.s32.totalorder %v609_v34, 2 }
 0x113   :  { %v1463_v25 = vsel %vm1462_vm15, %v1461_v15, 0  ;;  %v698_v37 = vor.u32 4788187, %v697_v31  ;;  %v701_v28 = vcvt.s32.f32 %v694_v11  ;;  %v612_v12 = vxor.u32 2147483648, %v2618_v32 }
 0x114   :  { %v1407_v55 = vadd.s32 %v1406_v3, %v1402_v63  ;;  %v1465_v14 = vand.u32 31, %v1463_v25  ;;  %vm607_vm2 = vweird.f32 %v3444_v19  ;;  %vm611_vm3 = vcmp.eq.s32.totalorder %v609_v34, 0 }
 0x115   :  { %v699_v61 = vand.u32 2147483647, %v698_v37  ;;  %vm610_vm4 = vcmp.lt.s32.totalorder %v609_v34, 2  ;;  %v3731_v10 = vand.u32 3, %v712_v33  ;;  %v616_v36 = vsel %vm614_vm1, %v615_v41, %v2618_v32 }
 0x116   :  { %v1408_v21 = vadd.s32 536870912, %v1407_v55  ;;  %v1466_v44 = vsub.s32 32, %v1465_v14  ;;  %v1458_v57 = vand.u32 8388607, %v1451_v7  ;;  %v2330_v13 = vunpack.c.l.bf16 %v3728_v18 }
 0x117   :  { %v702_v6 = vmul.f32 %v701_v28, %v699_v61  ;;  %v613_v8 = vsel %vm611_vm3, %v2616_v9, %v612_v12  ;;  %v1468_v27 = vshll.u32 %v2651_v45, %v1465_v14  ;;  %v1471_v48 = vshll.u32 %v2652_v47, %v1465_v14 }
 0x118   :  { %v3736_v59 = vshrl.u32 %v1408_v21, 30  ;;  %v1469_v5 = vshrl.u32 %v2652_v47, %v1466_v44  ;;  %v1472_v43 = vshrl.u32 %v2653_v50, %v1466_v44  ;;  %v1477_v53 = vshll.u32 %v2654_v52, %v1465_v14  ;;  %v3774_v21 = vld [vmem:[%s4257_s3] ss:$0 sm:$0xff] }
 0x119   :  { %v703_v51 = vxor.u32 2147483648, %v702_v6  ;;  %v1464_v26 = vshrl.u32 %v1463_v25, 5  ;;  %v1474_v38 = vshll.u32 %v2653_v50, %v1465_v14  ;;  %v1475_v39 = vshrl.u32 %v2654_v52, %v1466_v44 }
 0x11a   :  { %v1410_v30 = vshll.u32 %v3736_v59, 30  ;;  %v617_v49 = vsel %vm610_vm4, %v613_v8, %v616_v36  ;;  %v1459_v1 = vor.u32 8388608, %v1458_v57  ;;  %v1478_v56 = vshrl.u32 %v2655_v54, %v1466_v44 }
 0x11b   :  { %v704_v58 = vsel %vm621_vm8, %v703_v51, %v702_v6  ;;  %v1470_v63 = vor.u32 %v1469_v5, %v1468_v27  ;;  %v1480_v22 = vshll.u32 %v2655_v54, %v1465_v14  ;;  %v1473_v32 = vor.u32 %v1472_v43, %v1471_v48 }
 0x11c   :  { %v707_v15 = vsel %vm3710_vm14, %v3496_v24, %v704_v58  ;;  %v3753_v9 = vsub.s32 %v1407_v55, %v1410_v30  ;;  %v1479_v11 = vor.u32 %v1478_v56, %v1477_v53  ;;  %v1481_v34 = vshrl.u32 %v2656_v62, %v1466_v44 }
 0x11d   :  { %2619 = vcosq.f32 %v707_v15  ;;  %v1476_v33 = vor.u32 %v1475_v39, %v1474_v38  ;;  %vm1483_vm5 = vcmp.lt.s32.totalorder %v1464_v26, 1  ;;  %v618_v25 = vsel %vm607_vm2, nan, %v617_v49 }
 0x11e   :  { %2621 = vsinq.f32 %v707_v15  ;;  %v1413_v31 = vsub.s32 0, %v3753_v9  ;;  %v1467_v42 = vshrl.u32 %v2651_v45, %v1466_v44  ;;  %v1482_v41 = vor.u32 %v1481_v34, %v1480_v22 }
 0x11f   :  { %vm1486_vm6 = vcmp.lt.s32.totalorder %v1464_v26, 4  ;;  %vm715_vm7 = vcmp.eq.s32.totalorder %v3731_v10, 0  ;;  %vm718_vm8 = vcmp.eq.s32.totalorder %v3731_v10, 2  ;;  %vm1485_vm9 = vcmp.lt.s32.totalorder %v1464_v26, 3 }
 0x120   :  { %v2259_v37 = vmin.u32 %v1413_v31, %v3753_v9  ;;  %v1488_v28 = vsel %vm1486_vm6, %v1476_v33, 2102212464  ;;  %vm714_vm12 = vcmp.lt.s32.totalorder %v3731_v10, 2  ;;  %vm1349_vm10 = vcmp.lt.s32.totalorder %v3569_v29, 0 }
 0x121   :  { %vm1484_vm11 = vcmp.lt.s32.totalorder %v1464_v26, 2  ;;  %v1491_v19 = vsel %vm1483_vm5, %v1470_v63, %v1473_v32  ;;  %v1492_v3 = vsel %vm1486_vm6, %v1479_v11, 920167782  ;;  %v1499_v12 = vshll.u32 %v1459_v1, 8 }
 0x122   :  { %vm711_vm13 = vweird.f32 %v3496_v24  ;;  %v1767_v55 = vmul.f32 %v618_v25, %v618_v25  ;;  %v1415_v14 = vclz %v2259_v37  ;;  %v1495_v61 = vsel %vm1483_vm5, %v1473_v32, %v1476_v33 }
 0x123   :  { %v3779_v44 = vmul.f32 %v3774_v21, %v2330_v13  ;;  %v1487_v36 = vsel %vm1483_vm5, %v1467_v42, %v1470_v63  ;;  %v1489_v6 = vsel %vm1485_vm9, %v1473_v32, %v1488_v28  ;;  %v1493_v57 = vsel %vm1485_vm9, %v1476_v33, %v1492_v3 }
 0x124   :  { %v1496_v8 = vsel %vm1486_vm6, %v1482_v41, 1326507024  ;;  %v1403_v27 = vadd.s32 %v3703_v2, %v3715_v0  ;;  %v2260_v5 = vadd.s32 4294967294, %v1415_v14  ;;  %v1494_v51 = vsel %vm1484_vm11, %v1491_v19, %v1493_v57 }
 0x125   :  { %v1497_v48 = vsel %vm1485_vm9, %v1479_v11, %v1496_v8  ;;  %v1433_v43 = vsub.s32 4, %v3736_v59  ;;  %v3791_v30 = vmul.u32.u64.low %v1499_v12, %v1494_v51  ;;  %v3792_v38 = vmul.u32.u64.high %v1499_v12, %v1494_v51, %v3791_v30 }
 0x126   :  { %v1498_v53 = vsel %vm1484_vm11, %v1495_v61, %v1497_v48  ;;  %vm2261_vm14 = vcmp.lt.s32.totalorder %v2260_v5, 0  ;;  %v1490_v39 = vsel %vm1484_vm11, %v1487_v36, %v1489_v6  ;;  %v1790_v2 = vmul.f32 %v3640_v60, %v1767_v55 }
 0x127   :  { %v3795_v49 = vmul.u32.u64.low %v1499_v12, %v1498_v53  ;;  %v3796_v58 = vmul.u32.u64.high %v1499_v12, %v1498_v53, %v3795_v49  ;;  %v2620_v1 = vpop.eup %2619  ;;  %v1418_v0 = vsel %vm2261_vm14, 0, %v2260_v5  ;;  %v2331_v56 = vunpack.c.h.bf16 %v3728_v18  ;;  %v2349_v18 = vld [vmem:[%s4260_s5] sm:$0xff]  }
 0x128   :  { %v726_v15 = vand.u32 2139095040, %v3779_v44  ;;  %v2622_v63 = vpop.eup %2621  ;;  %v719_v22 = vxor.u32 2147483648, %v2620_v1  ;;  %v1419_v32 = vsub.s32 32, %v1418_v0  ;;  %v1420_v11 = vshll.u32 %v3753_v9, %v1418_v0 }
 0x129   :  { %v1423_v34 = vsub.s32 4294967266, %v1418_v0  ;;  %v716_v31 = vxor.u32 2147483648, %v2622_v63  ;;  %v1506_v26 = vmul.u32 %v1499_v12, %v1490_v39  ;;  %v1509_v33 = vadd.s32 1, %v3792_v38 }
 0x12a   :  { %v727_v25 = vshrl.u32 %v726_v15, 23  ;;  %v720_v42 = vsel %vm718_vm8, %v719_v22, %v2622_v63  ;;  %v1421_v41 = vshrl.u32 %v1403_v27, %v1419_v32  ;;  %v1434_v28 = vsel %vm1349_vm10, %v1433_v43, %v3736_v59 }
 0x12b   :  { %v1424_v37 = vadd.s32 127, %v1423_v34  ;;  %v717_v19 = vsel %vm715_vm7, %v2620_v1, %v716_v31  ;;  %vm1508_vm15 = vc.u32 %v3796_v58, %v3791_v30  ;;  %v723_v9 = vand.u32 2147483647, %v3779_v44 }
 0x12c   :  { %v2234_v3 = vadd.s32 4294967169, %v727_v25  ;;  %v721_v12 = vsel %vm714_vm12, %v717_v19, %v720_v42  ;;  %v1422_v55 = vor.u32 %v1421_v41, %v1420_v11  ;;  %v1510_v61 = vsel %vm1508_vm15, %v1509_v33, %v3792_v38 }
 0x12d   :  { %v1425_v14 = vshll.u32 %v1424_v37, 23  ;;  %v722_v36 = vsel %vm711_vm13, nan, %v721_v12  ;;  %vm3819_vm0 = vcmp.le.f32.partialorder %v1347_v23, 0.7853982  ;;  %v1511_v6 = vadd.s32 %v1510_v61, %v1506_v26 }
 0x12e   :  { %v733_v57 = vadd.s32 1, %v2234_v3  ;;  %v1768_v8 = vmul.f32 %v722_v36, %v722_v36  ;;  %v1806_v10 = vadd.f32 %v2326_v20, %v1790_v2  ;;  %v1429_v5 = vcvt.s32.f32 %v1422_v55 }
 0x12f   :  { %v1426_v27 = vor.u32 4788187, %v1425_v14  ;;  %v1436_v51 = vsel %vm3819_vm0, 0, %v1434_v28  ;;  %v1512_v48 = vadd.s32 536870912, %v1511_v6  ;;  %v730_v24 = vand.u32 8388607, %v723_v9 }
 0x130   :  { %vm734_vm1 = vcmp.gt.s32.totalorder %v733_v57, 0  ;;  %v1791_v23 = vmul.f32 %v3640_v60, %v1768_v8  ;;  %v3833_v53 = vmul.f32 %v3774_v21, %v2331_v56  ;;  %v3837_v2 = vadd.s32 3, %v1436_v51 }
 0x131   :  { %v1427_v43 = vand.u32 2147483647, %v1426_v27  ;;  %v735_v38 = vsel %vm734_vm1, %v733_v57, 0  ;;  %v1513_v20 = vshrl.u32 %v1512_v48, 30  ;;  %v3840_v0 = vadd.s32 %v3791_v30, %v3796_v58 }
 0x132   :  { %v737_v39 = vand.u32 31, %v735_v38  ;;  %v1807_v49 = vadd.f32 %v2327_v40, %v1791_v23  ;;  %v731_v63 = vor.u32 8388608, %v730_v24  ;;  %v830_v31 = vand.u32 2139095040, %v3833_v53 }
 0x133   :  { %v1430_v1 = vmul.f32 %v1429_v5, %v1427_v43  ;;  %v1514_v15 = vshll.u32 %v1513_v20, 30  ;;  %v736_v33 = vshrl.u32 %v735_v38, 5  ;;  %vm1453_vm2 = vcmp.lt.s32.totalorder %v3659_v4, 0 }
 0x134   :  { %v738_v22 = vsub.s32 32, %v737_v39  ;;  %v1820_v32 = vpack.c.bf16 %v1807_v49, %v1806_v10  ;;  %v740_v34 = vshll.u32 %v2651_v45, %v737_v39  ;;  %v743_v40 = vshll.u32 %v2652_v47, %v737_v39 }
 0x135   :  { %v1431_v11 = vxor.u32 2147483648, %v1430_v1  ;;  %v3844_v26 = vsub.s32 %v1511_v6, %v1514_v15  ;;  %v746_v25 = vshll.u32 %v2653_v50, %v737_v39  ;;  %v3858_v28 = vshll.u32 %v731_v63, 8 }
 0x136   :  { %v741_v17 = vshrl.u32 %v2652_v47, %v738_v22  ;;  %2477 = vmatprep.mubr.bf16.mxu0 %v1820_v32  ;;  %v744_v58 = vshrl.u32 %v2653_v50, %v738_v22  ;;  %v747_v42 = vshrl.u32 %v2654_v52, %v738_v22  ;;  %v827_v19 = vand.u32 2147483647, %v3833_v53 }
 0x137   :  { %v1432_v30 = vsel %vm1349_vm10, %v1431_v11, %v1430_v1  ;;  %v1517_v37 = vsub.s32 0, %v3844_v26  ;;  %v739_v3 = vshrl.u32 %v2651_v45, %v738_v22  ;;  %v749_v55 = vshll.u32 %v2654_v52, %v737_v39 }
 0x138   :  { %v1435_v41 = vsel %vm3819_vm0, %v3569_v29, %v1432_v30  ;;  %v742_v12 = vor.u32 %v741_v17, %v740_v34  ;;  %v831_v14 = vshrl.u32 %v830_v31, 23  ;;  %v745_v36 = vor.u32 %v744_v58, %v743_v40 }
 0x139   :  { %2623 = vcosq.f32 %v1435_v41  ;;  %v2263_v61 = vmin.u32 %v1517_v37, %v3844_v26  ;;  %v750_v6 = vshrl.u32 %v2655_v54, %v738_v22  ;;  %vm3867_vm3 = vcmp.le.f32.partialorder %v1451_v7, 0.7853982 }
 0x13a   :  { %v748_v57 = vor.u32 %v747_v42, %v746_v25  ;;  %v752_v8 = vshll.u32 %v2655_v54, %v737_v39  ;;  %v753_v10 = vshrl.u32 %v2656_v62, %v738_v22  ;;  %vm755_vm4 = vcmp.lt.s32.totalorder %v736_v33, 1 }
 0x13b   :  { %2625 = vsinq.f32 %v1435_v41  ;;  %v1519_v27 = vclz %v2263_v61  ;;  %v1537_v5 = vsub.s32 4, %v1513_v20  ;;  %vm756_vm5 = vcmp.lt.s32.totalorder %v736_v33, 2 }
 0x13c   :  { %v751_v51 = vor.u32 %v750_v6, %v749_v55  ;;  %v754_v48 = vor.u32 %v753_v10, %v752_v8  ;;  %vm757_vm6 = vcmp.lt.s32.totalorder %v736_v33, 3  ;;  %vm758_vm7 = vcmp.lt.s32.totalorder %v736_v33, 4 }
 0x13d   :  { %v2264_v24 = vadd.s32 4294967294, %v1519_v27  ;;  %v759_v23 = vsel %vm755_vm4, %v739_v3, %v742_v12  ;;  %v760_v7 = vsel %vm758_vm7, %v748_v57, 2102212464  ;;  %v763_v43 = vsel %vm755_vm4, %v742_v12, %v745_v36 }
 0x13e   :  { %v761_v38 = vsel %vm757_vm6, %v745_v36, %v760_v7  ;;  %v764_v49 = vsel %vm758_vm7, %v751_v51, 920167782  ;;  %v767_v1 = vsel %vm755_vm4, %v745_v36, %v748_v57  ;;  %v768_v15 = vsel %vm758_vm7, %v754_v48, 1326507024 }
 0x13f   :  { %vm2265_vm8 = vcmp.lt.s32.totalorder %v2264_v24, 0  ;;  %v1538_v39 = vsel %vm1453_vm2, %v1537_v5, %v1513_v20  ;;  %v765_v63 = vsel %vm757_vm6, %v748_v57, %v764_v49  ;;  %v769_v22 = vsel %vm757_vm6, %v751_v51, %v768_v15 }
 0x140   :  { %v1522_v32 = vsel %vm2265_vm8, 0, %v2264_v24  ;;  %v762_v11 = vsel %vm756_vm5, %v759_v23, %v761_v38  ;;  %v766_v34 = vsel %vm756_vm5, %v763_v43, %v765_v63  ;;  %v770_v31 = vsel %vm756_vm5, %v767_v1, %v769_v22 }
 0x141   :  { %v1523_v17 = vsub.s32 32, %v1522_v32  ;;  %v1524_v40 = vshll.u32 %v3844_v26, %v1522_v32  ;;  %v1527_v30 = vsub.s32 4294967266, %v1522_v32  ;;  %v2238_v58 = vadd.s32 4294967169, %v831_v14  ;;  %v3894_v26 = vld [vmem:[%s4256_s0 + $0x38] sm:$0xff]  }
 0x142   :  { %v3880_v25 = vmul.u32.u64.low %v3858_v28, %v770_v31  ;;  %v3881_v42 = vmul.u32.u64.high %v3858_v28, %v770_v31, %v3880_v25  ;;  %v3884_v20 = vmul.u32.u64.low %v3858_v28, %v766_v34  ;;  %v3885_v41 = vmul.u32.u64.high %v3858_v28, %v766_v34, %v3884_v20 }
 0x143   :  { %v2624_v37 = vpop.eup %2623  ;;  %v1525_v3 = vshrl.u32 %v3840_v0, %v1523_v17  ;;  %v1528_v12 = vadd.s32 127, %v1527_v30  ;;  %v1540_v33 = vsel %vm3867_vm3, 0, %v1538_v39  ;;  %v3897_v55 = vand.u32 3, %v3837_v2 }
 0x144   :  { %v834_v14 = vand.u32 8388607, %v827_v19  ;;  %v837_v61 = vadd.s32 1, %v2238_v58  ;;  %v778_v0 = vmul.u32 %v3858_v28, %v762_v11  ;;  %v1544_v8 = vadd.s32 3, %v1540_v33 }
 0x145   :  { %v2626_v36 = vpop.eup %2625  ;;  %v1526_v6 = vor.u32 %v1525_v3, %v1524_v40  ;;  %v1529_v57 = vshll.u32 %v1528_v12, 23  ;;  %vm780_vm9 = vc.u32 %v3881_v42, %v3884_v20  ;;  %v781_v10 = vadd.s32 1, %v3885_v41 }
 0x146   :  { %v2346_v27 = vunpack.c.l.bf16 %v3894_v26  ;;  %v1447_v5 = vxor.u32 2147483648, %v2624_v37  ;;  %vm838_vm12 = vcmp.gt.s32.totalorder %v837_v61, 0  ;;  %vm1446_vm10 = vcmp.eq.s32.totalorder %v3897_v55, 2 }
 0x147   :  { %v1530_v2 = vor.u32 4788187, %v1529_v57  ;;  %v1533_v51 = vcvt.s32.f32 %v1526_v6  ;;  %v782_v48 = vsel %vm780_vm9, %v781_v10, %v3885_v41  ;;  %v835_v24 = vor.u32 8388608, %v834_v14 }
 0x148   :  { %v839_v23 = vsel %vm838_vm12, %v837_v61, 0  ;;  %vm1442_vm11 = vcmp.lt.s32.totalorder %v3897_v55, 2  ;;  %v783_v7 = vadd.s32 %v782_v48, %v778_v0  ;;  %vm1443_vm13 = vcmp.eq.s32.totalorder %v3897_v55, 0 }
 0x149   :  { %v1531_v28 = vand.u32 2147483647, %v1530_v2  ;;  %v1444_v43 = vxor.u32 2147483648, %v2626_v36  ;;  %v3910_v38 = vand.u32 3, %v1544_v8  ;;  %v841_v49 = vand.u32 31, %v839_v23 }
 0x14a   :  { %v1448_v1 = vsel %vm1446_vm10, %v1447_v5, %v2626_v36  ;;  %v784_v39 = vadd.s32 536870912, %v783_v7  ;;  %v3915_v63 = vmul.f32 %v3774_v21, %v2346_v27  ;;  %v840_v22 = vshrl.u32 %v839_v23, 5 }
 0x14b   :  { %v1534_v15 = vmul.f32 %v1533_v51, %v1531_v28  ;;  %v842_v32 = vsub.s32 32, %v841_v49  ;;  %v844_v11 = vshll.u32 %v2651_v45, %v841_v49  ;;  %v3918_v34 = vshll.u32 %v835_v24, 8 }
 0x14c   :  { %vm1439_vm14 = vweird.f32 %v3569_v29  ;;  %v3921_v17 = vshrl.u32 %v784_v39, 30  ;;  %v847_v40 = vshll.u32 %v2652_v47, %v841_v49  ;;  %v853_v30 = vshll.u32 %v2654_v52, %v841_v49 }
 0x14d   :  { %v1535_v31 = vxor.u32 2147483648, %v1534_v15  ;;  %v845_v58 = vshrl.u32 %v2652_v47, %v842_v32  ;;  %v848_v25 = vshrl.u32 %v2653_v50, %v842_v32  ;;  %v850_v41 = vshll.u32 %v2653_v50, %v841_v49 }
 0x14e   :  { %v851_v3 = vshrl.u32 %v2654_v52, %v842_v32  ;;  %v1445_v12 = vsel %vm1443_vm13, %v2624_v37, %v1444_v43  ;;  %v786_v14 = vshll.u32 %v3921_v17, 30  ;;  %v854_v61 = vshrl.u32 %v2655_v54, %v842_v32 }
 0x14f   :  { %v1536_v33 = vsel %vm1453_vm2, %v1535_v31, %v1534_v15  ;;  %v843_v6 = vshrl.u32 %v2651_v45, %v842_v32  ;;  %v846_v57 = vor.u32 %v845_v58, %v844_v11  ;;  %vm859_vm15 = vcmp.lt.s32.totalorder %v840_v22, 1 }
 0x150   :  { %v1539_v36 = vsel %vm3867_vm3, %v3659_v4, %v1536_v33  ;;  %v3939_v0 = vsub.s32 %v783_v7, %v786_v14  ;;  %v849_v8 = vor.u32 %v848_v25, %v847_v40  ;;  %v855_v37 = vor.u32 %v854_v61, %v853_v30 }
 0x151   :  { %2627 = vcosq.f32 %v1539_v36  ;;  %v852_v10 = vor.u32 %v851_v3, %v850_v41  ;;  %v856_v5 = vshll.u32 %v2655_v54, %v841_v49  ;;  %v857_v2 = vshrl.u32 %v2656_v62, %v842_v32 }
 0x152   :  { %2629 = vsinq.f32 %v1539_v36  ;;  %v1449_v51 = vsel %vm1442_vm11, %v1445_v12, %v1448_v1  ;;  %v789_v59 = vsub.s32 0, %v3939_v0  ;;  %vm861_vm0 = vcmp.lt.s32.totalorder %v840_v22, 3 }
 0x153   :  { %v1558_v48 = vand.u32 2139095040, %v3915_v63  ;;  %v858_v24 = vor.u32 %v857_v2, %v856_v5  ;;  %vm860_vm1 = vcmp.lt.s32.totalorder %v840_v22, 2  ;;  %vm862_vm2 = vcmp.lt.s32.totalorder %v840_v22, 4 }
 0x154   :  { %v863_v23 = vsel %vm859_vm15, %v843_v6, %v846_v57  ;;  %v2235_v28 = vmin.u32 %v789_v59, %v3939_v0  ;;  %v864_v7 = vsel %vm862_vm2, %v852_v10, 2102212464  ;;  %v867_v43 = vsel %vm859_vm15, %v846_v57, %v849_v8 }
 0x155   :  { %v868_v49 = vsel %vm862_vm2, %v855_v37, 920167782  ;;  %vm1543_vm3 = vweird.f32 %v3659_v4  ;;  %v865_v55 = vsel %vm861_vm0, %v849_v8, %v864_v7  ;;  %v871_v15 = vsel %vm859_vm15, %v849_v8, %v852_v10 }
 0x156   :  { %v869_v1 = vsel %vm861_vm0, %v852_v10, %v868_v49  ;;  %v872_v39 = vsel %vm862_vm2, %v858_v24, 1326507024  ;;  %vm1546_vm4 = vcmp.lt.s32.totalorder %v3910_v38, 2  ;;  %vm1547_vm5 = vcmp.eq.s32.totalorder %v3910_v38, 0 }
 0x157   :  { %vm725_vm6 = vcmp.lt.s32.totalorder %v3779_v44, 0  ;;  %v791_v32 = vclz %v2235_v28  ;;  %v1450_v11 = vsel %vm1439_vm14, nan, %v1449_v51  ;;  %v866_v31 = vsel %vm860_vm1, %v863_v23, %v865_v55 }
 0x158   :  { %v870_v40 = vsel %vm860_vm1, %v867_v43, %v869_v1  ;;  %v873_v30 = vsel %vm861_vm0, %v855_v37, %v872_v39  ;;  %vm3964_vm7 = vcmp.le.f32.partialorder %v723_v9, 0.7853982  ;;  %vm1550_vm8 = vcmp.eq.s32.totalorder %v3910_v38, 2 }
 0x159   :  { %v2236_v25 = vadd.s32 4294967294, %v791_v32  ;;  %v874_v41 = vsel %vm860_vm1, %v871_v15, %v873_v30  ;;  %v3970_v3 = vmul.u32.u64.low %v3918_v34, %v870_v40  ;;  %v3971_v12 = vmul.u32.u64.high %v3918_v34, %v870_v40, %v3970_v3 }
 0x15a   :  { %v3976_v29 = vmul.u32.u64.low %v3918_v34, %v874_v41  ;;  %v3977_v33 = vmul.u32.u64.high %v3918_v34, %v874_v41, %v3976_v29  ;;  %v1559_v14 = vshrl.u32 %v1558_v48, 23  ;;  %v1775_v9 = vmul.f32 %v1450_v11, %v1450_v11 }
 0x15b   :  { %v2628_v61 = vpop.eup %2627  ;;  %v779_v36 = vadd.s32 %v3884_v20, %v3881_v42  ;;  %vm2237_vm9 = vcmp.lt.s32.totalorder %v2236_v25, 0  ;;  %v809_v22 = vsub.s32 4, %v3921_v17  ;;  %v882_v37 = vmul.u32 %v3918_v34, %v866_v31 }
 0x15c   :  { %v2630_v6 = vpop.eup %2629  ;;  %v1551_v57 = vxor.u32 2147483648, %v2628_v61  ;;  %v794_v8 = vsel %vm2237_vm9, 0, %v2236_v25  ;;  %v2266_v10 = vadd.s32 4294967169, %v1559_v14  ;;  %vm884_vm12 = vc.u32 %v3977_v33, %v3970_v3 }
 0x15d   :  { %v1548_v5 = vxor.u32 2147483648, %v2630_v6  ;;  %v795_v2 = vsub.s32 32, %v794_v8  ;;  %v796_v51 = vshll.u32 %v3939_v0, %v794_v8  ;;  %v799_v59 = vsub.s32 4294967266, %v794_v8 }
 0x15e   :  { %v1552_v48 = vsel %vm1550_vm8, %v1551_v57, %v2630_v6  ;;  %v885_v42 = vadd.s32 1, %v3971_v12  ;;  %v2347_v20 = vunpack.c.h.bf16 %v3894_v26  ;;  %v810_v0 = vsel %vm725_vm6, %v809_v22, %v3921_v17 }
 0x15f   :  { %v1549_v24 = vsel %vm1547_vm5, %v2628_v61, %v1548_v5  ;;  %v797_v34 = vshrl.u32 %v779_v36, %v795_v2  ;;  %v800_v23 = vadd.s32 127, %v799_v59  ;;  %v1798_v7 = vmul.f32 %v3640_v60, %v1775_v9 }
 0x160   :  { %v1553_v28 = vsel %vm1546_vm4, %v1549_v24, %v1552_v48  ;;  %v886_v43 = vsel %vm884_vm12, %v885_v42, %v3971_v12  ;;  %v1565_v49 = vadd.s32 1, %v2266_v10  ;;  %v812_v11 = vsel %vm3964_vm7, 0, %v810_v0 }
 0x161   :  { %v1554_v55 = vsel %vm1543_vm3, nan, %v1553_v28  ;;  %v798_v1 = vor.u32 %v797_v34, %v796_v51  ;;  %v801_v15 = vshll.u32 %v800_v23, 23  ;;  %v887_v39 = vadd.s32 %v886_v43, %v882_v37 }
 0x162   :  { %v1776_v32 = vmul.f32 %v1554_v55, %v1554_v55  ;;  %v1555_v17 = vand.u32 2147483647, %v3915_v63  ;;  %vm1566_vm10 = vcmp.gt.s32.totalorder %v1565_v49, 0  ;;  %v1814_v4 = vadd.f32 %v2342_v35, %v1798_v7 }
 0x163   :  { %v802_v38 = vor.u32 4788187, %v801_v15  ;;  %v805_v31 = vcvt.s32.f32 %v798_v1  ;;  %v888_v40 = vadd.s32 536870912, %v887_v39  ;;  %v1567_v30 = vsel %vm1566_vm10, %v1565_v49, 0 }
 0x164   :  { %v1799_v25 = vmul.f32 %v3640_v60, %v1776_v32  ;;  %v4010_v41 = vmul.f32 %v3774_v21, %v2347_v20  ;;  %v1569_v12 = vand.u32 31, %v1567_v30  ;;  %v4012_v14 = vadd.s32 3, %v812_v11 }
 0x165   :  { %v803_v29 = vand.u32 2147483647, %v802_v38  ;;  %v4014_v61 = vshrl.u32 %v888_v40, 30  ;;  %v1562_v60 = vand.u32 8388607, %v1555_v17  ;;  %v1568_v37 = vshrl.u32 %v1567_v30, 5 }
 0x166   :  { %v1815_v9 = vadd.f32 %v2343_v46, %v1799_v25  ;;  %v1570_v36 = vsub.s32 32, %v1569_v12  ;;  %v1659_v35 = vand.u32 2147483647, %v4010_v41  ;;  %v1572_v21 = vshll.u32 %v2651_v45, %v1569_v12 }
 0x167   :  { %v806_v22 = vmul.f32 %v805_v31, %v803_v29  ;;  %v890_v6 = vshll.u32 %v4014_v61, 30  ;;  %v1575_v57 = vshll.u32 %v2652_v47, %v1569_v12  ;;  %v1578_v2 = vshll.u32 %v2653_v50, %v1569_v12 }
 0x168   :  { %v1824_v8 = vpack.c.bf16 %v1815_v9, %v1814_v4  ;;  %v1573_v10 = vshrl.u32 %v2652_v47, %v1570_v36  ;;  %v1576_v16 = vshrl.u32 %v2653_v50, %v1570_v36  ;;  %v1579_v51 = vshrl.u32 %v2654_v52, %v1570_v36 }
 0x169   :  { %v807_v46 = vxor.u32 2147483648, %v806_v22  ;;  %v4026_v5 = vsub.s32 %v887_v39, %v890_v6  ;;  %v1563_v59 = vor.u32 8388608, %v1562_v60  ;;  %v1571_v48 = vshrl.u32 %v2651_v45, %v1570_v36 }
 0x16a   :  { %2485 = vmatprep.mubr.bf16.mxu1 %v1824_v8  ;;  %v1581_v42 = vshll.u32 %v2654_v52, %v1569_v12  ;;  %v1662_v24 = vand.u32 2139095040, %v4010_v41  ;;  %v1574_v0 = vor.u32 %v1573_v10, %v1572_v21  ;;  %v1577_v28 = vor.u32 %v1576_v16, %v1575_v57 }
 0x16b   :  { %v808_v34 = vsel %vm725_vm6, %v807_v46, %v806_v22  ;;  %v893_v23 = vsub.s32 0, %v4026_v5  ;;  %v1582_v43 = vshrl.u32 %v2655_v54, %v1570_v36  ;;  %v1584_v49 = vshll.u32 %v2655_v54, %v1569_v12 }
 0x16c   :  { %v811_v7 = vsel %vm3964_vm7, %v3779_v44, %v808_v34  ;;  %v1585_v55 = vshrl.u32 %v2656_v62, %v1570_v36  ;;  %v883_v1 = vadd.s32 %v3970_v3, %v3977_v33  ;;  %v1580_v39 = vor.u32 %v1579_v51, %v1578_v2 }
 0x16d   :  { %v2239_v15 = vmin.u32 %v893_v23, %v4026_v5  ;;  %vm1587_vm11 = vcmp.lt.s32.totalorder %v1568_v37, 1  ;;  %2631 = vcosq.f32 %v811_v7  ;;  %v1583_v32 = vor.u32 %v1582_v43, %v1581_v42 }
 0x16e   :  { %v1586_v11 = vor.u32 %v1585_v55, %v1584_v49  ;;  %v1663_v38 = vshrl.u32 %v1662_v24, 23  ;;  %2633 = vsinq.f32 %v811_v7  ;;  %vm1588_vm13 = vcmp.lt.s32.totalorder %v1568_v37, 2 }
 0x16f   :  { %v895_v58 = vclz %v2239_v15  ;;  %v1603_v31 = vshll.u32 %v1563_v59, 8  ;;  %vm1589_vm14 = vcmp.lt.s32.totalorder %v1568_v37, 3  ;;  %vm1590_vm15 = vcmp.lt.s32.totalorder %v1568_v37, 4 }
 0x170   :  { %v1591_v40 = vsel %vm1587_vm11, %v1571_v48, %v1574_v0  ;;  %v1595_v30 = vsel %vm1587_vm11, %v1574_v0, %v1577_v28  ;;  %v1592_v3 = vsel %vm1590_vm15, %v1580_v39, 2102212464  ;;  %v1596_v33 = vsel %vm1590_vm15, %v1583_v32, 920167782 }
 0x171   :  { %v2240_v25 = vadd.s32 4294967294, %v895_v58  ;;  %v1599_v4 = vsel %vm1587_vm11, %v1577_v28, %v1580_v39  ;;  %v1593_v12 = vsel %vm1589_vm14, %v1577_v28, %v1592_v3  ;;  %v1597_v29 = vsel %vm1589_vm14, %v1580_v39, %v1596_v33 }
 0x172   :  { %v1600_v9 = vsel %vm1590_vm15, %v1586_v11, 1326507024  ;;  %v2270_v60 = vadd.s32 4294967169, %v1663_v38  ;;  %v913_v36 = vsub.s32 4, %v4014_v61  ;;  %v1598_v22 = vsel %vm1588_vm13, %v1595_v30, %v1597_v29 }
 0x173   :  { %vm2241_vm0 = vcmp.lt.s32.totalorder %v2240_v25, 0  ;;  %v1601_v6 = vsel %vm1589_vm14, %v1583_v32, %v1600_v9  ;;  %v4051_v8 = vmul.u32.u64.low %v1603_v31, %v1598_v22  ;;  %v4052_v10 = vmul.u32.u64.high %v1603_v31, %v1598_v22, %v4051_v8 }
 0x174   :  { %v898_v21 = vsel %vm2241_vm0, 0, %v2240_v25  ;;  %v1602_v57 = vsel %vm1588_vm13, %v1599_v4, %v1601_v6  ;;  %v1594_v51 = vsel %vm1588_vm13, %v1591_v40, %v1593_v12  ;;  %vm829_vm1 = vcmp.lt.s32.totalorder %v3833_v53, 0 }
 0x175   :  { %v899_v16 = vsub.s32 32, %v898_v21  ;;  %v900_v46 = vshll.u32 %v4026_v5, %v898_v21  ;;  %v903_v2 = vsub.s32 4294967266, %v898_v21  ;;  %v1669_v42 = vadd.s32 1, %v2270_v60 }
 0x176   :  { %v4058_v59 = vmul.u32.u64.low %v1603_v31, %v1602_v57  ;;  %v4059_v48 = vmul.u32.u64.high %v1603_v31, %v1602_v57, %v4058_v59  ;;  %vm4063_vm2 = vcmp.le.f32.partialorder %v827_v19, 0.7853982  ;;  %v914_v5 = vsel %vm829_vm1, %v913_v36, %v4014_v61 }
 0x177   :  { %v901_v34 = vshrl.u32 %v883_v1, %v899_v16  ;;  %v904_v23 = vadd.s32 127, %v903_v2  ;;  %v2632_v37 = vpop.eup %2631  ;;  %v4071_v0 = vand.u32 3, %v4012_v14  ;;  %v1610_v28 = vmul.u32 %v1603_v31, %v1594_v51 }
 0x178   :  { %v1613_v7 = vadd.s32 1, %v4052_v10  ;;  %vm1670_vm3 = vcmp.gt.s32.totalorder %v1669_v42, 0  ;;  %v2634_v43 = vpop.eup %2633  ;;  %v1666_v55 = vand.u32 8388607, %v1659_v35  ;;  %v916_v15 = vsel %vm4063_vm2, 0, %v914_v5 }
 0x179   :  { %v902_v49 = vor.u32 %v901_v34, %v900_v46  ;;  %v905_v19 = vshll.u32 %v904_v23, 23  ;;  %v1671_v1 = vsel %vm1670_vm3, %v1669_v42, 0  ;;  %vm1612_vm4 = vc.u32 %v4059_v48, %v4051_v8 }
 0x17a   :  { %v1614_v39 = vsel %vm1612_vm4, %v1613_v7, %v4052_v10  ;;  %vm819_vm5 = vcmp.eq.s32.totalorder %v4071_v0, 0  ;;  %v823_v32 = vxor.u32 2147483648, %v2632_v37  ;;  %v1673_v38 = vand.u32 31, %v1671_v1 }
 0x17b   :  { %v906_v61 = vor.u32 4788187, %v905_v19  ;;  %v909_v14 = vcvt.s32.f32 %v902_v49  ;;  %v1615_v11 = vadd.s32 %v1614_v39, %v1610_v28  ;;  %vm818_vm6 = vcmp.lt.s32.totalorder %v4071_v0, 2 }
 0x17c   :  { %vm822_vm7 = vcmp.eq.s32.totalorder %v4071_v0, 2  ;;  %v920_v31 = vadd.s32 3, %v916_v15  ;;  %v1667_v40 = vor.u32 8388608, %v1666_v55  ;;  %v820_v30 = vxor.u32 2147483648, %v2634_v43 }
 0x17d   :  { %v907_v58 = vand.u32 2147483647, %v906_v61  ;;  %v1616_v25 = vadd.s32 536870912, %v1615_v11  ;;  %v1672_v3 = vshrl.u32 %v1671_v1, 5  ;;  %v1674_v33 = vsub.s32 32, %v1673_v38 }
 0x17e   :  { %v1676_v12 = vshll.u32 %v2651_v45, %v1673_v38  ;;  %v1679_v29 = vshll.u32 %v2652_v47, %v1673_v38  ;;  %v1685_v9 = vshll.u32 %v2654_v52, %v1673_v38  ;;  %v824_v60 = vsel %vm822_vm7, %v823_v32, %v2634_v43 }
 0x17f   :  { %v910_v4 = vmul.f32 %v909_v14, %v907_v58  ;;  %v4087_v36 = vshrl.u32 %v1616_v25, 30  ;;  %v1677_v22 = vshrl.u32 %v2652_v47, %v1674_v33  ;;  %v1682_v6 = vshll.u32 %v2653_v50, %v1673_v38 }
 0x180   :  { %vm815_vm8 = vweird.f32 %v3779_v44  ;;  %v1680_v57 = vshrl.u32 %v2653_v50, %v1674_v33  ;;  %v1683_v10 = vshrl.u32 %v2654_v52, %v1674_v33  ;;  %v1686_v16 = vshrl.u32 %v2655_v54, %v1674_v33 }
 0x181   :  { %v911_v21 = vxor.u32 2147483648, %v910_v4  ;;  %v821_v46 = vsel %vm819_vm5, %v2632_v37, %v820_v30  ;;  %v1618_v2 = vshll.u32 %v4087_v36, 30  ;;  %v1675_v51 = vshrl.u32 %v2651_v45, %v1674_v33 }
 0x182   :  { %vm1691_vm9 = vcmp.lt.s32.totalorder %v1672_v3, 1  ;;  %v1678_v59 = vor.u32 %v1677_v22, %v1676_v12  ;;  %v1681_v42 = vor.u32 %v1680_v57, %v1679_v29  ;;  %v1687_v34 = vor.u32 %v1686_v16, %v1685_v9 }
 0x183   :  { %v912_v47 = vsel %vm829_vm1, %v911_v21, %v910_v4  ;;  %v1619_v52 = vsub.s32 %v1615_v11, %v1618_v2  ;;  %v1684_v23 = vor.u32 %v1683_v10, %v1682_v6  ;;  %v1688_v5 = vshll.u32 %v2655_v54, %v1673_v38 }
 0x184   :  { %v915_v50 = vsel %vm4063_vm2, %v3833_v53, %v912_v47  ;;  %v1689_v37 = vshrl.u32 %v2656_v62, %v1674_v33  ;;  %vm1693_vm12 = vcmp.lt.s32.totalorder %v1672_v3, 3  ;;  %vm1694_vm10 = vcmp.lt.s32.totalorder %v1672_v3, 4 }
 0x185   :  { %2635 = vcosq.f32 %v915_v50  ;;  %v1621_v45 = vsub.s32 0, %v1619_v52  ;;  %vm1692_vm11 = vcmp.lt.s32.totalorder %v1672_v3, 2  ;;  %v1707_v28 = vshll.u32 %v1667_v40, 8 }
 0x186   :  { %2637 = vsinq.f32 %v915_v50  ;;  %v1690_v7 = vor.u32 %v1689_v37, %v1688_v5  ;;  %v1696_v43 = vsel %vm1694_vm10, %v1684_v23, 2102212464  ;;  %v1699_v49 = vsel %vm1691_vm9, %v1678_v59, %v1681_v42 }
 0x187   :  { %v1700_v24 = vsel %vm1694_vm10, %v1687_v34, 920167782  ;;  %v825_v19 = vsel %vm818_vm6, %v821_v46, %v824_v60  ;;  %v2267_v54 = vmin.u32 %v1621_v45, %v1619_v52  ;;  %v1695_v55 = vsel %vm1691_vm9, %v1675_v51, %v1678_v59  ;;  %v4141_v59 = vld [vmem:[%s4258_s4] ss:$0 sm:$0xff] }
 0x188   :  { %v1701_v62 = vsel %vm1693_vm12, %v1684_v23, %v1700_v24  ;;  %v1697_v1 = vsel %vm1693_vm12, %v1681_v42, %v1696_v43  ;;  %v1703_v61 = vsel %vm1691_vm9, %v1681_v42, %v1684_v23  ;;  %v1704_v14 = vsel %vm1694_vm10, %v1690_v7, 1326507024 }
 0x189   :  { %v1702_v15 = vsel %vm1692_vm11, %v1699_v49, %v1701_v62  ;;  %v921_v39 = vand.u32 3, %v920_v31  ;;  %v1623_v32 = vclz %v2267_v54  ;;  %v1705_v11 = vsel %vm1693_vm12, %v1687_v34, %v1704_v14 }
 0x18a   :  { %v4118_v38 = vmul.u32.u64.low %v1707_v28, %v1702_v15  ;;  %v4119_v0 = vmul.u32.u64.high %v1707_v28, %v1702_v15, %v4118_v38  ;;  %v826_v58 = vsel %vm815_vm8, nan, %v825_v19  ;;  %v1698_v30 = vsel %vm1692_vm11, %v1695_v55, %v1697_v1  ;;  %v4156_v15 = vld [vmem:[%s4259_s2] ss:$0 sm:$0xff] }
 0x18b   :  { %v2268_v40 = vadd.s32 4294967294, %v1623_v32  ;;  %v1706_v25 = vsel %vm1692_vm11, %v1703_v61, %v1705_v11  ;;  %vm923_vm13 = vcmp.eq.s32.totalorder %v921_v39, 0  ;;  %vm926_vm14 = vcmp.eq.s32.totalorder %v921_v39, 2 }
 0x18c   :  { %v4126_v33 = vmul.u32.u64.low %v1707_v28, %v1706_v25  ;;  %v4127_v4 = vmul.u32.u64.high %v1707_v28, %v1706_v25, %v4126_v33  ;;  %v1611_v31 = vadd.s32 %v4051_v8, %v4059_v48  ;;  %v1769_v29 = vmul.f32 %v826_v58, %v826_v58 }
 0x18d   :  { %vm2269_vm15 = vcmp.lt.s32.totalorder %v2268_v40, 0  ;;  %v1714_v60 = vmul.u32 %v1707_v28, %v1698_v30  ;;  %v1717_v44 = vadd.s32 1, %v4119_v0  ;;  %vm919_vm0 = vweird.f32 %v3833_v53 }
 0x18e   :  { %v1626_v9 = vsel %vm2269_vm15, 0, %v2268_v40  ;;  %vm922_vm1 = vcmp.lt.s32.totalorder %v921_v39, 2  ;;  %vm1716_vm2 = vc.u32 %v4127_v4, %v4118_v38  ;;  %v1792_v53 = vmul.f32 %v4141_v59, %v1769_v29 }
 0x18f   :  { %v2636_v12 = vpop.eup %2635  ;;  %v1627_v21 = vsub.s32 32, %v1626_v9  ;;  %v1628_v3 = vshll.u32 %v1619_v52, %v1626_v9  ;;  %v1631_v57 = vsub.s32 4294967266, %v1626_v9  ;;  %v1718_v46 = vsel %vm1716_vm2, %v1717_v44, %v4119_v0 }
 0x190   :  { %v2638_v22 = vpop.eup %2637  ;;  %v927_v6 = vxor.u32 2147483648, %v2636_v12  ;;  %v1719_v51 = vadd.s32 %v1718_v46, %v1714_v60  ;;  %v1808_v7 = vadd.f32 %v2330_v13, %v1792_v53  ;;  %vm1557_vm3 = vcmp.lt.s32.totalorder %v3915_v63, 0  ;;  %v2427_v13 = vld [vmem:[%s4260_s5 + $0x8] sm:$0xff]  }
 0x191   :  { %v924_v10 = vxor.u32 2147483648, %v2638_v22  ;;  %v1629_v48 = vshrl.u32 %v1611_v31, %v1627_v21  ;;  %v1632_v16 = vadd.s32 127, %v1631_v57  ;;  %vm4166_vm4 = vcmp.le.f32.partialorder %v1555_v17, 0.7853982 }
 0x192   :  { %v928_v8 = vsel %vm926_vm14, %v927_v6, %v2638_v22  ;;  %v1720_v52 = vadd.s32 536870912, %v1719_v51  ;;  %v2354_v11 = vunpack.c.l.bf16 %v2427_v13  ;;  %v2355_v58 = vunpack.c.h.bf16 %v2427_v13 }
 0x193   :  { %v925_v2 = vsel %vm923_vm13, %v2636_v12, %v924_v10  ;;  %v1630_v42 = vor.u32 %v1629_v48, %v1628_v3  ;;  %v1633_v34 = vshll.u32 %v1632_v16, 23  ;;  %v2350_v30 = vunpack.c.l.bf16 %v2349_v18 }
 0x194   :  { %v929_v47 = vsel %vm922_vm1, %v925_v2, %v928_v8  ;;  %v4144_v45 = vshrl.u32 %v1720_v52, 30  ;;  %v2351_v33 = vunpack.c.h.bf16 %v2349_v18  ;;  %v1641_v44 = vsub.s32 4, %v4087_v36 }
 0x195   :  { %v930_v50 = vsel %vm919_vm0, nan, %v929_v47  ;;  %v1634_v5 = vor.u32 4788187, %v1633_v34  ;;  %v1637_v37 = vcvt.s32.f32 %v1630_v42  ;;  %v1715_v21 = vadd.s32 %v4118_v38, %v4127_v4 }
 0x196   :  { %v1770_v23 = vmul.f32 %v930_v50, %v930_v50  ;;  %v1722_v49 = vshll.u32 %v4144_v45, 30  ;;  %vm1661_vm6 = vcmp.lt.s32.totalorder %v4010_v41, 0  ;;  %vm1660_vm7 = vcmp.le.f32.partialorder %v1659_v35, 0.7853982 }
 0x197   :  { %v1635_v43 = vand.u32 2147483647, %v1634_v5  ;;  %vm1647_vm10 = vweird.f32 %v3915_v63  ;;  %vm1751_vm15 = vweird.f32 %v4010_v41 }
 0x198   :  { %v1793_v28 = vmul.f32 %v4141_v59, %v1770_v23  ;;  %v1723_v54 = vsub.s32 %v1719_v51, %v1722_v49  ;;  %v1642_v51 = vsel %vm1557_vm3, %v1641_v44, %v4087_v36  ;;  %v1745_v23 = vsub.s32 4, %v4144_v45 }
 0x199   :  { %v1638_v19 = vmul.f32 %v1637_v37, %v1635_v43  ;;  %v1644_v47 = vsel %vm4166_vm4, 0, %v1642_v51  ;;  %v2429_v51 = vld [vmem:[%s4260_s5 + $0x18] sm:$0xff]  }
 0x19a   :  { %v1809_v24 = vadd.f32 %v2331_v56, %v1793_v28  ;;  %v1725_v1 = vsub.s32 0, %v1723_v54  ;;  %v1648_v52 = vadd.s32 3, %v1644_v47  ;;  %v1746_v49 = vsel %vm1661_vm6, %v1745_v23, %v4144_v45 }
 0x19b   :  { %v1639_v62 = vxor.u32 2147483648, %v1638_v19 }
 0x19c   :  { %v1821_v55 = vpack.c.bf16 %v1809_v24, %v1808_v7  ;;  %v2271_v61 = vmin.u32 %v1725_v1, %v1723_v54  ;;  %v1649_v7 = vand.u32 3, %v1648_v52 }
 0x19d   :  { %v1640_v39 = vsel %vm1557_vm3, %v1639_v62, %v1638_v19  ;;  %v1748_v62 = vsel %vm1660_vm7, 0, %v1746_v49 }
 0x19e   :  { %2478 = vmatmul.mubr.bf16.gmra.mrb[4].mxu0 %v1821_v55  ;;  %v1727_v40 = vclz %v2271_v61  ;;  %v1643_v29 = vsel %vm4166_vm4, %v3915_v63, %v1640_v39  ;;  %vm1651_vm8 = vcmp.eq.s32.totalorder %v1649_v7, 0  ;;  %vm1654_vm9 = vcmp.eq.s32.totalorder %v1649_v7, 2 }
 0x19f   :  { %v2475_v14 = vpop.f32.mrb[0].mxu0  ;;  %2639 = vcosq.f32 %v1643_v29  ;;  %vm1650_vm12 = vcmp.lt.s32.totalorder %v1649_v7, 2  ;;  %v1752_v18 = vadd.s32 3, %v1748_v62  ;;  %v2432_v62 = vld [vmem:[%s4260_s5 + $0x30] sm:$0xff]  }
 0x1a0   :  { %v2063_v32 = vadd.f32 %v2475_v14, %v4156_v15  ;;  %v1940_v0 = vpop.f32.mrb[1].mxu0  ;;  %v2272_v9 = vadd.s32 4294967294, %v1727_v40  ;;  %2641 = vsinq.f32 %v1643_v29  ;;  %v2430_v29 = vld [vmem:[%s4260_s5 + $0x20] sm:$0xff]  }
 0x1a1   :  { %v2476_v25 = vpop.f32.mrb[2].mxu0  ;;  %v2061_v31 = vadd.f32 %v4156_v15, %v1940_v0  ;;  %v1753_v56 = vand.u32 3, %v1752_v18  ;;  %v2366_v26 = vunpack.c.l.bf16 %v2430_v29 }
 0x1a2   :  { %v2064_v17 = vadd.f32 %v2476_v25, %v4156_v15  ;;  %v1943_v12 = vpop.f32.mrb[3].mxu0  ;;  %v2111_v22 = vadd.f32 %v2354_v11, %v2063_v32  ;;  %vm2273_vm5 = vcmp.lt.s32.totalorder %v2272_v9, 0 }
 0x1a3   :  { %v2062_v60 = vadd.f32 %v4156_v15, %v1943_v12  ;;  %v2109_v3 = vadd.f32 %v2350_v30, %v2061_v31  ;;  %v1730_v10 = vsel %vm2273_vm5, 0, %v2272_v9  ;;  %vm1758_vm11 = vcmp.eq.s32.totalorder %v1753_v56, 2 }
 0x1a4   :  { %v2112_v6 = vadd.f32 %v2355_v58, %v2064_v17  ;;  %v1731_v48 = vsub.s32 32, %v1730_v10  ;;  %v1732_v16 = vshll.u32 %v1723_v54, %v1730_v10  ;;  %v1735_v46 = vsub.s32 4294967266, %v1730_v10 }
 0x1a5   :  { %v2110_v57 = vadd.f32 %v2351_v33, %v2062_v60  ;;  %vm1755_vm13 = vcmp.eq.s32.totalorder %v1753_v56, 0  ;;  %vm1754_vm14 = vcmp.lt.s32.totalorder %v1753_v56, 2 }
 0x1a6   :  { %v2388_v8 = vpack.c.bf16 %v2112_v6, %v2111_v22  ;;  %v1733_v38 = vshrl.u32 %v1715_v21, %v1731_v48  ;;  %v1736_v4 = vadd.s32 127, %v1735_v46  ;;  %v2367_v6 = vunpack.c.h.bf16 %v2430_v29 }
 0x1a7   :  { %v2383_v2 = vpack.c.bf16 %v2110_v57, %v2109_v3 }
 0x1a8   :  { %2434 = vst [vmem:[%s4261_s6 + $0x8] sm:$0xff] %v2388_v8   ;;  %v1734_v53 = vor.u32 %v1733_v38, %v1732_v16  ;;  %v1737_v42 = vshll.u32 %v1736_v4, 23  ;;  %v2428_v38 = vld [vmem:[%s4260_s5 + $0x10] sm:$0xff]  }
 0x1a9   :  { %2384 = vst [vmem:[%s4261_s6] sm:$0xff] %v2383_v2   ;;  %v2640_v5 = vpop.eup %2639  ;;  %v2358_v52 = vunpack.c.l.bf16 %v2428_v38  ;;  %v2359_v23 = vunpack.c.h.bf16 %v2428_v38 }
 0x1aa   :  { %v1738_v34 = vor.u32 4788187, %v1737_v42  ;;  %v1741_v50 = vcvt.s32.f32 %v1734_v53  ;;  %v2642_v28 = vpop.eup %2641  ;;  %v1655_v19 = vxor.u32 2147483648, %v2640_v5  ;;  %v2362_v53 = vunpack.c.l.bf16 %v2429_v51 }
 0x1ab   :  { %v1652_v24 = vxor.u32 2147483648, %v2642_v28 }
 0x1ac   :  { %v1739_v36 = vand.u32 2147483647, %v1738_v34  ;;  %v1656_v13 = vsel %vm1654_vm9, %v1655_v19, %v2642_v28  ;;  %v2363_v34 = vunpack.c.h.bf16 %v2429_v51 }
 0x1ad   :  { %v1653_v1 = vsel %vm1651_vm8, %v2640_v5, %v1652_v24 }
 0x1ae   :  { %v1742_v37 = vmul.f32 %v1741_v50, %v1739_v36  ;;  %v1657_v35 = vsel %vm1650_vm12, %v1653_v1, %v1656_v13 }
 0x1af   :  { %v1658_v61 = vsel %vm1647_vm10, nan, %v1657_v35 }
 0x1b0   :  { %v1743_v43 = vxor.u32 2147483648, %v1742_v37  ;;  %v1777_v32 = vmul.f32 %v1658_v61, %v1658_v61 }
 0x1b2   :  { %v1744_v54 = vsel %vm1661_vm6, %v1743_v43, %v1742_v37  ;;  %v1800_v30 = vmul.f32 %v4141_v59, %v1777_v32 }
 0x1b3   :  { %v1747_v55 = vsel %vm1660_vm7, %v4010_v41, %v1744_v54  ;;  %v2431_v41 = vld [vmem:[%s4260_s5 + $0x28] sm:$0xff]  }
 0x1b4   :  { %2643 = vcosq.f32 %v1747_v55  ;;  %v1816_v31 = vadd.f32 %v2346_v27, %v1800_v30  ;;  %v2371_v22 = vunpack.c.h.bf16 %v2431_v41 }
 0x1b5   :  { %2645 = vsinq.f32 %v1747_v55  ;;  %v2433_v55 = vld [vmem:[%s4260_s5 + $0x38] sm:$0xff]  }
 0x1b6   :  { %v2378_v18 = vunpack.c.l.bf16 %v2433_v55  ;;  %v2379_v56 = vunpack.c.h.bf16 %v2433_v55 }
 0x1be   :  { %v2644_v45 = vpop.eup %2643 }
 0x1bf   :  { %v2646_v14 = vpop.eup %2645  ;;  %v1759_v39 = vxor.u32 2147483648, %v2644_v45 }
 0x1c0   :  { %v1756_v11 = vxor.u32 2147483648, %v2646_v14 }
 0x1c1   :  { %v1760_v0 = vsel %vm1758_vm11, %v1759_v39, %v2646_v14  ;;  %v2375_v39 = vunpack.c.h.bf16 %v2432_v62 }
 0x1c2   :  { %v1757_v58 = vsel %vm1755_vm13, %v2644_v45, %v1756_v11  ;;  %v2374_v45 = vunpack.c.l.bf16 %v2432_v62 }
 0x1c3   :  { %v1761_v40 = vsel %vm1754_vm14, %v1757_v58, %v1760_v0 }
 0x1c4   :  { %v1762_v25 = vsel %vm1751_vm15, nan, %v1761_v40 }
 0x1c5   :  { %v1778_v63 = vmul.f32 %v1762_v25, %v1762_v25 }
 0x1c7   :  { %v1801_v33 = vmul.f32 %v4141_v59, %v1778_v63  ;;  %v2370_v59 = vunpack.c.l.bf16 %v2431_v41 }
 0x1c9   :  { %v1817_v17 = vadd.f32 %v2347_v20, %v1801_v33 }
 0x1cb   :  { %v1825_v12 = vpack.c.bf16 %v1817_v17, %v1816_v31 }
 0x1cd   :  { %2486 = vmatmul.mubr.bf16.gmra.mrb[4].mxu1 %v1825_v12 }
 0x1d6   :  { %v2483_v9 = vpop.f32.mrb[0].mxu1 }
 0x1d7   :  { %v2071_v60 = vadd.f32 %v2483_v9, %v4156_v15  ;;  %v1972_v44 = vpop.f32.mrb[1].mxu1 }
 0x1d8   :  { %v2069_v27 = vadd.f32 %v4156_v15, %v1972_v44  ;;  %v2484_v20 = vpop.f32.mrb[2].mxu1 }
 0x1d9   :  { %v2072_v21 = vadd.f32 %v2484_v20, %v4156_v15  ;;  %v1975_v3 = vpop.f32.mrb[3].mxu1  ;;  %v2119_v10 = vadd.f32 %v2370_v59, %v2071_v60 }
 0x1da   :  { %v2070_v57 = vadd.f32 %v4156_v15, %v1975_v3  ;;  %v2117_v48 = vadd.f32 %v2366_v26, %v2069_v27 }
 0x1db   :  { %v2120_v8 = vadd.f32 %v2371_v22, %v2072_v21 }
 0x1dc   :  { %v2118_v16 = vadd.f32 %v2367_v6, %v2070_v57 }
 0x1dd   :  { %v2408_v46 = vpack.c.bf16 %v2120_v8, %v2119_v10 }
 0x1de   :  { %v2403_v2 = vpack.c.bf16 %v2118_v16, %v2117_v48 }
 0x1df   :  { %2438 = vst [vmem:[%s4261_s6 + $0x28] sm:$0xff] %v2408_v46  }
 0x1e0   :  { %2437 = vst [vmem:[%s4261_s6 + $0x20] sm:$0xff] %v2403_v2  }
 0x271   :  { %v2479_v4 = vpop.f32.mrb[4].mxu0 }
 0x272   :  { %v2067_v47 = vadd.f32 %v2479_v4, %v4156_v15  ;;  %v1956_v42 = vpop.f32.mrb[5].mxu0 }
 0x273   :  { %v2065_v50 = vadd.f32 %v4156_v15, %v1956_v42  ;;  %v2480_v36 = vpop.f32.mrb[6].mxu0 }
 0x274   :  { %v2068_v5 = vadd.f32 %v2480_v36, %v4156_v15  ;;  %v1959_v37 = vpop.f32.mrb[7].mxu0  ;;  %v2115_v7 = vadd.f32 %v2362_v53, %v2067_v47 }
 0x275   :  { %v2066_v28 = vadd.f32 %v4156_v15, %v1959_v37  ;;  %v2113_v49 = vadd.f32 %v2358_v52, %v2065_v50 }
 0x276   :  { %v2116_v43 = vadd.f32 %v2363_v34, %v2068_v5 }
 0x277   :  { %v2114_v24 = vadd.f32 %v2359_v23, %v2066_v28 }
 0x278   :  { %v2398_v19 = vpack.c.bf16 %v2116_v43, %v2115_v7 }
 0x279   :  { %v2393_v54 = vpack.c.bf16 %v2114_v24, %v2113_v49 }
 0x27a   :  { %2436 = vst [vmem:[%s4261_s6 + $0x18] sm:$0xff] %v2398_v19  }
 0x27b   :  { %2435 = vst [vmem:[%s4261_s6 + $0x10] sm:$0xff] %v2393_v54  }
 0x2a0   :  { %v2487_v1 = vpop.f32.mrb[4].mxu1 }
 0x2a1   :  { %v2075_v13 = vadd.f32 %v2487_v1, %v4156_v15  ;;  %v1988_v35 = vpop.f32.mrb[5].mxu1 }
 0x2a2   :  { %v2073_v61 = vadd.f32 %v4156_v15, %v1988_v35  ;;  %v2488_v14 = vpop.f32.mrb[6].mxu1 }
 0x2a3   :  { %v2076_v32 = vadd.f32 %v2488_v14, %v4156_v15  ;;  %v1991_v11 = vpop.f32.mrb[7].mxu1  ;;  %v2123_v58 = vadd.f32 %v2378_v18, %v2075_v13 }
 0x2a4   :  { %v2074_v0 = vadd.f32 %v4156_v15, %v1991_v11  ;;  %v2121_v30 = vadd.f32 %v2374_v45, %v2073_v61 }
 0x2a5   :  { %v2124_v40 = vadd.f32 %v2379_v56, %v2076_v32 }
 0x2a6   :  { %v2122_v25 = vadd.f32 %v2375_v39, %v2074_v0 }
 0x2a7   :  { %v2418_v63 = vpack.c.bf16 %v2124_v40, %v2123_v58 }
 0x2a8   :  { %v2413_v33 = vpack.c.bf16 %v2122_v25, %v2121_v30 }
 0x2a9   :  { %2440 = vst [vmem:[%s4261_s6 + $0x38] sm:$0xff] %v2418_v63  }
 0x2aa   :  { %2439 = vst [vmem:[%s4261_s6 + $0x30] sm:$0xff] %v2413_v33  }

// kernel: dac_encoder_forward.23
= control target key start
LH: loop header
LB: loop body
LE: loop exit
PB: predicated region body
PF: predicated region fallthrough
CT: control target
= control target key end

     0   :  { %v1386_v45 = vmov 683565275   ;;  %v1387_v47 = vmov 2475754826   ;;  %v1388_v50 = vmov 2131351028   ;;  %s2214_s1 = inlined_call_operand.vmem [shape: bf16[128,128], index: 1, kind: input, shape index: {}]   ;;  %s2215_s0 = inlined_call_operand.vmem [shape: bf16[64,128], index: 0, kind: input, shape index: {}]   ;;  %s2216_s3 = inlined_call_operand.vmem [shape: f32[1,128], index: 3, kind: input, shape index: {}]   ;;  %s2217_s4 = inlined_call_operand.vmem [shape: f32[1,128], index: 4, kind: input, shape index: {}]   ;;  %s2218_s2 = inlined_call_operand.vmem [shape: f32[1,128], index: 2, kind: input, shape index: {}]   ;;  %s2219_s5 = inlined_call_operand.vmem [shape: bf16[64,128], index: 5, kind: output, shape index: {}]  }
   0x1   :  { %v1345_v0 = vld [vmem:[%s2214_s1] sm:$0xff]   ;;  %v1346_v1 = vld [vmem:[%s2214_s1 + $0x8] sm:$0xff]   ;;  %v1347_v2 = vld [vmem:[%s2214_s1 + $0x10] sm:$0xff]   ;;  %v1389_v52 = vmov 2102212464  }
   0x2   :  { %1267 = vmatprep.subr.bf16.mxu0 %v1345_v0  ;;  %1291 = vmatprep.subr.bf16.mxu1 %v1345_v0  ;;  %v1348_v3 = vld [vmem:[%s2214_s1 + $0x18] sm:$0xff]   ;;  %v1437_v4 = vld [vmem:[%s2215_s0] sm:$0xff]   ;;  %v1447_v6 = vld [vmem:[%s2215_s0 + $0x10] sm:$0xff]   ;;  %v1390_v54 = vmov 920167782  }
   0x3   :  { %1268 = vmatpush3.bf16.msra.mxu0 %v1345_v0  ;;  %1299 = vmatpush3.bf16.msra.mxu1 %v1345_v0  ;;  %v1442_v5 = vld [vmem:[%s2216_s3] ss:$0 sm:$0xff]  ;;  %v1215_v7 = vunpack.c.l.bf16 %v1437_v4  ;;  %v1216_v8 = vunpack.c.h.bf16 %v1437_v4  ;;  %v1223_v9 = vunpack.c.l.bf16 %v1447_v6  ;;  %v1350_v18 = vld [vmem:[%s2214_s1 + $0x28] sm:$0xff]   ;;  %v1224_v28 = vunpack.c.h.bf16 %v1447_v6  ;;  %v1351_v29 = vld [vmem:[%s2214_s1 + $0x30] sm:$0xff]  }
   0x4   :  { %1269 = vmatprep.subr.bf16.mxu0 %v1346_v1  ;;  %1292 = vmatprep.subr.bf16.mxu1 %v1346_v1  ;;  %v1349_v12 = vld [vmem:[%s2214_s1 + $0x20] sm:$0xff]   ;;  %v1352_v39 = vld [vmem:[%s2214_s1 + $0x38] sm:$0xff]   ;;  %v1391_v62 = vmov 1326507024  }
   0x5   :  { %v1455_v10 = vmul.f32 %v1215_v7, %v1442_v5  ;;  %v1460_v11 = vmul.f32 %v1216_v8, %v1442_v5  ;;  %v1468_v13 = vmul.f32 %v1223_v9, %v1442_v5  ;;  %v1491_v38 = vmul.f32 %v1224_v28, %v1442_v5 }
   0x7   :  { %1270 = vmatpush3.bf16.msra.mxu0 %v1346_v1  ;;  %1300 = vmatpush3.bf16.msra.mxu1 %v1346_v1  ;;  %v64_v14 = vand.u32 2147483647, %v1455_v10  ;;  %v67_v15 = vand.u32 2139095040, %v1455_v10  ;;  %v168_v16 = vand.u32 2147483647, %v1460_v11  ;;  %v171_v17 = vand.u32 2139095040, %v1460_v11 }
   0x8   :  { %1271 = vmatprep.subr.bf16.mxu0 %v1347_v2  ;;  %1293 = vmatprep.subr.bf16.mxu1 %v1347_v2  ;;  %v483_v23 = vand.u32 2139095040, %v1468_v13  ;;  %v480_v42 = vand.u32 2147483647, %v1468_v13  ;;  %vm66_vm14 = vcmp.lt.s32.totalorder %v1455_v10, 0 }
   0x9   :  { %v68_v19 = vshrl.u32 %v67_v15, 23  ;;  %v71_v20 = vand.u32 8388607, %v64_v14  ;;  %v172_v21 = vshrl.u32 %v171_v17, 23  ;;  %v175_v22 = vand.u32 8388607, %v168_v16 }
   0xa   :  { %v484_v26 = vshrl.u32 %v483_v23, 23 }
   0xb   :  { %1272 = vmatpush3.bf16.msra.mxu0 %v1347_v2  ;;  %1301 = vmatpush3.bf16.msra.mxu1 %v1347_v2  ;;  %v1155_v24 = vadd.s32 4294967169, %v68_v19  ;;  %v1159_v25 = vadd.s32 4294967169, %v172_v21  ;;  %v72_v30 = vor.u32 8388608, %v71_v20  ;;  %v176_v31 = vor.u32 8388608, %v175_v22 }
   0xc   :  { %1273 = vmatprep.subr.bf16.mxu0 %v1348_v3  ;;  %1294 = vmatprep.subr.bf16.mxu1 %v1348_v3  ;;  %v1171_v33 = vadd.s32 4294967169, %v484_v26 }
   0xd   :  { %v74_v27 = vadd.s32 1, %v1155_v24  ;;  %v178_v32 = vadd.s32 1, %v1159_v25  ;;  %v1496_v40 = vshll.u32 %v72_v30, 8  ;;  %v1498_v41 = vshll.u32 %v176_v31, 8 }
   0xe   :  { %v1501_v43 = vadd.s32 1, %v1171_v33 }
   0xf   :  { %1274 = vmatpush3.bf16.msra.mxu0 %v1348_v3  ;;  %1302 = vmatpush3.bf16.msra.mxu1 %v1348_v3  ;;  %vm75_vm0 = vcmp.gt.s32.totalorder %v74_v27, 0  ;;  %vm179_vm1 = vcmp.gt.s32.totalorder %v178_v32, 0 }
  0x10   :  { %1275 = vmatprep.subr.bf16.mxu0 %v1349_v12  ;;  %1295 = vmatprep.subr.bf16.mxu1 %v1349_v12  ;;  %v76_v34 = vsel %vm75_vm0, %v74_v27, 0  ;;  %v180_v37 = vsel %vm179_vm1, %v178_v32, 0  ;;  %vm491_vm6 = vcmp.gt.s32.totalorder %v1501_v43, 0 }
  0x11   :  { %v1486_v35 = vshrl.u32 %v76_v34, 5  ;;  %v78_v36 = vand.u32 31, %v76_v34  ;;  %v182_v49 = vand.u32 31, %v180_v37  ;;  %v1508_v56 = vshrl.u32 %v180_v37, 5 }
  0x13   :  { %1276 = vmatpush3.bf16.msra.mxu0 %v1349_v12  ;;  %1303 = vmatpush3.bf16.msra.mxu1 %v1349_v12  ;;  %v79_v44 = vsub.s32 32, %v78_v36  ;;  %v81_v46 = vshll.u32 %v1386_v45, %v78_v36  ;;  %v84_v48 = vshll.u32 %v1387_v47, %v78_v36  ;;  %v87_v51 = vshll.u32 %v1388_v50, %v78_v36 }
  0x14   :  { %1277 = vmatprep.subr.bf16.mxu0 %v1350_v18  ;;  %1296 = vmatprep.subr.bf16.mxu1 %v1350_v18  ;;  %v90_v53 = vshll.u32 %v1389_v52, %v78_v36  ;;  %v93_v55 = vshll.u32 %v1390_v54, %v78_v36  ;;  %vm96_vm2 = vcmp.lt.s32.totalorder %v1486_v35, 1  ;;  %vm98_vm3 = vcmp.lt.s32.totalorder %v1486_v35, 3 }
  0x15   :  { %v80_v57 = vshrl.u32 %v1386_v45, %v79_v44  ;;  %v82_v58 = vshrl.u32 %v1387_v47, %v79_v44  ;;  %v85_v59 = vshrl.u32 %v1388_v50, %v79_v44  ;;  %v88_v60 = vshrl.u32 %v1389_v52, %v79_v44 }
  0x16   :  { %v91_v61 = vshrl.u32 %v1390_v54, %v79_v44  ;;  %v94_v63 = vshrl.u32 %v1391_v62, %v79_v44  ;;  %vm99_vm4 = vcmp.lt.s32.totalorder %v1486_v35, 4  ;;  %v183_v2 = vsub.s32 32, %v182_v49 }
  0x17   :  { %1278 = vmatpush3.bf16.msra.mxu0 %v1350_v18  ;;  %1304 = vmatpush3.bf16.msra.mxu1 %v1350_v18  ;;  %v83_v0 = vor.u32 %v82_v58, %v81_v46  ;;  %v86_v1 = vor.u32 %v85_v59, %v84_v48  ;;  %v89_v3 = vor.u32 %v88_v60, %v87_v51  ;;  %vm97_vm5 = vcmp.lt.s32.totalorder %v1486_v35, 2 }
  0x18   :  { %1279 = vmatprep.subr.bf16.mxu0 %v1351_v29  ;;  %1297 = vmatprep.subr.bf16.mxu1 %v1351_v29  ;;  %v92_v12 = vor.u32 %v91_v61, %v90_v53  ;;  %v95_v15 = vor.u32 %v94_v63, %v93_v55  ;;  %v185_v17 = vshll.u32 %v1386_v45, %v182_v49  ;;  %vm200_vm7 = vcmp.lt.s32.totalorder %v1508_v56, 1 }
  0x19   :  { %v100_v18 = vsel %vm96_vm2, %v80_v57, %v83_v0  ;;  %v104_v19 = vsel %vm96_vm2, %v83_v0, %v86_v1  ;;  %v188_v20 = vshll.u32 %v1387_v47, %v182_v49  ;;  %v101_v21 = vsel %vm99_vm4, %v89_v3, 2102212464 }
  0x1a   :  { %v105_v22 = vsel %vm99_vm4, %v92_v12, 920167782  ;;  %v108_v23 = vsel %vm96_vm2, %v86_v1, %v89_v3  ;;  %v109_v24 = vsel %vm99_vm4, %v95_v15, 1326507024  ;;  %v102_v25 = vsel %vm98_vm3, %v86_v1, %v101_v21 }
  0x1b   :  { %1280 = vmatpush3.bf16.msra.mxu0 %v1351_v29  ;;  %1305 = vmatpush3.bf16.msra.mxu1 %v1351_v29  ;;  %v106_v26 = vsel %vm98_vm3, %v89_v3, %v105_v22  ;;  %v110_v27 = vsel %vm98_vm3, %v92_v12, %v109_v24  ;;  %v186_v29 = vshrl.u32 %v1387_v47, %v183_v2  ;;  %vm201_vm8 = vcmp.lt.s32.totalorder %v1508_v56, 2 }
  0x1c   :  { %1281 = vmatprep.subr.bf16.mxu0 %v1352_v39  ;;  %1298 = vmatprep.subr.bf16.mxu1 %v1352_v39  ;;  %v103_v30 = vsel %vm97_vm5, %v100_v18, %v102_v25  ;;  %v107_v31 = vsel %vm97_vm5, %v104_v19, %v106_v26  ;;  %v111_v32 = vsel %vm97_vm5, %v108_v23, %v110_v27  ;;  %vm203_vm10 = vcmp.lt.s32.totalorder %v1508_v56, 4 }
  0x1d   :  { %v189_v33 = vshrl.u32 %v1388_v50, %v183_v2  ;;  %v1538_v34 = vmul.u32.u64.low %v1496_v40, %v111_v32  ;;  %v1539_v36 = vmul.u32.u64.high %v1496_v40, %v111_v32, %v1538_v34  ;;  %v184_v44 = vshrl.u32 %v1386_v45, %v183_v2 }
  0x1e   :  { %v187_v35 = vor.u32 %v186_v29, %v185_v17  ;;  %v191_v48 = vshll.u32 %v1388_v50, %v182_v49  ;;  %v192_v51 = vshrl.u32 %v1389_v52, %v183_v2  ;;  %v194_v53 = vshll.u32 %v1389_v52, %v182_v49 }
  0x1f   :  { %1282 = vmatpush3.bf16.msra.mxu0 %v1352_v39  ;;  %1306 = vmatpush3.bf16.msra.mxu1 %v1352_v39  ;;  %v1542_v37 = vmul.u32.u64.low %v1496_v40, %v107_v31  ;;  %v1543_v39 = vmul.u32.u64.high %v1496_v40, %v107_v31, %v1542_v37  ;;  %v190_v46 = vor.u32 %v189_v33, %v188_v20  ;;  %v195_v55 = vshrl.u32 %v1390_v54, %v183_v2 }
  0x20   :  { %v197_v57 = vshll.u32 %v1390_v54, %v182_v49  ;;  %v119_v58 = vmul.u32 %v1496_v40, %v103_v30  ;;  %v198_v59 = vshrl.u32 %v1391_v62, %v183_v2  ;;  %v193_v61 = vor.u32 %v192_v51, %v191_v48 }
  0x21   :  { %vm121_vm9 = vc.u32 %v1539_v36, %v1542_v37  ;;  %v122_v60 = vadd.s32 1, %v1543_v39  ;;  %v196_v63 = vor.u32 %v195_v55, %v194_v53  ;;  %vm202_vm11 = vcmp.lt.s32.totalorder %v1508_v56, 3 }
  0x22   :  { %v199_v0 = vor.u32 %v198_v59, %v197_v57  ;;  %v204_v49 = vsel %vm200_vm7, %v184_v44, %v187_v35  ;;  %v205_v1 = vsel %vm203_vm10, %v193_v61, 2102212464  ;;  %v208_v2 = vsel %vm200_vm7, %v187_v35, %v190_v46 }
  0x23   :  { %v123_v40 = vsel %vm121_vm9, %v122_v60, %v1543_v39  ;;  %v212_v3 = vsel %vm200_vm7, %v190_v46, %v193_v61  ;;  %v206_v15 = vsel %vm202_vm11, %v190_v46, %v205_v1  ;;  %v209_v17 = vsel %vm203_vm10, %v196_v63, 920167782 }
  0x24   :  { %v124_v12 = vadd.s32 %v123_v40, %v119_v58  ;;  %v213_v18 = vsel %vm203_vm10, %v199_v0, 1326507024  ;;  %v210_v19 = vsel %vm202_vm11, %v193_v61, %v209_v17  ;;  %v487_v21 = vand.u32 8388607, %v480_v42 }
  0x25   :  { %v214_v20 = vsel %vm202_vm11, %v196_v63, %v213_v18  ;;  %v492_v22 = vsel %vm491_vm6, %v1501_v43, 0  ;;  %v207_v24 = vsel %vm201_vm8, %v204_v49, %v206_v15  ;;  %v211_v25 = vsel %vm201_vm8, %v208_v2, %v210_v19 }
  0x26   :  { %v125_v23 = vadd.s32 536870912, %v124_v12  ;;  %v215_v26 = vsel %vm201_vm8, %v212_v3, %v214_v20  ;;  %v1578_v30 = vmul.u32.u64.low %v1498_v41, %v211_v25  ;;  %v1579_v31 = vmul.u32.u64.high %v1498_v41, %v211_v25, %v1578_v30 }
  0x27   :  { %v1574_v27 = vmul.u32.u64.low %v1498_v41, %v215_v26  ;;  %v1575_v29 = vmul.u32.u64.high %v1498_v41, %v215_v26, %v1574_v27  ;;  %v494_v32 = vand.u32 31, %v492_v22  ;;  %v488_v33 = vor.u32 8388608, %v487_v21 }
  0x28   :  { %v1582_v43 = vshrl.u32 %v125_v23, 30  ;;  %v223_v39 = vmul.u32 %v1498_v41, %v207_v24  ;;  %v587_v56 = vand.u32 2139095040, %v1491_v38  ;;  %v226_v35 = vadd.s32 1, %v1579_v31 }
  0x29   :  { %v495_v44 = vsub.s32 32, %v494_v32  ;;  %vm225_vm12 = vc.u32 %v1575_v29, %v1578_v30  ;;  %v1590_v46 = vshrl.u32 %v492_v22, 5  ;;  %v497_v51 = vshll.u32 %v1386_v45, %v494_v32 }
  0x2a   :  { %v127_v34 = vshll.u32 %v1582_v43, 30  ;;  %v227_v55 = vsel %vm225_vm12, %v226_v35, %v1579_v31  ;;  %v500_v41 = vshll.u32 %v1387_v47, %v494_v32  ;;  %v503_v58 = vshll.u32 %v1388_v50, %v494_v32 }
  0x2b   :  { %v498_v53 = vshrl.u32 %v1387_v47, %v495_v44  ;;  %v501_v57 = vshrl.u32 %v1388_v50, %v495_v44  ;;  %v228_v60 = vadd.s32 %v227_v55, %v223_v39  ;;  %v1601_v61 = vshll.u32 %v488_v33, 8 }
  0x2c   :  { %v1592_v48 = vsub.s32 %v124_v12, %v127_v34  ;;  %v588_v63 = vshrl.u32 %v587_v56, 23  ;;  %v504_v0 = vshrl.u32 %v1389_v52, %v495_v44  ;;  %v506_v49 = vshll.u32 %v1389_v52, %v494_v32 }
  0x2d   :  { %v507_v40 = vshrl.u32 %v1390_v54, %v495_v44  ;;  %vm515_vm13 = vcmp.lt.s32.totalorder %v1590_v46, 4  ;;  %v229_v2 = vadd.s32 536870912, %v228_v60  ;;  %v499_v3 = vor.u32 %v498_v53, %v497_v51 }
  0x2e   :  { %v130_v59 = vsub.s32 0, %v1592_v48  ;;  %v509_v12 = vshll.u32 %v1390_v54, %v494_v32  ;;  %v502_v15 = vor.u32 %v501_v57, %v500_v41  ;;  %v505_v17 = vor.u32 %v504_v0, %v503_v58 }
  0x2f   :  { %v508_v18 = vor.u32 %v507_v40, %v506_v49  ;;  %v510_v19 = vshrl.u32 %v1391_v62, %v495_v44  ;;  %v496_v21 = vshrl.u32 %v1386_v45, %v495_v44  ;;  %vm512_vm15 = vcmp.lt.s32.totalorder %v1590_v46, 1 }
  0x30   :  { %v1156_v1 = vmin.u32 %v130_v59, %v1592_v48  ;;  %vm514_vm0 = vcmp.lt.s32.totalorder %v1590_v46, 3  ;;  %v120_v22 = vadd.s32 %v1542_v37, %v1539_v36  ;;  %v1616_v23 = vshrl.u32 %v229_v2, 30 }
  0x31   :  { %v511_v24 = vor.u32 %v510_v19, %v509_v12  ;;  %vm513_vm1 = vcmp.lt.s32.totalorder %v1590_v46, 2  ;;  %vm1621_vm2 = vcmp.le.f32.partialorder %v64_v14, 0.7853982  ;;  %v517_v27 = vsel %vm515_vm13, %v505_v17, 2102212464 }
  0x32   :  { %v132_v20 = vclz %v1156_v1  ;;  %v521_v31 = vsel %vm515_vm13, %v508_v18, 920167782  ;;  %v1175_v32 = vadd.s32 4294967169, %v588_v63  ;;  %v150_v36 = vsub.s32 4, %v1582_v43 }
  0x33   :  { %v231_v37 = vshll.u32 %v1616_v23, 30  ;;  %v520_v33 = vsel %vm512_vm15, %v499_v3, %v502_v15  ;;  %v522_v14 = vsel %vm514_vm0, %v505_v17, %v521_v31  ;;  %v516_v34 = vsel %vm512_vm15, %v496_v21, %v499_v3 }
  0x34   :  { %v1157_v26 = vadd.s32 4294967294, %v132_v20  ;;  %v524_v39 = vsel %vm512_vm15, %v502_v15, %v505_v17  ;;  %v525_v44 = vsel %vm515_vm13, %v511_v24, 1326507024  ;;  %v518_v51 = vsel %vm514_vm0, %v502_v15, %v517_v27 }
  0x35   :  { %v1641_v35 = vsub.s32 %v228_v60, %v231_v37  ;;  %v526_v53 = vsel %vm514_vm0, %v508_v18, %v525_v44  ;;  %v523_v58 = vsel %vm513_vm1, %v520_v33, %v522_v14  ;;  %v151_v59 = vsel %vm66_vm14, %v150_v36, %v1582_v43 }
  0x36   :  { %vm1158_vm3 = vcmp.lt.s32.totalorder %v1157_v26, 0  ;;  %v527_v63 = vsel %vm513_vm1, %v524_v39, %v526_v53  ;;  %v594_v0 = vadd.s32 1, %v1175_v32  ;;  %v519_v43 = vsel %vm513_vm1, %v516_v34, %v518_v51 }
  0x37   :  { %v135_v56 = vsel %vm1158_vm3, 0, %v1157_v26  ;;  %v234_v60 = vsub.s32 0, %v1641_v35  ;;  %v1657_v1 = vmul.u32.u64.low %v1601_v61, %v527_v63  ;;  %v1658_v2 = vmul.u32.u64.high %v1601_v61, %v527_v63, %v1657_v1 }
  0x38   :  { %v136_v55 = vsub.s32 32, %v135_v56  ;;  %v137_v41 = vshll.u32 %v1592_v48, %v135_v56  ;;  %v140_v57 = vsub.s32 4294967266, %v135_v56  ;;  %v1663_v48 = vld [vmem:[%s2215_s0 + $0x8] sm:$0xff]   ;;  %v584_v19 = vand.u32 2147483647, %v1491_v38 }
  0x39   :  { %v1160_v3 = vmin.u32 %v234_v60, %v1641_v35  ;;  %v1669_v12 = vmul.u32.u64.low %v1601_v61, %v523_v58  ;;  %v1670_v15 = vmul.u32.u64.high %v1601_v61, %v523_v58, %v1669_v12  ;;  %vm595_vm4 = vcmp.gt.s32.totalorder %v594_v0, 0 }
  0x3a   :  { %v138_v49 = vshrl.u32 %v120_v22, %v136_v55  ;;  %v141_v40 = vadd.s32 127, %v140_v57  ;;  %v153_v20 = vsel %vm1621_vm2, 0, %v151_v59  ;;  %v254_v22 = vsub.s32 4, %v1616_v23 }
  0x3b   :  { %v236_v21 = vclz %v1160_v3  ;;  %v1219_v24 = vunpack.c.l.bf16 %v1663_v48  ;;  %v535_v27 = vmul.u32 %v1601_v61, %v519_v43  ;;  %vm537_vm5 = vc.u32 %v1658_v2, %v1669_v12 }
  0x3c   :  { %v139_v17 = vor.u32 %v138_v49, %v137_v41  ;;  %v142_v18 = vshll.u32 %v141_v40, 23  ;;  %v538_v32 = vadd.s32 1, %v1670_v15  ;;  %v596_v36 = vsel %vm595_vm4, %v594_v0, 0 }
  0x3d   :  { %v1161_v31 = vadd.s32 4294967294, %v236_v21  ;;  %v1220_v37 = vunpack.c.h.bf16 %v1663_v48  ;;  %vm170_vm6 = vcmp.lt.s32.totalorder %v1460_v11, 0  ;;  %v591_v14 = vand.u32 8388607, %v584_v19 }
  0x3e   :  { %v143_v46 = vor.u32 4788187, %v142_v18  ;;  %v146_v26 = vcvt.s32.f32 %v139_v17  ;;  %v598_v34 = vand.u32 31, %v596_v36  ;;  %v157_v39 = vadd.s32 3, %v153_v20 }
  0x3f   :  { %v224_v61 = vadd.s32 %v1578_v30, %v1575_v29  ;;  %vm1162_vm7 = vcmp.lt.s32.totalorder %v1161_v31, 0  ;;  %v539_v44 = vsel %vm537_vm5, %v538_v32, %v1670_v15  ;;  %v255_v53 = vsel %vm170_vm6, %v254_v22, %v1616_v23 }
  0x40   :  { %v144_v33 = vand.u32 2147483647, %v143_v46  ;;  %v239_v51 = vsel %vm1162_vm7, 0, %v1161_v31  ;;  %v540_v55 = vadd.s32 %v539_v44, %v535_v27  ;;  %v599_v59 = vsub.s32 32, %v598_v34 }
  0x41   :  { %v240_v41 = vsub.s32 32, %v239_v51  ;;  %v241_v57 = vshll.u32 %v1641_v35, %v239_v51  ;;  %v244_v58 = vsub.s32 4294967266, %v239_v51  ;;  %vm1695_vm8 = vcmp.le.f32.partialorder %v168_v16, 0.7853982 }
  0x42   :  { %v147_v56 = vmul.f32 %v146_v26, %v144_v33  ;;  %v541_v30 = vadd.s32 536870912, %v540_v55  ;;  %v592_v63 = vor.u32 8388608, %v591_v14  ;;  %v1699_v0 = vand.u32 3, %v157_v39 }
  0x43   :  { %v242_v49 = vshrl.u32 %v224_v61, %v240_v41  ;;  %v245_v40 = vadd.s32 127, %v244_v58  ;;  %v257_v23 = vsel %vm1695_vm8, 0, %v255_v53  ;;  %v1707_v3 = vshrl.u32 %v596_v36, 5 }
  0x44   :  { %v148_v60 = vxor.u32 2147483648, %v147_v56  ;;  %v1705_v1 = vshrl.u32 %v541_v30, 30  ;;  %v601_v16 = vshll.u32 %v1386_v45, %v598_v34  ;;  %v602_v18 = vshrl.u32 %v1387_v47, %v599_v59 }
  0x45   :  { %v243_v15 = vor.u32 %v242_v49, %v241_v57  ;;  %v246_v17 = vshll.u32 %v245_v40, 23  ;;  %v604_v21 = vshll.u32 %v1387_v47, %v598_v34  ;;  %v605_v22 = vshrl.u32 %v1388_v50, %v599_v59 }
  0x46   :  { %v149_v35 = vsel %vm66_vm14, %v148_v60, %v147_v56  ;;  %v543_v20 = vshll.u32 %v1705_v1, 30  ;;  %v610_v27 = vshll.u32 %v1389_v52, %v598_v34  ;;  %vm163_vm9 = vcmp.eq.s32.totalorder %v1699_v0, 2 }
  0x47   :  { %v152_v43 = vsel %vm1621_vm2, %v1455_v10, %v149_v35  ;;  %v247_v46 = vor.u32 4788187, %v246_v17  ;;  %v250_v26 = vcvt.s32.f32 %v243_v15  ;;  %v607_v31 = vshll.u32 %v1388_v50, %v598_v34 }
  0x48   :  { %1353 = vcosq.f32 %v152_v43  ;;  %v1719_v25 = vsub.s32 %v540_v55, %v543_v20  ;;  %v608_v32 = vshrl.u32 %v1389_v52, %v599_v59  ;;  %v611_v36 = vshrl.u32 %v1390_v54, %v599_v59 }
  0x49   :  { %1355 = vsinq.f32 %v152_v43  ;;  %vm160_vm10 = vcmp.eq.s32.totalorder %v1699_v0, 0  ;;  %v248_v33 = vand.u32 2147483647, %v247_v46  ;;  %v261_v14 = vadd.s32 3, %v257_v23 }
  0x4a   :  { %v613_v39 = vshll.u32 %v1390_v54, %v598_v34  ;;  %v614_v61 = vshrl.u32 %v1391_v62, %v599_v59  ;;  %vm159_vm11 = vcmp.lt.s32.totalorder %v1699_v0, 2  ;;  %v536_v44 = vadd.s32 %v1669_v12, %v1658_v2 }
  0x4b   :  { %v546_v56 = vsub.s32 0, %v1719_v25  ;;  %v612_v51 = vor.u32 %v611_v36, %v610_v27  ;;  %v1731_v53 = vshll.u32 %v592_v63, 8  ;;  %v251_v55 = vmul.f32 %v250_v26, %v248_v33 }
  0x4c   :  { %v600_v41 = vshrl.u32 %v1386_v45, %v599_v59  ;;  %v603_v57 = vor.u32 %v602_v18, %v601_v16  ;;  %v606_v58 = vor.u32 %v605_v22, %v604_v21  ;;  %v609_v34 = vor.u32 %v608_v32, %v607_v31 }
  0x4d   :  { %v1172_v60 = vmin.u32 %v546_v56, %v1719_v25  ;;  %vm616_vm12 = vcmp.lt.s32.totalorder %v1707_v3, 1  ;;  %vm619_vm13 = vcmp.lt.s32.totalorder %v1707_v3, 4  ;;  %vm156_vm14 = vweird.f32 %v1455_v10 }
  0x4e   :  { %v252_v2 = vxor.u32 2147483648, %v251_v55  ;;  %vm482_vm15 = vcmp.lt.s32.totalorder %v1468_v13, 0  ;;  %v615_v12 = vor.u32 %v614_v61, %v613_v39  ;;  %vm618_vm0 = vcmp.lt.s32.totalorder %v1707_v3, 3  ;;  %v1779_v39 = vld [vmem:[%s2215_s0 + $0x18] sm:$0xff]  }
  0x4f   :  { %v625_v59 = vsel %vm619_vm13, %v612_v51, 920167782  ;;  %v548_v30 = vclz %v1172_v60  ;;  %v566_v63 = vsub.s32 4, %v1705_v1  ;;  %v621_v49 = vsel %vm619_vm13, %v609_v34, 2102212464 }
  0x50   :  { %v1748_v40 = vmul.f32 %v1219_v24, %v1442_v5  ;;  %v253_v23 = vsel %vm170_vm6, %v252_v2, %v251_v55  ;;  %vm617_vm1 = vcmp.lt.s32.totalorder %v1707_v3, 2  ;;  %v620_v35 = vsel %vm616_vm12, %v600_v41, %v603_v57 }
  0x51   :  { %v624_v16 = vsel %vm616_vm12, %v603_v57, %v606_v58  ;;  %v256_v15 = vsel %vm1695_vm8, %v1460_v11, %v253_v23  ;;  %v1173_v17 = vadd.s32 4294967294, %v548_v30  ;;  %v626_v18 = vsel %vm618_vm0, %v609_v34, %v625_v59 }
  0x52   :  { %v1354_v43 = vpop.eup %1353  ;;  %v628_v20 = vsel %vm616_vm12, %v606_v58, %v609_v34  ;;  %1357 = vcosq.f32 %v256_v15  ;;  %v622_v46 = vsel %vm618_vm0, %v606_v58, %v621_v49  ;;  %v629_v26 = vsel %vm619_vm13, %v615_v12, 1326507024 }
  0x53   :  { %v1356_v21 = vpop.eup %1355  ;;  %v164_v22 = vxor.u32 2147483648, %v1354_v43  ;;  %1359 = vsinq.f32 %v256_v15  ;;  %vm1174_vm2 = vcmp.lt.s32.totalorder %v1173_v17, 0  ;;  %v630_v29 = vsel %vm618_vm0, %v612_v51, %v629_v26  ;;  %v1819_v15 = vld [vmem:[%s2217_s4] ss:$0 sm:$0xff] }
  0x54   :  { %v161_v27 = vxor.u32 2147483648, %v1356_v21  ;;  %v551_v32 = vsel %vm1174_vm2, 0, %v1173_v17  ;;  %v627_v36 = vsel %vm617_vm1, %v624_v16, %v626_v18  ;;  %v631_v33 = vsel %vm617_vm1, %v628_v20, %v630_v29 }
  0x55   :  { %v165_v31 = vsel %vm163_vm9, %v164_v22, %v1356_v21  ;;  %v552_v56 = vsub.s32 32, %v551_v32  ;;  %v553_v51 = vshll.u32 %v1719_v25, %v551_v32  ;;  %v556_v55 = vsub.s32 4294967266, %v551_v32 }
  0x56   :  { %v162_v61 = vsel %vm160_vm10, %v1354_v43, %v161_v27  ;;  %v262_v57 = vand.u32 3, %v261_v14  ;;  %v1787_v58 = vmul.u32.u64.low %v1731_v53, %v631_v33  ;;  %v1788_v60 = vmul.u32.u64.high %v1731_v53, %v631_v33, %v1787_v58 }
  0x57   :  { %v166_v41 = vsel %vm159_vm11, %v162_v61, %v165_v31  ;;  %v554_v34 = vshrl.u32 %v536_v44, %v552_v56  ;;  %v557_v2 = vadd.s32 127, %v556_v55  ;;  %v567_v12 = vsel %vm482_vm15, %v566_v63, %v1705_v1 }
  0x58   :  { %v1227_v59 = vunpack.c.l.bf16 %v1779_v39  ;;  %v623_v25 = vsel %vm617_vm1, %v620_v35, %v622_v46  ;;  %v1797_v30 = vmul.u32.u64.low %v1731_v53, %v627_v36  ;;  %v1798_v0 = vmul.u32.u64.high %v1731_v53, %v627_v36, %v1797_v30 }
  0x59   :  { %v275_v14 = vand.u32 2139095040, %v1748_v40  ;;  %v167_v44 = vsel %vm156_vm14, nan, %v166_v41  ;;  %vm1806_vm3 = vcmp.le.f32.partialorder %v480_v42, 0.7853982  ;;  %v555_v1 = vor.u32 %v554_v34, %v553_v51 }
  0x5a   :  { %v558_v63 = vshll.u32 %v557_v2, 23  ;;  %vm260_vm4 = vweird.f32 %v1460_v11  ;;  %vm267_vm5 = vcmp.eq.s32.totalorder %v262_v57, 2  ;;  %v569_v3 = vsel %vm1806_vm3, 0, %v567_v12 }
  0x5b   :  { %v276_v23 = vshrl.u32 %v275_v14, 23  ;;  %v562_v16 = vcvt.s32.f32 %v555_v1  ;;  %v639_v10 = vmul.u32 %v1731_v53, %v623_v25  ;;  %vm641_vm6 = vc.u32 %v1788_v60, %v1797_v30 }
  0x5c   :  { %v559_v35 = vor.u32 4788187, %v558_v63  ;;  %v1358_v42 = vpop.eup %1357  ;;  %v896_v43 = vmul.f32 %v167_v44, %v167_v44  ;;  %v642_v17 = vadd.s32 1, %v1798_v0  ;;  %v272_v18 = vand.u32 2147483647, %v1748_v40 }
  0x5d   :  { %v1163_v20 = vadd.s32 4294967169, %v276_v23  ;;  %v1360_v21 = vpop.eup %1359  ;;  %vm263_vm7 = vcmp.lt.s32.totalorder %v262_v57, 2  ;;  %vm264_vm8 = vcmp.eq.s32.totalorder %v262_v57, 0  ;;  %v268_v22 = vxor.u32 2147483648, %v1358_v42 }
  0x5e   :  { %v560_v53 = vand.u32 2147483647, %v559_v35  ;;  %v265_v46 = vxor.u32 2147483648, %v1360_v21  ;;  %v643_v26 = vsel %vm641_vm6, %v642_v17, %v1798_v0  ;;  %v1827_v27 = vmul.f32 %v1220_v37, %v1442_v5 }
  0x5f   :  { %v282_v29 = vadd.s32 1, %v1163_v20  ;;  %v269_v31 = vsel %vm267_vm5, %v268_v22, %v1360_v21  ;;  %v573_v36 = vadd.s32 3, %v569_v3  ;;  %v644_v33 = vadd.s32 %v643_v26, %v639_v10 }
  0x60   :  { %v563_v32 = vmul.f32 %v562_v16, %v560_v53  ;;  %v266_v61 = vsel %vm264_vm8, %v1358_v42, %v265_v46  ;;  %v911_v56 = vmul.f32 %v1819_v15, %v896_v43  ;;  %v279_v51 = vand.u32 8388607, %v272_v18 }
  0x61   :  { %vm283_vm9 = vcmp.gt.s32.totalorder %v282_v29, 0  ;;  %v270_v55 = vsel %vm263_vm7, %v266_v61, %v269_v31  ;;  %v645_v58 = vadd.s32 536870912, %v644_v33  ;;  %v1841_v44 = vmul.f32 %v1227_v59, %v1442_v5 }
  0x62   :  { %v564_v41 = vxor.u32 2147483648, %v563_v32  ;;  %v284_v34 = vsel %vm283_vm9, %v282_v29, 0  ;;  %v271_v2 = vsel %vm260_vm4, nan, %v270_v55  ;;  %v1846_v1 = vand.u32 3, %v573_v36 }
  0x63   :  { %v286_v12 = vand.u32 31, %v284_v34  ;;  %v897_v25 = vmul.f32 %v271_v2, %v271_v2  ;;  %v646_v14 = vshrl.u32 %v645_v58, 30  ;;  %v379_v11 = vand.u32 2139095040, %v1827_v27 }
  0x64   :  { %v565_v0 = vsel %vm482_vm15, %v564_v41, %v563_v32  ;;  %v919_v23 = vadd.f32 %v1215_v7, %v911_v56  ;;  %vm586_vm10 = vcmp.lt.s32.totalorder %v1491_v38, 0  ;;  %v280_v16 = vor.u32 8388608, %v279_v51 }
  0x65   :  { %v568_v57 = vsel %vm1806_vm3, %v1468_v13, %v565_v0  ;;  %v287_v63 = vsub.s32 32, %v286_v12  ;;  %v912_v3 = vmul.f32 %v1819_v15, %v897_v25  ;;  %v647_v35 = vshll.u32 %v646_v14, 30 }
  0x66   :  { %1361 = vcosq.f32 %v568_v57  ;;  %v289_v5 = vshll.u32 %v1386_v45, %v286_v12  ;;  %v292_v10 = vshll.u32 %v1387_v47, %v286_v12  ;;  %v295_v7 = vshll.u32 %v1388_v50, %v286_v12 }
  0x67   :  { %v290_v49 = vshrl.u32 %v1387_v47, %v287_v63  ;;  %v920_v42 = vadd.f32 %v1216_v8, %v912_v3  ;;  %v1858_v43 = vsub.s32 %v644_v33, %v647_v35  ;;  %v293_v17 = vshrl.u32 %v1388_v50, %v287_v63 }
  0x68   :  { %vm1864_vm11 = vcmp.le.f32.partialorder %v584_v19, 0.7853982  ;;  %v285_v21 = vshrl.u32 %v284_v34, 5  ;;  %v296_v22 = vshrl.u32 %v1389_v52, %v287_v63  ;;  %v376_v53 = vand.u32 2147483647, %v1827_v27 }
  0x69   :  { %v380_v46 = vshrl.u32 %v379_v11, 23  ;;  %v927_v4 = vpack.c.bf16 %v920_v42, %v919_v23  ;;  %1363 = vsinq.f32 %v568_v57  ;;  %v650_v8 = vsub.s32 0, %v1858_v43 }
  0x6a   :  { %v298_v26 = vshll.u32 %v1389_v52, %v286_v12  ;;  %v670_v29 = vsub.s32 4, %v646_v14  ;;  %v299_v31 = vshrl.u32 %v1390_v54, %v287_v63  ;;  %v301_v19 = vshll.u32 %v1390_v54, %v286_v12 }
  0x6b   :  { %v302_v32 = vshrl.u32 %v1391_v62, %v287_v63  ;;  %1283 = vmatprep.mubr.bf16.mxu0 %v927_v4  ;;  %v1176_v36 = vmin.u32 %v650_v8, %v1858_v43  ;;  %v291_v33 = vor.u32 %v290_v49, %v289_v5  ;;  %v294_v61 = vor.u32 %v293_v17, %v292_v10 }
  0x6c   :  { %v297_v56 = vor.u32 %v296_v22, %v295_v7  ;;  %v300_v51 = vor.u32 %v299_v31, %v298_v26  ;;  %vm304_vm12 = vcmp.lt.s32.totalorder %v285_v21, 1  ;;  %vm307_vm13 = vcmp.lt.s32.totalorder %v285_v21, 4 }
  0x6d   :  { %v303_v55 = vor.u32 %v302_v32, %v301_v19  ;;  %vm579_vm14 = vcmp.eq.s32.totalorder %v1846_v1, 2  ;;  %v640_v41 = vadd.s32 %v1797_v30, %v1788_v60  ;;  %v652_v58 = vclz %v1176_v36 }
  0x6e   :  { %v288_v34 = vshrl.u32 %v1386_v45, %v287_v63  ;;  %vm306_vm15 = vcmp.lt.s32.totalorder %v285_v21, 3  ;;  %v671_v2 = vsel %vm586_vm10, %v670_v29, %v646_v14  ;;  %v313_v12 = vsel %vm307_vm13, %v300_v51, 920167782 }
  0x6f   :  { %v1883_v25 = vshll.u32 %v280_v16, 8  ;;  %v1167_v0 = vadd.s32 4294967169, %v380_v46  ;;  %vm576_vm0 = vcmp.eq.s32.totalorder %v1846_v1, 0  ;;  %v1177_v57 = vadd.s32 4294967294, %v652_v58 }
  0x70   :  { %vm305_vm1 = vcmp.lt.s32.totalorder %v285_v21, 2  ;;  %v309_v11 = vsel %vm307_vm13, %v297_v56, 2102212464  ;;  %v316_v60 = vsel %vm304_vm12, %v294_v61, %v297_v56  ;;  %v1362_v30 = vpop.eup %1361  ;;  %v312_v63 = vsel %vm304_vm12, %v291_v33, %v294_v61 }
  0x71   :  { %v314_v3 = vsel %vm306_vm15, %v297_v56, %v313_v12  ;;  %v317_v14 = vsel %vm307_vm13, %v303_v55, 1326507024  ;;  %v1893_v23 = vand.u32 8388607, %v376_v53  ;;  %vm1178_vm2 = vcmp.lt.s32.totalorder %v1177_v57, 0 }
  0x72   :  { %v673_v35 = vsel %vm1864_vm11, 0, %v671_v2  ;;  %v308_v16 = vsel %vm304_vm12, %v288_v34, %v291_v33  ;;  %v318_v5 = vsel %vm306_vm15, %v300_v51, %v317_v14  ;;  %v655_v49 = vsel %vm1178_vm2, 0, %v1177_v57 }
  0x73   :  { %v310_v10 = vsel %vm306_vm15, %v294_v61, %v309_v11  ;;  %v319_v42 = vsel %vm305_vm1, %v316_v60, %v318_v5  ;;  %v386_v17 = vadd.s32 1, %v1167_v0  ;;  %v1364_v7 = vpop.eup %1363  ;;  %v656_v22 = vsub.s32 32, %v655_v49 }
  0x74   :  { %v657_v46 = vshll.u32 %v1858_v43, %v655_v49  ;;  %v660_v4 = vsub.s32 4294967266, %v655_v49  ;;  %v315_v8 = vsel %vm305_vm1, %v312_v63, %v314_v3  ;;  %v580_v26 = vxor.u32 2147483648, %v1362_v30 }
  0x75   :  { %v1904_v29 = vmul.u32.u64.low %v1883_v25, %v319_v42  ;;  %v1905_v31 = vmul.u32.u64.high %v1883_v25, %v319_v42, %v1904_v29  ;;  %vm387_vm3 = vcmp.gt.s32.totalorder %v386_v17, 0  ;;  %v658_v19 = vshrl.u32 %v640_v41, %v656_v22 }
  0x76   :  { %v661_v32 = vadd.s32 127, %v660_v4  ;;  %v311_v36 = vsel %vm305_vm1, %v308_v16, %v310_v10  ;;  %v388_v33 = vsel %vm387_vm3, %v386_v17, 0  ;;  %v577_v61 = vxor.u32 2147483648, %v1364_v7 }
  0x77   :  { %v1909_v56 = vmul.u32.u64.low %v1883_v25, %v315_v8  ;;  %v1910_v51 = vmul.u32.u64.high %v1883_v25, %v315_v8, %v1909_v56  ;;  %v384_v43 = vor.u32 8388608, %v1893_v23  ;;  %vm575_vm4 = vcmp.lt.s32.totalorder %v1846_v1, 2 }
  0x78   :  { %v659_v55 = vor.u32 %v658_v19, %v657_v46  ;;  %v662_v58 = vshll.u32 %v661_v32, 23  ;;  %v1915_v34 = vshrl.u32 %v388_v33, 5  ;;  %v390_v2 = vand.u32 31, %v388_v33 }
  0x79   :  { %v581_v21 = vsel %vm579_vm14, %v580_v26, %v1364_v7  ;;  %v677_v41 = vadd.s32 3, %v673_v35  ;;  %v327_v12 = vmul.u32 %v1883_v25, %v311_v36  ;;  %vm329_vm5 = vc.u32 %v1905_v31, %v1909_v56 }
  0x7a   :  { %v663_v0 = vor.u32 4788187, %v662_v58  ;;  %v666_v57 = vcvt.s32.f32 %v659_v55  ;;  %v391_v11 = vsub.s32 32, %v390_v2  ;;  %v393_v60 = vshll.u32 %v1386_v45, %v390_v2 }
  0x7b   :  { %v578_v63 = vsel %vm576_vm0, %v1362_v30, %v577_v61  ;;  %v330_v3 = vadd.s32 1, %v1910_v51  ;;  %v396_v14 = vshll.u32 %v1387_v47, %v390_v2  ;;  %v399_v23 = vshll.u32 %v1388_v50, %v390_v2 }
  0x7c   :  { %vm572_vm6 = vweird.f32 %v1468_v13  ;;  %v664_v25 = vand.u32 2147483647, %v663_v0  ;;  %v394_v35 = vshrl.u32 %v1387_v47, %v391_v11  ;;  %v397_v16 = vshrl.u32 %v1388_v50, %v391_v11 }
  0x7d   :  { %vm408_vm7 = vcmp.lt.s32.totalorder %v1915_v34, 1  ;;  %v331_v5 = vsel %vm329_vm5, %v330_v3, %v1910_v51  ;;  %v400_v49 = vshrl.u32 %v1389_v52, %v391_v11  ;;  %v402_v30 = vshll.u32 %v1389_v52, %v390_v2 }
  0x7e   :  { %v403_v10 = vshrl.u32 %v1390_v54, %v391_v11  ;;  %v667_v42 = vmul.f32 %v666_v57, %v664_v25  ;;  %v332_v17 = vadd.s32 %v331_v5, %v327_v12  ;;  %v395_v7 = vor.u32 %v394_v35, %v393_v60 }
  0x7f   :  { %v398_v22 = vor.u32 %v397_v16, %v396_v14  ;;  %v401_v46 = vor.u32 %v400_v49, %v399_v23  ;;  %v405_v8 = vshll.u32 %v1390_v54, %v390_v2  ;;  %v406_v26 = vshrl.u32 %v1391_v62, %v391_v11 }
  0x80   :  { %v404_v4 = vor.u32 %v403_v10, %v402_v30  ;;  %v668_v29 = vxor.u32 2147483648, %v667_v42  ;;  %v333_v19 = vadd.s32 536870912, %v332_v17  ;;  %v392_v32 = vshrl.u32 %v1386_v45, %v391_v11 }
  0x81   :  { %vm410_vm8 = vcmp.lt.s32.totalorder %v1915_v34, 3  ;;  %v407_v36 = vor.u32 %v406_v26, %v405_v8  ;;  %vm409_vm9 = vcmp.lt.s32.totalorder %v1915_v34, 2  ;;  %vm411_vm12 = vcmp.lt.s32.totalorder %v1915_v34, 4 }
  0x82   :  { %v416_v33 = vsel %vm408_vm7, %v395_v7, %v398_v22  ;;  %v669_v61 = vsel %vm586_vm10, %v668_v29, %v667_v42  ;;  %v334_v51 = vshrl.u32 %v333_v19, 30  ;;  %v413_v55 = vsel %vm411_vm12, %v401_v46, 2102212464 }
  0x83   :  { %v417_v58 = vsel %vm411_vm12, %v404_v4, 920167782  ;;  %v582_v2 = vsel %vm575_vm4, %v578_v63, %v581_v21  ;;  %v672_v12 = vsel %vm1864_vm11, %v1491_v38, %v669_v61  ;;  %v424_v57 = vshll.u32 %v384_v43, 8 }
  0x84   :  { %v418_v0 = vsel %vm410_vm8, %v401_v46, %v417_v58  ;;  %1365 = vcosq.f32 %v672_v12  ;;  %v335_v11 = vshll.u32 %v334_v51, 30  ;;  %v412_v60 = vsel %vm408_vm7, %v392_v32, %v395_v7 }
  0x85   :  { %v420_v3 = vsel %vm408_vm7, %v398_v22, %v401_v46  ;;  %1367 = vsinq.f32 %v672_v12  ;;  %v414_v1 = vsel %vm410_vm8, %v398_v22, %v413_v55  ;;  %v419_v20 = vsel %vm409_vm9, %v416_v33, %v418_v0 }
  0x86   :  { %v421_v21 = vsel %vm411_vm12, %v407_v36, 1326507024  ;;  %v678_v63 = vand.u32 3, %v677_v41  ;;  %v1967_v43 = vsub.s32 %v332_v17, %v335_v11  ;;  %v583_v23 = vsel %vm572_vm6, nan, %v582_v2 }
  0x87   :  { %v422_v14 = vsel %vm410_vm8, %v404_v4, %v421_v21  ;;  %v1975_v35 = vmul.u32.u64.low %v424_v57, %v419_v20  ;;  %v1976_v16 = vmul.u32.u64.high %v424_v57, %v419_v20, %v1975_v35  ;;  %v415_v41 = vsel %vm409_vm9, %v412_v60, %v414_v1 }
  0x88   :  { %v423_v25 = vsel %vm409_vm9, %v420_v3, %v422_v14  ;;  %v338_v5 = vsub.s32 0, %v1967_v43  ;;  %v358_v10 = vsub.s32 4, %v334_v51  ;;  %v691_v42 = vand.u32 2139095040, %v1841_v44 }
  0x89   :  { %v1982_v49 = vmul.u32.u64.low %v424_v57, %v423_v25  ;;  %v1983_v30 = vmul.u32.u64.high %v424_v57, %v423_v25, %v1982_v49  ;;  %vm676_vm10 = vweird.f32 %v1491_v38  ;;  %v900_v13 = vmul.f32 %v583_v23, %v583_v23 }
  0x8a   :  { %v1164_v17 = vmin.u32 %v338_v5, %v1967_v43  ;;  %v1228_v7 = vunpack.c.h.bf16 %v1779_v39  ;;  %vm1991_vm11 = vcmp.le.f32.partialorder %v272_v18, 0.7853982  ;;  %v431_v34 = vmul.u32 %v424_v57, %v415_v41  ;;  %v1385_v57 = vld [vmem:[%s2216_s3] ss:$0 sm:$0xff] }
  0x8b   :  { %v434_v46 = vadd.s32 1, %v1976_v16  ;;  %v692_v4 = vshrl.u32 %v691_v42, 23  ;;  %vm679_vm13 = vcmp.lt.s32.totalorder %v678_v63, 2  ;;  %vm680_vm14 = vcmp.eq.s32.totalorder %v678_v63, 0 }
  0x8c   :  { %vm274_vm15 = vcmp.lt.s32.totalorder %v1748_v40, 0  ;;  %v340_v8 = vclz %v1164_v17  ;;  %vm683_vm0 = vcmp.eq.s32.totalorder %v678_v63, 2  ;;  %vm433_vm1 = vc.u32 %v1983_v30, %v1975_v35 }
  0x8d   :  { %v359_v26 = vsel %vm274_vm15, %v358_v10, %v334_v51  ;;  %v1179_v18 = vadd.s32 4294967169, %v692_v4  ;;  %v915_v19 = vmul.f32 %v1819_v15, %v900_v13  ;;  %v328_v32 = vadd.s32 %v1909_v56, %v1905_v31 }
  0x8e   :  { %v1366_v29 = vpop.eup %1365  ;;  %v1165_v36 = vadd.s32 4294967294, %v340_v8  ;;  %v435_v33 = vsel %vm433_vm1, %v434_v46, %v1976_v16  ;;  %v688_v2 = vand.u32 2147483647, %v1841_v44  ;;  %v361_v0 = vsel %vm1991_vm11, 0, %v359_v26 }
  0x8f   :  { %v1368_v61 = vpop.eup %1367  ;;  %v684_v55 = vxor.u32 2147483648, %v1366_v29  ;;  %v436_v58 = vadd.s32 %v435_v33, %v431_v34  ;;  %v698_v12 = vadd.s32 1, %v1179_v18  ;;  %v2013_v31 = vmul.f32 %v1385_v57, %v1228_v7 }
  0x90   :  { %v681_v51 = vxor.u32 2147483648, %v1368_v61  ;;  %vm1166_vm2 = vcmp.lt.s32.totalorder %v1165_v36, 0  ;;  %v695_v25 = vand.u32 8388607, %v688_v2  ;;  %v923_v63 = vadd.f32 %v1223_v9, %v915_v19 }
  0x91   :  { %v685_v56 = vsel %vm683_vm0, %v684_v55, %v1368_v61  ;;  %v343_v11 = vsel %vm1166_vm2, 0, %v1165_v36  ;;  %v437_v60 = vadd.s32 536870912, %v436_v58  ;;  %vm699_vm3 = vcmp.gt.s32.totalorder %v698_v12, 0 }
  0x92   :  { %v682_v3 = vsel %vm680_vm14, %v1366_v29, %v681_v51  ;;  %v344_v1 = vsub.s32 32, %v343_v11  ;;  %v345_v20 = vshll.u32 %v1967_v43, %v343_v11  ;;  %v348_v21 = vsub.s32 4294967266, %v343_v11 }
  0x93   :  { %v686_v14 = vsel %vm679_vm13, %v682_v3, %v685_v56  ;;  %v2019_v23 = vshrl.u32 %v437_v60, 30  ;;  %v700_v16 = vsel %vm699_vm3, %v698_v12, 0  ;;  %v795_v10 = vand.u32 2139095040, %v2013_v31 }
  0x94   :  { %v687_v5 = vsel %vm676_vm10, nan, %v686_v14  ;;  %v346_v41 = vshrl.u32 %v328_v32, %v344_v1  ;;  %v349_v49 = vadd.s32 127, %v348_v21  ;;  %v702_v43 = vand.u32 31, %v700_v16 }
  0x95   :  { %v901_v42 = vmul.f32 %v687_v5, %v687_v5  ;;  %v439_v13 = vshll.u32 %v2019_v23, 30  ;;  %v2029_v46 = vadd.s32 3, %v361_v0  ;;  %v696_v38 = vor.u32 8388608, %v695_v25 }
  0x96   :  { %v347_v17 = vor.u32 %v346_v41, %v345_v20  ;;  %v350_v34 = vshll.u32 %v349_v49, 23  ;;  %v703_v26 = vsub.s32 32, %v702_v43  ;;  %v2034_v32 = vshrl.u32 %v700_v16, 5 }
  0x97   :  { %v916_v4 = vmul.f32 %v1819_v15, %v901_v42  ;;  %v2032_v8 = vsub.s32 %v436_v58, %v439_v13  ;;  %v796_v36 = vshrl.u32 %v795_v10, 23  ;;  %v432_v9 = vadd.s32 %v1975_v35, %v1983_v30 }
  0x98   :  { %v351_v18 = vor.u32 4788187, %v350_v34  ;;  %v354_v29 = vcvt.s32.f32 %v347_v17  ;;  %v705_v61 = vshll.u32 %v1386_v45, %v702_v43  ;;  %v706_v58 = vshrl.u32 %v1387_v47, %v703_v26 }
  0x99   :  { %v924_v33 = vadd.f32 %v1224_v28, %v916_v4  ;;  %v442_v19 = vsub.s32 0, %v2032_v8  ;;  %v708_v12 = vshll.u32 %v1387_v47, %v702_v43  ;;  %v709_v51 = vshrl.u32 %v1388_v50, %v703_v26 }
  0x9a   :  { %v352_v55 = vand.u32 2147483647, %v351_v18  ;;  %v711_v6 = vshll.u32 %v1388_v50, %v702_v43  ;;  %v2047_v28 = vshll.u32 %v696_v38, 8  ;;  %v712_v35 = vshrl.u32 %v1389_v52, %v703_v26 }
  0x9b   :  { %v929_v0 = vpack.c.bf16 %v924_v33, %v923_v63  ;;  %v1168_v57 = vmin.u32 %v442_v19, %v2032_v8  ;;  %vm720_vm4 = vcmp.lt.s32.totalorder %v2034_v32, 1  ;;  %v1183_v30 = vadd.s32 4294967169, %v796_v36 }
  0x9c   :  { %v355_v56 = vmul.f32 %v354_v29, %v352_v55  ;;  %v704_v60 = vshrl.u32 %v1386_v45, %v703_v26  ;;  %v707_v3 = vor.u32 %v706_v58, %v705_v61  ;;  %vm721_vm5 = vcmp.lt.s32.totalorder %v2034_v32, 2 }
  0x9d   :  { %1287 = vmatprep.mubr.bf16.mxu1 %v929_v0  ;;  %v444_v11 = vclz %v1168_v57  ;;  %v710_v20 = vor.u32 %v709_v51, %v708_v12  ;;  %v714_v21 = vshll.u32 %v1389_v52, %v702_v43  ;;  %v715_v14 = vshrl.u32 %v1390_v54, %v703_v26 }
  0x9e   :  { %v356_v1 = vxor.u32 2147483648, %v355_v56  ;;  %v713_v16 = vor.u32 %v712_v35, %v711_v6  ;;  %v717_v5 = vshll.u32 %v1390_v54, %v702_v43  ;;  %v718_v41 = vshrl.u32 %v1391_v62, %v703_v26 }
  0x9f   :  { %v1169_v25 = vadd.s32 4294967294, %v444_v11  ;;  %v716_v10 = vor.u32 %v715_v14, %v714_v21  ;;  %vm722_vm6 = vcmp.lt.s32.totalorder %v2034_v32, 3  ;;  %vm723_vm7 = vcmp.lt.s32.totalorder %v2034_v32, 4 }
  0xa0   :  { %v357_v49 = vsel %vm274_vm15, %v356_v1, %v355_v56  ;;  %v719_v13 = vor.u32 %v718_v41, %v717_v5  ;;  %v725_v63 = vsel %vm723_vm7, %v713_v16, 2102212464  ;;  %v724_v17 = vsel %vm720_vm4, %v704_v60, %v707_v3 }
  0xa1   :  { %v360_v42 = vsel %vm1991_vm11, %v1748_v40, %v357_v49  ;;  %vm1170_vm8 = vcmp.lt.s32.totalorder %v1169_v25, 0  ;;  %v728_v34 = vsel %vm720_vm4, %v707_v3, %v710_v20  ;;  %v726_v22 = vsel %vm722_vm6, %v710_v20, %v725_v63 }
  0xa2   :  { %1369 = vcosq.f32 %v360_v42  ;;  %v447_v43 = vsel %vm1170_vm8, 0, %v1169_v25  ;;  %v729_v18 = vsel %vm723_vm7, %v716_v10, 920167782  ;;  %v732_v29 = vsel %vm720_vm4, %v710_v20, %v713_v16 }
  0xa3   :  { %1371 = vsinq.f32 %v360_v42  ;;  %v448_v4 = vsub.s32 32, %v447_v43  ;;  %v449_v38 = vshll.u32 %v2032_v8, %v447_v43  ;;  %v452_v26 = vsub.s32 4294967266, %v447_v43 }
  0xa4   :  { %v733_v36 = vsel %vm723_vm7, %v719_v13, 1326507024  ;;  %v730_v61 = vsel %vm722_vm6, %v713_v16, %v729_v18  ;;  %v462_v55 = vsub.s32 4, %v2019_v23  ;;  %v792_v51 = vand.u32 2147483647, %v2013_v31 }
  0xa5   :  { %v450_v33 = vshrl.u32 %v432_v9, %v448_v4  ;;  %v453_v19 = vadd.s32 127, %v452_v26  ;;  %v734_v8 = vsel %vm722_vm6, %v716_v10, %v733_v36  ;;  %v731_v58 = vsel %vm721_vm5, %v728_v34, %v730_v61 }
  0xa6   :  { %v735_v12 = vsel %vm721_vm5, %v732_v29, %v734_v8  ;;  %v727_v56 = vsel %vm721_vm5, %v724_v17, %v726_v22  ;;  %v2096_v35 = vmul.u32.u64.low %v2047_v28, %v731_v58  ;;  %v2097_v11 = vmul.u32.u64.high %v2047_v28, %v731_v58, %v2096_v35 }
  0xa7   :  { %v451_v0 = vor.u32 %v450_v33, %v449_v38  ;;  %v454_v57 = vshll.u32 %v453_v19, 23  ;;  %v2090_v9 = vmul.u32.u64.low %v2047_v28, %v735_v12  ;;  %v2091_v6 = vmul.u32.u64.high %v2047_v28, %v735_v12, %v2090_v9 }
  0xa8   :  { %v802_v60 = vadd.s32 1, %v1183_v30  ;;  %v366_v3 = vand.u32 3, %v2029_v46  ;;  %vm378_vm9 = vcmp.lt.s32.totalorder %v1827_v27, 0  ;;  %v743_v32 = vmul.u32 %v2047_v28, %v727_v56 }
  0xa9   :  { %v455_v1 = vor.u32 4788187, %v454_v57  ;;  %v458_v20 = vcvt.s32.f32 %v451_v0  ;;  %v463_v21 = vsel %vm378_vm9, %v462_v55, %v2019_v23  ;;  %vm745_vm10 = vc.u32 %v2091_v6, %v2096_v35 }
  0xaa   :  { %vm803_vm12 = vcmp.gt.s32.totalorder %v802_v60, 0  ;;  %vm2110_vm11 = vcmp.le.f32.partialorder %v376_v53, 0.7853982  ;;  %v746_v30 = vadd.s32 1, %v2097_v11  ;;  %v799_v23 = vand.u32 8388607, %v792_v51 }
  0xab   :  { %v456_v14 = vand.u32 2147483647, %v455_v1  ;;  %v804_v25 = vsel %vm803_vm12, %v802_v60, 0  ;;  %vm364_vm13 = vweird.f32 %v1748_v40  ;;  %vm367_vm14 = vcmp.lt.s32.totalorder %v366_v3, 2 }
  0xac   :  { %v1370_v16 = vpop.eup %1369  ;;  %v806_v5 = vand.u32 31, %v804_v25  ;;  %v465_v49 = vsel %vm2110_vm11, 0, %v463_v21  ;;  %v747_v53 = vsel %vm745_vm10, %v746_v30, %v2097_v11  ;;  %vm368_vm15 = vcmp.eq.s32.totalorder %v366_v3, 0 }
  0xad   :  { %v1372_v41 = vpop.eup %1371  ;;  %v459_v28 = vmul.f32 %v458_v20, %v456_v14  ;;  %v372_v42 = vxor.u32 2147483648, %v1370_v16  ;;  %vm371_vm0 = vcmp.eq.s32.totalorder %v366_v3, 2  ;;  %v748_v43 = vadd.s32 %v747_v53, %v743_v32 }
  0xae   :  { %v369_v10 = vxor.u32 2147483648, %v1372_v41  ;;  %v807_v13 = vsub.s32 32, %v806_v5  ;;  %v469_v17 = vadd.s32 3, %v465_v49  ;;  %v800_v34 = vor.u32 8388608, %v799_v23 }
  0xaf   :  { %v460_v63 = vxor.u32 2147483648, %v459_v28  ;;  %v809_v4 = vshll.u32 %v1386_v45, %v806_v5  ;;  %v812_v38 = vshll.u32 %v1387_v47, %v806_v5  ;;  %v749_v22 = vadd.s32 536870912, %v748_v43 }
  0xb0   :  { %v810_v18 = vshrl.u32 %v1387_v47, %v807_v13  ;;  %v813_v29 = vshrl.u32 %v1388_v50, %v807_v13  ;;  %v370_v36 = vsel %vm368_vm15, %v1370_v16, %v369_v10  ;;  %v373_v33 = vsel %vm371_vm0, %v372_v42, %v1372_v41 }
  0xb1   :  { %v461_v26 = vsel %vm378_vm9, %v460_v63, %v459_v28  ;;  %v805_v61 = vshrl.u32 %v804_v25, 5  ;;  %v2130_v8 = vshrl.u32 %v749_v22, 30  ;;  %v815_v55 = vshll.u32 %v1388_v50, %v806_v5 }
  0xb2   :  { %v464_v19 = vsel %vm2110_vm11, %v1827_v27, %v461_v26  ;;  %v816_v58 = vshrl.u32 %v1389_v52, %v807_v13  ;;  %v818_v12 = vshll.u32 %v1389_v52, %v806_v5  ;;  %v819_v47 = vshrl.u32 %v1390_v54, %v807_v13 }
  0xb3   :  { %1373 = vcosq.f32 %v464_v19  ;;  %v821_v0 = vshll.u32 %v1390_v54, %v806_v5  ;;  %v374_v57 = vsel %vm367_vm14, %v370_v36, %v373_v33  ;;  %v751_v9 = vshll.u32 %v2130_v8, 30 }
  0xb4   :  { %1375 = vsinq.f32 %v464_v19  ;;  %v811_v56 = vor.u32 %v810_v18, %v809_v4  ;;  %v814_v11 = vor.u32 %v813_v29, %v812_v38  ;;  %v808_v60 = vshrl.u32 %v1386_v45, %v807_v13 }
  0xb5   :  { %v820_v1 = vor.u32 %v819_v47, %v818_v12  ;;  %v822_v50 = vshrl.u32 %v1391_v62, %v807_v13  ;;  %vm824_vm1 = vcmp.lt.s32.totalorder %v805_v61, 1  ;;  %v470_v20 = vand.u32 3, %v469_v17 }
  0xb6   :  { %v752_v21 = vsub.s32 %v748_v43, %v751_v9  ;;  %v817_v14 = vor.u32 %v816_v58, %v815_v55  ;;  %v840_v52 = vshll.u32 %v800_v34, 8  ;;  %v375_v32 = vsel %vm364_vm13, nan, %v374_v57 }
  0xb7   :  { %v823_v54 = vor.u32 %v822_v50, %v821_v0  ;;  %vm826_vm2 = vcmp.lt.s32.totalorder %v805_v61, 3  ;;  %vm827_vm3 = vcmp.lt.s32.totalorder %v805_v61, 4  ;;  %vm825_vm4 = vcmp.lt.s32.totalorder %v805_v61, 2 }
  0xb8   :  { %v754_v3 = vsub.s32 0, %v752_v21  ;;  %v829_v25 = vsel %vm827_vm3, %v817_v14, 2102212464  ;;  %v832_v16 = vsel %vm824_vm1, %v811_v56, %v814_v11  ;;  %v828_v45 = vsel %vm824_vm1, %v808_v60, %v811_v56 }
  0xb9   :  { %v830_v62 = vsel %vm826_vm2, %v814_v11, %v829_v25  ;;  %v833_v46 = vsel %vm827_vm3, %v820_v1, 920167782  ;;  %v837_v30 = vsel %vm827_vm3, %v823_v54, 1326507024  ;;  %v836_v40 = vsel %vm824_vm1, %v814_v11, %v817_v14 }
  0xba   :  { %v1180_v23 = vmin.u32 %v754_v3, %v752_v21  ;;  %v834_v5 = vsel %vm826_vm2, %v817_v14, %v833_v46  ;;  %vm471_vm5 = vcmp.lt.s32.totalorder %v470_v20, 2  ;;  %vm472_vm6 = vcmp.eq.s32.totalorder %v470_v20, 0 }
  0xbb   :  { %v835_v41 = vsel %vm825_vm4, %v832_v16, %v834_v5  ;;  %v838_v28 = vsel %vm826_vm2, %v820_v1, %v837_v30  ;;  %vm475_vm7 = vcmp.eq.s32.totalorder %v470_v20, 2  ;;  %v898_v10 = vmul.f32 %v375_v32, %v375_v32 }
  0xbc   :  { %v756_v42 = vclz %v1180_v23  ;;  %v831_v53 = vsel %vm825_vm4, %v828_v45, %v830_v62  ;;  %v839_v43 = vsel %vm825_vm4, %v836_v40, %v838_v28  ;;  %vm468_vm8 = vweird.f32 %v1827_v27 }
  0xbd   :  { %v1374_v49 = vpop.eup %1373  ;;  %v2152_v17 = vmul.u32.u64.low %v840_v52, %v835_v41  ;;  %v2153_v34 = vmul.u32.u64.high %v840_v52, %v835_v41, %v2152_v17  ;;  %v2155_v26 = vmul.u32.u64.low %v840_v52, %v839_v43  ;;  %v2156_v22 = vmul.u32.u64.high %v840_v52, %v839_v43, %v2155_v26 }
  0xbe   :  { %v1376_v13 = vpop.eup %1375  ;;  %v476_v63 = vxor.u32 2147483648, %v1374_v49  ;;  %v1181_v38 = vadd.s32 4294967294, %v756_v42  ;;  %v913_v36 = vmul.f32 %v1819_v15, %v898_v10  ;;  %v744_v33 = vadd.s32 %v2096_v35, %v2091_v6 }
  0xbf   :  { %v473_v4 = vxor.u32 2147483648, %v1376_v13  ;;  %v847_v55 = vmul.u32 %v840_v52, %v831_v53  ;;  %v850_v58 = vadd.s32 1, %v2153_v34  ;;  %vm849_vm12 = vc.u32 %v2156_v22, %v2152_v17 }
  0xc0   :  { %v477_v18 = vsel %vm475_vm7, %v476_v63, %v1376_v13  ;;  %vm1182_vm9 = vcmp.lt.s32.totalorder %v1181_v38, 0  ;;  %v921_v35 = vadd.f32 %v1219_v24, %v913_v36  ;;  %vm690_vm10 = vcmp.lt.s32.totalorder %v1841_v44, 0 }
  0xc1   :  { %v474_v29 = vsel %vm472_vm6, %v1374_v49, %v473_v4  ;;  %v759_v61 = vsel %vm1182_vm9, 0, %v1181_v38  ;;  %v851_v11 = vsel %vm849_vm12, %v850_v58, %v2153_v34  ;;  %vm2175_vm11 = vcmp.le.f32.partialorder %v688_v2, 0.7853982 }
  0xc2   :  { %v478_v19 = vsel %vm471_vm5, %v474_v29, %v477_v18  ;;  %v760_v47 = vsub.s32 32, %v759_v61  ;;  %v761_v0 = vshll.u32 %v752_v21, %v759_v61  ;;  %v764_v57 = vsub.s32 4294967266, %v759_v61 }
  0xc3   :  { %v479_v12 = vsel %vm468_vm8, nan, %v478_v19  ;;  %v852_v60 = vadd.s32 %v851_v11, %v847_v55  ;;  %v774_v5 = vsub.s32 4, %v2130_v8  ;;  %v848_v41 = vadd.s32 %v2152_v17, %v2156_v22 }
  0xc4   :  { %v899_v27 = vmul.f32 %v479_v12, %v479_v12  ;;  %v762_v9 = vshrl.u32 %v744_v33, %v760_v47  ;;  %v765_v56 = vadd.s32 127, %v764_v57  ;;  %vm794_vm14 = vcmp.lt.s32.totalorder %v2013_v31, 0 }
  0xc5   :  { %v853_v21 = vadd.s32 536870912, %v852_v60  ;;  %v775_v42 = vsel %vm690_vm10, %v774_v5, %v2130_v8  ;;  %vm793_vm15 = vcmp.le.f32.partialorder %v792_v51, 0.7853982  ;;  %vm780_vm3 = vweird.f32 %v1841_v44 }
  0xc6   :  { %v914_v6 = vmul.f32 %v1819_v15, %v899_v27  ;;  %v763_v1 = vor.u32 %v762_v9, %v761_v0  ;;  %v766_v50 = vshll.u32 %v765_v56, 23  ;;  %v777_v63 = vsel %vm2175_vm11, 0, %v775_v42 }
  0xc7   :  { %v854_v54 = vshrl.u32 %v853_v21, 30  ;;  %v781_v26 = vadd.s32 3, %v777_v63  ;;  %vm884_vm7 = vweird.f32 %v2013_v31 }
  0xc8   :  { %v922_v20 = vadd.f32 %v1220_v37, %v914_v6  ;;  %v767_v14 = vor.u32 4788187, %v766_v50  ;;  %v770_v52 = vcvt.s32.f32 %v763_v1 }
  0xc9   :  { %v855_v25 = vshll.u32 %v854_v54, 30  ;;  %v878_v22 = vsub.s32 4, %v854_v54  ;;  %v782_v33 = vand.u32 3, %v781_v26 }
  0xca   :  { %v928_v32 = vpack.c.bf16 %v922_v20, %v921_v35  ;;  %v768_v3 = vand.u32 2147483647, %v767_v14 }
  0xcb   :  { %v856_v45 = vsub.s32 %v852_v60, %v855_v25  ;;  %v879_v19 = vsel %vm794_vm14, %v878_v22, %v854_v54  ;;  %vm784_vm0 = vcmp.eq.s32.totalorder %v782_v33, 0  ;;  %vm787_vm1 = vcmp.eq.s32.totalorder %v782_v33, 2 }
  0xcc   :  { %1284 = vmatmul.mubr.bf16.vlgmr.msra.gmra.mrb[0].mxu0 %v928_v32  ;;  %v771_v16 = vmul.f32 %v770_v52, %v768_v3  ;;  %v881_v47 = vsel %vm793_vm15, 0, %v879_v19  ;;  %vm783_vm2 = vcmp.lt.s32.totalorder %v782_v33, 2 }
  0xcd   :  { %v858_v46 = vsub.s32 0, %v856_v45  ;;  %v885_v27 = vadd.s32 3, %v881_v47 }
  0xce   :  { %v772_v62 = vxor.u32 2147483648, %v771_v16 }
  0xcf   :  { %v1184_v24 = vmin.u32 %v858_v46, %v856_v45  ;;  %v886_v51 = vand.u32 3, %v885_v27 }
  0xd0   :  { %v773_v37 = vsel %vm690_vm10, %v772_v62, %v771_v16 }
  0xd1   :  { %v860_v30 = vclz %v1184_v24  ;;  %v776_v40 = vsel %vm2175_vm11, %v1841_v44, %v773_v37  ;;  %vm891_vm4 = vcmp.eq.s32.totalorder %v886_v51, 2  ;;  %vm888_vm5 = vcmp.eq.s32.totalorder %v886_v51, 0 }
  0xd2   :  { %1377 = vcosq.f32 %v776_v40  ;;  %vm887_vm6 = vcmp.lt.s32.totalorder %v886_v51, 2 }
  0xd3   :  { %v1185_v23 = vadd.s32 4294967294, %v860_v30  ;;  %1379 = vsinq.f32 %v776_v40 }
  0xd5   :  { %vm1186_vm13 = vcmp.lt.s32.totalorder %v1185_v23, 0 }
  0xd6   :  { %v863_v28 = vsel %vm1186_vm13, 0, %v1185_v23 }
  0xd7   :  { %v864_v49 = vsub.s32 32, %v863_v28  ;;  %v865_v10 = vshll.u32 %v856_v45, %v863_v28  ;;  %v868_v2 = vsub.s32 4294967266, %v863_v28 }
  0xd9   :  { %v866_v53 = vshrl.u32 %v848_v41, %v864_v49  ;;  %v869_v13 = vadd.s32 127, %v868_v2 }
  0xdb   :  { %v867_v43 = vor.u32 %v866_v53, %v865_v10  ;;  %v870_v34 = vshll.u32 %v869_v13, 23 }
  0xdc   :  { %v1378_v18 = vpop.eup %1377 }
  0xdd   :  { %v871_v4 = vor.u32 4788187, %v870_v34  ;;  %v874_v38 = vcvt.s32.f32 %v867_v43  ;;  %v1380_v36 = vpop.eup %1379  ;;  %v788_v55 = vxor.u32 2147483648, %v1378_v18 }
  0xde   :  { %v785_v61 = vxor.u32 2147483648, %v1380_v36 }
  0xdf   :  { %v872_v17 = vand.u32 2147483647, %v871_v4  ;;  %v789_v57 = vsel %vm787_vm1, %v788_v55, %v1380_v36 }
  0xe0   :  { %v786_v0 = vsel %vm784_vm0, %v1378_v18, %v785_v61 }
  0xe1   :  { %v875_v29 = vmul.f32 %v874_v38, %v872_v17  ;;  %v790_v9 = vsel %vm783_vm2, %v786_v0, %v789_v57 }
  0xe2   :  { %v791_v56 = vsel %vm780_vm3, nan, %v790_v9 }
  0xe3   :  { %v876_v8 = vxor.u32 2147483648, %v875_v29  ;;  %v902_v60 = vmul.f32 %v791_v56, %v791_v56 }
  0xe5   :  { %v877_v58 = vsel %vm794_vm14, %v876_v8, %v875_v29  ;;  %v917_v14 = vmul.f32 %v1819_v15, %v902_v60 }
  0xe6   :  { %v880_v12 = vsel %vm793_vm15, %v2013_v31, %v877_v58  ;;  %v1196_v31 = vld [vmem:[%s2218_s2] ss:$0 sm:$0xff] }
  0xe7   :  { %1381 = vcosq.f32 %v880_v12  ;;  %v925_v54 = vadd.f32 %v1227_v59, %v917_v14 }
  0xe8   :  { %1383 = vsinq.f32 %v880_v12 }
  0xf1   :  { %v1382_v11 = vpop.eup %1381 }
  0xf2   :  { %v1384_v6 = vpop.eup %1383  ;;  %v892_v35 = vxor.u32 2147483648, %v1382_v11 }
  0xf3   :  { %v889_v1 = vxor.u32 2147483648, %v1384_v6 }
  0xf4   :  { %v893_v50 = vsel %vm891_vm4, %v892_v35, %v1384_v6 }
  0xf5   :  { %v890_v20 = vsel %vm888_vm5, %v1382_v11, %v889_v1 }
  0xf6   :  { %v894_v21 = vsel %vm887_vm6, %v890_v20, %v893_v50 }
  0xf7   :  { %v895_v52 = vsel %vm884_vm7, nan, %v894_v21 }
  0xf8   :  { %v903_v44 = vmul.f32 %v895_v52, %v895_v52 }
  0xfa   :  { %v918_v32 = vmul.f32 %v1819_v15, %v903_v44 }
  0xfc   :  { %v926_v3 = vadd.f32 %v1228_v7, %v918_v32 }
  0xfe   :  { %v930_v25 = vpack.c.bf16 %v926_v3, %v925_v54 }
 0x100   :  { %1288 = vmatmul.mubr.bf16.vlgmr.msra.gmra.mrb[0].mxu1 %v930_v25 }
 0x19f   :  { %v1285_v16 = vpop.f32.mrb[0].mxu0 }
 0x1a0   :  { %v1037_v45 = vpop.f32.mrb[1].mxu0  ;;  %v1104_v46 = vadd.f32 %v1285_v16, %v1196_v31 }
 0x1a1   :  { %v1286_v62 = vpop.f32.mrb[2].mxu0  ;;  %v1102_v37 = vadd.f32 %v1196_v31, %v1037_v45 }
 0x1a2   :  { %v1105_v24 = vadd.f32 %v1286_v62, %v1196_v31  ;;  %v1040_v48 = vpop.f32.mrb[3].mxu0 }
 0x1a3   :  { %v1103_v15 = vadd.f32 %v1196_v31, %v1040_v48 }
 0x1a4   :  { %v1237_v30 = vpack.c.bf16 %v1105_v24, %v1104_v46 }
 0x1a5   :  { %v1232_v23 = vpack.c.bf16 %v1103_v15, %v1102_v37 }
 0x1a6   :  { %1252 = vst [vmem:[%s2219_s5 + $0x8] sm:$0xff] %v1237_v30  }
 0x1a7   :  { %1233 = vst [vmem:[%s2219_s5] sm:$0xff] %v1232_v23  }
 0x1d3   :  { %v1289_v39 = vpop.f32.mrb[0].mxu1 }
 0x1d4   :  { %v1053_v59 = vpop.f32.mrb[1].mxu1  ;;  %v1108_v5 = vadd.f32 %v1289_v39, %v1196_v31 }
 0x1d5   :  { %v1290_v7 = vpop.f32.mrb[2].mxu1  ;;  %v1106_v28 = vadd.f32 %v1196_v31, %v1053_v59 }
 0x1d6   :  { %v1109_v40 = vadd.f32 %v1290_v7, %v1196_v31  ;;  %v1056_v41 = vpop.f32.mrb[3].mxu1 }
 0x1d7   :  { %v1107_v49 = vadd.f32 %v1196_v31, %v1056_v41 }
 0x1d8   :  { %v1247_v10 = vpack.c.bf16 %v1109_v40, %v1108_v5 }
 0x1d9   :  { %v1242_v2 = vpack.c.bf16 %v1107_v49, %v1106_v28 }
 0x1da   :  { %1254 = vst [vmem:[%s2219_s5 + $0x18] sm:$0xff] %v1247_v10  }
 0x1db   :  { %1253 = vst [vmem:[%s2219_s5 + $0x10] sm:$0xff] %v1242_v2  }

// kernel: dac_encoder_forward.25
= control target key start
LH: loop header
LB: loop body
LE: loop exit
PB: predicated region body
PF: predicated region fallthrough
CT: control target
= control target key end

     0   :  { %v1432_v45 = vmov 683565275   ;;  %v1433_v47 = vmov 2475754826   ;;  %v1434_v50 = vmov 2131351028   ;;  %s2277_s1 = inlined_call_operand.vmem [shape: bf16[128,128], index: 1, kind: input, shape index: {}]   ;;  %s2278_s0 = inlined_call_operand.vmem [shape: bf16[64,128], index: 0, kind: input, shape index: {}]   ;;  %s2279_s3 = inlined_call_operand.vmem [shape: f32[1,128], index: 3, kind: input, shape index: {}]   ;;  %s2280_s4 = inlined_call_operand.vmem [shape: f32[1,128], index: 4, kind: input, shape index: {}]   ;;  %s2281_s2 = inlined_call_operand.vmem [shape: f32[1,128], index: 2, kind: input, shape index: {}]   ;;  %s2282_s5 = inlined_call_operand.vmem [shape: bf16[64,128], index: 5, kind: input, shape index: {}]   ;;  %s2283_s6 = inlined_call_operand.vmem [shape: bf16[64,128], index: 6, kind: output, shape index: {}]  }
   0x1   :  { %v1391_v0 = vld [vmem:[%s2277_s1] sm:$0xff]   ;;  %v1392_v1 = vld [vmem:[%s2277_s1 + $0x8] sm:$0xff]   ;;  %v1393_v2 = vld [vmem:[%s2277_s1 + $0x10] sm:$0xff]   ;;  %v1435_v52 = vmov 2102212464  }
   0x2   :  { %1313 = vmatprep.subr.bf16.mxu0 %v1391_v0  ;;  %1337 = vmatprep.subr.bf16.mxu1 %v1391_v0  ;;  %v1394_v3 = vld [vmem:[%s2277_s1 + $0x18] sm:$0xff]   ;;  %v1488_v4 = vld [vmem:[%s2278_s0] sm:$0xff]   ;;  %v1498_v6 = vld [vmem:[%s2278_s0 + $0x10] sm:$0xff]   ;;  %v1436_v54 = vmov 920167782  }
   0x3   :  { %1314 = vmatpush3.bf16.msra.mxu0 %v1391_v0  ;;  %1345 = vmatpush3.bf16.msra.mxu1 %v1391_v0  ;;  %v1493_v5 = vld [vmem:[%s2279_s3] ss:$0 sm:$0xff]  ;;  %v1242_v7 = vunpack.c.l.bf16 %v1488_v4  ;;  %v1243_v8 = vunpack.c.h.bf16 %v1488_v4  ;;  %v1250_v9 = vunpack.c.l.bf16 %v1498_v6  ;;  %v1396_v18 = vld [vmem:[%s2277_s1 + $0x28] sm:$0xff]   ;;  %v1251_v28 = vunpack.c.h.bf16 %v1498_v6  ;;  %v1397_v29 = vld [vmem:[%s2277_s1 + $0x30] sm:$0xff]  }
   0x4   :  { %1315 = vmatprep.subr.bf16.mxu0 %v1392_v1  ;;  %1338 = vmatprep.subr.bf16.mxu1 %v1392_v1  ;;  %v1395_v12 = vld [vmem:[%s2277_s1 + $0x20] sm:$0xff]   ;;  %v1398_v39 = vld [vmem:[%s2277_s1 + $0x38] sm:$0xff]   ;;  %v1437_v62 = vmov 1326507024  }
   0x5   :  { %v1506_v10 = vmul.f32 %v1242_v7, %v1493_v5  ;;  %v1511_v11 = vmul.f32 %v1243_v8, %v1493_v5  ;;  %v1519_v13 = vmul.f32 %v1250_v9, %v1493_v5  ;;  %v1542_v38 = vmul.f32 %v1251_v28, %v1493_v5 }
   0x7   :  { %1316 = vmatpush3.bf16.msra.mxu0 %v1392_v1  ;;  %1346 = vmatpush3.bf16.msra.mxu1 %v1392_v1  ;;  %v67_v14 = vand.u32 2147483647, %v1506_v10  ;;  %v70_v15 = vand.u32 2139095040, %v1506_v10  ;;  %v171_v16 = vand.u32 2147483647, %v1511_v11  ;;  %v174_v17 = vand.u32 2139095040, %v1511_v11 }
   0x8   :  { %1317 = vmatprep.subr.bf16.mxu0 %v1393_v2  ;;  %1339 = vmatprep.subr.bf16.mxu1 %v1393_v2  ;;  %v486_v23 = vand.u32 2139095040, %v1519_v13  ;;  %v483_v42 = vand.u32 2147483647, %v1519_v13  ;;  %vm69_vm14 = vcmp.lt.s32.totalorder %v1506_v10, 0 }
   0x9   :  { %v71_v19 = vshrl.u32 %v70_v15, 23  ;;  %v74_v20 = vand.u32 8388607, %v67_v14  ;;  %v175_v21 = vshrl.u32 %v174_v17, 23  ;;  %v178_v22 = vand.u32 8388607, %v171_v16 }
   0xa   :  { %v487_v26 = vshrl.u32 %v486_v23, 23 }
   0xb   :  { %1318 = vmatpush3.bf16.msra.mxu0 %v1393_v2  ;;  %1347 = vmatpush3.bf16.msra.mxu1 %v1393_v2  ;;  %v1182_v24 = vadd.s32 4294967169, %v71_v19  ;;  %v1186_v25 = vadd.s32 4294967169, %v175_v21  ;;  %v75_v30 = vor.u32 8388608, %v74_v20  ;;  %v179_v31 = vor.u32 8388608, %v178_v22 }
   0xc   :  { %1319 = vmatprep.subr.bf16.mxu0 %v1394_v3  ;;  %1340 = vmatprep.subr.bf16.mxu1 %v1394_v3  ;;  %v1198_v33 = vadd.s32 4294967169, %v487_v26 }
   0xd   :  { %v77_v27 = vadd.s32 1, %v1182_v24  ;;  %v181_v32 = vadd.s32 1, %v1186_v25  ;;  %v1547_v40 = vshll.u32 %v75_v30, 8  ;;  %v1549_v41 = vshll.u32 %v179_v31, 8 }
   0xe   :  { %v1552_v43 = vadd.s32 1, %v1198_v33 }
   0xf   :  { %1320 = vmatpush3.bf16.msra.mxu0 %v1394_v3  ;;  %1348 = vmatpush3.bf16.msra.mxu1 %v1394_v3  ;;  %vm78_vm0 = vcmp.gt.s32.totalorder %v77_v27, 0  ;;  %vm182_vm1 = vcmp.gt.s32.totalorder %v181_v32, 0 }
  0x10   :  { %1321 = vmatprep.subr.bf16.mxu0 %v1395_v12  ;;  %1341 = vmatprep.subr.bf16.mxu1 %v1395_v12  ;;  %v79_v34 = vsel %vm78_vm0, %v77_v27, 0  ;;  %v183_v37 = vsel %vm182_vm1, %v181_v32, 0  ;;  %vm494_vm6 = vcmp.gt.s32.totalorder %v1552_v43, 0 }
  0x11   :  { %v1537_v35 = vshrl.u32 %v79_v34, 5  ;;  %v81_v36 = vand.u32 31, %v79_v34  ;;  %v185_v49 = vand.u32 31, %v183_v37  ;;  %v1559_v56 = vshrl.u32 %v183_v37, 5 }
  0x13   :  { %1322 = vmatpush3.bf16.msra.mxu0 %v1395_v12  ;;  %1349 = vmatpush3.bf16.msra.mxu1 %v1395_v12  ;;  %v82_v44 = vsub.s32 32, %v81_v36  ;;  %v84_v46 = vshll.u32 %v1432_v45, %v81_v36  ;;  %v87_v48 = vshll.u32 %v1433_v47, %v81_v36  ;;  %v90_v51 = vshll.u32 %v1434_v50, %v81_v36 }
  0x14   :  { %1323 = vmatprep.subr.bf16.mxu0 %v1396_v18  ;;  %1342 = vmatprep.subr.bf16.mxu1 %v1396_v18  ;;  %v93_v53 = vshll.u32 %v1435_v52, %v81_v36  ;;  %v96_v55 = vshll.u32 %v1436_v54, %v81_v36  ;;  %vm99_vm2 = vcmp.lt.s32.totalorder %v1537_v35, 1  ;;  %vm101_vm3 = vcmp.lt.s32.totalorder %v1537_v35, 3 }
  0x15   :  { %v83_v57 = vshrl.u32 %v1432_v45, %v82_v44  ;;  %v85_v58 = vshrl.u32 %v1433_v47, %v82_v44  ;;  %v88_v59 = vshrl.u32 %v1434_v50, %v82_v44  ;;  %v91_v60 = vshrl.u32 %v1435_v52, %v82_v44 }
  0x16   :  { %v94_v61 = vshrl.u32 %v1436_v54, %v82_v44  ;;  %v97_v63 = vshrl.u32 %v1437_v62, %v82_v44  ;;  %vm102_vm4 = vcmp.lt.s32.totalorder %v1537_v35, 4  ;;  %v186_v2 = vsub.s32 32, %v185_v49 }
  0x17   :  { %1324 = vmatpush3.bf16.msra.mxu0 %v1396_v18  ;;  %1350 = vmatpush3.bf16.msra.mxu1 %v1396_v18  ;;  %v86_v0 = vor.u32 %v85_v58, %v84_v46  ;;  %v89_v1 = vor.u32 %v88_v59, %v87_v48  ;;  %v92_v3 = vor.u32 %v91_v60, %v90_v51  ;;  %vm100_vm5 = vcmp.lt.s32.totalorder %v1537_v35, 2 }
  0x18   :  { %1325 = vmatprep.subr.bf16.mxu0 %v1397_v29  ;;  %1343 = vmatprep.subr.bf16.mxu1 %v1397_v29  ;;  %v95_v12 = vor.u32 %v94_v61, %v93_v53  ;;  %v98_v15 = vor.u32 %v97_v63, %v96_v55  ;;  %v188_v17 = vshll.u32 %v1432_v45, %v185_v49  ;;  %vm203_vm7 = vcmp.lt.s32.totalorder %v1559_v56, 1 }
  0x19   :  { %v103_v18 = vsel %vm99_vm2, %v83_v57, %v86_v0  ;;  %v107_v19 = vsel %vm99_vm2, %v86_v0, %v89_v1  ;;  %v191_v20 = vshll.u32 %v1433_v47, %v185_v49  ;;  %v104_v21 = vsel %vm102_vm4, %v92_v3, 2102212464 }
  0x1a   :  { %v108_v22 = vsel %vm102_vm4, %v95_v12, 920167782  ;;  %v111_v23 = vsel %vm99_vm2, %v89_v1, %v92_v3  ;;  %v112_v24 = vsel %vm102_vm4, %v98_v15, 1326507024  ;;  %v105_v25 = vsel %vm101_vm3, %v89_v1, %v104_v21 }
  0x1b   :  { %1326 = vmatpush3.bf16.msra.mxu0 %v1397_v29  ;;  %1351 = vmatpush3.bf16.msra.mxu1 %v1397_v29  ;;  %v109_v26 = vsel %vm101_vm3, %v92_v3, %v108_v22  ;;  %v113_v27 = vsel %vm101_vm3, %v95_v12, %v112_v24  ;;  %v189_v29 = vshrl.u32 %v1433_v47, %v186_v2  ;;  %vm204_vm8 = vcmp.lt.s32.totalorder %v1559_v56, 2 }
  0x1c   :  { %1327 = vmatprep.subr.bf16.mxu0 %v1398_v39  ;;  %1344 = vmatprep.subr.bf16.mxu1 %v1398_v39  ;;  %v106_v30 = vsel %vm100_vm5, %v103_v18, %v105_v25  ;;  %v110_v31 = vsel %vm100_vm5, %v107_v19, %v109_v26  ;;  %v114_v32 = vsel %vm100_vm5, %v111_v23, %v113_v27  ;;  %vm206_vm10 = vcmp.lt.s32.totalorder %v1559_v56, 4 }
  0x1d   :  { %v192_v33 = vshrl.u32 %v1434_v50, %v186_v2  ;;  %v1589_v34 = vmul.u32.u64.low %v1547_v40, %v114_v32  ;;  %v1590_v36 = vmul.u32.u64.high %v1547_v40, %v114_v32, %v1589_v34  ;;  %v187_v44 = vshrl.u32 %v1432_v45, %v186_v2 }
  0x1e   :  { %v190_v35 = vor.u32 %v189_v29, %v188_v17  ;;  %v194_v48 = vshll.u32 %v1434_v50, %v185_v49  ;;  %v195_v51 = vshrl.u32 %v1435_v52, %v186_v2  ;;  %v197_v53 = vshll.u32 %v1435_v52, %v185_v49 }
  0x1f   :  { %1328 = vmatpush3.bf16.msra.mxu0 %v1398_v39  ;;  %1352 = vmatpush3.bf16.msra.mxu1 %v1398_v39  ;;  %v1593_v37 = vmul.u32.u64.low %v1547_v40, %v110_v31  ;;  %v1594_v39 = vmul.u32.u64.high %v1547_v40, %v110_v31, %v1593_v37  ;;  %v193_v46 = vor.u32 %v192_v33, %v191_v20  ;;  %v198_v55 = vshrl.u32 %v1436_v54, %v186_v2 }
  0x20   :  { %v200_v57 = vshll.u32 %v1436_v54, %v185_v49  ;;  %v122_v58 = vmul.u32 %v1547_v40, %v106_v30  ;;  %v201_v59 = vshrl.u32 %v1437_v62, %v186_v2  ;;  %v196_v61 = vor.u32 %v195_v51, %v194_v48 }
  0x21   :  { %vm124_vm9 = vc.u32 %v1590_v36, %v1593_v37  ;;  %v125_v60 = vadd.s32 1, %v1594_v39  ;;  %v199_v63 = vor.u32 %v198_v55, %v197_v53  ;;  %vm205_vm11 = vcmp.lt.s32.totalorder %v1559_v56, 3 }
  0x22   :  { %v202_v0 = vor.u32 %v201_v59, %v200_v57  ;;  %v207_v49 = vsel %vm203_vm7, %v187_v44, %v190_v35  ;;  %v208_v1 = vsel %vm206_vm10, %v196_v61, 2102212464  ;;  %v211_v2 = vsel %vm203_vm7, %v190_v35, %v193_v46 }
  0x23   :  { %v126_v40 = vsel %vm124_vm9, %v125_v60, %v1594_v39  ;;  %v215_v3 = vsel %vm203_vm7, %v193_v46, %v196_v61  ;;  %v209_v15 = vsel %vm205_vm11, %v193_v46, %v208_v1  ;;  %v212_v17 = vsel %vm206_vm10, %v199_v63, 920167782 }
  0x24   :  { %v127_v12 = vadd.s32 %v126_v40, %v122_v58  ;;  %v216_v18 = vsel %vm206_vm10, %v202_v0, 1326507024  ;;  %v213_v19 = vsel %vm205_vm11, %v196_v61, %v212_v17  ;;  %v490_v21 = vand.u32 8388607, %v483_v42 }
  0x25   :  { %v217_v20 = vsel %vm205_vm11, %v199_v63, %v216_v18  ;;  %v495_v22 = vsel %vm494_vm6, %v1552_v43, 0  ;;  %v210_v24 = vsel %vm204_vm8, %v207_v49, %v209_v15  ;;  %v214_v25 = vsel %vm204_vm8, %v211_v2, %v213_v19 }
  0x26   :  { %v128_v23 = vadd.s32 536870912, %v127_v12  ;;  %v218_v26 = vsel %vm204_vm8, %v215_v3, %v217_v20  ;;  %v1629_v30 = vmul.u32.u64.low %v1549_v41, %v214_v25  ;;  %v1630_v31 = vmul.u32.u64.high %v1549_v41, %v214_v25, %v1629_v30 }
  0x27   :  { %v1625_v27 = vmul.u32.u64.low %v1549_v41, %v218_v26  ;;  %v1626_v29 = vmul.u32.u64.high %v1549_v41, %v218_v26, %v1625_v27  ;;  %v497_v32 = vand.u32 31, %v495_v22  ;;  %v491_v33 = vor.u32 8388608, %v490_v21 }
  0x28   :  { %v1633_v43 = vshrl.u32 %v128_v23, 30  ;;  %v226_v39 = vmul.u32 %v1549_v41, %v210_v24  ;;  %v590_v56 = vand.u32 2139095040, %v1542_v38  ;;  %v229_v35 = vadd.s32 1, %v1630_v31 }
  0x29   :  { %v498_v44 = vsub.s32 32, %v497_v32  ;;  %vm228_vm12 = vc.u32 %v1626_v29, %v1629_v30  ;;  %v1641_v46 = vshrl.u32 %v495_v22, 5  ;;  %v500_v51 = vshll.u32 %v1432_v45, %v497_v32 }
  0x2a   :  { %v130_v34 = vshll.u32 %v1633_v43, 30  ;;  %v230_v55 = vsel %vm228_vm12, %v229_v35, %v1630_v31  ;;  %v503_v41 = vshll.u32 %v1433_v47, %v497_v32  ;;  %v506_v58 = vshll.u32 %v1434_v50, %v497_v32 }
  0x2b   :  { %v501_v53 = vshrl.u32 %v1433_v47, %v498_v44  ;;  %v504_v57 = vshrl.u32 %v1434_v50, %v498_v44  ;;  %v231_v60 = vadd.s32 %v230_v55, %v226_v39  ;;  %v1652_v61 = vshll.u32 %v491_v33, 8 }
  0x2c   :  { %v1643_v48 = vsub.s32 %v127_v12, %v130_v34  ;;  %v591_v63 = vshrl.u32 %v590_v56, 23  ;;  %v507_v0 = vshrl.u32 %v1435_v52, %v498_v44  ;;  %v509_v49 = vshll.u32 %v1435_v52, %v497_v32 }
  0x2d   :  { %v510_v40 = vshrl.u32 %v1436_v54, %v498_v44  ;;  %vm518_vm13 = vcmp.lt.s32.totalorder %v1641_v46, 4  ;;  %v232_v2 = vadd.s32 536870912, %v231_v60  ;;  %v502_v3 = vor.u32 %v501_v53, %v500_v51 }
  0x2e   :  { %v133_v59 = vsub.s32 0, %v1643_v48  ;;  %v512_v12 = vshll.u32 %v1436_v54, %v497_v32  ;;  %v505_v15 = vor.u32 %v504_v57, %v503_v41  ;;  %v508_v17 = vor.u32 %v507_v0, %v506_v58 }
  0x2f   :  { %v511_v18 = vor.u32 %v510_v40, %v509_v49  ;;  %v513_v19 = vshrl.u32 %v1437_v62, %v498_v44  ;;  %v499_v21 = vshrl.u32 %v1432_v45, %v498_v44  ;;  %vm515_vm15 = vcmp.lt.s32.totalorder %v1641_v46, 1 }
  0x30   :  { %v1183_v1 = vmin.u32 %v133_v59, %v1643_v48  ;;  %vm517_vm0 = vcmp.lt.s32.totalorder %v1641_v46, 3  ;;  %v123_v22 = vadd.s32 %v1593_v37, %v1590_v36  ;;  %v1667_v23 = vshrl.u32 %v232_v2, 30 }
  0x31   :  { %v514_v24 = vor.u32 %v513_v19, %v512_v12  ;;  %vm516_vm1 = vcmp.lt.s32.totalorder %v1641_v46, 2  ;;  %vm1672_vm2 = vcmp.le.f32.partialorder %v67_v14, 0.7853982  ;;  %v520_v27 = vsel %vm518_vm13, %v508_v17, 2102212464 }
  0x32   :  { %v135_v20 = vclz %v1183_v1  ;;  %v524_v31 = vsel %vm518_vm13, %v511_v18, 920167782  ;;  %v1202_v32 = vadd.s32 4294967169, %v591_v63  ;;  %v153_v36 = vsub.s32 4, %v1633_v43 }
  0x33   :  { %v234_v37 = vshll.u32 %v1667_v23, 30  ;;  %v523_v33 = vsel %vm515_vm15, %v502_v3, %v505_v15  ;;  %v525_v14 = vsel %vm517_vm0, %v508_v17, %v524_v31  ;;  %v519_v34 = vsel %vm515_vm15, %v499_v21, %v502_v3 }
  0x34   :  { %v1184_v26 = vadd.s32 4294967294, %v135_v20  ;;  %v527_v39 = vsel %vm515_vm15, %v505_v15, %v508_v17  ;;  %v528_v44 = vsel %vm518_vm13, %v514_v24, 1326507024  ;;  %v521_v51 = vsel %vm517_vm0, %v505_v15, %v520_v27 }
  0x35   :  { %v1692_v35 = vsub.s32 %v231_v60, %v234_v37  ;;  %v529_v53 = vsel %vm517_vm0, %v511_v18, %v528_v44  ;;  %v526_v58 = vsel %vm516_vm1, %v523_v33, %v525_v14  ;;  %v154_v59 = vsel %vm69_vm14, %v153_v36, %v1633_v43 }
  0x36   :  { %vm1185_vm3 = vcmp.lt.s32.totalorder %v1184_v26, 0  ;;  %v530_v63 = vsel %vm516_vm1, %v527_v39, %v529_v53  ;;  %v597_v0 = vadd.s32 1, %v1202_v32  ;;  %v522_v43 = vsel %vm516_vm1, %v519_v34, %v521_v51 }
  0x37   :  { %v138_v56 = vsel %vm1185_vm3, 0, %v1184_v26  ;;  %v237_v60 = vsub.s32 0, %v1692_v35  ;;  %v1708_v1 = vmul.u32.u64.low %v1652_v61, %v530_v63  ;;  %v1709_v2 = vmul.u32.u64.high %v1652_v61, %v530_v63, %v1708_v1 }
  0x38   :  { %v139_v55 = vsub.s32 32, %v138_v56  ;;  %v140_v41 = vshll.u32 %v1643_v48, %v138_v56  ;;  %v143_v57 = vsub.s32 4294967266, %v138_v56  ;;  %v1714_v48 = vld [vmem:[%s2278_s0 + $0x8] sm:$0xff]   ;;  %v587_v19 = vand.u32 2147483647, %v1542_v38 }
  0x39   :  { %v1187_v3 = vmin.u32 %v237_v60, %v1692_v35  ;;  %v1720_v12 = vmul.u32.u64.low %v1652_v61, %v526_v58  ;;  %v1721_v15 = vmul.u32.u64.high %v1652_v61, %v526_v58, %v1720_v12  ;;  %vm598_vm4 = vcmp.gt.s32.totalorder %v597_v0, 0 }
  0x3a   :  { %v141_v49 = vshrl.u32 %v123_v22, %v139_v55  ;;  %v144_v40 = vadd.s32 127, %v143_v57  ;;  %v156_v20 = vsel %vm1672_vm2, 0, %v154_v59  ;;  %v257_v22 = vsub.s32 4, %v1667_v23 }
  0x3b   :  { %v239_v21 = vclz %v1187_v3  ;;  %v1246_v24 = vunpack.c.l.bf16 %v1714_v48  ;;  %v538_v27 = vmul.u32 %v1652_v61, %v522_v43  ;;  %vm540_vm5 = vc.u32 %v1709_v2, %v1720_v12 }
  0x3c   :  { %v142_v17 = vor.u32 %v141_v49, %v140_v41  ;;  %v145_v18 = vshll.u32 %v144_v40, 23  ;;  %v541_v32 = vadd.s32 1, %v1721_v15  ;;  %v599_v36 = vsel %vm598_vm4, %v597_v0, 0 }
  0x3d   :  { %v1188_v31 = vadd.s32 4294967294, %v239_v21  ;;  %v1247_v37 = vunpack.c.h.bf16 %v1714_v48  ;;  %vm173_vm6 = vcmp.lt.s32.totalorder %v1511_v11, 0  ;;  %v594_v14 = vand.u32 8388607, %v587_v19 }
  0x3e   :  { %v146_v46 = vor.u32 4788187, %v145_v18  ;;  %v149_v26 = vcvt.s32.f32 %v142_v17  ;;  %v601_v34 = vand.u32 31, %v599_v36  ;;  %v160_v39 = vadd.s32 3, %v156_v20 }
  0x3f   :  { %v227_v61 = vadd.s32 %v1629_v30, %v1626_v29  ;;  %vm1189_vm7 = vcmp.lt.s32.totalorder %v1188_v31, 0  ;;  %v542_v44 = vsel %vm540_vm5, %v541_v32, %v1721_v15  ;;  %v258_v53 = vsel %vm173_vm6, %v257_v22, %v1667_v23 }
  0x40   :  { %v147_v33 = vand.u32 2147483647, %v146_v46  ;;  %v242_v51 = vsel %vm1189_vm7, 0, %v1188_v31  ;;  %v543_v55 = vadd.s32 %v542_v44, %v538_v27  ;;  %v602_v59 = vsub.s32 32, %v601_v34 }
  0x41   :  { %v243_v41 = vsub.s32 32, %v242_v51  ;;  %v244_v57 = vshll.u32 %v1692_v35, %v242_v51  ;;  %v247_v58 = vsub.s32 4294967266, %v242_v51  ;;  %vm1746_vm8 = vcmp.le.f32.partialorder %v171_v16, 0.7853982 }
  0x42   :  { %v150_v56 = vmul.f32 %v149_v26, %v147_v33  ;;  %v544_v30 = vadd.s32 536870912, %v543_v55  ;;  %v595_v63 = vor.u32 8388608, %v594_v14  ;;  %v1750_v0 = vand.u32 3, %v160_v39 }
  0x43   :  { %v245_v49 = vshrl.u32 %v227_v61, %v243_v41  ;;  %v248_v40 = vadd.s32 127, %v247_v58  ;;  %v260_v23 = vsel %vm1746_vm8, 0, %v258_v53  ;;  %v1758_v3 = vshrl.u32 %v599_v36, 5 }
  0x44   :  { %v151_v60 = vxor.u32 2147483648, %v150_v56  ;;  %v1756_v1 = vshrl.u32 %v544_v30, 30  ;;  %v604_v16 = vshll.u32 %v1432_v45, %v601_v34  ;;  %v605_v18 = vshrl.u32 %v1433_v47, %v602_v59 }
  0x45   :  { %v246_v15 = vor.u32 %v245_v49, %v244_v57  ;;  %v249_v17 = vshll.u32 %v248_v40, 23  ;;  %v607_v21 = vshll.u32 %v1433_v47, %v601_v34  ;;  %v608_v22 = vshrl.u32 %v1434_v50, %v602_v59 }
  0x46   :  { %v152_v35 = vsel %vm69_vm14, %v151_v60, %v150_v56  ;;  %v546_v20 = vshll.u32 %v1756_v1, 30  ;;  %v613_v27 = vshll.u32 %v1435_v52, %v601_v34  ;;  %vm166_vm9 = vcmp.eq.s32.totalorder %v1750_v0, 2 }
  0x47   :  { %v155_v43 = vsel %vm1672_vm2, %v1506_v10, %v152_v35  ;;  %v250_v46 = vor.u32 4788187, %v249_v17  ;;  %v253_v26 = vcvt.s32.f32 %v246_v15  ;;  %v610_v31 = vshll.u32 %v1434_v50, %v601_v34 }
  0x48   :  { %1399 = vcosq.f32 %v155_v43  ;;  %v1770_v25 = vsub.s32 %v543_v55, %v546_v20  ;;  %v611_v32 = vshrl.u32 %v1435_v52, %v602_v59  ;;  %v614_v36 = vshrl.u32 %v1436_v54, %v602_v59 }
  0x49   :  { %1401 = vsinq.f32 %v155_v43  ;;  %vm163_vm10 = vcmp.eq.s32.totalorder %v1750_v0, 0  ;;  %v251_v33 = vand.u32 2147483647, %v250_v46  ;;  %v264_v14 = vadd.s32 3, %v260_v23 }
  0x4a   :  { %v616_v39 = vshll.u32 %v1436_v54, %v601_v34  ;;  %v617_v61 = vshrl.u32 %v1437_v62, %v602_v59  ;;  %vm162_vm11 = vcmp.lt.s32.totalorder %v1750_v0, 2  ;;  %v539_v44 = vadd.s32 %v1720_v12, %v1709_v2 }
  0x4b   :  { %v549_v56 = vsub.s32 0, %v1770_v25  ;;  %v615_v51 = vor.u32 %v614_v36, %v613_v27  ;;  %v1782_v53 = vshll.u32 %v595_v63, 8  ;;  %v254_v55 = vmul.f32 %v253_v26, %v251_v33 }
  0x4c   :  { %v603_v41 = vshrl.u32 %v1432_v45, %v602_v59  ;;  %v606_v57 = vor.u32 %v605_v18, %v604_v16  ;;  %v609_v58 = vor.u32 %v608_v22, %v607_v21  ;;  %v612_v34 = vor.u32 %v611_v32, %v610_v31 }
  0x4d   :  { %v1199_v60 = vmin.u32 %v549_v56, %v1770_v25  ;;  %vm619_vm12 = vcmp.lt.s32.totalorder %v1758_v3, 1  ;;  %vm622_vm13 = vcmp.lt.s32.totalorder %v1758_v3, 4  ;;  %vm159_vm14 = vweird.f32 %v1506_v10 }
  0x4e   :  { %v255_v2 = vxor.u32 2147483648, %v254_v55  ;;  %vm485_vm15 = vcmp.lt.s32.totalorder %v1519_v13, 0  ;;  %v618_v12 = vor.u32 %v617_v61, %v616_v39  ;;  %vm621_vm0 = vcmp.lt.s32.totalorder %v1758_v3, 3  ;;  %v1830_v39 = vld [vmem:[%s2278_s0 + $0x18] sm:$0xff]  }
  0x4f   :  { %v628_v59 = vsel %vm622_vm13, %v615_v51, 920167782  ;;  %v551_v30 = vclz %v1199_v60  ;;  %v569_v63 = vsub.s32 4, %v1756_v1  ;;  %v624_v49 = vsel %vm622_vm13, %v612_v34, 2102212464 }
  0x50   :  { %v1799_v40 = vmul.f32 %v1246_v24, %v1493_v5  ;;  %v256_v23 = vsel %vm173_vm6, %v255_v2, %v254_v55  ;;  %vm620_vm1 = vcmp.lt.s32.totalorder %v1758_v3, 2  ;;  %v623_v35 = vsel %vm619_vm12, %v603_v41, %v606_v57 }
  0x51   :  { %v627_v16 = vsel %vm619_vm12, %v606_v57, %v609_v58  ;;  %v259_v15 = vsel %vm1746_vm8, %v1511_v11, %v256_v23  ;;  %v1200_v17 = vadd.s32 4294967294, %v551_v30  ;;  %v629_v18 = vsel %vm621_vm0, %v612_v34, %v628_v59 }
  0x52   :  { %v1400_v43 = vpop.eup %1399  ;;  %v631_v20 = vsel %vm619_vm12, %v609_v58, %v612_v34  ;;  %1403 = vcosq.f32 %v259_v15  ;;  %v625_v46 = vsel %vm621_vm0, %v609_v58, %v624_v49  ;;  %v632_v26 = vsel %vm622_vm13, %v618_v12, 1326507024 }
  0x53   :  { %v1402_v21 = vpop.eup %1401  ;;  %v167_v22 = vxor.u32 2147483648, %v1400_v43  ;;  %1405 = vsinq.f32 %v259_v15  ;;  %vm1201_vm2 = vcmp.lt.s32.totalorder %v1200_v17, 0  ;;  %v633_v29 = vsel %vm621_vm0, %v615_v51, %v632_v26  ;;  %v1870_v15 = vld [vmem:[%s2280_s4] ss:$0 sm:$0xff] }
  0x54   :  { %v164_v27 = vxor.u32 2147483648, %v1402_v21  ;;  %v554_v32 = vsel %vm1201_vm2, 0, %v1200_v17  ;;  %v630_v36 = vsel %vm620_vm1, %v627_v16, %v629_v18  ;;  %v634_v33 = vsel %vm620_vm1, %v631_v20, %v633_v29 }
  0x55   :  { %v168_v31 = vsel %vm166_vm9, %v167_v22, %v1402_v21  ;;  %v555_v56 = vsub.s32 32, %v554_v32  ;;  %v556_v51 = vshll.u32 %v1770_v25, %v554_v32  ;;  %v559_v55 = vsub.s32 4294967266, %v554_v32 }
  0x56   :  { %v165_v61 = vsel %vm163_vm10, %v1400_v43, %v164_v27  ;;  %v265_v57 = vand.u32 3, %v264_v14  ;;  %v1838_v58 = vmul.u32.u64.low %v1782_v53, %v634_v33  ;;  %v1839_v60 = vmul.u32.u64.high %v1782_v53, %v634_v33, %v1838_v58 }
  0x57   :  { %v169_v41 = vsel %vm162_vm11, %v165_v61, %v168_v31  ;;  %v557_v34 = vshrl.u32 %v539_v44, %v555_v56  ;;  %v560_v2 = vadd.s32 127, %v559_v55  ;;  %v570_v12 = vsel %vm485_vm15, %v569_v63, %v1756_v1 }
  0x58   :  { %v1254_v59 = vunpack.c.l.bf16 %v1830_v39  ;;  %v626_v25 = vsel %vm620_vm1, %v623_v35, %v625_v46  ;;  %v1848_v30 = vmul.u32.u64.low %v1782_v53, %v630_v36  ;;  %v1849_v0 = vmul.u32.u64.high %v1782_v53, %v630_v36, %v1848_v30 }
  0x59   :  { %v278_v14 = vand.u32 2139095040, %v1799_v40  ;;  %v170_v44 = vsel %vm159_vm14, nan, %v169_v41  ;;  %vm1857_vm3 = vcmp.le.f32.partialorder %v483_v42, 0.7853982  ;;  %v558_v1 = vor.u32 %v557_v34, %v556_v51 }
  0x5a   :  { %v561_v63 = vshll.u32 %v560_v2, 23  ;;  %vm263_vm4 = vweird.f32 %v1511_v11  ;;  %vm270_vm5 = vcmp.eq.s32.totalorder %v265_v57, 2  ;;  %v572_v3 = vsel %vm1857_vm3, 0, %v570_v12 }
  0x5b   :  { %v279_v23 = vshrl.u32 %v278_v14, 23  ;;  %v565_v16 = vcvt.s32.f32 %v558_v1  ;;  %v642_v10 = vmul.u32 %v1782_v53, %v626_v25  ;;  %vm644_vm6 = vc.u32 %v1839_v60, %v1848_v30 }
  0x5c   :  { %v562_v35 = vor.u32 4788187, %v561_v63  ;;  %v1404_v42 = vpop.eup %1403  ;;  %v899_v43 = vmul.f32 %v170_v44, %v170_v44  ;;  %v645_v17 = vadd.s32 1, %v1849_v0  ;;  %v275_v18 = vand.u32 2147483647, %v1799_v40 }
  0x5d   :  { %v1190_v20 = vadd.s32 4294967169, %v279_v23  ;;  %v1406_v21 = vpop.eup %1405  ;;  %vm266_vm7 = vcmp.lt.s32.totalorder %v265_v57, 2  ;;  %vm267_vm8 = vcmp.eq.s32.totalorder %v265_v57, 0  ;;  %v271_v22 = vxor.u32 2147483648, %v1404_v42 }
  0x5e   :  { %v563_v53 = vand.u32 2147483647, %v562_v35  ;;  %v268_v46 = vxor.u32 2147483648, %v1406_v21  ;;  %v646_v26 = vsel %vm644_vm6, %v645_v17, %v1849_v0  ;;  %v1878_v27 = vmul.f32 %v1247_v37, %v1493_v5 }
  0x5f   :  { %v285_v29 = vadd.s32 1, %v1190_v20  ;;  %v272_v31 = vsel %vm270_vm5, %v271_v22, %v1406_v21  ;;  %v576_v36 = vadd.s32 3, %v572_v3  ;;  %v647_v33 = vadd.s32 %v646_v26, %v642_v10 }
  0x60   :  { %v566_v32 = vmul.f32 %v565_v16, %v563_v53  ;;  %v269_v61 = vsel %vm267_vm8, %v1404_v42, %v268_v46  ;;  %v914_v56 = vmul.f32 %v1870_v15, %v899_v43  ;;  %v282_v51 = vand.u32 8388607, %v275_v18 }
  0x61   :  { %vm286_vm9 = vcmp.gt.s32.totalorder %v285_v29, 0  ;;  %v273_v55 = vsel %vm266_vm7, %v269_v61, %v272_v31  ;;  %v648_v58 = vadd.s32 536870912, %v647_v33  ;;  %v1892_v44 = vmul.f32 %v1254_v59, %v1493_v5 }
  0x62   :  { %v567_v41 = vxor.u32 2147483648, %v566_v32  ;;  %v287_v34 = vsel %vm286_vm9, %v285_v29, 0  ;;  %v274_v2 = vsel %vm263_vm4, nan, %v273_v55  ;;  %v1897_v1 = vand.u32 3, %v576_v36 }
  0x63   :  { %v289_v12 = vand.u32 31, %v287_v34  ;;  %v900_v25 = vmul.f32 %v274_v2, %v274_v2  ;;  %v649_v14 = vshrl.u32 %v648_v58, 30  ;;  %v382_v11 = vand.u32 2139095040, %v1878_v27 }
  0x64   :  { %v568_v0 = vsel %vm485_vm15, %v567_v41, %v566_v32  ;;  %v922_v23 = vadd.f32 %v1242_v7, %v914_v56  ;;  %vm589_vm10 = vcmp.lt.s32.totalorder %v1542_v38, 0  ;;  %v283_v16 = vor.u32 8388608, %v282_v51 }
  0x65   :  { %v571_v57 = vsel %vm1857_vm3, %v1519_v13, %v568_v0  ;;  %v290_v63 = vsub.s32 32, %v289_v12  ;;  %v915_v3 = vmul.f32 %v1870_v15, %v900_v25  ;;  %v650_v35 = vshll.u32 %v649_v14, 30 }
  0x66   :  { %1407 = vcosq.f32 %v571_v57  ;;  %v292_v5 = vshll.u32 %v1432_v45, %v289_v12  ;;  %v295_v10 = vshll.u32 %v1433_v47, %v289_v12  ;;  %v298_v7 = vshll.u32 %v1434_v50, %v289_v12 }
  0x67   :  { %v293_v49 = vshrl.u32 %v1433_v47, %v290_v63  ;;  %v923_v42 = vadd.f32 %v1243_v8, %v915_v3  ;;  %v1909_v43 = vsub.s32 %v647_v33, %v650_v35  ;;  %v296_v17 = vshrl.u32 %v1434_v50, %v290_v63 }
  0x68   :  { %vm1915_vm11 = vcmp.le.f32.partialorder %v587_v19, 0.7853982  ;;  %v288_v21 = vshrl.u32 %v287_v34, 5  ;;  %v299_v22 = vshrl.u32 %v1435_v52, %v290_v63  ;;  %v379_v53 = vand.u32 2147483647, %v1878_v27 }
  0x69   :  { %v383_v46 = vshrl.u32 %v382_v11, 23  ;;  %v930_v4 = vpack.c.bf16 %v923_v42, %v922_v23  ;;  %1409 = vsinq.f32 %v571_v57  ;;  %v653_v8 = vsub.s32 0, %v1909_v43 }
  0x6a   :  { %v301_v26 = vshll.u32 %v1435_v52, %v289_v12  ;;  %v673_v29 = vsub.s32 4, %v649_v14  ;;  %v302_v31 = vshrl.u32 %v1436_v54, %v290_v63  ;;  %v304_v19 = vshll.u32 %v1436_v54, %v289_v12 }
  0x6b   :  { %v305_v32 = vshrl.u32 %v1437_v62, %v290_v63  ;;  %1329 = vmatprep.mubr.bf16.mxu0 %v930_v4  ;;  %v1203_v36 = vmin.u32 %v653_v8, %v1909_v43  ;;  %v294_v33 = vor.u32 %v293_v49, %v292_v5  ;;  %v297_v61 = vor.u32 %v296_v17, %v295_v10 }
  0x6c   :  { %v300_v56 = vor.u32 %v299_v22, %v298_v7  ;;  %v303_v51 = vor.u32 %v302_v31, %v301_v26  ;;  %vm307_vm12 = vcmp.lt.s32.totalorder %v288_v21, 1  ;;  %vm310_vm13 = vcmp.lt.s32.totalorder %v288_v21, 4 }
  0x6d   :  { %v306_v55 = vor.u32 %v305_v32, %v304_v19  ;;  %vm582_vm14 = vcmp.eq.s32.totalorder %v1897_v1, 2  ;;  %v643_v41 = vadd.s32 %v1848_v30, %v1839_v60  ;;  %v655_v58 = vclz %v1203_v36 }
  0x6e   :  { %v291_v34 = vshrl.u32 %v1432_v45, %v290_v63  ;;  %vm309_vm15 = vcmp.lt.s32.totalorder %v288_v21, 3  ;;  %v674_v2 = vsel %vm589_vm10, %v673_v29, %v649_v14  ;;  %v316_v12 = vsel %vm310_vm13, %v303_v51, 920167782 }
  0x6f   :  { %v1934_v25 = vshll.u32 %v283_v16, 8  ;;  %v1194_v0 = vadd.s32 4294967169, %v383_v46  ;;  %vm579_vm0 = vcmp.eq.s32.totalorder %v1897_v1, 0  ;;  %v1204_v57 = vadd.s32 4294967294, %v655_v58 }
  0x70   :  { %vm308_vm1 = vcmp.lt.s32.totalorder %v288_v21, 2  ;;  %v312_v11 = vsel %vm310_vm13, %v300_v56, 2102212464  ;;  %v319_v60 = vsel %vm307_vm12, %v297_v61, %v300_v56  ;;  %v1408_v30 = vpop.eup %1407  ;;  %v315_v63 = vsel %vm307_vm12, %v294_v33, %v297_v61 }
  0x71   :  { %v317_v3 = vsel %vm309_vm15, %v300_v56, %v316_v12  ;;  %v320_v14 = vsel %vm310_vm13, %v306_v55, 1326507024  ;;  %v1944_v23 = vand.u32 8388607, %v379_v53  ;;  %vm1205_vm2 = vcmp.lt.s32.totalorder %v1204_v57, 0 }
  0x72   :  { %v676_v35 = vsel %vm1915_vm11, 0, %v674_v2  ;;  %v311_v16 = vsel %vm307_vm12, %v291_v34, %v294_v33  ;;  %v321_v5 = vsel %vm309_vm15, %v303_v51, %v320_v14  ;;  %v658_v49 = vsel %vm1205_vm2, 0, %v1204_v57 }
  0x73   :  { %v313_v10 = vsel %vm309_vm15, %v297_v61, %v312_v11  ;;  %v322_v42 = vsel %vm308_vm1, %v319_v60, %v321_v5  ;;  %v389_v17 = vadd.s32 1, %v1194_v0  ;;  %v1410_v7 = vpop.eup %1409  ;;  %v659_v22 = vsub.s32 32, %v658_v49 }
  0x74   :  { %v660_v46 = vshll.u32 %v1909_v43, %v658_v49  ;;  %v663_v4 = vsub.s32 4294967266, %v658_v49  ;;  %v318_v8 = vsel %vm308_vm1, %v315_v63, %v317_v3  ;;  %v583_v26 = vxor.u32 2147483648, %v1408_v30 }
  0x75   :  { %v1955_v29 = vmul.u32.u64.low %v1934_v25, %v322_v42  ;;  %v1956_v31 = vmul.u32.u64.high %v1934_v25, %v322_v42, %v1955_v29  ;;  %vm390_vm3 = vcmp.gt.s32.totalorder %v389_v17, 0  ;;  %v661_v19 = vshrl.u32 %v643_v41, %v659_v22 }
  0x76   :  { %v664_v32 = vadd.s32 127, %v663_v4  ;;  %v314_v36 = vsel %vm308_vm1, %v311_v16, %v313_v10  ;;  %v391_v33 = vsel %vm390_vm3, %v389_v17, 0  ;;  %v580_v61 = vxor.u32 2147483648, %v1410_v7 }
  0x77   :  { %v1960_v56 = vmul.u32.u64.low %v1934_v25, %v318_v8  ;;  %v1961_v51 = vmul.u32.u64.high %v1934_v25, %v318_v8, %v1960_v56  ;;  %v387_v43 = vor.u32 8388608, %v1944_v23  ;;  %vm578_vm4 = vcmp.lt.s32.totalorder %v1897_v1, 2 }
  0x78   :  { %v662_v55 = vor.u32 %v661_v19, %v660_v46  ;;  %v665_v58 = vshll.u32 %v664_v32, 23  ;;  %v1966_v34 = vshrl.u32 %v391_v33, 5  ;;  %v393_v2 = vand.u32 31, %v391_v33 }
  0x79   :  { %v584_v21 = vsel %vm582_vm14, %v583_v26, %v1410_v7  ;;  %v680_v41 = vadd.s32 3, %v676_v35  ;;  %v330_v12 = vmul.u32 %v1934_v25, %v314_v36  ;;  %vm332_vm5 = vc.u32 %v1956_v31, %v1960_v56 }
  0x7a   :  { %v666_v0 = vor.u32 4788187, %v665_v58  ;;  %v669_v57 = vcvt.s32.f32 %v662_v55  ;;  %v394_v11 = vsub.s32 32, %v393_v2  ;;  %v396_v60 = vshll.u32 %v1432_v45, %v393_v2 }
  0x7b   :  { %v581_v63 = vsel %vm579_vm0, %v1408_v30, %v580_v61  ;;  %v333_v3 = vadd.s32 1, %v1961_v51  ;;  %v399_v14 = vshll.u32 %v1433_v47, %v393_v2  ;;  %v402_v23 = vshll.u32 %v1434_v50, %v393_v2 }
  0x7c   :  { %vm575_vm6 = vweird.f32 %v1519_v13  ;;  %v667_v25 = vand.u32 2147483647, %v666_v0  ;;  %v397_v35 = vshrl.u32 %v1433_v47, %v394_v11  ;;  %v400_v16 = vshrl.u32 %v1434_v50, %v394_v11 }
  0x7d   :  { %vm411_vm7 = vcmp.lt.s32.totalorder %v1966_v34, 1  ;;  %v334_v5 = vsel %vm332_vm5, %v333_v3, %v1961_v51  ;;  %v403_v49 = vshrl.u32 %v1435_v52, %v394_v11  ;;  %v405_v30 = vshll.u32 %v1435_v52, %v393_v2 }
  0x7e   :  { %v406_v10 = vshrl.u32 %v1436_v54, %v394_v11  ;;  %v670_v42 = vmul.f32 %v669_v57, %v667_v25  ;;  %v335_v17 = vadd.s32 %v334_v5, %v330_v12  ;;  %v398_v7 = vor.u32 %v397_v35, %v396_v60 }
  0x7f   :  { %v401_v22 = vor.u32 %v400_v16, %v399_v14  ;;  %v404_v46 = vor.u32 %v403_v49, %v402_v23  ;;  %v408_v8 = vshll.u32 %v1436_v54, %v393_v2  ;;  %v409_v26 = vshrl.u32 %v1437_v62, %v394_v11 }
  0x80   :  { %v407_v4 = vor.u32 %v406_v10, %v405_v30  ;;  %v671_v29 = vxor.u32 2147483648, %v670_v42  ;;  %v336_v19 = vadd.s32 536870912, %v335_v17  ;;  %v395_v32 = vshrl.u32 %v1432_v45, %v394_v11 }
  0x81   :  { %vm413_vm8 = vcmp.lt.s32.totalorder %v1966_v34, 3  ;;  %v410_v36 = vor.u32 %v409_v26, %v408_v8  ;;  %vm412_vm9 = vcmp.lt.s32.totalorder %v1966_v34, 2  ;;  %vm414_vm12 = vcmp.lt.s32.totalorder %v1966_v34, 4 }
  0x82   :  { %v419_v33 = vsel %vm411_vm7, %v398_v7, %v401_v22  ;;  %v672_v61 = vsel %vm589_vm10, %v671_v29, %v670_v42  ;;  %v337_v51 = vshrl.u32 %v336_v19, 30  ;;  %v416_v55 = vsel %vm414_vm12, %v404_v46, 2102212464 }
  0x83   :  { %v420_v58 = vsel %vm414_vm12, %v407_v4, 920167782  ;;  %v585_v2 = vsel %vm578_vm4, %v581_v63, %v584_v21  ;;  %v675_v12 = vsel %vm1915_vm11, %v1542_v38, %v672_v61  ;;  %v427_v57 = vshll.u32 %v387_v43, 8 }
  0x84   :  { %v421_v0 = vsel %vm413_vm8, %v404_v46, %v420_v58  ;;  %1411 = vcosq.f32 %v675_v12  ;;  %v338_v11 = vshll.u32 %v337_v51, 30  ;;  %v415_v60 = vsel %vm411_vm7, %v395_v32, %v398_v7 }
  0x85   :  { %v423_v3 = vsel %vm411_vm7, %v401_v22, %v404_v46  ;;  %1413 = vsinq.f32 %v675_v12  ;;  %v417_v1 = vsel %vm413_vm8, %v401_v22, %v416_v55  ;;  %v422_v20 = vsel %vm412_vm9, %v419_v33, %v421_v0 }
  0x86   :  { %v424_v21 = vsel %vm414_vm12, %v410_v36, 1326507024  ;;  %v681_v63 = vand.u32 3, %v680_v41  ;;  %v2018_v43 = vsub.s32 %v335_v17, %v338_v11  ;;  %v586_v23 = vsel %vm575_vm6, nan, %v585_v2 }
  0x87   :  { %v425_v14 = vsel %vm413_vm8, %v407_v4, %v424_v21  ;;  %v2026_v35 = vmul.u32.u64.low %v427_v57, %v422_v20  ;;  %v2027_v16 = vmul.u32.u64.high %v427_v57, %v422_v20, %v2026_v35  ;;  %v418_v41 = vsel %vm412_vm9, %v415_v60, %v417_v1 }
  0x88   :  { %v426_v25 = vsel %vm412_vm9, %v423_v3, %v425_v14  ;;  %v341_v5 = vsub.s32 0, %v2018_v43  ;;  %v361_v10 = vsub.s32 4, %v337_v51  ;;  %v694_v42 = vand.u32 2139095040, %v1892_v44 }
  0x89   :  { %v2033_v49 = vmul.u32.u64.low %v427_v57, %v426_v25  ;;  %v2034_v30 = vmul.u32.u64.high %v427_v57, %v426_v25, %v2033_v49  ;;  %vm679_vm10 = vweird.f32 %v1542_v38  ;;  %v903_v13 = vmul.f32 %v586_v23, %v586_v23 }
  0x8a   :  { %v1191_v17 = vmin.u32 %v341_v5, %v2018_v43  ;;  %v1255_v7 = vunpack.c.h.bf16 %v1830_v39  ;;  %vm2042_vm11 = vcmp.le.f32.partialorder %v275_v18, 0.7853982  ;;  %v434_v34 = vmul.u32 %v427_v57, %v418_v41  ;;  %v1431_v57 = vld [vmem:[%s2279_s3] ss:$0 sm:$0xff] }
  0x8b   :  { %v437_v46 = vadd.s32 1, %v2027_v16  ;;  %v695_v4 = vshrl.u32 %v694_v42, 23  ;;  %vm682_vm13 = vcmp.lt.s32.totalorder %v681_v63, 2  ;;  %vm683_vm14 = vcmp.eq.s32.totalorder %v681_v63, 0 }
  0x8c   :  { %vm277_vm15 = vcmp.lt.s32.totalorder %v1799_v40, 0  ;;  %v343_v8 = vclz %v1191_v17  ;;  %vm686_vm0 = vcmp.eq.s32.totalorder %v681_v63, 2  ;;  %vm436_vm1 = vc.u32 %v2034_v30, %v2026_v35 }
  0x8d   :  { %v362_v26 = vsel %vm277_vm15, %v361_v10, %v337_v51  ;;  %v1206_v18 = vadd.s32 4294967169, %v695_v4  ;;  %v918_v19 = vmul.f32 %v1870_v15, %v903_v13  ;;  %v331_v32 = vadd.s32 %v1960_v56, %v1956_v31 }
  0x8e   :  { %v1412_v29 = vpop.eup %1411  ;;  %v1192_v36 = vadd.s32 4294967294, %v343_v8  ;;  %v438_v33 = vsel %vm436_vm1, %v437_v46, %v2027_v16  ;;  %v691_v2 = vand.u32 2147483647, %v1892_v44  ;;  %v364_v0 = vsel %vm2042_vm11, 0, %v362_v26 }
  0x8f   :  { %v1414_v61 = vpop.eup %1413  ;;  %v687_v55 = vxor.u32 2147483648, %v1412_v29  ;;  %v439_v58 = vadd.s32 %v438_v33, %v434_v34  ;;  %v701_v12 = vadd.s32 1, %v1206_v18  ;;  %v2064_v31 = vmul.f32 %v1431_v57, %v1255_v7 }
  0x90   :  { %v684_v51 = vxor.u32 2147483648, %v1414_v61  ;;  %vm1193_vm2 = vcmp.lt.s32.totalorder %v1192_v36, 0  ;;  %v698_v25 = vand.u32 8388607, %v691_v2  ;;  %v926_v63 = vadd.f32 %v1250_v9, %v918_v19 }
  0x91   :  { %v688_v56 = vsel %vm686_vm0, %v687_v55, %v1414_v61  ;;  %v346_v11 = vsel %vm1193_vm2, 0, %v1192_v36  ;;  %v440_v60 = vadd.s32 536870912, %v439_v58  ;;  %vm702_vm3 = vcmp.gt.s32.totalorder %v701_v12, 0 }
  0x92   :  { %v685_v3 = vsel %vm683_vm14, %v1412_v29, %v684_v51  ;;  %v347_v1 = vsub.s32 32, %v346_v11  ;;  %v348_v20 = vshll.u32 %v2018_v43, %v346_v11  ;;  %v351_v21 = vsub.s32 4294967266, %v346_v11 }
  0x93   :  { %v689_v14 = vsel %vm682_vm13, %v685_v3, %v688_v56  ;;  %v2070_v23 = vshrl.u32 %v440_v60, 30  ;;  %v703_v16 = vsel %vm702_vm3, %v701_v12, 0  ;;  %v798_v10 = vand.u32 2139095040, %v2064_v31 }
  0x94   :  { %v690_v5 = vsel %vm679_vm10, nan, %v689_v14  ;;  %v349_v41 = vshrl.u32 %v331_v32, %v347_v1  ;;  %v352_v49 = vadd.s32 127, %v351_v21  ;;  %v705_v43 = vand.u32 31, %v703_v16 }
  0x95   :  { %v904_v42 = vmul.f32 %v690_v5, %v690_v5  ;;  %v442_v13 = vshll.u32 %v2070_v23, 30  ;;  %v2080_v46 = vadd.s32 3, %v364_v0  ;;  %v699_v38 = vor.u32 8388608, %v698_v25 }
  0x96   :  { %v350_v17 = vor.u32 %v349_v41, %v348_v20  ;;  %v353_v34 = vshll.u32 %v352_v49, 23  ;;  %v706_v26 = vsub.s32 32, %v705_v43  ;;  %v2085_v32 = vshrl.u32 %v703_v16, 5 }
  0x97   :  { %v919_v4 = vmul.f32 %v1870_v15, %v904_v42  ;;  %v2083_v8 = vsub.s32 %v439_v58, %v442_v13  ;;  %v799_v36 = vshrl.u32 %v798_v10, 23  ;;  %v435_v9 = vadd.s32 %v2026_v35, %v2034_v30 }
  0x98   :  { %v354_v18 = vor.u32 4788187, %v353_v34  ;;  %v357_v29 = vcvt.s32.f32 %v350_v17  ;;  %v708_v61 = vshll.u32 %v1432_v45, %v705_v43  ;;  %v709_v58 = vshrl.u32 %v1433_v47, %v706_v26 }
  0x99   :  { %v927_v33 = vadd.f32 %v1251_v28, %v919_v4  ;;  %v445_v19 = vsub.s32 0, %v2083_v8  ;;  %v711_v12 = vshll.u32 %v1433_v47, %v705_v43  ;;  %v712_v51 = vshrl.u32 %v1434_v50, %v706_v26 }
  0x9a   :  { %v355_v55 = vand.u32 2147483647, %v354_v18  ;;  %v714_v6 = vshll.u32 %v1434_v50, %v705_v43  ;;  %v2098_v28 = vshll.u32 %v699_v38, 8  ;;  %v715_v35 = vshrl.u32 %v1435_v52, %v706_v26 }
  0x9b   :  { %v932_v0 = vpack.c.bf16 %v927_v33, %v926_v63  ;;  %v1195_v57 = vmin.u32 %v445_v19, %v2083_v8  ;;  %vm723_vm4 = vcmp.lt.s32.totalorder %v2085_v32, 1  ;;  %v1210_v30 = vadd.s32 4294967169, %v799_v36 }
  0x9c   :  { %v358_v56 = vmul.f32 %v357_v29, %v355_v55  ;;  %v707_v60 = vshrl.u32 %v1432_v45, %v706_v26  ;;  %v710_v3 = vor.u32 %v709_v58, %v708_v61  ;;  %vm724_vm5 = vcmp.lt.s32.totalorder %v2085_v32, 2 }
  0x9d   :  { %1333 = vmatprep.mubr.bf16.mxu1 %v932_v0  ;;  %v447_v11 = vclz %v1195_v57  ;;  %v713_v20 = vor.u32 %v712_v51, %v711_v12  ;;  %v717_v21 = vshll.u32 %v1435_v52, %v705_v43  ;;  %v718_v14 = vshrl.u32 %v1436_v54, %v706_v26 }
  0x9e   :  { %v359_v1 = vxor.u32 2147483648, %v358_v56  ;;  %v716_v16 = vor.u32 %v715_v35, %v714_v6  ;;  %v720_v5 = vshll.u32 %v1436_v54, %v705_v43  ;;  %v721_v41 = vshrl.u32 %v1437_v62, %v706_v26 }
  0x9f   :  { %v1196_v25 = vadd.s32 4294967294, %v447_v11  ;;  %v719_v10 = vor.u32 %v718_v14, %v717_v21  ;;  %vm725_vm6 = vcmp.lt.s32.totalorder %v2085_v32, 3  ;;  %vm726_vm7 = vcmp.lt.s32.totalorder %v2085_v32, 4 }
  0xa0   :  { %v360_v49 = vsel %vm277_vm15, %v359_v1, %v358_v56  ;;  %v722_v13 = vor.u32 %v721_v41, %v720_v5  ;;  %v728_v63 = vsel %vm726_vm7, %v716_v16, 2102212464  ;;  %v727_v17 = vsel %vm723_vm4, %v707_v60, %v710_v3 }
  0xa1   :  { %v363_v42 = vsel %vm2042_vm11, %v1799_v40, %v360_v49  ;;  %vm1197_vm8 = vcmp.lt.s32.totalorder %v1196_v25, 0  ;;  %v731_v34 = vsel %vm723_vm4, %v710_v3, %v713_v20  ;;  %v729_v22 = vsel %vm725_vm6, %v713_v20, %v728_v63 }
  0xa2   :  { %1415 = vcosq.f32 %v363_v42  ;;  %v450_v43 = vsel %vm1197_vm8, 0, %v1196_v25  ;;  %v732_v18 = vsel %vm726_vm7, %v719_v10, 920167782  ;;  %v735_v29 = vsel %vm723_vm4, %v713_v20, %v716_v16 }
  0xa3   :  { %1417 = vsinq.f32 %v363_v42  ;;  %v451_v4 = vsub.s32 32, %v450_v43  ;;  %v452_v38 = vshll.u32 %v2083_v8, %v450_v43  ;;  %v455_v26 = vsub.s32 4294967266, %v450_v43 }
  0xa4   :  { %v736_v36 = vsel %vm726_vm7, %v722_v13, 1326507024  ;;  %v733_v61 = vsel %vm725_vm6, %v716_v16, %v732_v18  ;;  %v465_v55 = vsub.s32 4, %v2070_v23  ;;  %v795_v51 = vand.u32 2147483647, %v2064_v31 }
  0xa5   :  { %v453_v33 = vshrl.u32 %v435_v9, %v451_v4  ;;  %v456_v19 = vadd.s32 127, %v455_v26  ;;  %v737_v8 = vsel %vm725_vm6, %v719_v10, %v736_v36  ;;  %v734_v58 = vsel %vm724_vm5, %v731_v34, %v733_v61 }
  0xa6   :  { %v738_v12 = vsel %vm724_vm5, %v735_v29, %v737_v8  ;;  %v730_v56 = vsel %vm724_vm5, %v727_v17, %v729_v22  ;;  %v2147_v35 = vmul.u32.u64.low %v2098_v28, %v734_v58  ;;  %v2148_v11 = vmul.u32.u64.high %v2098_v28, %v734_v58, %v2147_v35 }
  0xa7   :  { %v454_v0 = vor.u32 %v453_v33, %v452_v38  ;;  %v457_v57 = vshll.u32 %v456_v19, 23  ;;  %v2141_v9 = vmul.u32.u64.low %v2098_v28, %v738_v12  ;;  %v2142_v6 = vmul.u32.u64.high %v2098_v28, %v738_v12, %v2141_v9 }
  0xa8   :  { %v805_v60 = vadd.s32 1, %v1210_v30  ;;  %v369_v3 = vand.u32 3, %v2080_v46  ;;  %vm381_vm9 = vcmp.lt.s32.totalorder %v1878_v27, 0  ;;  %v746_v32 = vmul.u32 %v2098_v28, %v730_v56 }
  0xa9   :  { %v458_v1 = vor.u32 4788187, %v457_v57  ;;  %v461_v20 = vcvt.s32.f32 %v454_v0  ;;  %v466_v21 = vsel %vm381_vm9, %v465_v55, %v2070_v23  ;;  %vm748_vm10 = vc.u32 %v2142_v6, %v2147_v35 }
  0xaa   :  { %vm806_vm12 = vcmp.gt.s32.totalorder %v805_v60, 0  ;;  %vm2161_vm11 = vcmp.le.f32.partialorder %v379_v53, 0.7853982  ;;  %v749_v30 = vadd.s32 1, %v2148_v11  ;;  %v802_v23 = vand.u32 8388607, %v795_v51 }
  0xab   :  { %v459_v14 = vand.u32 2147483647, %v458_v1  ;;  %v807_v25 = vsel %vm806_vm12, %v805_v60, 0  ;;  %vm367_vm13 = vweird.f32 %v1799_v40  ;;  %vm370_vm14 = vcmp.lt.s32.totalorder %v369_v3, 2 }
  0xac   :  { %v1416_v16 = vpop.eup %1415  ;;  %v809_v5 = vand.u32 31, %v807_v25  ;;  %v468_v49 = vsel %vm2161_vm11, 0, %v466_v21  ;;  %v750_v53 = vsel %vm748_vm10, %v749_v30, %v2148_v11  ;;  %vm371_vm15 = vcmp.eq.s32.totalorder %v369_v3, 0 }
  0xad   :  { %v1418_v41 = vpop.eup %1417  ;;  %v462_v28 = vmul.f32 %v461_v20, %v459_v14  ;;  %v375_v42 = vxor.u32 2147483648, %v1416_v16  ;;  %vm374_vm0 = vcmp.eq.s32.totalorder %v369_v3, 2  ;;  %v751_v43 = vadd.s32 %v750_v53, %v746_v32 }
  0xae   :  { %v372_v10 = vxor.u32 2147483648, %v1418_v41  ;;  %v810_v13 = vsub.s32 32, %v809_v5  ;;  %v472_v17 = vadd.s32 3, %v468_v49  ;;  %v803_v34 = vor.u32 8388608, %v802_v23 }
  0xaf   :  { %v463_v63 = vxor.u32 2147483648, %v462_v28  ;;  %v812_v4 = vshll.u32 %v1432_v45, %v809_v5  ;;  %v815_v38 = vshll.u32 %v1433_v47, %v809_v5  ;;  %v752_v22 = vadd.s32 536870912, %v751_v43 }
  0xb0   :  { %v813_v18 = vshrl.u32 %v1433_v47, %v810_v13  ;;  %v816_v29 = vshrl.u32 %v1434_v50, %v810_v13  ;;  %v373_v36 = vsel %vm371_vm15, %v1416_v16, %v372_v10  ;;  %v376_v33 = vsel %vm374_vm0, %v375_v42, %v1418_v41 }
  0xb1   :  { %v464_v26 = vsel %vm381_vm9, %v463_v63, %v462_v28  ;;  %v808_v61 = vshrl.u32 %v807_v25, 5  ;;  %v2181_v8 = vshrl.u32 %v752_v22, 30  ;;  %v818_v55 = vshll.u32 %v1434_v50, %v809_v5 }
  0xb2   :  { %v467_v19 = vsel %vm2161_vm11, %v1878_v27, %v464_v26  ;;  %v819_v58 = vshrl.u32 %v1435_v52, %v810_v13  ;;  %v821_v12 = vshll.u32 %v1435_v52, %v809_v5  ;;  %v822_v47 = vshrl.u32 %v1436_v54, %v810_v13 }
  0xb3   :  { %1419 = vcosq.f32 %v467_v19  ;;  %v824_v0 = vshll.u32 %v1436_v54, %v809_v5  ;;  %v377_v57 = vsel %vm370_vm14, %v373_v36, %v376_v33  ;;  %v754_v9 = vshll.u32 %v2181_v8, 30 }
  0xb4   :  { %1421 = vsinq.f32 %v467_v19  ;;  %v814_v56 = vor.u32 %v813_v18, %v812_v4  ;;  %v817_v11 = vor.u32 %v816_v29, %v815_v38  ;;  %v811_v60 = vshrl.u32 %v1432_v45, %v810_v13 }
  0xb5   :  { %v823_v1 = vor.u32 %v822_v47, %v821_v12  ;;  %v825_v50 = vshrl.u32 %v1437_v62, %v810_v13  ;;  %vm827_vm1 = vcmp.lt.s32.totalorder %v808_v61, 1  ;;  %v473_v20 = vand.u32 3, %v472_v17 }
  0xb6   :  { %v755_v21 = vsub.s32 %v751_v43, %v754_v9  ;;  %v820_v14 = vor.u32 %v819_v58, %v818_v55  ;;  %v843_v52 = vshll.u32 %v803_v34, 8  ;;  %v378_v32 = vsel %vm367_vm13, nan, %v377_v57 }
  0xb7   :  { %v826_v54 = vor.u32 %v825_v50, %v824_v0  ;;  %vm829_vm2 = vcmp.lt.s32.totalorder %v808_v61, 3  ;;  %vm830_vm3 = vcmp.lt.s32.totalorder %v808_v61, 4  ;;  %vm828_vm4 = vcmp.lt.s32.totalorder %v808_v61, 2 }
  0xb8   :  { %v757_v3 = vsub.s32 0, %v755_v21  ;;  %v832_v25 = vsel %vm830_vm3, %v820_v14, 2102212464  ;;  %v835_v16 = vsel %vm827_vm1, %v814_v56, %v817_v11  ;;  %v831_v45 = vsel %vm827_vm1, %v811_v60, %v814_v56 }
  0xb9   :  { %v833_v62 = vsel %vm829_vm2, %v817_v11, %v832_v25  ;;  %v836_v46 = vsel %vm830_vm3, %v823_v1, 920167782  ;;  %v840_v30 = vsel %vm830_vm3, %v826_v54, 1326507024  ;;  %v839_v40 = vsel %vm827_vm1, %v817_v11, %v820_v14 }
  0xba   :  { %v1207_v23 = vmin.u32 %v757_v3, %v755_v21  ;;  %v837_v5 = vsel %vm829_vm2, %v820_v14, %v836_v46  ;;  %vm474_vm5 = vcmp.lt.s32.totalorder %v473_v20, 2  ;;  %vm475_vm6 = vcmp.eq.s32.totalorder %v473_v20, 0 }
  0xbb   :  { %v838_v41 = vsel %vm828_vm4, %v835_v16, %v837_v5  ;;  %v841_v28 = vsel %vm829_vm2, %v823_v1, %v840_v30  ;;  %vm478_vm7 = vcmp.eq.s32.totalorder %v473_v20, 2  ;;  %v901_v10 = vmul.f32 %v378_v32, %v378_v32 }
  0xbc   :  { %v759_v42 = vclz %v1207_v23  ;;  %v834_v53 = vsel %vm828_vm4, %v831_v45, %v833_v62  ;;  %v842_v43 = vsel %vm828_vm4, %v839_v40, %v841_v28  ;;  %vm471_vm8 = vweird.f32 %v1878_v27 }
  0xbd   :  { %v1420_v49 = vpop.eup %1419  ;;  %v2203_v17 = vmul.u32.u64.low %v843_v52, %v838_v41  ;;  %v2204_v34 = vmul.u32.u64.high %v843_v52, %v838_v41, %v2203_v17  ;;  %v2206_v26 = vmul.u32.u64.low %v843_v52, %v842_v43  ;;  %v2207_v22 = vmul.u32.u64.high %v843_v52, %v842_v43, %v2206_v26 }
  0xbe   :  { %v1422_v13 = vpop.eup %1421  ;;  %v479_v63 = vxor.u32 2147483648, %v1420_v49  ;;  %v1208_v38 = vadd.s32 4294967294, %v759_v42  ;;  %v916_v36 = vmul.f32 %v1870_v15, %v901_v10  ;;  %v747_v33 = vadd.s32 %v2147_v35, %v2142_v6 }
  0xbf   :  { %v476_v4 = vxor.u32 2147483648, %v1422_v13  ;;  %v850_v55 = vmul.u32 %v843_v52, %v834_v53  ;;  %v853_v58 = vadd.s32 1, %v2204_v34  ;;  %vm852_vm12 = vc.u32 %v2207_v22, %v2203_v17 }
  0xc0   :  { %v480_v18 = vsel %vm478_vm7, %v479_v63, %v1422_v13  ;;  %vm1209_vm9 = vcmp.lt.s32.totalorder %v1208_v38, 0  ;;  %v924_v35 = vadd.f32 %v1246_v24, %v916_v36  ;;  %vm693_vm10 = vcmp.lt.s32.totalorder %v1892_v44, 0 }
  0xc1   :  { %v477_v29 = vsel %vm475_vm6, %v1420_v49, %v476_v4  ;;  %v762_v61 = vsel %vm1209_vm9, 0, %v1208_v38  ;;  %v854_v11 = vsel %vm852_vm12, %v853_v58, %v2204_v34  ;;  %vm2226_vm11 = vcmp.le.f32.partialorder %v691_v2, 0.7853982 }
  0xc2   :  { %v481_v19 = vsel %vm474_vm5, %v477_v29, %v480_v18  ;;  %v763_v47 = vsub.s32 32, %v762_v61  ;;  %v764_v0 = vshll.u32 %v755_v21, %v762_v61  ;;  %v767_v57 = vsub.s32 4294967266, %v762_v61 }
  0xc3   :  { %v482_v12 = vsel %vm471_vm8, nan, %v481_v19  ;;  %v855_v60 = vadd.s32 %v854_v11, %v850_v55  ;;  %v777_v5 = vsub.s32 4, %v2181_v8  ;;  %v851_v41 = vadd.s32 %v2203_v17, %v2207_v22 }
  0xc4   :  { %v902_v27 = vmul.f32 %v482_v12, %v482_v12  ;;  %v765_v9 = vshrl.u32 %v747_v33, %v763_v47  ;;  %v768_v56 = vadd.s32 127, %v767_v57  ;;  %vm797_vm14 = vcmp.lt.s32.totalorder %v2064_v31, 0 }
  0xc5   :  { %v856_v21 = vadd.s32 536870912, %v855_v60  ;;  %v778_v42 = vsel %vm693_vm10, %v777_v5, %v2181_v8  ;;  %vm796_vm15 = vcmp.le.f32.partialorder %v795_v51, 0.7853982  ;;  %vm783_vm3 = vweird.f32 %v1892_v44 }
  0xc6   :  { %v917_v6 = vmul.f32 %v1870_v15, %v902_v27  ;;  %v766_v1 = vor.u32 %v765_v9, %v764_v0  ;;  %v769_v50 = vshll.u32 %v768_v56, 23  ;;  %v780_v63 = vsel %vm2226_vm11, 0, %v778_v42  ;;  %v1297_v42 = vld [vmem:[%s2282_s5 + $0x18] sm:$0xff]  }
  0xc7   :  { %v857_v54 = vshrl.u32 %v856_v21, 30  ;;  %v784_v26 = vadd.s32 3, %v780_v63  ;;  %vm887_vm7 = vweird.f32 %v2064_v31 }
  0xc8   :  { %v925_v20 = vadd.f32 %v1247_v37, %v917_v6  ;;  %v770_v14 = vor.u32 4788187, %v769_v50  ;;  %v773_v52 = vcvt.s32.f32 %v766_v1 }
  0xc9   :  { %v858_v25 = vshll.u32 %v857_v54, 30  ;;  %v881_v22 = vsub.s32 4, %v857_v54  ;;  %v785_v33 = vand.u32 3, %v784_v26 }
  0xca   :  { %v931_v32 = vpack.c.bf16 %v925_v20, %v924_v35  ;;  %v771_v3 = vand.u32 2147483647, %v770_v14 }
  0xcb   :  { %v859_v45 = vsub.s32 %v855_v60, %v858_v25  ;;  %v882_v19 = vsel %vm797_vm14, %v881_v22, %v857_v54  ;;  %vm787_vm0 = vcmp.eq.s32.totalorder %v785_v33, 0  ;;  %vm790_vm1 = vcmp.eq.s32.totalorder %v785_v33, 2 }
  0xcc   :  { %1330 = vmatmul.mubr.bf16.vlgmr.msra.gmra.mrb[0].mxu0 %v931_v32  ;;  %v774_v16 = vmul.f32 %v773_v52, %v771_v3  ;;  %v884_v47 = vsel %vm796_vm15, 0, %v882_v19  ;;  %vm786_vm2 = vcmp.lt.s32.totalorder %v785_v33, 2 }
  0xcd   :  { %v861_v46 = vsub.s32 0, %v859_v45  ;;  %v888_v27 = vadd.s32 3, %v884_v47 }
  0xce   :  { %v775_v62 = vxor.u32 2147483648, %v774_v16 }
  0xcf   :  { %v1211_v24 = vmin.u32 %v861_v46, %v859_v45  ;;  %v889_v51 = vand.u32 3, %v888_v27 }
  0xd0   :  { %v776_v37 = vsel %vm693_vm10, %v775_v62, %v774_v16  ;;  %v1295_v16 = vld [vmem:[%s2282_s5 + $0x8] sm:$0xff]  }
  0xd1   :  { %v863_v30 = vclz %v1211_v24  ;;  %v779_v40 = vsel %vm2226_vm11, %v1892_v44, %v776_v37  ;;  %vm894_vm4 = vcmp.eq.s32.totalorder %v889_v51, 2  ;;  %vm891_vm5 = vcmp.eq.s32.totalorder %v889_v51, 0 }
  0xd2   :  { %1423 = vcosq.f32 %v779_v40  ;;  %vm890_vm6 = vcmp.lt.s32.totalorder %v889_v51, 2  ;;  %v1263_v39 = vunpack.c.h.bf16 %v1295_v16 }
  0xd3   :  { %v1212_v23 = vadd.s32 4294967294, %v863_v30  ;;  %1425 = vsinq.f32 %v779_v40 }
  0xd5   :  { %vm1213_vm13 = vcmp.lt.s32.totalorder %v1212_v23, 0 }
  0xd6   :  { %v866_v28 = vsel %vm1213_vm13, 0, %v1212_v23 }
  0xd7   :  { %v867_v49 = vsub.s32 32, %v866_v28  ;;  %v868_v10 = vshll.u32 %v859_v45, %v866_v28  ;;  %v871_v2 = vsub.s32 4294967266, %v866_v28 }
  0xd9   :  { %v869_v53 = vshrl.u32 %v851_v41, %v867_v49  ;;  %v872_v13 = vadd.s32 127, %v871_v2 }
  0xdb   :  { %v870_v43 = vor.u32 %v869_v53, %v868_v10  ;;  %v873_v34 = vshll.u32 %v872_v13, 23  ;;  %v1296_v53 = vld [vmem:[%s2282_s5 + $0x10] sm:$0xff]  }
  0xdc   :  { %v1424_v18 = vpop.eup %1423  ;;  %v1266_v26 = vunpack.c.l.bf16 %v1296_v53  ;;  %v1267_v22 = vunpack.c.h.bf16 %v1296_v53 }
  0xdd   :  { %v874_v4 = vor.u32 4788187, %v873_v34  ;;  %v877_v38 = vcvt.s32.f32 %v870_v43  ;;  %v1426_v36 = vpop.eup %1425  ;;  %v791_v55 = vxor.u32 2147483648, %v1424_v18  ;;  %v1270_v43 = vunpack.c.l.bf16 %v1297_v42 }
  0xde   :  { %v788_v61 = vxor.u32 2147483648, %v1426_v36 }
  0xdf   :  { %v875_v17 = vand.u32 2147483647, %v874_v4  ;;  %v792_v57 = vsel %vm790_vm1, %v791_v55, %v1426_v36  ;;  %v1271_v4 = vunpack.c.h.bf16 %v1297_v42 }
  0xe0   :  { %v789_v0 = vsel %vm787_vm0, %v1424_v18, %v788_v61 }
  0xe1   :  { %v878_v29 = vmul.f32 %v877_v38, %v875_v17  ;;  %v793_v9 = vsel %vm786_vm2, %v789_v0, %v792_v57 }
  0xe2   :  { %v794_v56 = vsel %vm783_vm3, nan, %v793_v9 }
  0xe3   :  { %v879_v8 = vxor.u32 2147483648, %v878_v29  ;;  %v905_v60 = vmul.f32 %v794_v56, %v794_v56 }
  0xe5   :  { %v880_v58 = vsel %vm797_vm14, %v879_v8, %v878_v29  ;;  %v920_v14 = vmul.f32 %v1870_v15, %v905_v60 }
  0xe6   :  { %v883_v12 = vsel %vm796_vm15, %v2064_v31, %v880_v58  ;;  %v1223_v31 = vld [vmem:[%s2281_s2] ss:$0 sm:$0xff] }
  0xe7   :  { %1427 = vcosq.f32 %v883_v12  ;;  %v928_v54 = vadd.f32 %v1254_v59, %v920_v14  ;;  %v1262_v59 = vunpack.c.l.bf16 %v1295_v16 }
  0xe8   :  { %1429 = vsinq.f32 %v883_v12 }
  0xf1   :  { %v1428_v11 = vpop.eup %1427 }
  0xf2   :  { %v1430_v6 = vpop.eup %1429  ;;  %v895_v35 = vxor.u32 2147483648, %v1428_v11 }
  0xf3   :  { %v892_v1 = vxor.u32 2147483648, %v1430_v6 }
  0xf4   :  { %v896_v50 = vsel %vm894_vm4, %v895_v35, %v1430_v6 }
  0xf5   :  { %v893_v20 = vsel %vm891_vm5, %v1428_v11, %v892_v1 }
  0xf6   :  { %v897_v21 = vsel %vm890_vm6, %v893_v20, %v896_v50 }
  0xf7   :  { %v898_v52 = vsel %vm887_vm7, nan, %v897_v21 }
  0xf8   :  { %v906_v44 = vmul.f32 %v898_v52, %v898_v52 }
  0xfa   :  { %v921_v32 = vmul.f32 %v1870_v15, %v906_v44  ;;  %v1257_v15 = vld [vmem:[%s2282_s5] sm:$0xff]  }
  0xfb   :  { %v1258_v24 = vunpack.c.l.bf16 %v1257_v15  ;;  %v1259_v37 = vunpack.c.h.bf16 %v1257_v15 }
  0xfc   :  { %v929_v3 = vadd.f32 %v1255_v7, %v921_v32 }
  0xfe   :  { %v933_v25 = vpack.c.bf16 %v929_v3, %v928_v54 }
 0x100   :  { %1334 = vmatmul.mubr.bf16.vlgmr.msra.gmra.mrb[0].mxu1 %v933_v25 }
 0x19f   :  { %v1331_v45 = vpop.f32.mrb[0].mxu0 }
 0x1a0   :  { %v1107_v62 = vadd.f32 %v1331_v45, %v1223_v31  ;;  %v1040_v46 = vpop.f32.mrb[1].mxu0 }
 0x1a1   :  { %v1105_v7 = vadd.f32 %v1223_v31, %v1040_v46  ;;  %v1332_v48 = vpop.f32.mrb[2].mxu0 }
 0x1a2   :  { %v1108_v30 = vadd.f32 %v1332_v48, %v1223_v31  ;;  %v1043_v23 = vpop.f32.mrb[3].mxu0  ;;  %v1131_v40 = vadd.f32 %v1262_v59, %v1107_v62 }
 0x1a3   :  { %v1106_v5 = vadd.f32 %v1223_v31, %v1043_v23  ;;  %v1129_v28 = vadd.f32 %v1258_v24, %v1105_v7 }
 0x1a4   :  { %v1132_v41 = vadd.f32 %v1263_v39, %v1108_v30 }
 0x1a5   :  { %v1130_v49 = vadd.f32 %v1259_v37, %v1106_v5 }
 0x1a6   :  { %v1280_v10 = vpack.c.bf16 %v1132_v41, %v1131_v40 }
 0x1a7   :  { %v1275_v2 = vpack.c.bf16 %v1130_v49, %v1129_v28 }
 0x1a8   :  { %1298 = vst [vmem:[%s2283_s6 + $0x8] sm:$0xff] %v1280_v10  }
 0x1a9   :  { %1276 = vst [vmem:[%s2283_s6] sm:$0xff] %v1275_v2  }
 0x1d3   :  { %v1335_v13 = vpop.f32.mrb[0].mxu1 }
 0x1d4   :  { %v1111_v63 = vadd.f32 %v1335_v13, %v1223_v31  ;;  %v1056_v34 = vpop.f32.mrb[1].mxu1 }
 0x1d5   :  { %v1109_v38 = vadd.f32 %v1223_v31, %v1056_v34  ;;  %v1336_v17 = vpop.f32.mrb[2].mxu1 }
 0x1d6   :  { %v1112_v18 = vadd.f32 %v1336_v17, %v1223_v31  ;;  %v1059_v29 = vpop.f32.mrb[3].mxu1  ;;  %v1135_v33 = vadd.f32 %v1270_v43, %v1111_v63 }
 0x1d7   :  { %v1110_v36 = vadd.f32 %v1223_v31, %v1059_v29  ;;  %v1133_v19 = vadd.f32 %v1266_v26, %v1109_v38 }
 0x1d8   :  { %v1136_v8 = vadd.f32 %v1271_v4, %v1112_v18 }
 0x1d9   :  { %v1134_v61 = vadd.f32 %v1267_v22, %v1110_v36 }
 0x1da   :  { %v1290_v55 = vpack.c.bf16 %v1136_v8, %v1135_v33 }
 0x1db   :  { %v1285_v58 = vpack.c.bf16 %v1134_v61, %v1133_v19 }
 0x1dc   :  { %1300 = vst [vmem:[%s2283_s6 + $0x18] sm:$0xff] %v1290_v55  }
 0x1dd   :  { %1299 = vst [vmem:[%s2283_s6 + $0x10] sm:$0xff] %v1285_v58  }

// kernel: dac_encoder_forward.30
= control target key start
LH: loop header
LB: loop body
LE: loop exit
PB: predicated region body
PF: predicated region fallthrough
CT: control target
= control target key end

     0   :  { %v783_v46 = vmov 683565275   ;;  %v784_v48 = vmov 2475754826   ;;  %v785_v50 = vmov 2131351028   ;;  %s1227_s1 = inlined_call_operand.vmem [shape: bf16[128,128], index: 1, kind: input, shape index: {}]   ;;  %s1228_s0 = inlined_call_operand.vmem [shape: bf16[32,128], index: 0, kind: input, shape index: {}]   ;;  %s1229_s3 = inlined_call_operand.vmem [shape: f32[1,128], index: 3, kind: input, shape index: {}]   ;;  %s1230_s4 = inlined_call_operand.vmem [shape: f32[1,128], index: 4, kind: input, shape index: {}]   ;;  %s1231_s2 = inlined_call_operand.vmem [shape: f32[1,128], index: 2, kind: input, shape index: {}]   ;;  %s1232_s5 = inlined_call_operand.vmem [shape: bf16[32,128], index: 5, kind: output, shape index: {}]  }
   0x1   :  { %v759_v0 = vld [vmem:[%s1227_s1] sm:$0xff]   ;;  %v760_v1 = vld [vmem:[%s1227_s1 + $0x8] sm:$0xff]   ;;  %v761_v2 = vld [vmem:[%s1227_s1 + $0x10] sm:$0xff]   ;;  %v786_v52 = vmov 2102212464  }
   0x2   :  { %717 = vmatprep.subr.bf16.mxu0 %v759_v0  ;;  %v762_v3 = vld [vmem:[%s1227_s1 + $0x18] sm:$0xff]   ;;  %v834_v4 = vld [vmem:[%s1228_s0] sm:$0xff]   ;;  %v839_v5 = vld [vmem:[%s1228_s0 + $0x8] sm:$0xff]   ;;  %v787_v54 = vmov 920167782  }
   0x3   :  { %718 = vmatpush3.bf16.msra.mxu0 %v759_v0  ;;  %v844_v6 = vld [vmem:[%s1229_s3] ss:$0 sm:$0xff]  ;;  %v689_v7 = vunpack.c.l.bf16 %v834_v4  ;;  %v690_v8 = vunpack.c.h.bf16 %v834_v4  ;;  %v693_v9 = vunpack.c.l.bf16 %v839_v5  ;;  %v764_v20 = vld [vmem:[%s1227_s1 + $0x28] sm:$0xff]   ;;  %v765_v29 = vld [vmem:[%s1227_s1 + $0x30] sm:$0xff]   ;;  %v694_v35 = vunpack.c.h.bf16 %v839_v5 }
   0x4   :  { %719 = vmatprep.subr.bf16.mxu0 %v760_v1  ;;  %v763_v12 = vld [vmem:[%s1227_s1 + $0x20] sm:$0xff]   ;;  %v766_v40 = vld [vmem:[%s1227_s1 + $0x38] sm:$0xff]   ;;  %v788_v62 = vmov 1326507024  }
   0x5   :  { %v852_v10 = vmul.f32 %v689_v7, %v844_v6  ;;  %v857_v11 = vmul.f32 %v690_v8, %v844_v6  ;;  %v865_v13 = vmul.f32 %v693_v9, %v844_v6 }
   0x7   :  { %720 = vmatpush3.bf16.msra.mxu0 %v760_v1  ;;  %v48_v14 = vand.u32 2147483647, %v852_v10  ;;  %v51_v15 = vand.u32 2139095040, %v852_v10  ;;  %v152_v16 = vand.u32 2147483647, %v857_v11  ;;  %v155_v17 = vand.u32 2139095040, %v857_v11 }
   0x8   :  { %721 = vmatprep.subr.bf16.mxu0 %v761_v2  ;;  %v259_v23 = vand.u32 2139095040, %v865_v13  ;;  %v256_v32 = vand.u32 2147483647, %v865_v13  ;;  %vm50_vm13 = vcmp.lt.s32.totalorder %v852_v10, 0 }
   0x9   :  { %v52_v18 = vshrl.u32 %v51_v15, 23  ;;  %v55_v19 = vand.u32 8388607, %v48_v14  ;;  %v156_v21 = vshrl.u32 %v155_v17, 23  ;;  %v159_v22 = vand.u32 8388607, %v152_v16 }
   0xa   :  { %v260_v26 = vshrl.u32 %v259_v23, 23  ;;  %v895_v43 = vand.u32 8388607, %v256_v32  ;;  %vm1015_vm15 = vcmp.le.f32.partialorder %v48_v14, 0.7853982 }
   0xb   :  { %722 = vmatpush3.bf16.msra.mxu0 %v761_v2  ;;  %v653_v24 = vadd.s32 4294967169, %v52_v18  ;;  %v657_v25 = vadd.s32 4294967169, %v156_v21  ;;  %v56_v27 = vor.u32 8388608, %v55_v19  ;;  %v160_v30 = vor.u32 8388608, %v159_v22 }
   0xc   :  { %723 = vmatprep.subr.bf16.mxu0 %v762_v3  ;;  %v661_v33 = vadd.s32 4294967169, %v260_v26 }
   0xd   :  { %v58_v28 = vadd.s32 1, %v653_v24  ;;  %v162_v31 = vadd.s32 1, %v657_v25  ;;  %v884_v38 = vshll.u32 %v56_v27, 8  ;;  %v891_v42 = vshll.u32 %v160_v30, 8 }
   0xe   :  { %v897_v44 = vadd.s32 1, %v661_v33 }
   0xf   :  { %724 = vmatpush3.bf16.msra.mxu0 %v762_v3  ;;  %vm59_vm0 = vcmp.gt.s32.totalorder %v58_v28, 0  ;;  %vm163_vm1 = vcmp.gt.s32.totalorder %v162_v31, 0 }
  0x10   :  { %725 = vmatprep.subr.bf16.mxu0 %v763_v12  ;;  %v60_v34 = vsel %vm59_vm0, %v58_v28, 0  ;;  %v164_v39 = vsel %vm163_vm1, %v162_v31, 0  ;;  %vm267_vm6 = vcmp.gt.s32.totalorder %v897_v44, 0 }
  0x11   :  { %v61_v36 = vshrl.u32 %v60_v34, 5  ;;  %v62_v37 = vand.u32 31, %v60_v34  ;;  %v889_v41 = vand.u32 31, %v164_v39  ;;  %v904_v56 = vshrl.u32 %v164_v39, 5 }
  0x13   :  { %726 = vmatpush3.bf16.msra.mxu0 %v763_v12  ;;  %v63_v45 = vsub.s32 32, %v62_v37  ;;  %v65_v47 = vshll.u32 %v783_v46, %v62_v37  ;;  %v68_v49 = vshll.u32 %v784_v48, %v62_v37  ;;  %v71_v51 = vshll.u32 %v785_v50, %v62_v37 }
  0x14   :  { %727 = vmatprep.subr.bf16.mxu0 %v764_v20  ;;  %v74_v53 = vshll.u32 %v786_v52, %v62_v37  ;;  %v77_v55 = vshll.u32 %v787_v54, %v62_v37  ;;  %vm80_vm2 = vcmp.lt.s32.totalorder %v61_v36, 1  ;;  %vm81_vm3 = vcmp.lt.s32.totalorder %v61_v36, 2 }
  0x15   :  { %v64_v57 = vshrl.u32 %v783_v46, %v63_v45  ;;  %v66_v58 = vshrl.u32 %v784_v48, %v63_v45  ;;  %v69_v59 = vshrl.u32 %v785_v50, %v63_v45  ;;  %v72_v60 = vshrl.u32 %v786_v52, %v63_v45 }
  0x16   :  { %v75_v61 = vshrl.u32 %v787_v54, %v63_v45  ;;  %v78_v63 = vshrl.u32 %v788_v62, %v63_v45  ;;  %vm83_vm4 = vcmp.lt.s32.totalorder %v61_v36, 4  ;;  %v167_v3 = vsub.s32 32, %v889_v41 }
  0x17   :  { %728 = vmatpush3.bf16.msra.mxu0 %v764_v20  ;;  %v67_v0 = vor.u32 %v66_v58, %v65_v47  ;;  %v70_v1 = vor.u32 %v69_v59, %v68_v49  ;;  %v73_v2 = vor.u32 %v72_v60, %v71_v51  ;;  %vm82_vm5 = vcmp.lt.s32.totalorder %v61_v36, 3 }
  0x18   :  { %729 = vmatprep.subr.bf16.mxu0 %v765_v29  ;;  %v76_v12 = vor.u32 %v75_v61, %v74_v53  ;;  %v79_v15 = vor.u32 %v78_v63, %v77_v55  ;;  %v169_v17 = vshll.u32 %v783_v46, %v889_v41  ;;  %v172_v25 = vshll.u32 %v784_v48, %v889_v41 }
  0x19   :  { %v84_v18 = vsel %vm80_vm2, %v64_v57, %v67_v0  ;;  %v85_v19 = vsel %vm83_vm4, %v73_v2, 2102212464  ;;  %v88_v20 = vsel %vm80_vm2, %v67_v0, %v70_v1  ;;  %v92_v21 = vsel %vm80_vm2, %v70_v1, %v73_v2 }
  0x1a   :  { %v86_v22 = vsel %vm82_vm5, %v70_v1, %v85_v19  ;;  %v89_v23 = vsel %vm83_vm4, %v76_v12, 920167782  ;;  %v93_v24 = vsel %vm83_vm4, %v79_v15, 1326507024  ;;  %v168_v28 = vshrl.u32 %v783_v46, %v167_v3 }
  0x1b   :  { %730 = vmatpush3.bf16.msra.mxu0 %v765_v29  ;;  %v90_v26 = vsel %vm82_vm5, %v73_v2, %v89_v23  ;;  %v94_v27 = vsel %vm82_vm5, %v76_v12, %v93_v24  ;;  %v170_v29 = vshrl.u32 %v784_v48, %v167_v3  ;;  %v87_v30 = vsel %vm81_vm3, %v84_v18, %v86_v22 }
  0x1c   :  { %731 = vmatprep.subr.bf16.mxu0 %v766_v40  ;;  %v91_v31 = vsel %vm81_vm3, %v88_v20, %v90_v26  ;;  %v95_v33 = vsel %vm81_vm3, %v92_v21, %v94_v27  ;;  %v173_v34 = vshrl.u32 %v785_v50, %v167_v3  ;;  %v175_v51 = vshll.u32 %v785_v50, %v889_v41 }
  0x1d   :  { %v931_v37 = vmul.u32.u64.low %v884_v38, %v95_v33  ;;  %v932_v39 = vmul.u32.u64.high %v884_v38, %v95_v33, %v931_v37  ;;  %v171_v47 = vor.u32 %v170_v29, %v169_v17  ;;  %v176_v53 = vshrl.u32 %v786_v52, %v167_v3 }
  0x1e   :  { %v174_v49 = vor.u32 %v173_v34, %v172_v25  ;;  %v178_v36 = vshll.u32 %v786_v52, %v889_v41  ;;  %v179_v55 = vshrl.u32 %v787_v54, %v167_v3  ;;  %v181_v57 = vshll.u32 %v787_v54, %v889_v41 }
  0x1f   :  { %732 = vmatpush3.bf16.msra.mxu0 %v766_v40  ;;  %v935_v40 = vmul.u32.u64.low %v884_v38, %v91_v31  ;;  %v936_v45 = vmul.u32.u64.high %v884_v38, %v91_v31, %v935_v40  ;;  %v182_v58 = vshrl.u32 %v788_v62, %v167_v3  ;;  %v103_v59 = vmul.u32 %v884_v38, %v87_v30 }
  0x20   :  { %v177_v60 = vor.u32 %v176_v53, %v175_v51  ;;  %vm184_vm7 = vcmp.lt.s32.totalorder %v904_v56, 1  ;;  %vm185_vm8 = vcmp.lt.s32.totalorder %v904_v56, 2  ;;  %v180_v63 = vor.u32 %v179_v55, %v178_v36 }
  0x21   :  { %vm105_vm9 = vc.u32 %v932_v39, %v935_v40  ;;  %v106_v61 = vadd.s32 1, %v936_v45  ;;  %vm186_vm10 = vcmp.lt.s32.totalorder %v904_v56, 3  ;;  %v183_v0 = vor.u32 %v182_v58, %v181_v57 }
  0x22   :  { %vm187_vm11 = vcmp.lt.s32.totalorder %v904_v56, 4  ;;  %v188_v41 = vsel %vm184_vm7, %v168_v28, %v171_v47  ;;  %v192_v1 = vsel %vm184_vm7, %v171_v47, %v174_v49  ;;  %v196_v12 = vsel %vm184_vm7, %v174_v49, %v177_v60 }
  0x23   :  { %v107_v38 = vsel %vm105_vm9, %v106_v61, %v936_v45  ;;  %v189_v2 = vsel %vm187_vm11, %v177_v60, 2102212464  ;;  %v193_v3 = vsel %vm187_vm11, %v180_v63, 920167782  ;;  %v197_v19 = vsel %vm187_vm11, %v183_v0, 1326507024 }
  0x24   :  { %v108_v15 = vadd.s32 %v107_v38, %v103_v59  ;;  %v190_v17 = vsel %vm186_vm10, %v174_v49, %v189_v2  ;;  %v194_v18 = vsel %vm186_vm10, %v177_v60, %v193_v3  ;;  %v198_v22 = vsel %vm186_vm10, %v180_v63, %v197_v19 }
  0x25   :  { %v191_v20 = vsel %vm185_vm8, %v188_v41, %v190_v17  ;;  %v195_v21 = vsel %vm185_vm8, %v192_v1, %v194_v18  ;;  %v268_v23 = vsel %vm267_vm6, %v897_v44, 0  ;;  %v199_v25 = vsel %vm185_vm8, %v196_v12, %v198_v22 }
  0x26   :  { %v109_v24 = vadd.s32 536870912, %v108_v15  ;;  %v967_v26 = vmul.u32.u64.low %v891_v42, %v195_v21  ;;  %v968_v27 = vmul.u32.u64.high %v891_v42, %v195_v21, %v967_v26  ;;  %v978_v30 = vmul.f32 %v694_v35, %v844_v6 }
  0x27   :  { %v972_v28 = vmul.u32.u64.low %v891_v42, %v199_v25  ;;  %v973_v29 = vmul.u32.u64.high %v891_v42, %v199_v25, %v972_v28  ;;  %v264_v44 = vor.u32 8388608, %v895_v43  ;;  %v270_v33 = vand.u32 31, %v268_v23 }
  0x28   :  { %v110_v31 = vshrl.u32 %v109_v24, 30  ;;  %v207_v56 = vmul.u32 %v891_v42, %v191_v20  ;;  %v210_v37 = vadd.s32 1, %v968_v27  ;;  %v360_v47 = vand.u32 2147483647, %v978_v30 }
  0x29   :  { %v271_v45 = vsub.s32 32, %v270_v33  ;;  %vm209_vm12 = vc.u32 %v973_v29, %v967_v26  ;;  %v363_v49 = vand.u32 2139095040, %v978_v30  ;;  %v991_v51 = vshrl.u32 %v268_v23, 5 }
  0x2a   :  { %v111_v34 = vshll.u32 %v110_v31, 30  ;;  %v211_v43 = vsel %vm209_vm12, %v210_v37, %v968_v27  ;;  %v993_v42 = vshll.u32 %v264_v44, 8  ;;  %v273_v36 = vshll.u32 %v783_v46, %v270_v33 }
  0x2b   :  { %v212_v53 = vadd.s32 %v211_v43, %v207_v56  ;;  %v274_v55 = vshrl.u32 %v784_v48, %v271_v45  ;;  %v276_v57 = vshll.u32 %v784_v48, %v270_v33  ;;  %v277_v59 = vshrl.u32 %v785_v50, %v271_v45 }
  0x2c   :  { %v988_v6 = vsub.s32 %v108_v15, %v111_v34  ;;  %v279_v60 = vshll.u32 %v785_v50, %v270_v33  ;;  %v280_v61 = vshrl.u32 %v786_v52, %v271_v45  ;;  %v104_v63 = vadd.s32 %v935_v40, %v932_v39 }
  0x2d   :  { %v213_v0 = vadd.s32 536870912, %v212_v53  ;;  %v282_v41 = vshll.u32 %v786_v52, %v270_v33  ;;  %v364_v1 = vshrl.u32 %v363_v49, 23  ;;  %v134_v2 = vsub.s32 4, %v110_v31 }
  0x2e   :  { %v114_v58 = vsub.s32 0, %v988_v6  ;;  %v283_v3 = vshrl.u32 %v787_v54, %v271_v45  ;;  %vm291_vm14 = vcmp.lt.s32.totalorder %v991_v51, 4  ;;  %v272_v15 = vshrl.u32 %v783_v46, %v271_v45 }
  0x2f   :  { %v1008_v12 = vshrl.u32 %v213_v0, 30  ;;  %v285_v17 = vshll.u32 %v787_v54, %v270_v33  ;;  %v286_v18 = vshrl.u32 %v788_v62, %v271_v45  ;;  %v275_v19 = vor.u32 %v274_v55, %v273_v36 }
  0x30   :  { %v654_v38 = vmin.u32 %v114_v58, %v988_v6  ;;  %v278_v20 = vor.u32 %v277_v59, %v276_v57  ;;  %v281_v21 = vor.u32 %v280_v61, %v279_v60  ;;  %v284_v23 = vor.u32 %v283_v3, %v282_v41 }
  0x31   :  { %v215_v22 = vshll.u32 %v1008_v12, 30  ;;  %vm288_vm0 = vcmp.lt.s32.totalorder %v991_v51, 1  ;;  %vm290_vm1 = vcmp.lt.s32.totalorder %v991_v51, 3  ;;  %v287_v25 = vor.u32 %v286_v18, %v285_v17 }
  0x32   :  { %v116_v40 = vclz %v654_v38  ;;  %v293_v27 = vsel %vm291_vm14, %v281_v21, 2102212464  ;;  %v665_v14 = vadd.s32 4294967169, %v364_v1  ;;  %v135_v28 = vsel %vm50_vm13, %v134_v2, %v110_v31 }
  0x33   :  { %v1026_v44 = vsub.s32 %v212_v53, %v215_v22  ;;  %vm289_vm2 = vcmp.lt.s32.totalorder %v991_v51, 2  ;;  %v297_v33 = vsel %vm291_vm14, %v284_v23, 920167782  ;;  %v292_v56 = vsel %vm288_vm0, %v272_v15, %v275_v19 }
  0x34   :  { %v655_v24 = vadd.s32 4294967294, %v116_v40  ;;  %v296_v34 = vsel %vm288_vm0, %v275_v19, %v278_v20  ;;  %v298_v37 = vsel %vm290_vm1, %v281_v21, %v297_v33  ;;  %v294_v49 = vsel %vm290_vm1, %v278_v20, %v293_v27 }
  0x35   :  { %v218_v31 = vsub.s32 0, %v1026_v44  ;;  %v300_v43 = vsel %vm288_vm0, %v278_v20, %v281_v21  ;;  %v301_v57 = vsel %vm291_vm14, %v287_v25, 1326507024  ;;  %v299_v59 = vsel %vm289_vm2, %v296_v34, %v298_v37 }
  0x36   :  { %vm656_vm3 = vcmp.lt.s32.totalorder %v655_v24, 0  ;;  %v302_v60 = vsel %vm290_vm1, %v284_v23, %v301_v57  ;;  %v1052_v61 = vand.u32 8388607, %v360_v47  ;;  %v370_v1 = vadd.s32 1, %v665_v14 }
  0x37   :  { %v119_v45 = vsel %vm656_vm3, 0, %v655_v24  ;;  %v658_v58 = vmin.u32 %v218_v31, %v1026_v44  ;;  %v137_v38 = vsel %vm1015_vm15, 0, %v135_v28  ;;  %v295_v3 = vsel %vm289_vm2, %v292_v56, %v294_v49 }
  0x38   :  { %v120_v53 = vsub.s32 32, %v119_v45  ;;  %v121_v36 = vshll.u32 %v988_v6, %v119_v45  ;;  %v124_v55 = vsub.s32 4294967266, %v119_v45  ;;  %v303_v6 = vsel %vm289_vm2, %v300_v43, %v302_v60 }
  0x39   :  { %v220_v2 = vclz %v658_v58  ;;  %v1061_v18 = vmul.u32.u64.low %v993_v42, %v303_v6  ;;  %v1062_v40 = vmul.u32.u64.high %v993_v42, %v303_v6, %v1061_v18  ;;  %vm371_vm4 = vcmp.gt.s32.totalorder %v370_v1, 0 }
  0x3a   :  { %v122_v0 = vshrl.u32 %v104_v63, %v120_v53  ;;  %v125_v41 = vadd.s32 127, %v124_v55  ;;  %v1065_v63 = vmul.u32.u64.low %v993_v42, %v299_v59  ;;  %v1066_v20 = vmul.u32.u64.high %v993_v42, %v299_v59, %v1065_v63 }
  0x3b   :  { %v659_v19 = vadd.s32 4294967294, %v220_v2  ;;  %v368_v23 = vor.u32 8388608, %v1052_v61  ;;  %v372_v24 = vsel %vm371_vm4, %v370_v1, 0  ;;  %v1070_v51 = vadd.s32 3, %v137_v38 }
  0x3c   :  { %v123_v15 = vor.u32 %v122_v0, %v121_v36  ;;  %v126_v17 = vshll.u32 %v125_v41, 23  ;;  %v208_v25 = vadd.s32 %v967_v26, %v973_v29  ;;  %v374_v27 = vand.u32 31, %v372_v24 }
  0x3d   :  { %vm660_vm5 = vcmp.lt.s32.totalorder %v659_v19, 0  ;;  %v311_v33 = vmul.u32 %v993_v42, %v295_v3  ;;  %vm313_vm6 = vc.u32 %v1062_v40, %v1065_v63  ;;  %vm154_vm7 = vcmp.lt.s32.totalorder %v857_v11, 0 }
  0x3e   :  { %v127_v21 = vor.u32 4788187, %v126_v17  ;;  %v130_v22 = vcvt.s32.f32 %v123_v15  ;;  %v223_v28 = vsel %vm660_vm5, 0, %v659_v19  ;;  %v314_v45 = vadd.s32 1, %v1066_v20 }
  0x3f   :  { %v224_v56 = vsub.s32 32, %v223_v28  ;;  %v225_v34 = vshll.u32 %v1026_v44, %v223_v28  ;;  %v228_v37 = vsub.s32 4294967266, %v223_v28  ;;  %v238_v26 = vsub.s32 4, %v1008_v12 }
  0x40   :  { %v128_v14 = vand.u32 2147483647, %v127_v21  ;;  %v1081_v29 = vshrl.u32 %v372_v24, 5  ;;  %v375_v49 = vsub.s32 32, %v374_v27  ;;  %v315_v42 = vsel %vm313_vm6, %v314_v45, %v1066_v20 }
  0x41   :  { %v226_v43 = vshrl.u32 %v208_v25, %v224_v56  ;;  %v229_v53 = vadd.s32 127, %v228_v37  ;;  %v377_v36 = vshll.u32 %v783_v46, %v374_v27  ;;  %v316_v57 = vadd.s32 %v315_v42, %v311_v33 }
  0x42   :  { %v131_v31 = vmul.f32 %v130_v22, %v128_v14  ;;  %v378_v58 = vshrl.u32 %v784_v48, %v375_v49  ;;  %v380_v44 = vshll.u32 %v784_v48, %v374_v27  ;;  %vm1089_vm8 = vcmp.le.f32.partialorder %v152_v16, 0.7853982 }
  0x43   :  { %v227_v60 = vor.u32 %v226_v43, %v225_v34  ;;  %v230_v61 = vshll.u32 %v229_v53, 23  ;;  %v381_v0 = vshrl.u32 %v785_v50, %v375_v49  ;;  %v383_v41 = vshll.u32 %v785_v50, %v374_v27 }
  0x44   :  { %v132_v55 = vxor.u32 2147483648, %v131_v31  ;;  %v317_v1 = vadd.s32 536870912, %v316_v57  ;;  %v384_v38 = vshrl.u32 %v786_v52, %v375_v49  ;;  %v386_v48 = vshll.u32 %v786_v52, %v374_v27 }
  0x45   :  { %v231_v2 = vor.u32 4788187, %v230_v61  ;;  %v234_v3 = vcvt.s32.f32 %v227_v60  ;;  %v379_v15 = vor.u32 %v378_v58, %v377_v36  ;;  %v382_v18 = vor.u32 %v381_v0, %v380_v44 }
  0x46   :  { %v133_v6 = vsel %vm50_vm13, %v132_v55, %v131_v31  ;;  %v1102_v17 = vshrl.u32 %v317_v1, 30  ;;  %v387_v50 = vshrl.u32 %v787_v54, %v375_v49  ;;  %v389_v20 = vshll.u32 %v787_v54, %v374_v27 }
  0x47   :  { %v136_v16 = vsel %vm1015_vm15, %v852_v10, %v133_v6  ;;  %v232_v19 = vand.u32 2147483647, %v231_v2  ;;  %v390_v21 = vshrl.u32 %v788_v62, %v375_v49  ;;  %v239_v52 = vsel %vm154_vm7, %v238_v26, %v1008_v12 }
  0x48   :  { %767 = vcosq.f32 %v136_v16  ;;  %v319_v39 = vshll.u32 %v1102_v17, 30  ;;  %v388_v22 = vor.u32 %v387_v50, %v386_v48  ;;  %vm392_vm9 = vcmp.lt.s32.totalorder %v1081_v29, 1 }
  0x49   :  { %769 = vsinq.f32 %v136_v16  ;;  %v235_v24 = vmul.f32 %v234_v3, %v232_v19  ;;  %v376_v25 = vshrl.u32 %v783_v46, %v375_v49  ;;  %v385_v14 = vor.u32 %v384_v38, %v383_v41 }
  0x4a   :  { %v1113_v28 = vshll.u32 %v368_v23, 8  ;;  %v1115_v33 = vsub.s32 %v316_v57, %v319_v39  ;;  %v391_v54 = vor.u32 %v390_v21, %v389_v20  ;;  %vm394_vm10 = vcmp.lt.s32.totalorder %v1081_v29, 3 }
  0x4b   :  { %vm395_vm11 = vcmp.lt.s32.totalorder %v1081_v29, 4  ;;  %v236_v62 = vxor.u32 2147483648, %v235_v24  ;;  %vm393_vm12 = vcmp.lt.s32.totalorder %v1081_v29, 2  ;;  %v400_v27 = vsel %vm392_vm9, %v379_v15, %v382_v18 }
  0x4c   :  { %v397_v12 = vsel %vm395_vm11, %v385_v14, 2102212464  ;;  %v142_v46 = vand.u32 3, %v1070_v51  ;;  %v241_v23 = vsel %vm1089_vm8, 0, %v239_v52  ;;  %v322_v56 = vsub.s32 0, %v1115_v33 }
  0x4d   :  { %v401_v34 = vsel %vm395_vm11, %v388_v22, 920167782  ;;  %v237_v37 = vsel %vm154_vm7, %v236_v62, %v235_v24  ;;  %v396_v45 = vsel %vm392_vm9, %v376_v25, %v379_v15  ;;  %v398_v31 = vsel %vm394_vm10, %v382_v18, %v397_v12  ;;  %v1176_v12 = vld [vmem:[%s1230_s4] ss:$0 sm:$0xff] }
  0x4e   :  { %v402_v51 = vsel %vm394_vm10, %v385_v14, %v401_v34  ;;  %v240_v26 = vsel %vm1089_vm8, %v857_v11, %v237_v37  ;;  %v662_v49 = vmin.u32 %v322_v56, %v1115_v33  ;;  %v404_v53 = vsel %vm392_vm9, %v382_v18, %v385_v14 }
  0x4f   :  { %v403_v43 = vsel %vm393_vm12, %v400_v27, %v402_v51  ;;  %771 = vcosq.f32 %v240_v26  ;;  %v405_v42 = vsel %vm395_vm11, %v391_v54, 1326507024  ;;  %vm143_vm13 = vcmp.lt.s32.totalorder %v142_v46, 2 }
  0x50   :  { %v1149_v36 = vmul.u32.u64.low %v1113_v28, %v403_v43  ;;  %v1150_v55 = vmul.u32.u64.high %v1113_v28, %v403_v43, %v1149_v36  ;;  %vm147_vm14 = vcmp.eq.s32.totalorder %v142_v46, 2  ;;  %773 = vsinq.f32 %v240_v26 }
  0x51   :  { %v324_v58 = vclz %v662_v49  ;;  %vm144_vm15 = vcmp.eq.s32.totalorder %v142_v46, 0  ;;  %v245_v60 = vadd.s32 3, %v241_v23  ;;  %v406_v61 = vsel %vm394_vm10, %v388_v22, %v405_v42 }
  0x52   :  { %v768_v57 = vpop.eup %767  ;;  %v399_v6 = vsel %vm393_vm12, %v396_v45, %v398_v31  ;;  %v407_v1 = vsel %vm393_vm12, %v404_v53, %v406_v61  ;;  %vm140_vm0 = vweird.f32 %v852_v10  ;;  %v312_v3 = vadd.s32 %v1065_v63, %v1062_v40 }
  0x53   :  { %v770_v44 = vpop.eup %769  ;;  %v148_v59 = vxor.u32 2147483648, %v768_v57  ;;  %v663_v41 = vadd.s32 4294967294, %v324_v58  ;;  %v1161_v48 = vmul.u32.u64.low %v1113_v28, %v407_v1  ;;  %v1162_v16 = vmul.u32.u64.high %v1113_v28, %v407_v1, %v1161_v48 }
  0x54   :  { %v145_v0 = vxor.u32 2147483648, %v770_v44  ;;  %v418_v15 = vadd.s32 1, %v1150_v55  ;;  %v246_v50 = vand.u32 3, %v245_v60  ;;  %v415_v29 = vmul.u32 %v1113_v28, %v399_v6 }
  0x55   :  { %v149_v38 = vsel %vm147_vm14, %v148_v59, %v770_v44  ;;  %vm664_vm1 = vcmp.lt.s32.totalorder %v663_v41, 0  ;;  %vm417_vm2 = vc.u32 %v1162_v16, %v1149_v36  ;;  %vm244_vm6 = vweird.f32 %v857_v11 }
  0x56   :  { %v146_v2 = vsel %vm144_vm15, %v768_v57, %v145_v0  ;;  %v327_v19 = vsel %vm664_vm1, 0, %v663_v41  ;;  %v419_v40 = vsel %vm417_vm2, %v418_v15, %v1150_v55  ;;  %vm248_vm3 = vcmp.eq.s32.totalorder %v246_v50, 0 }
  0x57   :  { %v150_v18 = vsel %vm143_vm13, %v146_v2, %v149_v38  ;;  %v328_v20 = vsub.s32 32, %v327_v19  ;;  %v329_v10 = vshll.u32 %v1115_v33, %v327_v19  ;;  %v332_v21 = vsub.s32 4294967266, %v327_v19 }
  0x58   :  { %v151_v52 = vsel %vm140_vm0, nan, %v150_v18  ;;  %vm251_vm4 = vcmp.eq.s32.totalorder %v246_v50, 2  ;;  %v420_v24 = vadd.s32 %v419_v40, %v415_v29  ;;  %vm247_vm5 = vcmp.lt.s32.totalorder %v246_v50, 2 }
  0x59   :  { %v330_v39 = vshrl.u32 %v312_v3, %v328_v20  ;;  %v333_v22 = vadd.s32 127, %v332_v21  ;;  %v772_v63 = vpop.eup %771  ;;  %v464_v54 = vmul.f32 %v151_v52, %v151_v52  ;;  %vm258_vm7 = vcmp.lt.s32.totalorder %v865_v13, 0 }
  0x5a   :  { %v774_v25 = vpop.eup %773  ;;  %v252_v14 = vxor.u32 2147483648, %v772_v63  ;;  %v421_v27 = vadd.s32 536870912, %v420_v24  ;;  %vm1189_vm8 = vcmp.le.f32.partialorder %v256_v32, 0.7853982  ;;  %v342_v6 = vsub.s32 4, %v1102_v17 }
  0x5b   :  { %v331_v28 = vor.u32 %v330_v39, %v329_v10  ;;  %v334_v62 = vshll.u32 %v333_v22, 23  ;;  %v249_v33 = vxor.u32 2147483648, %v774_v25  ;;  %v475_v31 = vmul.f32 %v1176_v12, %v464_v54 }
  0x5c   :  { %v253_v46 = vsel %vm251_vm4, %v252_v14, %v774_v25  ;;  %v422_v37 = vshrl.u32 %v421_v27, 30  ;;  %v343_v2 = vsel %vm258_vm7, %v342_v6, %v1102_v17  ;;  %vm362_vm10 = vcmp.lt.s32.totalorder %v978_v30, 0 }
  0x5d   :  { %v335_v23 = vor.u32 4788187, %v334_v62  ;;  %v338_v56 = vcvt.s32.f32 %v331_v28  ;;  %v250_v34 = vsel %vm248_vm3, %v772_v63, %v249_v33  ;;  %v479_v11 = vadd.f32 %v689_v7, %v475_v31 }
  0x5e   :  { %v254_v45 = vsel %vm247_vm5, %v250_v34, %v253_v46  ;;  %v423_v49 = vshll.u32 %v422_v37, 30  ;;  %v345_v18 = vsel %vm1189_vm8, 0, %v343_v2  ;;  %v446_v10 = vsub.s32 4, %v422_v37 }
  0x5f   :  { %v336_v51 = vand.u32 2147483647, %v335_v23  ;;  %v255_v26 = vsel %vm244_vm6, nan, %v254_v45  ;;  %vm361_vm11 = vcmp.le.f32.partialorder %v360_v47, 0.7853982  ;;  %vm348_vm15 = vweird.f32 %v865_v13 }
  0x60   :  { %v465_v43 = vmul.f32 %v255_v26, %v255_v26  ;;  %v424_v42 = vsub.s32 %v420_v24, %v423_v49  ;;  %v447_v40 = vsel %vm362_vm10, %v446_v10, %v422_v37  ;;  %vm452_vm3 = vweird.f32 %v978_v30 }
  0x61   :  { %v339_v53 = vmul.f32 %v338_v56, %v336_v51  ;;  %v449_v54 = vsel %vm361_vm11, 0, %v447_v40 }
  0x62   :  { %v476_v55 = vmul.f32 %v1176_v12, %v465_v43  ;;  %v426_v58 = vsub.s32 0, %v424_v42  ;;  %v453_v33 = vadd.s32 3, %v449_v54 }
  0x63   :  { %v340_v57 = vxor.u32 2147483648, %v339_v53 }
  0x64   :  { %v480_v44 = vadd.f32 %v690_v8, %v476_v55  ;;  %v666_v59 = vmin.u32 %v426_v58, %v424_v42  ;;  %v416_v8 = vadd.s32 %v1149_v36, %v1162_v16  ;;  %v349_v16 = vadd.s32 3, %v345_v18 }
  0x65   :  { %v341_v0 = vsel %vm258_vm7, %v340_v57, %v339_v53  ;;  %v454_v47 = vand.u32 3, %v453_v33 }
  0x66   :  { %v483_v60 = vpack.c.bf16 %v480_v44, %v479_v11  ;;  %v428_v41 = vclz %v666_v59  ;;  %v344_v4 = vsel %vm1189_vm8, %v865_v13, %v341_v0  ;;  %v350_v22 = vand.u32 3, %v349_v16 }
  0x67   :  { %775 = vcosq.f32 %v344_v4  ;;  %vm459_vm0 = vcmp.eq.s32.totalorder %v454_v47, 2  ;;  %vm456_vm1 = vcmp.eq.s32.totalorder %v454_v47, 0  ;;  %vm455_vm2 = vcmp.lt.s32.totalorder %v454_v47, 2 }
  0x68   :  { %733 = vmatprep.mubr.bf16.mxu0 %v483_v60  ;;  %v667_v7 = vadd.s32 4294967294, %v428_v41  ;;  %777 = vsinq.f32 %v344_v4  ;;  %vm352_vm12 = vcmp.eq.s32.totalorder %v350_v22, 0  ;;  %vm355_vm13 = vcmp.eq.s32.totalorder %v350_v22, 2 }
  0x69   :  { %vm351_vm14 = vcmp.lt.s32.totalorder %v350_v22, 2 }
  0x6a   :  { %vm668_vm9 = vcmp.lt.s32.totalorder %v667_v7, 0 }
  0x6b   :  { %v431_v32 = vsel %vm668_vm9, 0, %v667_v7 }
  0x6c   :  { %v432_v1 = vsub.s32 32, %v431_v32  ;;  %v433_v38 = vshll.u32 %v424_v42, %v431_v32  ;;  %v436_v48 = vsub.s32 4294967266, %v431_v32 }
  0x6e   :  { %v434_v3 = vshrl.u32 %v416_v8, %v432_v1  ;;  %v437_v15 = vadd.s32 127, %v436_v48 }
  0x70   :  { %v435_v50 = vor.u32 %v434_v3, %v433_v38  ;;  %v438_v19 = vshll.u32 %v437_v15, 23 }
  0x71   :  { %v776_v21 = vpop.eup %775 }
  0x72   :  { %v439_v29 = vor.u32 4788187, %v438_v19  ;;  %v442_v36 = vcvt.s32.f32 %v435_v50  ;;  %v778_v39 = vpop.eup %777  ;;  %v356_v24 = vxor.u32 2147483648, %v776_v21 }
  0x73   :  { %v353_v63 = vxor.u32 2147483648, %v778_v39 }
  0x74   :  { %v440_v20 = vand.u32 2147483647, %v439_v29  ;;  %v357_v62 = vsel %vm355_vm13, %v356_v24, %v778_v39 }
  0x75   :  { %v354_v28 = vsel %vm352_vm12, %v776_v21, %v353_v63 }
  0x76   :  { %v443_v52 = vmul.f32 %v442_v36, %v440_v20  ;;  %v358_v27 = vsel %vm351_vm14, %v354_v28, %v357_v62 }
  0x77   :  { %v359_v46 = vsel %vm348_vm15, nan, %v358_v27 }
  0x78   :  { %v444_v17 = vxor.u32 2147483648, %v443_v52  ;;  %v466_v37 = vmul.f32 %v359_v46, %v359_v46 }
  0x7a   :  { %v445_v25 = vsel %vm362_vm10, %v444_v17, %v443_v52  ;;  %v477_v49 = vmul.f32 %v1176_v12, %v466_v37 }
  0x7b   :  { %v448_v14 = vsel %vm361_vm11, %v978_v30, %v445_v25  ;;  %v678_v30 = vld [vmem:[%s1231_s2] ss:$0 sm:$0xff] }
  0x7c   :  { %779 = vcosq.f32 %v448_v14  ;;  %v481_v42 = vadd.f32 %v693_v9, %v477_v49 }
  0x7d   :  { %781 = vsinq.f32 %v448_v14 }
  0x86   :  { %v780_v23 = vpop.eup %779 }
  0x87   :  { %v782_v56 = vpop.eup %781  ;;  %v460_v34 = vxor.u32 2147483648, %v780_v23 }
  0x88   :  { %v457_v45 = vxor.u32 2147483648, %v782_v56 }
  0x89   :  { %v461_v31 = vsel %vm459_vm0, %v460_v34, %v782_v56 }
  0x8a   :  { %v458_v51 = vsel %vm456_vm1, %v780_v23, %v457_v45 }
  0x8b   :  { %v462_v26 = vsel %vm455_vm2, %v458_v51, %v461_v31 }
  0x8c   :  { %v463_v43 = vsel %vm452_vm3, nan, %v462_v26 }
  0x8d   :  { %v467_v13 = vmul.f32 %v463_v43, %v463_v43 }
  0x8f   :  { %v478_v53 = vmul.f32 %v1176_v12, %v467_v13 }
  0x91   :  { %v482_v55 = vadd.f32 %v694_v35, %v478_v53 }
  0x93   :  { %v484_v11 = vpack.c.bf16 %v482_v55, %v481_v42 }
  0x95   :  { %734 = vmatmul.mubr.bf16.vlgmr.msra.gmra.mrb[0].mxu0 %v484_v11 }
 0x168   :  { %v735_v57 = vpop.f32.mrb[0].mxu0 }
 0x169   :  { %v587_v58 = vpop.f32.mrb[1].mxu0  ;;  %v626_v59 = vadd.f32 %v735_v57, %v678_v30 }
 0x16a   :  { %v736_v44 = vpop.f32.mrb[2].mxu0  ;;  %v624_v0 = vadd.f32 %v678_v30, %v587_v58 }
 0x16b   :  { %v627_v60 = vadd.f32 %v736_v44, %v678_v30  ;;  %v590_v61 = vpop.f32.mrb[3].mxu0 }
 0x16c   :  { %v625_v12 = vadd.f32 %v678_v30, %v590_v61 }
 0x16d   :  { %v703_v41 = vpack.c.bf16 %v627_v60, %v626_v59 }
 0x16e   :  { %v698_v7 = vpack.c.bf16 %v625_v12, %v624_v0 }
 0x16f   :  { %706 = vst [vmem:[%s1232_s5 + $0x8] sm:$0xff] %v703_v41  }
 0x170   :  { %699 = vst [vmem:[%s1232_s5] sm:$0xff] %v698_v7  }

</bundles_post_ra>
